<compile_context>
chip_gen: v7x
topology: tpu7x:2x2x1
jax: 0.10.0
libtpu: 0.0.40
codegen_flags: <defaults>
</compile_context>

<pallas_src>
import functools
import math

import numpy as np
import jax
import jax.numpy as jnp
from jax.experimental import pallas as pl
from jax.experimental.pallas import tpu as pltpu

_PAD = 2            # max conv halo (5x5 -> pad 2); the 3x3 convs reuse the buffer
_K5, _K3 = 5, 3


# ----------------------------------------------------------------------------
# Fused kernel: whole _SpatialResConvBlock for one image per grid step.
# ----------------------------------------------------------------------------
def _block_kernel(seg_ref, x_ref,
                  sp1_w_ref, sp1_b_ref, gb1_w_ref, gb1_b_ref, c1_w_ref, c1_b_ref,
                  sp2_w_ref, sp2_b_ref, gb2_w_ref, gb2_b_ref, c2_w_ref, c2_b_ref,
                  o_ref, halo_ref, segp_ref, *, H, W, C, S, mxu_dtype):
    HW = H * W
    f32 = jnp.float32
    cmax = halo_ref.shape[0]

    # ---- hoisted per-step constants: pixel-x coordinate + horizontal masks --
    pid = jax.lax.broadcasted_iota(jnp.int32, (1, HW), 1)
    px = (pid & (W - 1)) if (W & (W - 1)) == 0 else (pid % W)

    def _xmask(dx, dtype):
        m = (px < W - dx) if dx > 0 else (px >= -dx)
        return m.astype(dtype)

    xm_acc = {dx: _xmask(dx, f32) for dx in (-2, -1, 1, 2)}        # conv accum
    xm_pat = {dx: _xmask(dx, mxu_dtype) for dx in (-2, -1, 1, 2)}  # patch build

    # ---- zero the top/bottom halo bands of the staging buffer ---------------
    # Done unconditionally every grid step (cheap) so steps stay independent
    # and the batch axis can be marked "parallel" for megacore / v7x 2-TC.
    zeros_band = jnp.zeros((cmax, _PAD * W), mxu_dtype)
    halo_ref[:, 0:_PAD * W] = zeros_band
    halo_ref[:, _PAD * W + HW:2 * _PAD * W + HW] = zeros_band

    def stage(v):
        """Copy (Cin, HW) into the zero-halo staging buffer (dy taps -> slices)."""
        cin = v.shape[0]
        halo_ref[0:cin, _PAD * W:_PAD * W + HW] = v.astype(mxu_dtype)
        return cin

    # ---- seg im2col patches, built once, reused by BOTH spatial blocks ------
    stage(seg_ref[0])                                   # rows 0:S
    for ky in range(_K5):
        row = halo_ref[0:S, ky * W:ky * W + HW]         # dy = ky-2 via halo rows
        for kx in range(_K5):
            dx = kx - _PAD
            v = row
            if dx != 0:
                v = pltpu.roll(v, (-dx) % HW, axis=1) * xm_pat[dx]
            t = ky * _K5 + kx
            segp_ref[t * S:(t + 1) * S, :] = v

    def conv_same(v, w_ref, b_ref, K):
        """'SAME' KxK conv of v:(Cin, HW) -> (Cout, HW) f32.

        w_ref is (K, K*Cout, Cin): one fused MXU matmul per conv-kernel row
        (dy handled by the zero-halo slice); the K dx column-groups of the
        (K*Cout, HW) result get a small lane roll + precomputed px-mask
        multiply and are accumulated in f32 (nothing big between dot & add).
        """
        pad = K // 2
        cin = stage(v)
        cout = b_ref.shape[0]
        acc = b_ref[...].astype(f32)                    # (Cout,1) broadcasts
        for ky in range(K):
            off = (_PAD + ky - pad) * W
            xin = halo_ref[0:cin, off:off + HW]         # (Cin, HW), zero OOB rows
            yrow = jnp.dot(w_ref[ky], xin, preferred_element_type=f32)
            for j in range(K):
                dx = j - pad
                y = yrow[j * cout:(j + 1) * cout, :]
                if dx != 0:
                    y = pltpu.roll(y, (-dx) % HW, axis=1) * xm_acc[dx]
                acc = acc + y
        return acc

    def instance_norm(v, eps=1e-5):
        # Single pass (sum & sum-of-squares), unbiased variance: matches
        # torch.var(dim=(2,3)) default (ddof=1) used by _param_free_norm.
        s1 = jnp.sum(v, axis=1, keepdims=True)
        s2 = jnp.sum(v * v, axis=1, keepdims=True)
        mean = s1 * (1.0 / HW)
        var = (s2 - s1 * mean) * (1.0 / (HW - 1))
        return (v - mean) * jax.lax.rsqrt(var + eps)

    def leaky(v, s=0.2):
        return jnp.where(v >= 0.0, v, s * v)

    def spatial_modulate(v, sp_w_ref, sp_b_ref, gb_w_ref, gb_b_ref):
        # hidden = relu(conv5x5(seg)): ONE im2col matmul over the 25*S taps.
        h = jnp.dot(sp_w_ref[...], segp_ref[...],
                    preferred_element_type=f32) + sp_b_ref[...].astype(f32)
        h = jnp.maximum(h, 0.0)                         # (hidden, HW)
        gb = conv_same(h, gb_w_ref, gb_b_ref, _K5)      # (2C, HW): [gamma; beta]
        return instance_norm(v) * (1.0 + gb[:C]) + gb[C:]

    x = x_ref[0].astype(f32)                            # (C, HW)
    out = leaky(spatial_modulate(x, sp1_w_ref, sp1_b_ref, gb1_w_ref, gb1_b_ref))
    out = conv_same(out, c1_w_ref, c1_b_ref, _K3)
    out = leaky(spatial_modulate(out, sp2_w_ref, sp2_b_ref, gb2_w_ref, gb2_b_ref))
    out = conv_same(out, c2_w_ref, c2_b_ref, _K3) + x
    o_ref[0] = out.astype(o_ref.dtype)


# ----------------------------------------------------------------------------
# Wrapper: weight layout plumbing done once outside, one pallas_call per block.
# ----------------------------------------------------------------------------
def _const_spec(a):
    return pl.BlockSpec(a.shape, lambda n, _nd=a.ndim: (0,) * _nd)


def spatial_res_conv_block(segment_map, x, p, *, mxu_dtype=jnp.bfloat16):
    """segment_map: (N, S, H, W); x: (N, C, H, W); returns (N, C, H, W)."""
    N, S, H, W = segment_map.shape
    C = x.shape[1]
    HW = H * W
    hidden = p["sp1_w"].shape[-1]
    cmax = max(hidden, C, S)

    seg_flat = segment_map.reshape(N, S, HW).astype(mxu_dtype)   # raw seg, no im2col
    x_flat = x.reshape(N, C, HW)

    def prep_sp(w, b):     # HWIO (5,5,S,hidden) -> (hidden, 25*S), (hidden, 1)
        wt = jnp.transpose(w, (3, 0, 1, 2)).reshape(hidden, _K5 * _K5 * S)
        return wt.astype(mxu_dtype), b.reshape(hidden, 1)

    def prep_gb(gw, gbias, bw, bbias):   # -> (5, 5*2C, hidden), (2C, 1)
        gt = jnp.transpose(gw, (0, 1, 3, 2))            # (5,5,C,hidden)
        bt = jnp.transpose(bw, (0, 1, 3, 2))
        w = jnp.concatenate([gt, bt], axis=2)           # (5,5,2C,hidden)
        w = w.reshape(_K5, _K5 * 2 * C, hidden).astype(mxu_dtype)
        return w, jnp.concatenate([gbias, bbias]).reshape(2 * C, 1)

    def prep_c(w, b):      # HWIO (3,3,C,C) -> (3, 3*C, C), (C, 1)
        wt = jnp.transpose(w, (0, 1, 3, 2)).reshape(_K3, _K3 * C, C)
        return wt.astype(mxu_dtype), b.reshape(C, 1)

    weights = [*prep_sp(p["sp1_w"], p["sp1_b"]),
               *prep_gb(p["g1_w"], p["g1_b"], p["bt1_w"], p["bt1_b"]),
               *prep_c(p["c1_w"], p["c1_b"]),
               *prep_sp(p["sp2_w"], p["sp2_b"]),
               *prep_gb(p["g2_w"], p["g2_b"], p["bt2_w"], p["bt2_b"]),
               *prep_c(p["c2_w"], p["c2_b"])]

    # VMEM budget from the actual footprint, clamped to ~80% of chip capacity
    # (raises the 32 MiB scoped default on v5e/v6e, stays inside v7x's 64 MiB).
    mxu_bytes = np.dtype(mxu_dtype).itemsize
    scratch_b = (cmax * (H + 2 * _PAD) * W + _K5 * _K5 * S * HW) * mxu_bytes
    io_b = 2 * (S * HW * mxu_bytes + 2 * C * HW * 4)            # 2x buffered I/O
    w_b = 2 * sum(int(w.size) * w.dtype.itemsize for w in weights)
    live_b = (6 * hidden + 16 * C) * HW * 4                      # live f32 temps
    try:
        cap = int(pltpu.get_tpu_info().vmem_capacity_bytes)
    except Exception:                                            # assume v7x (64 MiB)
        cap = 64 * 1024 * 1024
    vmem_limit = int(min(max(scratch_b + io_b + w_b + live_b + (8 << 20),
                             32 * 1024 * 1024), 0.8 * cap))

    # TODO(synk): for large images add an H-tile grid axis (two-pass /
    #             grid-carried instance norm) and batch several images per
    #             grid step when HW is tiny; whole-image blocks are fine here.
    out_flat = pl.pallas_call(
        functools.partial(_block_kernel, H=H, W=W, C=C, S=S, mxu_dtype=mxu_dtype),
        out_shape=jax.ShapeDtypeStruct((N, C, HW), x.dtype),
        grid=(N,),
        in_specs=[pl.BlockSpec((1, S, HW), lambda n: (n, 0, 0)),
                  pl.BlockSpec((1, C, HW), lambda n: (n, 0, 0))]
                 + [_const_spec(w) for w in weights],
        out_specs=pl.BlockSpec((1, C, HW), lambda n: (n, 0, 0)),
        scratch_shapes=[pltpu.VMEM((cmax, (H + 2 * _PAD) * W), mxu_dtype),
                        pltpu.VMEM((_K5 * _K5 * S, HW), mxu_dtype)],
        compiler_params=pltpu.CompilerParams(
            dimension_semantics=("parallel",),        # v7x: both TCs over N
            vmem_limit_bytes=vmem_limit),
    )(seg_flat, x_flat, *weights)
    return out_flat.reshape(N, C, H, W)


# ----------------------------------------------------------------------------
# Parameter init (deterministic, torch-Conv2d-style uniform bounds, HWIO)
# ----------------------------------------------------------------------------
def _conv_init(key, K, cin, cout):
    kw, kb = jax.random.split(key)
    bound = 1.0 / math.sqrt(cin * K * K)
    w = jax.random.uniform(kw, (K, K, cin, cout), jnp.float32, -bound, bound)
    b = jax.random.uniform(kb, (cout,), jnp.float32, -bound, bound)
    return w, b


def init_block_params(key, num_spatial_layers, channels, hidden=128):
    keys = jax.random.split(key, 8)
    p = {}
    p["sp1_w"], p["sp1_b"] = _conv_init(keys[0], 5, num_spatial_layers, hidden)
    p["g1_w"], p["g1_b"] = _conv_init(keys[1], 5, hidden, channels)
    p["bt1_w"], p["bt1_b"] = _conv_init(keys[2], 5, hidden, channels)
    p["c1_w"], p["c1_b"] = _conv_init(keys[3], 3, channels, channels)
    p["sp2_w"], p["sp2_b"] = _conv_init(keys[4], 5, num_spatial_layers, hidden)
    p["g2_w"], p["g2_b"] = _conv_init(keys[5], 5, hidden, channels)
    p["bt2_w"], p["bt2_b"] = _conv_init(keys[6], 5, hidden, channels)
    p["c2_w"], p["c2_b"] = _conv_init(keys[7], 3, channels, channels)
    return p


# ----------------------------------------------------------------------------
# Pure-JAX reference (NCHW) for a sanity check
# ----------------------------------------------------------------------------
def _conv_ref(x, w, b):
    y = jax.lax.conv_general_dilated(
        x, w, window_strides=(1, 1), padding="SAME",
        dimension_numbers=("NCHW", "HWIO", "NCHW"))
    return y + b.reshape(1, -1, 1, 1)


def _norm_ref(x, eps=1e-5):
    mean = jnp.mean(x, axis=(2, 3), keepdims=True)
    var = jnp.var(x, axis=(2, 3), ddof=1, keepdims=True)   # unbiased, like torch.var
    return (x - mean) / jnp.sqrt(var + eps)


def _lrelu(x, s=0.2):
    return jnp.where(x >= 0.0, x, s * x)


def _block_ref(seg, x, p):
    def spatial(xin, sw, sb, gw, gb, bw, bb):
        h = jnp.maximum(_conv_ref(seg, sw, sb), 0.0)
        return _norm_ref(xin) * (1.0 + _conv_ref(h, gw, gb)) + _conv_ref(h, bw, bb)

    out = spatial(x, p["sp1_w"], p["sp1_b"], p["g1_w"], p["g1_b"], p["bt1_w"], p["bt1_b"])
    out = _conv_ref(_lrelu(out), p["c1_w"], p["c1_b"])
    out = spatial(out, p["sp2_w"], p["sp2_b"], p["g2_w"], p["g2_b"], p["bt2_w"], p["bt2_b"])
    out = _conv_ref(_lrelu(out), p["c2_w"], p["c2_b"])
    return out + x


# ----------------------------------------------------------------------------
if __name__ == "__main__":
    N, H, W = 2, 16, 16
    num_spatial_layers = 2
    channels = 4

    key = jax.random.PRNGKey(0)
    k_seg, k_x, k_p = jax.random.split(key, 3)
    segment_map = jax.random.normal(k_seg, (N, num_spatial_layers, H, W), jnp.float32)
    x = jax.random.normal(k_x, (N, channels, H, W), jnp.float32)
    params = init_block_params(k_p, num_spatial_layers, channels)

    ref = jax.block_until_ready(_block_ref(segment_map, x, params))

    # 1) Structural check: f32 MXU operands, tight tolerance vs JAX reference.
    block_f32 = jax.jit(functools.partial(spatial_res_conv_block, mxu_dtype=jnp.float32))
    out_f32 = jax.block_until_ready(block_f32(segment_map, x, params))
    assert out_f32.shape == (N, channels, H, W)
    assert jnp.allclose(out_f32, ref, atol=1e-3, rtol=1e-3), "f32 kernel mismatch"

    # 2) Default perf path: bf16 MXU operands, f32 accumulation (looser check).
    block_bf16 = jax.jit(spatial_res_conv_block)
    out_bf16 = jax.block_until_ready(block_bf16(segment_map, x, params))
    assert jnp.allclose(out_bf16, ref, atol=1e-1, rtol=1e-1), "bf16 kernel mismatch"

    print("KERNEL_OK")
</pallas_src>

<mosaic_0001>
module attributes {stable_mosaic.version = 11 : i64} {
  func.func @_block_kernel(%arg0: i32, %arg1: memref<1x2x256xf32, #tpu.memory_space<vmem>>, %arg2: memref<1x4x256xf32, #tpu.memory_space<vmem>>, %arg3: memref<128x50xf32, #tpu.memory_space<vmem>>, %arg4: memref<128x1xf32, #tpu.memory_space<vmem>>, %arg5: memref<5x40x128xf32, #tpu.memory_space<vmem>>, %arg6: memref<8x1xf32, #tpu.memory_space<vmem>>, %arg7: memref<3x12x4xf32, #tpu.memory_space<vmem>>, %arg8: memref<4x1xf32, #tpu.memory_space<vmem>>, %arg9: memref<128x50xf32, #tpu.memory_space<vmem>>, %arg10: memref<128x1xf32, #tpu.memory_space<vmem>>, %arg11: memref<5x40x128xf32, #tpu.memory_space<vmem>>, %arg12: memref<8x1xf32, #tpu.memory_space<vmem>>, %arg13: memref<3x12x4xf32, #tpu.memory_space<vmem>>, %arg14: memref<4x1xf32, #tpu.memory_space<vmem>>, %arg15: memref<1x4x256xf32, #tpu.memory_space<vmem>>, %arg16: memref<128x320xf32, #tpu.memory_space<vmem>>, %arg17: memref<50x256xf32, #tpu.memory_space<vmem>>) attributes {dimension_semantics = [#tpu.dimension_semantics<parallel>], iteration_bounds = array<i64: 2>, scalar_prefetch = 0 : i64, scratch_operands = 2 : i64, tpu.core_type = #tpu.core_type<tc>, window_params = [{transform_indices = @transform_0, window_bounds = array<i64: 1, 2, 256>}, {transform_indices = @transform_1, window_bounds = array<i64: 1, 4, 256>}, {pipeline_mode = #tpu.pipeline_mode<synchronous>, transform_indices = @transform_2, window_bounds = array<i64: 128, 50>}, {pipeline_mode = #tpu.pipeline_mode<synchronous>, transform_indices = @transform_3, window_bounds = array<i64: 128, 1>}, {pipeline_mode = #tpu.pipeline_mode<synchronous>, transform_indices = @transform_4, window_bounds = array<i64: 5, 40, 128>}, {pipeline_mode = #tpu.pipeline_mode<synchronous>, transform_indices = @transform_5, window_bounds = array<i64: 8, 1>}, {pipeline_mode = #tpu.pipeline_mode<synchronous>, transform_indices = @transform_6, window_bounds = array<i64: 3, 12, 4>}, {pipeline_mode = #tpu.pipeline_mode<synchronous>, transform_indices = @transform_7, window_bounds = array<i64: 4, 1>}, {pipeline_mode = #tpu.pipeline_mode<synchronous>, transform_indices = @transform_8, window_bounds = array<i64: 128, 50>}, {pipeline_mode = #tpu.pipeline_mode<synchronous>, transform_indices = @transform_9, window_bounds = array<i64: 128, 1>}, {pipeline_mode = #tpu.pipeline_mode<synchronous>, transform_indices = @transform_10, window_bounds = array<i64: 5, 40, 128>}, {pipeline_mode = #tpu.pipeline_mode<synchronous>, transform_indices = @transform_11, window_bounds = array<i64: 8, 1>}, {pipeline_mode = #tpu.pipeline_mode<synchronous>, transform_indices = @transform_12, window_bounds = array<i64: 3, 12, 4>}, {pipeline_mode = #tpu.pipeline_mode<synchronous>, transform_indices = @transform_13, window_bounds = array<i64: 4, 1>}, {transform_indices = @transform_14, window_bounds = array<i64: 1, 4, 256>}]} {
    %0 = tpu.iota {dimensions = array<i32: 1>} : vector<1x256xi32>
    %c15_i32 = arith.constant 15 : i32
    %1 = vector.broadcast %c15_i32 : i32 to vector<1x256xi32>
    %2 = arith.andi %0, %1 : vector<1x256xi32>
    %c2_i32 = arith.constant 2 : i32
    %3 = vector.broadcast %c2_i32 : i32 to vector<1x256xi32>
    %4 = arith.cmpi sge, %2, %3 : vector<1x256xi32>
    %5 = arith.extui %4 : vector<1x256xi1> to vector<1x256xi32>
    %6 = arith.sitofp %5 : vector<1x256xi32> to vector<1x256xf32>
    %c1_i32 = arith.constant 1 : i32
    %7 = vector.broadcast %c1_i32 : i32 to vector<1x256xi32>
    %8 = arith.cmpi sge, %2, %7 : vector<1x256xi32>
    %9 = arith.extui %8 : vector<1x256xi1> to vector<1x256xi32>
    %10 = arith.sitofp %9 : vector<1x256xi32> to vector<1x256xf32>
    %c15_i32_0 = arith.constant 15 : i32
    %11 = vector.broadcast %c15_i32_0 : i32 to vector<1x256xi32>
    %12 = arith.cmpi slt, %2, %11 : vector<1x256xi32>
    %13 = arith.extui %12 : vector<1x256xi1> to vector<1x256xi32>
    %14 = arith.sitofp %13 : vector<1x256xi32> to vector<1x256xf32>
    %c14_i32 = arith.constant 14 : i32
    %15 = vector.broadcast %c14_i32 : i32 to vector<1x256xi32>
    %16 = arith.cmpi slt, %2, %15 : vector<1x256xi32>
    %17 = arith.extui %16 : vector<1x256xi1> to vector<1x256xi32>
    %18 = arith.sitofp %17 : vector<1x256xi32> to vector<1x256xf32>
    %c2_i32_1 = arith.constant 2 : i32
    %19 = vector.broadcast %c2_i32_1 : i32 to vector<1x256xi32>
    %20 = arith.cmpi sge, %2, %19 : vector<1x256xi32>
    %21 = arith.extui %20 : vector<1x256xi1> to vector<1x256xi32>
    %22 = arith.sitofp %21 : vector<1x256xi32> to vector<1x256xf32>
    %c1_i32_2 = arith.constant 1 : i32
    %23 = vector.broadcast %c1_i32_2 : i32 to vector<1x256xi32>
    %24 = arith.cmpi sge, %2, %23 : vector<1x256xi32>
    %25 = arith.extui %24 : vector<1x256xi1> to vector<1x256xi32>
    %26 = arith.sitofp %25 : vector<1x256xi32> to vector<1x256xf32>
    %c15_i32_3 = arith.constant 15 : i32
    %27 = vector.broadcast %c15_i32_3 : i32 to vector<1x256xi32>
    %28 = arith.cmpi slt, %2, %27 : vector<1x256xi32>
    %29 = arith.extui %28 : vector<1x256xi1> to vector<1x256xi32>
    %30 = arith.sitofp %29 : vector<1x256xi32> to vector<1x256xf32>
    %c14_i32_4 = arith.constant 14 : i32
    %31 = vector.broadcast %c14_i32_4 : i32 to vector<1x256xi32>
    %32 = arith.cmpi slt, %2, %31 : vector<1x256xi32>
    %33 = arith.extui %32 : vector<1x256xi1> to vector<1x256xi32>
    %34 = arith.sitofp %33 : vector<1x256xi32> to vector<1x256xf32>
    %cst = arith.constant 0.000000e+00 : f32
    %35 = vector.broadcast %cst : f32 to vector<128x32xf32>
    %c0 = arith.constant 0 : index
    %c0_5 = arith.constant 0 : index
    %36 = vector.load %arg16[%c0, %c0_5] : memref<128x320xf32, #tpu.memory_space<vmem>>, vector<128x32xf32>
    tpu.vector_store %arg16[%c0, %c0_5], %35 {strides = array<i32>} : memref<128x320xf32, #tpu.memory_space<vmem>>, vector<128x32xf32>,
    %c0_6 = arith.constant 0 : index
    %c288 = arith.constant 288 : index
    %37 = vector.load %arg16[%c0_6, %c288] : memref<128x320xf32, #tpu.memory_space<vmem>>, vector<128x32xf32>
    tpu.vector_store %arg16[%c0_6, %c288], %35 {strides = array<i32>} : memref<128x320xf32, #tpu.memory_space<vmem>>, vector<128x32xf32>,
    %c0_7 = arith.constant 0 : index
    %c0_8 = arith.constant 0 : index
    %c0_9 = arith.constant 0 : index
    %38 = vector.load %arg1[%c0_7, %c0_8, %c0_9] : memref<1x2x256xf32, #tpu.memory_space<vmem>>, vector<1x2x256xf32>
    %39 = vector.shape_cast %38 : vector<1x2x256xf32> to vector<2x256xf32>
    %c0_10 = arith.constant 0 : index
    %c32 = arith.constant 32 : index
    %40 = vector.load %arg16[%c0_10, %c32] : memref<128x320xf32, #tpu.memory_space<vmem>>, vector<2x256xf32>
    tpu.vector_store %arg16[%c0_10, %c32], %39 {strides = array<i32>} : memref<128x320xf32, #tpu.memory_space<vmem>>, vector<2x256xf32>,
    %c0_11 = arith.constant 0 : index
    %c0_12 = arith.constant 0 : index
    %41 = vector.load %arg16[%c0_11, %c0_12] : memref<128x320xf32, #tpu.memory_space<vmem>>, vector<2x256xf32>
    %c2_i32_13 = arith.constant 2 : i32
    %42 = tpu.dynamic_rotate %41 by %c2_i32_13 dim 1 : vector<2x256xf32>, i32 -> vector<2x256xf32>
    %43 = vector.broadcast %22 : vector<1x256xf32> to vector<2x256xf32>
    %44 = arith.mulf %42, %43 : vector<2x256xf32>
    %c0_14 = arith.constant 0 : index
    %c0_15 = arith.constant 0 : index
    %45 = vector.load %arg17[%c0_14, %c0_15] : memref<50x256xf32, #tpu.memory_space<vmem>>, vector<2x256xf32>
    tpu.vector_store %arg17[%c0_14, %c0_15], %44 {strides = array<i32>} : memref<50x256xf32, #tpu.memory_space<vmem>>, vector<2x256xf32>,
    %c1_i32_16 = arith.constant 1 : i32
    %46 = tpu.dynamic_rotate %41 by %c1_i32_16 dim 1 : vector<2x256xf32>, i32 -> vector<2x256xf32>
    %47 = vector.broadcast %26 : vector<1x256xf32> to vector<2x256xf32>
    %48 = arith.mulf %46, %47 : vector<2x256xf32>
    %c2 = arith.constant 2 : index
    %c0_17 = arith.constant 0 : index
    %49 = vector.load %arg17[%c2, %c0_17] : memref<50x256xf32, #tpu.memory_space<vmem>>, vector<2x256xf32>
    tpu.vector_store %arg17[%c2, %c0_17], %48 {strides = array<i32>} : memref<50x256xf32, #tpu.memory_space<vmem>>, vector<2x256xf32>,
    %c4 = arith.constant 4 : index
    %c0_18 = arith.constant 0 : index
    %50 = vector.load %arg17[%c4, %c0_18] : memref<50x256xf32, #tpu.memory_space<vmem>>, vector<2x256xf32>
    tpu.vector_store %arg17[%c4, %c0_18], %41 {strides = array<i32>} : memref<50x256xf32, #tpu.memory_space<vmem>>, vector<2x256xf32>,
    %c255_i32 = arith.constant 255 : i32
    %51 = tpu.dynamic_rotate %41 by %c255_i32 dim 1 : vector<2x256xf32>, i32 -> vector<2x256xf32>
    %52 = vector.broadcast %30 : vector<1x256xf32> to vector<2x256xf32>
    %53 = arith.mulf %51, %52 : vector<2x256xf32>
    %c6 = arith.constant 6 : index
    %c0_19 = arith.constant 0 : index
    %54 = vector.load %arg17[%c6, %c0_19] : memref<50x256xf32, #tpu.memory_space<vmem>>, vector<2x256xf32>
    tpu.vector_store %arg17[%c6, %c0_19], %53 {strides = array<i32>} : memref<50x256xf32, #tpu.memory_space<vmem>>, vector<2x256xf32>,
    %c254_i32 = arith.constant 254 : i32
    %55 = tpu.dynamic_rotate %41 by %c254_i32 dim 1 : vector<2x256xf32>, i32 -> vector<2x256xf32>
    %56 = vector.broadcast %34 : vector<1x256xf32> to vector<2x256xf32>
    %57 = arith.mulf %55, %56 : vector<2x256xf32>
    %c8 = arith.constant 8 : index
    %c0_20 = arith.constant 0 : index
    %58 = vector.load %arg17[%c8, %c0_20] : memref<50x256xf32, #tpu.memory_space<vmem>>, vector<2x256xf32>
    tpu.vector_store %arg17[%c8, %c0_20], %57 {strides = array<i32>} : memref<50x256xf32, #tpu.memory_space<vmem>>, vector<2x256xf32>,
    %c0_21 = arith.constant 0 : index
    %c16 = arith.constant 16 : index
    %59 = vector.load %arg16[%c0_21, %c16] : memref<128x320xf32, #tpu.memory_space<vmem>>, vector<2x256xf32>
    %c2_i32_22 = arith.constant 2 : i32
    %60 = tpu.dynamic_rotate %59 by %c2_i32_22 dim 1 : vector<2x256xf32>, i32 -> vector<2x256xf32>
    %61 = vector.broadcast %22 : vector<1x256xf32> to vector<2x256xf32>
    %62 = arith.mulf %60, %61 : vector<2x256xf32>
    %c10 = arith.constant 10 : index
    %c0_23 = arith.constant 0 : index
    %63 = vector.load %arg17[%c10, %c0_23] : memref<50x256xf32, #tpu.memory_space<vmem>>, vector<2x256xf32>
    tpu.vector_store %arg17[%c10, %c0_23], %62 {strides = array<i32>} : memref<50x256xf32, #tpu.memory_space<vmem>>, vector<2x256xf32>,
    %c1_i32_24 = arith.constant 1 : i32
    %64 = tpu.dynamic_rotate %59 by %c1_i32_24 dim 1 : vector<2x256xf32>, i32 -> vector<2x256xf32>
    %65 = vector.broadcast %26 : vector<1x256xf32> to vector<2x256xf32>
    %66 = arith.mulf %64, %65 : vector<2x256xf32>
    %c12 = arith.constant 12 : index
    %c0_25 = arith.constant 0 : index
    %67 = vector.load %arg17[%c12, %c0_25] : memref<50x256xf32, #tpu.memory_space<vmem>>, vector<2x256xf32>
    tpu.vector_store %arg17[%c12, %c0_25], %66 {strides = array<i32>} : memref<50x256xf32, #tpu.memory_space<vmem>>, vector<2x256xf32>,
    %c14 = arith.constant 14 : index
    %c0_26 = arith.constant 0 : index
    %68 = vector.load %arg17[%c14, %c0_26] : memref<50x256xf32, #tpu.memory_space<vmem>>, vector<2x256xf32>
    tpu.vector_store %arg17[%c14, %c0_26], %59 {strides = array<i32>} : memref<50x256xf32, #tpu.memory_space<vmem>>, vector<2x256xf32>,
    %c255_i32_27 = arith.constant 255 : i32
    %69 = tpu.dynamic_rotate %59 by %c255_i32_27 dim 1 : vector<2x256xf32>, i32 -> vector<2x256xf32>
    %70 = vector.broadcast %30 : vector<1x256xf32> to vector<2x256xf32>
    %71 = arith.mulf %69, %70 : vector<2x256xf32>
    %c16_28 = arith.constant 16 : index
    %c0_29 = arith.constant 0 : index
    %72 = vector.load %arg17[%c16_28, %c0_29] : memref<50x256xf32, #tpu.memory_space<vmem>>, vector<2x256xf32>
    tpu.vector_store %arg17[%c16_28, %c0_29], %71 {strides = array<i32>} : memref<50x256xf32, #tpu.memory_space<vmem>>, vector<2x256xf32>,
    %c254_i32_30 = arith.constant 254 : i32
    %73 = tpu.dynamic_rotate %59 by %c254_i32_30 dim 1 : vector<2x256xf32>, i32 -> vector<2x256xf32>
    %74 = vector.broadcast %34 : vector<1x256xf32> to vector<2x256xf32>
    %75 = arith.mulf %73, %74 : vector<2x256xf32>
    %c18 = arith.constant 18 : index
    %c0_31 = arith.constant 0 : index
    %76 = vector.load %arg17[%c18, %c0_31] : memref<50x256xf32, #tpu.memory_space<vmem>>, vector<2x256xf32>
    tpu.vector_store %arg17[%c18, %c0_31], %75 {strides = array<i32>} : memref<50x256xf32, #tpu.memory_space<vmem>>, vector<2x256xf32>,
    %c0_32 = arith.constant 0 : index
    %c32_33 = arith.constant 32 : index
    %77 = vector.load %arg16[%c0_32, %c32_33] : memref<128x320xf32, #tpu.memory_space<vmem>>, vector<2x256xf32>
    %c2_i32_34 = arith.constant 2 : i32
    %78 = tpu.dynamic_rotate %77 by %c2_i32_34 dim 1 : vector<2x256xf32>, i32 -> vector<2x256xf32>
    %79 = vector.broadcast %22 : vector<1x256xf32> to vector<2x256xf32>
    %80 = arith.mulf %78, %79 : vector<2x256xf32>
    %c20 = arith.constant 20 : index
    %c0_35 = arith.constant 0 : index
    %81 = vector.load %arg17[%c20, %c0_35] : memref<50x256xf32, #tpu.memory_space<vmem>>, vector<2x256xf32>
    tpu.vector_store %arg17[%c20, %c0_35], %80 {strides = array<i32>} : memref<50x256xf32, #tpu.memory_space<vmem>>, vector<2x256xf32>,
    %c1_i32_36 = arith.constant 1 : i32
    %82 = tpu.dynamic_rotate %77 by %c1_i32_36 dim 1 : vector<2x256xf32>, i32 -> vector<2x256xf32>
    %83 = vector.broadcast %26 : vector<1x256xf32> to vector<2x256xf32>
    %84 = arith.mulf %82, %83 : vector<2x256xf32>
    %c22 = arith.constant 22 : index
    %c0_37 = arith.constant 0 : index
    %85 = vector.load %arg17[%c22, %c0_37] : memref<50x256xf32, #tpu.memory_space<vmem>>, vector<2x256xf32>
    tpu.vector_store %arg17[%c22, %c0_37], %84 {strides = array<i32>} : memref<50x256xf32, #tpu.memory_space<vmem>>, vector<2x256xf32>,
    %c24 = arith.constant 24 : index
    %c0_38 = arith.constant 0 : index
    %86 = vector.load %arg17[%c24, %c0_38] : memref<50x256xf32, #tpu.memory_space<vmem>>, vector<2x256xf32>
    tpu.vector_store %arg17[%c24, %c0_38], %77 {strides = array<i32>} : memref<50x256xf32, #tpu.memory_space<vmem>>, vector<2x256xf32>,
    %c255_i32_39 = arith.constant 255 : i32
    %87 = tpu.dynamic_rotate %77 by %c255_i32_39 dim 1 : vector<2x256xf32>, i32 -> vector<2x256xf32>
    %88 = vector.broadcast %30 : vector<1x256xf32> to vector<2x256xf32>
    %89 = arith.mulf %87, %88 : vector<2x256xf32>
    %c26 = arith.constant 26 : index
    %c0_40 = arith.constant 0 : index
    %90 = vector.load %arg17[%c26, %c0_40] : memref<50x256xf32, #tpu.memory_space<vmem>>, vector<2x256xf32>
    tpu.vector_store %arg17[%c26, %c0_40], %89 {strides = array<i32>} : memref<50x256xf32, #tpu.memory_space<vmem>>, vector<2x256xf32>,
    %c254_i32_41 = arith.constant 254 : i32
    %91 = tpu.dynamic_rotate %77 by %c254_i32_41 dim 1 : vector<2x256xf32>, i32 -> vector<2x256xf32>
    %92 = vector.broadcast %34 : vector<1x256xf32> to vector<2x256xf32>
    %93 = arith.mulf %91, %92 : vector<2x256xf32>
    %c28 = arith.constant 28 : index
    %c0_42 = arith.constant 0 : index
    %94 = vector.load %arg17[%c28, %c0_42] : memref<50x256xf32, #tpu.memory_space<vmem>>, vector<2x256xf32>
    tpu.vector_store %arg17[%c28, %c0_42], %93 {strides = array<i32>} : memref<50x256xf32, #tpu.memory_space<vmem>>, vector<2x256xf32>,
    %c0_43 = arith.constant 0 : index
    %c48 = arith.constant 48 : index
    %95 = vector.load %arg16[%c0_43, %c48] : memref<128x320xf32, #tpu.memory_space<vmem>>, vector<2x256xf32>
    %c2_i32_44 = arith.constant 2 : i32
    %96 = tpu.dynamic_rotate %95 by %c2_i32_44 dim 1 : vector<2x256xf32>, i32 -> vector<2x256xf32>
    %97 = vector.broadcast %22 : vector<1x256xf32> to vector<2x256xf32>
    %98 = arith.mulf %96, %97 : vector<2x256xf32>
    %c30 = arith.constant 30 : index
    %c0_45 = arith.constant 0 : index
    %99 = vector.load %arg17[%c30, %c0_45] : memref<50x256xf32, #tpu.memory_space<vmem>>, vector<2x256xf32>
    tpu.vector_store %arg17[%c30, %c0_45], %98 {strides = array<i32>} : memref<50x256xf32, #tpu.memory_space<vmem>>, vector<2x256xf32>,
    %c1_i32_46 = arith.constant 1 : i32
    %100 = tpu.dynamic_rotate %95 by %c1_i32_46 dim 1 : vector<2x256xf32>, i32 -> vector<2x256xf32>
    %101 = vector.broadcast %26 : vector<1x256xf32> to vector<2x256xf32>
    %102 = arith.mulf %100, %101 : vector<2x256xf32>
    %c32_47 = arith.constant 32 : index
    %c0_48 = arith.constant 0 : index
    %103 = vector.load %arg17[%c32_47, %c0_48] : memref<50x256xf32, #tpu.memory_space<vmem>>, vector<2x256xf32>
    tpu.vector_store %arg17[%c32_47, %c0_48], %102 {strides = array<i32>} : memref<50x256xf32, #tpu.memory_space<vmem>>, vector<2x256xf32>,
    %c34 = arith.constant 34 : index
    %c0_49 = arith.constant 0 : index
    %104 = vector.load %arg17[%c34, %c0_49] : memref<50x256xf32, #tpu.memory_space<vmem>>, vector<2x256xf32>
    tpu.vector_store %arg17[%c34, %c0_49], %95 {strides = array<i32>} : memref<50x256xf32, #tpu.memory_space<vmem>>, vector<2x256xf32>,
    %c255_i32_50 = arith.constant 255 : i32
    %105 = tpu.dynamic_rotate %95 by %c255_i32_50 dim 1 : vector<2x256xf32>, i32 -> vector<2x256xf32>
    %106 = vector.broadcast %30 : vector<1x256xf32> to vector<2x256xf32>
    %107 = arith.mulf %105, %106 : vector<2x256xf32>
    %c36 = arith.constant 36 : index
    %c0_51 = arith.constant 0 : index
    %108 = vector.load %arg17[%c36, %c0_51] : memref<50x256xf32, #tpu.memory_space<vmem>>, vector<2x256xf32>
    tpu.vector_store %arg17[%c36, %c0_51], %107 {strides = array<i32>} : memref<50x256xf32, #tpu.memory_space<vmem>>, vector<2x256xf32>,
    %c254_i32_52 = arith.constant 254 : i32
    %109 = tpu.dynamic_rotate %95 by %c254_i32_52 dim 1 : vector<2x256xf32>, i32 -> vector<2x256xf32>
    %110 = vector.broadcast %34 : vector<1x256xf32> to vector<2x256xf32>
    %111 = arith.mulf %109, %110 : vector<2x256xf32>
    %c38 = arith.constant 38 : index
    %c0_53 = arith.constant 0 : index
    %112 = vector.load %arg17[%c38, %c0_53] : memref<50x256xf32, #tpu.memory_space<vmem>>, vector<2x256xf32>
    tpu.vector_store %arg17[%c38, %c0_53], %111 {strides = array<i32>} : memref<50x256xf32, #tpu.memory_space<vmem>>, vector<2x256xf32>,
    %c0_54 = arith.constant 0 : index
    %c64 = arith.constant 64 : index
    %113 = vector.load %arg16[%c0_54, %c64] : memref<128x320xf32, #tpu.memory_space<vmem>>, vector<2x256xf32>
    %c2_i32_55 = arith.constant 2 : i32
    %114 = tpu.dynamic_rotate %113 by %c2_i32_55 dim 1 : vector<2x256xf32>, i32 -> vector<2x256xf32>
    %115 = vector.broadcast %22 : vector<1x256xf32> to vector<2x256xf32>
    %116 = arith.mulf %114, %115 : vector<2x256xf32>
    %c40 = arith.constant 40 : index
    %c0_56 = arith.constant 0 : index
    %117 = vector.load %arg17[%c40, %c0_56] : memref<50x256xf32, #tpu.memory_space<vmem>>, vector<2x256xf32>
    tpu.vector_store %arg17[%c40, %c0_56], %116 {strides = array<i32>} : memref<50x256xf32, #tpu.memory_space<vmem>>, vector<2x256xf32>,
    %c1_i32_57 = arith.constant 1 : i32
    %118 = tpu.dynamic_rotate %113 by %c1_i32_57 dim 1 : vector<2x256xf32>, i32 -> vector<2x256xf32>
    %119 = vector.broadcast %26 : vector<1x256xf32> to vector<2x256xf32>
    %120 = arith.mulf %118, %119 : vector<2x256xf32>
    %c42 = arith.constant 42 : index
    %c0_58 = arith.constant 0 : index
    %121 = vector.load %arg17[%c42, %c0_58] : memref<50x256xf32, #tpu.memory_space<vmem>>, vector<2x256xf32>
    tpu.vector_store %arg17[%c42, %c0_58], %120 {strides = array<i32>} : memref<50x256xf32, #tpu.memory_space<vmem>>, vector<2x256xf32>,
    %c44 = arith.constant 44 : index
    %c0_59 = arith.constant 0 : index
    %122 = vector.load %arg17[%c44, %c0_59] : memref<50x256xf32, #tpu.memory_space<vmem>>, vector<2x256xf32>
    tpu.vector_store %arg17[%c44, %c0_59], %113 {strides = array<i32>} : memref<50x256xf32, #tpu.memory_space<vmem>>, vector<2x256xf32>,
    %c255_i32_60 = arith.constant 255 : i32
    %123 = tpu.dynamic_rotate %113 by %c255_i32_60 dim 1 : vector<2x256xf32>, i32 -> vector<2x256xf32>
    %124 = vector.broadcast %30 : vector<1x256xf32> to vector<2x256xf32>
    %125 = arith.mulf %123, %124 : vector<2x256xf32>
    %c46 = arith.constant 46 : index
    %c0_61 = arith.constant 0 : index
    %126 = vector.load %arg17[%c46, %c0_61] : memref<50x256xf32, #tpu.memory_space<vmem>>, vector<2x256xf32>
    tpu.vector_store %arg17[%c46, %c0_61], %125 {strides = array<i32>} : memref<50x256xf32, #tpu.memory_space<vmem>>, vector<2x256xf32>,
    %c254_i32_62 = arith.constant 254 : i32
    %127 = tpu.dynamic_rotate %113 by %c254_i32_62 dim 1 : vector<2x256xf32>, i32 -> vector<2x256xf32>
    %128 = vector.broadcast %34 : vector<1x256xf32> to vector<2x256xf32>
    %129 = arith.mulf %127, %128 : vector<2x256xf32>
    %c48_63 = arith.constant 48 : index
    %c0_64 = arith.constant 0 : index
    %130 = vector.load %arg17[%c48_63, %c0_64] : memref<50x256xf32, #tpu.memory_space<vmem>>, vector<2x256xf32>
    tpu.vector_store %arg17[%c48_63, %c0_64], %129 {strides = array<i32>} : memref<50x256xf32, #tpu.memory_space<vmem>>, vector<2x256xf32>,
    %c0_65 = arith.constant 0 : index
    %c0_66 = arith.constant 0 : index
    %c0_67 = arith.constant 0 : index
    %131 = vector.load %arg2[%c0_65, %c0_66, %c0_67] : memref<1x4x256xf32, #tpu.memory_space<vmem>>, vector<1x4x256xf32>
    %132 = vector.shape_cast %131 : vector<1x4x256xf32> to vector<4x256xf32>
    %c0_68 = arith.constant 0 : index
    %c0_69 = arith.constant 0 : index
    %133 = vector.load %arg3[%c0_68, %c0_69] : memref<128x50xf32, #tpu.memory_space<vmem>>, vector<128x50xf32>
    %c0_70 = arith.constant 0 : index
    %c0_71 = arith.constant 0 : index
    %134 = vector.load %arg17[%c0_70, %c0_71] : memref<50x256xf32, #tpu.memory_space<vmem>>, vector<50x256xf32>
    %cst_72 = arith.constant dense<0.000000e+00> : vector<128x256xf32>
    %135 = tpu.matmul %133, %134, %cst_72 {dimension_numbers = #tpu.dot_dimension_numbers<[1], [0], [0], [1], [0, 0, 1, 1], [], []>} : vector<128x50xf32>, vector<50x256xf32>, vector<128x256xf32> -> vector<128x256xf32>
    %c0_73 = arith.constant 0 : index
    %c0_74 = arith.constant 0 : index
    %136 = vector.load %arg4[%c0_73, %c0_74] : memref<128x1xf32, #tpu.memory_space<vmem>>, vector<128x1xf32>
    %137 = vector.broadcast %136 : vector<128x1xf32> to vector<128x256xf32>
    %138 = arith.addf %135, %137 : vector<128x256xf32>
    %cst_75 = arith.constant 0.000000e+00 : f32
    %139 = vector.broadcast %cst_75 : f32 to vector<128x256xf32>
    %140 = arith.maximumf %138, %139 : vector<128x256xf32>
    %c0_76 = arith.constant 0 : index
    %c32_77 = arith.constant 32 : index
    %141 = vector.load %arg16[%c0_76, %c32_77] : memref<128x320xf32, #tpu.memory_space<vmem>>, vector<128x256xf32>
    tpu.vector_store %arg16[%c0_76, %c32_77], %140 {strides = array<i32>} : memref<128x320xf32, #tpu.memory_space<vmem>>, vector<128x256xf32>,
    %c0_78 = arith.constant 0 : index
    %c0_79 = arith.constant 0 : index
    %142 = vector.load %arg6[%c0_78, %c0_79] : memref<8x1xf32, #tpu.memory_space<vmem>>, vector<8x1xf32>
    %c0_80 = arith.constant 0 : index
    %c0_81 = arith.constant 0 : index
    %143 = vector.load %arg16[%c0_80, %c0_81] : memref<128x320xf32, #tpu.memory_space<vmem>>, vector<128x256xf32>
    %c0_82 = arith.constant 0 : index
    %c0_83 = arith.constant 0 : index
    %c0_84 = arith.constant 0 : index
    %144 = vector.load %arg5[%c0_82, %c0_83, %c0_84] : memref<5x40x128xf32, #tpu.memory_space<vmem>>, vector<1x40x128xf32>
    %145 = vector.shape_cast %144 : vector<1x40x128xf32> to vector<40x128xf32>
    %cst_85 = arith.constant dense<0.000000e+00> : vector<40x256xf32>
    %146 = tpu.matmul %145, %143, %cst_85 {dimension_numbers = #tpu.dot_dimension_numbers<[1], [0], [0], [1], [0, 0, 1, 1], [], []>} : vector<40x128xf32>, vector<128x256xf32>, vector<40x256xf32> -> vector<40x256xf32>
    %147 = vector.extract_strided_slice %146 {offsets = [0, 0], sizes = [8, 256], strides = [1, 1]} : vector<40x256xf32> to vector<8x256xf32>
    %c2_i32_86 = arith.constant 2 : i32
    %148 = tpu.dynamic_rotate %147 by %c2_i32_86 dim 1 : vector<8x256xf32>, i32 -> vector<8x256xf32>
    %149 = vector.broadcast %6 : vector<1x256xf32> to vector<8x256xf32>
    %150 = arith.mulf %148, %149 : vector<8x256xf32>
    %151 = vector.broadcast %142 : vector<8x1xf32> to vector<8x256xf32>
    %152 = arith.addf %151, %150 : vector<8x256xf32>
    %153 = vector.extract_strided_slice %146 {offsets = [8, 0], sizes = [8, 256], strides = [1, 1]} : vector<40x256xf32> to vector<8x256xf32>
    %c1_i32_87 = arith.constant 1 : i32
    %154 = tpu.dynamic_rotate %153 by %c1_i32_87 dim 1 : vector<8x256xf32>, i32 -> vector<8x256xf32>
    %155 = vector.broadcast %10 : vector<1x256xf32> to vector<8x256xf32>
    %156 = arith.mulf %154, %155 : vector<8x256xf32>
    %157 = arith.addf %152, %156 : vector<8x256xf32>
    %158 = vector.extract_strided_slice %146 {offsets = [16, 0], sizes = [8, 256], strides = [1, 1]} : vector<40x256xf32> to vector<8x256xf32>
    %159 = arith.addf %157, %158 : vector<8x256xf32>
    %160 = vector.extract_strided_slice %146 {offsets = [24, 0], sizes = [8, 256], strides = [1, 1]} : vector<40x256xf32> to vector<8x256xf32>
    %c255_i32_88 = arith.constant 255 : i32
    %161 = tpu.dynamic_rotate %160 by %c255_i32_88 dim 1 : vector<8x256xf32>, i32 -> vector<8x256xf32>
    %162 = vector.broadcast %14 : vector<1x256xf32> to vector<8x256xf32>
    %163 = arith.mulf %161, %162 : vector<8x256xf32>
    %164 = arith.addf %159, %163 : vector<8x256xf32>
    %165 = vector.extract_strided_slice %146 {offsets = [32, 0], sizes = [8, 256], strides = [1, 1]} : vector<40x256xf32> to vector<8x256xf32>
    %c254_i32_89 = arith.constant 254 : i32
    %166 = tpu.dynamic_rotate %165 by %c254_i32_89 dim 1 : vector<8x256xf32>, i32 -> vector<8x256xf32>
    %167 = vector.broadcast %18 : vector<1x256xf32> to vector<8x256xf32>
    %168 = arith.mulf %166, %167 : vector<8x256xf32>
    %169 = arith.addf %164, %168 : vector<8x256xf32>
    %c0_90 = arith.constant 0 : index
    %c16_91 = arith.constant 16 : index
    %170 = vector.load %arg16[%c0_90, %c16_91] : memref<128x320xf32, #tpu.memory_space<vmem>>, vector<128x256xf32>
    %c1 = arith.constant 1 : index
    %c0_92 = arith.constant 0 : index
    %c0_93 = arith.constant 0 : index
    %171 = vector.load %arg5[%c1, %c0_92, %c0_93] : memref<5x40x128xf32, #tpu.memory_space<vmem>>, vector<1x40x128xf32>
    %172 = vector.shape_cast %171 : vector<1x40x128xf32> to vector<40x128xf32>
    %cst_94 = arith.constant dense<0.000000e+00> : vector<40x256xf32>
    %173 = tpu.matmul %172, %170, %cst_94 {dimension_numbers = #tpu.dot_dimension_numbers<[1], [0], [0], [1], [0, 0, 1, 1], [], []>} : vector<40x128xf32>, vector<128x256xf32>, vector<40x256xf32> -> vector<40x256xf32>
    %174 = vector.extract_strided_slice %173 {offsets = [0, 0], sizes = [8, 256], strides = [1, 1]} : vector<40x256xf32> to vector<8x256xf32>
    %c2_i32_95 = arith.constant 2 : i32
    %175 = tpu.dynamic_rotate %174 by %c2_i32_95 dim 1 : vector<8x256xf32>, i32 -> vector<8x256xf32>
    %176 = vector.broadcast %6 : vector<1x256xf32> to vector<8x256xf32>
    %177 = arith.mulf %175, %176 : vector<8x256xf32>
    %178 = arith.addf %169, %177 : vector<8x256xf32>
    %179 = vector.extract_strided_slice %173 {offsets = [8, 0], sizes = [8, 256], strides = [1, 1]} : vector<40x256xf32> to vector<8x256xf32>
    %c1_i32_96 = arith.constant 1 : i32
    %180 = tpu.dynamic_rotate %179 by %c1_i32_96 dim 1 : vector<8x256xf32>, i32 -> vector<8x256xf32>
    %181 = vector.broadcast %10 : vector<1x256xf32> to vector<8x256xf32>
    %182 = arith.mulf %180, %181 : vector<8x256xf32>
    %183 = arith.addf %178, %182 : vector<8x256xf32>
    %184 = vector.extract_strided_slice %173 {offsets = [16, 0], sizes = [8, 256], strides = [1, 1]} : vector<40x256xf32> to vector<8x256xf32>
    %185 = arith.addf %183, %184 : vector<8x256xf32>
    %186 = vector.extract_strided_slice %173 {offsets = [24, 0], sizes = [8, 256], strides = [1, 1]} : vector<40x256xf32> to vector<8x256xf32>
    %c255_i32_97 = arith.constant 255 : i32
    %187 = tpu.dynamic_rotate %186 by %c255_i32_97 dim 1 : vector<8x256xf32>, i32 -> vector<8x256xf32>
    %188 = vector.broadcast %14 : vector<1x256xf32> to vector<8x256xf32>
    %189 = arith.mulf %187, %188 : vector<8x256xf32>
    %190 = arith.addf %185, %189 : vector<8x256xf32>
    %191 = vector.extract_strided_slice %173 {offsets = [32, 0], sizes = [8, 256], strides = [1, 1]} : vector<40x256xf32> to vector<8x256xf32>
    %c254_i32_98 = arith.constant 254 : i32
    %192 = tpu.dynamic_rotate %191 by %c254_i32_98 dim 1 : vector<8x256xf32>, i32 -> vector<8x256xf32>
    %193 = vector.broadcast %18 : vector<1x256xf32> to vector<8x256xf32>
    %194 = arith.mulf %192, %193 : vector<8x256xf32>
    %195 = arith.addf %190, %194 : vector<8x256xf32>
    %c0_99 = arith.constant 0 : index
    %c32_100 = arith.constant 32 : index
    %196 = vector.load %arg16[%c0_99, %c32_100] : memref<128x320xf32, #tpu.memory_space<vmem>>, vector<128x256xf32>
    %c2_101 = arith.constant 2 : index
    %c0_102 = arith.constant 0 : index
    %c0_103 = arith.constant 0 : index
    %197 = vector.load %arg5[%c2_101, %c0_102, %c0_103] : memref<5x40x128xf32, #tpu.memory_space<vmem>>, vector<1x40x128xf32>
    %198 = vector.shape_cast %197 : vector<1x40x128xf32> to vector<40x128xf32>
    %cst_104 = arith.constant dense<0.000000e+00> : vector<40x256xf32>
    %199 = tpu.matmul %198, %196, %cst_104 {dimension_numbers = #tpu.dot_dimension_numbers<[1], [0], [0], [1], [0, 0, 1, 1], [], []>} : vector<40x128xf32>, vector<128x256xf32>, vector<40x256xf32> -> vector<40x256xf32>
    %200 = vector.extract_strided_slice %199 {offsets = [0, 0], sizes = [8, 256], strides = [1, 1]} : vector<40x256xf32> to vector<8x256xf32>
    %c2_i32_105 = arith.constant 2 : i32
    %201 = tpu.dynamic_rotate %200 by %c2_i32_105 dim 1 : vector<8x256xf32>, i32 -> vector<8x256xf32>
    %202 = vector.broadcast %6 : vector<1x256xf32> to vector<8x256xf32>
    %203 = arith.mulf %201, %202 : vector<8x256xf32>
    %204 = arith.addf %195, %203 : vector<8x256xf32>
    %205 = vector.extract_strided_slice %199 {offsets = [8, 0], sizes = [8, 256], strides = [1, 1]} : vector<40x256xf32> to vector<8x256xf32>
    %c1_i32_106 = arith.constant 1 : i32
    %206 = tpu.dynamic_rotate %205 by %c1_i32_106 dim 1 : vector<8x256xf32>, i32 -> vector<8x256xf32>
    %207 = vector.broadcast %10 : vector<1x256xf32> to vector<8x256xf32>
    %208 = arith.mulf %206, %207 : vector<8x256xf32>
    %209 = arith.addf %204, %208 : vector<8x256xf32>
    %210 = vector.extract_strided_slice %199 {offsets = [16, 0], sizes = [8, 256], strides = [1, 1]} : vector<40x256xf32> to vector<8x256xf32>
    %211 = arith.addf %209, %210 : vector<8x256xf32>
    %212 = vector.extract_strided_slice %199 {offsets = [24, 0], sizes = [8, 256], strides = [1, 1]} : vector<40x256xf32> to vector<8x256xf32>
    %c255_i32_107 = arith.constant 255 : i32
    %213 = tpu.dynamic_rotate %212 by %c255_i32_107 dim 1 : vector<8x256xf32>, i32 -> vector<8x256xf32>
    %214 = vector.broadcast %14 : vector<1x256xf32> to vector<8x256xf32>
    %215 = arith.mulf %213, %214 : vector<8x256xf32>
    %216 = arith.addf %211, %215 : vector<8x256xf32>
    %217 = vector.extract_strided_slice %199 {offsets = [32, 0], sizes = [8, 256], strides = [1, 1]} : vector<40x256xf32> to vector<8x256xf32>
    %c254_i32_108 = arith.constant 254 : i32
    %218 = tpu.dynamic_rotate %217 by %c254_i32_108 dim 1 : vector<8x256xf32>, i32 -> vector<8x256xf32>
    %219 = vector.broadcast %18 : vector<1x256xf32> to vector<8x256xf32>
    %220 = arith.mulf %218, %219 : vector<8x256xf32>
    %221 = arith.addf %216, %220 : vector<8x256xf32>
    %c0_109 = arith.constant 0 : index
    %c48_110 = arith.constant 48 : index
    %222 = vector.load %arg16[%c0_109, %c48_110] : memref<128x320xf32, #tpu.memory_space<vmem>>, vector<128x256xf32>
    %c3 = arith.constant 3 : index
    %c0_111 = arith.constant 0 : index
    %c0_112 = arith.constant 0 : index
    %223 = vector.load %arg5[%c3, %c0_111, %c0_112] : memref<5x40x128xf32, #tpu.memory_space<vmem>>, vector<1x40x128xf32>
    %224 = vector.shape_cast %223 : vector<1x40x128xf32> to vector<40x128xf32>
    %cst_113 = arith.constant dense<0.000000e+00> : vector<40x256xf32>
    %225 = tpu.matmul %224, %222, %cst_113 {dimension_numbers = #tpu.dot_dimension_numbers<[1], [0], [0], [1], [0, 0, 1, 1], [], []>} : vector<40x128xf32>, vector<128x256xf32>, vector<40x256xf32> -> vector<40x256xf32>
    %226 = vector.extract_strided_slice %225 {offsets = [0, 0], sizes = [8, 256], strides = [1, 1]} : vector<40x256xf32> to vector<8x256xf32>
    %c2_i32_114 = arith.constant 2 : i32
    %227 = tpu.dynamic_rotate %226 by %c2_i32_114 dim 1 : vector<8x256xf32>, i32 -> vector<8x256xf32>
    %228 = vector.broadcast %6 : vector<1x256xf32> to vector<8x256xf32>
    %229 = arith.mulf %227, %228 : vector<8x256xf32>
    %230 = arith.addf %221, %229 : vector<8x256xf32>
    %231 = vector.extract_strided_slice %225 {offsets = [8, 0], sizes = [8, 256], strides = [1, 1]} : vector<40x256xf32> to vector<8x256xf32>
    %c1_i32_115 = arith.constant 1 : i32
    %232 = tpu.dynamic_rotate %231 by %c1_i32_115 dim 1 : vector<8x256xf32>, i32 -> vector<8x256xf32>
    %233 = vector.broadcast %10 : vector<1x256xf32> to vector<8x256xf32>
    %234 = arith.mulf %232, %233 : vector<8x256xf32>
    %235 = arith.addf %230, %234 : vector<8x256xf32>
    %236 = vector.extract_strided_slice %225 {offsets = [16, 0], sizes = [8, 256], strides = [1, 1]} : vector<40x256xf32> to vector<8x256xf32>
    %237 = arith.addf %235, %236 : vector<8x256xf32>
    %238 = vector.extract_strided_slice %225 {offsets = [24, 0], sizes = [8, 256], strides = [1, 1]} : vector<40x256xf32> to vector<8x256xf32>
    %c255_i32_116 = arith.constant 255 : i32
    %239 = tpu.dynamic_rotate %238 by %c255_i32_116 dim 1 : vector<8x256xf32>, i32 -> vector<8x256xf32>
    %240 = vector.broadcast %14 : vector<1x256xf32> to vector<8x256xf32>
    %241 = arith.mulf %239, %240 : vector<8x256xf32>
    %242 = arith.addf %237, %241 : vector<8x256xf32>
    %243 = vector.extract_strided_slice %225 {offsets = [32, 0], sizes = [8, 256], strides = [1, 1]} : vector<40x256xf32> to vector<8x256xf32>
    %c254_i32_117 = arith.constant 254 : i32
    %244 = tpu.dynamic_rotate %243 by %c254_i32_117 dim 1 : vector<8x256xf32>, i32 -> vector<8x256xf32>
    %245 = vector.broadcast %18 : vector<1x256xf32> to vector<8x256xf32>
    %246 = arith.mulf %244, %245 : vector<8x256xf32>
    %247 = arith.addf %242, %246 : vector<8x256xf32>
    %c0_118 = arith.constant 0 : index
    %c64_119 = arith.constant 64 : index
    %248 = vector.load %arg16[%c0_118, %c64_119] : memref<128x320xf32, #tpu.memory_space<vmem>>, vector<128x256xf32>
    %c4_120 = arith.constant 4 : index
    %c0_121 = arith.constant 0 : index
    %c0_122 = arith.constant 0 : index
    %249 = vector.load %arg5[%c4_120, %c0_121, %c0_122] : memref<5x40x128xf32, #tpu.memory_space<vmem>>, vector<1x40x128xf32>
    %250 = vector.shape_cast %249 : vector<1x40x128xf32> to vector<40x128xf32>
    %cst_123 = arith.constant dense<0.000000e+00> : vector<40x256xf32>
    %251 = tpu.matmul %250, %248, %cst_123 {dimension_numbers = #tpu.dot_dimension_numbers<[1], [0], [0], [1], [0, 0, 1, 1], [], []>} : vector<40x128xf32>, vector<128x256xf32>, vector<40x256xf32> -> vector<40x256xf32>
    %252 = vector.extract_strided_slice %251 {offsets = [0, 0], sizes = [8, 256], strides = [1, 1]} : vector<40x256xf32> to vector<8x256xf32>
    %c2_i32_124 = arith.constant 2 : i32
    %253 = tpu.dynamic_rotate %252 by %c2_i32_124 dim 1 : vector<8x256xf32>, i32 -> vector<8x256xf32>
    %254 = vector.broadcast %6 : vector<1x256xf32> to vector<8x256xf32>
    %255 = arith.mulf %253, %254 : vector<8x256xf32>
    %256 = arith.addf %247, %255 : vector<8x256xf32>
    %257 = vector.extract_strided_slice %251 {offsets = [8, 0], sizes = [8, 256], strides = [1, 1]} : vector<40x256xf32> to vector<8x256xf32>
    %c1_i32_125 = arith.constant 1 : i32
    %258 = tpu.dynamic_rotate %257 by %c1_i32_125 dim 1 : vector<8x256xf32>, i32 -> vector<8x256xf32>
    %259 = vector.broadcast %10 : vector<1x256xf32> to vector<8x256xf32>
    %260 = arith.mulf %258, %259 : vector<8x256xf32>
    %261 = arith.addf %256, %260 : vector<8x256xf32>
    %262 = vector.extract_strided_slice %251 {offsets = [16, 0], sizes = [8, 256], strides = [1, 1]} : vector<40x256xf32> to vector<8x256xf32>
    %263 = arith.addf %261, %262 : vector<8x256xf32>
    %264 = vector.extract_strided_slice %251 {offsets = [24, 0], sizes = [8, 256], strides = [1, 1]} : vector<40x256xf32> to vector<8x256xf32>
    %c255_i32_126 = arith.constant 255 : i32
    %265 = tpu.dynamic_rotate %264 by %c255_i32_126 dim 1 : vector<8x256xf32>, i32 -> vector<8x256xf32>
    %266 = vector.broadcast %14 : vector<1x256xf32> to vector<8x256xf32>
    %267 = arith.mulf %265, %266 : vector<8x256xf32>
    %268 = arith.addf %263, %267 : vector<8x256xf32>
    %269 = vector.extract_strided_slice %251 {offsets = [32, 0], sizes = [8, 256], strides = [1, 1]} : vector<40x256xf32> to vector<8x256xf32>
    %c254_i32_127 = arith.constant 254 : i32
    %270 = tpu.dynamic_rotate %269 by %c254_i32_127 dim 1 : vector<8x256xf32>, i32 -> vector<8x256xf32>
    %271 = vector.broadcast %18 : vector<1x256xf32> to vector<8x256xf32>
    %272 = arith.mulf %270, %271 : vector<8x256xf32>
    %273 = arith.addf %268, %272 : vector<8x256xf32>
    %cst_128 = arith.constant dense<0.000000e+00> : vector<4xf32>
    %274 = vector.multi_reduction <add>, %132, %cst_128 [1] : vector<4x256xf32> to vector<4xf32>
    %275 = vector.shape_cast %274 : vector<4xf32> to vector<4x1xf32>
    %276 = arith.mulf %132, %132 : vector<4x256xf32>
    %cst_129 = arith.constant dense<0.000000e+00> : vector<4xf32>
    %277 = vector.multi_reduction <add>, %276, %cst_129 [1] : vector<4x256xf32> to vector<4xf32>
    %278 = vector.shape_cast %277 : vector<4xf32> to vector<4x1xf32>
    %cst_130 = arith.constant 3.906250e-03 : f32
    %279 = vector.broadcast %cst_130 : f32 to vector<4x1xf32>
    %280 = arith.mulf %275, %279 : vector<4x1xf32>
    %281 = arith.mulf %275, %280 : vector<4x1xf32>
    %282 = arith.subf %278, %281 : vector<4x1xf32>
    %cst_131 = arith.constant 0.00392156886 : f32
    %283 = vector.broadcast %cst_131 : f32 to vector<4x1xf32>
    %284 = arith.mulf %282, %283 : vector<4x1xf32>
    %285 = vector.broadcast %280 : vector<4x1xf32> to vector<4x256xf32>
    %286 = arith.subf %132, %285 : vector<4x256xf32>
    %cst_132 = arith.constant 9.99999974E-6 : f32
    %287 = vector.broadcast %cst_132 : f32 to vector<4x1xf32>
    %288 = arith.addf %284, %287 : vector<4x1xf32>
    %289 = math.rsqrt %288 : vector<4x1xf32>
    %290 = vector.broadcast %289 : vector<4x1xf32> to vector<4x256xf32>
    %291 = arith.mulf %286, %290 : vector<4x256xf32>
    %292 = vector.extract_strided_slice %273 {offsets = [0, 0], sizes = [4, 256], strides = [1, 1]} : vector<8x256xf32> to vector<4x256xf32>
    %cst_133 = arith.constant 1.000000e+00 : f32
    %293 = vector.broadcast %cst_133 : f32 to vector<4x256xf32>
    %294 = arith.addf %293, %292 : vector<4x256xf32>
    %295 = arith.mulf %291, %294 : vector<4x256xf32>
    %296 = vector.extract_strided_slice %273 {offsets = [4, 0], sizes = [4, 256], strides = [1, 1]} : vector<8x256xf32> to vector<4x256xf32>
    %297 = arith.addf %295, %296 : vector<4x256xf32>
    %cst_134 = arith.constant 0.000000e+00 : f32
    %298 = vector.broadcast %cst_134 : f32 to vector<4x256xf32>
    %299 = arith.cmpf oge, %297, %298 : vector<4x256xf32>
    %cst_135 = arith.constant 2.000000e-01 : f32
    %300 = vector.broadcast %cst_135 : f32 to vector<4x256xf32>
    %301 = arith.mulf %300, %297 : vector<4x256xf32>
    %302 = arith.select %299, %297, %301 : vector<4x256xi1>, vector<4x256xf32>
    %c0_136 = arith.constant 0 : index
    %c32_137 = arith.constant 32 : index
    %303 = vector.load %arg16[%c0_136, %c32_137] : memref<128x320xf32, #tpu.memory_space<vmem>>, vector<4x256xf32>
    tpu.vector_store %arg16[%c0_136, %c32_137], %302 {strides = array<i32>} : memref<128x320xf32, #tpu.memory_space<vmem>>, vector<4x256xf32>,
    %c0_138 = arith.constant 0 : index
    %c0_139 = arith.constant 0 : index
    %304 = vector.load %arg8[%c0_138, %c0_139] : memref<4x1xf32, #tpu.memory_space<vmem>>, vector<4x1xf32>
    %c0_140 = arith.constant 0 : index
    %c16_141 = arith.constant 16 : index
    %305 = vector.load %arg16[%c0_140, %c16_141] : memref<128x320xf32, #tpu.memory_space<vmem>>, vector<4x256xf32>
    %c0_142 = arith.constant 0 : index
    %c0_143 = arith.constant 0 : index
    %c0_144 = arith.constant 0 : index
    %306 = vector.load %arg7[%c0_142, %c0_143, %c0_144] : memref<3x12x4xf32, #tpu.memory_space<vmem>>, vector<1x12x4xf32>
    %307 = vector.shape_cast %306 : vector<1x12x4xf32> to vector<12x4xf32>
    %cst_145 = arith.constant dense<0.000000e+00> : vector<12x256xf32>
    %308 = tpu.matmul %307, %305, %cst_145 {dimension_numbers = #tpu.dot_dimension_numbers<[1], [0], [0], [1], [0, 0, 1, 1], [], []>} : vector<12x4xf32>, vector<4x256xf32>, vector<12x256xf32> -> vector<12x256xf32>
    %309 = vector.extract_strided_slice %308 {offsets = [0, 0], sizes = [4, 256], strides = [1, 1]} : vector<12x256xf32> to vector<4x256xf32>
    %c1_i32_146 = arith.constant 1 : i32
    %310 = tpu.dynamic_rotate %309 by %c1_i32_146 dim 1 : vector<4x256xf32>, i32 -> vector<4x256xf32>
    %311 = vector.broadcast %10 : vector<1x256xf32> to vector<4x256xf32>
    %312 = arith.mulf %310, %311 : vector<4x256xf32>
    %313 = vector.broadcast %304 : vector<4x1xf32> to vector<4x256xf32>
    %314 = arith.addf %313, %312 : vector<4x256xf32>
    %315 = vector.extract_strided_slice %308 {offsets = [4, 0], sizes = [4, 256], strides = [1, 1]} : vector<12x256xf32> to vector<4x256xf32>
    %316 = arith.addf %314, %315 : vector<4x256xf32>
    %317 = vector.extract_strided_slice %308 {offsets = [8, 0], sizes = [4, 256], strides = [1, 1]} : vector<12x256xf32> to vector<4x256xf32>
    %c255_i32_147 = arith.constant 255 : i32
    %318 = tpu.dynamic_rotate %317 by %c255_i32_147 dim 1 : vector<4x256xf32>, i32 -> vector<4x256xf32>
    %319 = vector.broadcast %14 : vector<1x256xf32> to vector<4x256xf32>
    %320 = arith.mulf %318, %319 : vector<4x256xf32>
    %321 = arith.addf %316, %320 : vector<4x256xf32>
    %c0_148 = arith.constant 0 : index
    %c32_149 = arith.constant 32 : index
    %322 = vector.load %arg16[%c0_148, %c32_149] : memref<128x320xf32, #tpu.memory_space<vmem>>, vector<4x256xf32>
    %c1_150 = arith.constant 1 : index
    %c0_151 = arith.constant 0 : index
    %c0_152 = arith.constant 0 : index
    %323 = vector.load %arg7[%c1_150, %c0_151, %c0_152] : memref<3x12x4xf32, #tpu.memory_space<vmem>>, vector<1x12x4xf32>
    %324 = vector.shape_cast %323 : vector<1x12x4xf32> to vector<12x4xf32>
    %cst_153 = arith.constant dense<0.000000e+00> : vector<12x256xf32>
    %325 = tpu.matmul %324, %322, %cst_153 {dimension_numbers = #tpu.dot_dimension_numbers<[1], [0], [0], [1], [0, 0, 1, 1], [], []>} : vector<12x4xf32>, vector<4x256xf32>, vector<12x256xf32> -> vector<12x256xf32>
    %326 = vector.extract_strided_slice %325 {offsets = [0, 0], sizes = [4, 256], strides = [1, 1]} : vector<12x256xf32> to vector<4x256xf32>
    %c1_i32_154 = arith.constant 1 : i32
    %327 = tpu.dynamic_rotate %326 by %c1_i32_154 dim 1 : vector<4x256xf32>, i32 -> vector<4x256xf32>
    %328 = vector.broadcast %10 : vector<1x256xf32> to vector<4x256xf32>
    %329 = arith.mulf %327, %328 : vector<4x256xf32>
    %330 = arith.addf %321, %329 : vector<4x256xf32>
    %331 = vector.extract_strided_slice %325 {offsets = [4, 0], sizes = [4, 256], strides = [1, 1]} : vector<12x256xf32> to vector<4x256xf32>
    %332 = arith.addf %330, %331 : vector<4x256xf32>
    %333 = vector.extract_strided_slice %325 {offsets = [8, 0], sizes = [4, 256], strides = [1, 1]} : vector<12x256xf32> to vector<4x256xf32>
    %c255_i32_155 = arith.constant 255 : i32
    %334 = tpu.dynamic_rotate %333 by %c255_i32_155 dim 1 : vector<4x256xf32>, i32 -> vector<4x256xf32>
    %335 = vector.broadcast %14 : vector<1x256xf32> to vector<4x256xf32>
    %336 = arith.mulf %334, %335 : vector<4x256xf32>
    %337 = arith.addf %332, %336 : vector<4x256xf32>
    %c0_156 = arith.constant 0 : index
    %c48_157 = arith.constant 48 : index
    %338 = vector.load %arg16[%c0_156, %c48_157] : memref<128x320xf32, #tpu.memory_space<vmem>>, vector<4x256xf32>
    %c2_158 = arith.constant 2 : index
    %c0_159 = arith.constant 0 : index
    %c0_160 = arith.constant 0 : index
    %339 = vector.load %arg7[%c2_158, %c0_159, %c0_160] : memref<3x12x4xf32, #tpu.memory_space<vmem>>, vector<1x12x4xf32>
    %340 = vector.shape_cast %339 : vector<1x12x4xf32> to vector<12x4xf32>
    %cst_161 = arith.constant dense<0.000000e+00> : vector<12x256xf32>
    %341 = tpu.matmul %340, %338, %cst_161 {dimension_numbers = #tpu.dot_dimension_numbers<[1], [0], [0], [1], [0, 0, 1, 1], [], []>} : vector<12x4xf32>, vector<4x256xf32>, vector<12x256xf32> -> vector<12x256xf32>
    %342 = vector.extract_strided_slice %341 {offsets = [0, 0], sizes = [4, 256], strides = [1, 1]} : vector<12x256xf32> to vector<4x256xf32>
    %c1_i32_162 = arith.constant 1 : i32
    %343 = tpu.dynamic_rotate %342 by %c1_i32_162 dim 1 : vector<4x256xf32>, i32 -> vector<4x256xf32>
    %344 = vector.broadcast %10 : vector<1x256xf32> to vector<4x256xf32>
    %345 = arith.mulf %343, %344 : vector<4x256xf32>
    %346 = arith.addf %337, %345 : vector<4x256xf32>
    %347 = vector.extract_strided_slice %341 {offsets = [4, 0], sizes = [4, 256], strides = [1, 1]} : vector<12x256xf32> to vector<4x256xf32>
    %348 = arith.addf %346, %347 : vector<4x256xf32>
    %349 = vector.extract_strided_slice %341 {offsets = [8, 0], sizes = [4, 256], strides = [1, 1]} : vector<12x256xf32> to vector<4x256xf32>
    %c255_i32_163 = arith.constant 255 : i32
    %350 = tpu.dynamic_rotate %349 by %c255_i32_163 dim 1 : vector<4x256xf32>, i32 -> vector<4x256xf32>
    %351 = vector.broadcast %14 : vector<1x256xf32> to vector<4x256xf32>
    %352 = arith.mulf %350, %351 : vector<4x256xf32>
    %353 = arith.addf %348, %352 : vector<4x256xf32>
    %c0_164 = arith.constant 0 : index
    %c0_165 = arith.constant 0 : index
    %354 = vector.load %arg9[%c0_164, %c0_165] : memref<128x50xf32, #tpu.memory_space<vmem>>, vector<128x50xf32>
    %c0_166 = arith.constant 0 : index
    %c0_167 = arith.constant 0 : index
    %355 = vector.load %arg17[%c0_166, %c0_167] : memref<50x256xf32, #tpu.memory_space<vmem>>, vector<50x256xf32>
    %cst_168 = arith.constant dense<0.000000e+00> : vector<128x256xf32>
    %356 = tpu.matmul %354, %355, %cst_168 {dimension_numbers = #tpu.dot_dimension_numbers<[1], [0], [0], [1], [0, 0, 1, 1], [], []>} : vector<128x50xf32>, vector<50x256xf32>, vector<128x256xf32> -> vector<128x256xf32>
    %c0_169 = arith.constant 0 : index
    %c0_170 = arith.constant 0 : index
    %357 = vector.load %arg10[%c0_169, %c0_170] : memref<128x1xf32, #tpu.memory_space<vmem>>, vector<128x1xf32>
    %358 = vector.broadcast %357 : vector<128x1xf32> to vector<128x256xf32>
    %359 = arith.addf %356, %358 : vector<128x256xf32>
    %cst_171 = arith.constant 0.000000e+00 : f32
    %360 = vector.broadcast %cst_171 : f32 to vector<128x256xf32>
    %361 = arith.maximumf %359, %360 : vector<128x256xf32>
    %c0_172 = arith.constant 0 : index
    %c32_173 = arith.constant 32 : index
    %362 = vector.load %arg16[%c0_172, %c32_173] : memref<128x320xf32, #tpu.memory_space<vmem>>, vector<128x256xf32>
    tpu.vector_store %arg16[%c0_172, %c32_173], %361 {strides = array<i32>} : memref<128x320xf32, #tpu.memory_space<vmem>>, vector<128x256xf32>,
    %c0_174 = arith.constant 0 : index
    %c0_175 = arith.constant 0 : index
    %363 = vector.load %arg12[%c0_174, %c0_175] : memref<8x1xf32, #tpu.memory_space<vmem>>, vector<8x1xf32>
    %c0_176 = arith.constant 0 : index
    %c0_177 = arith.constant 0 : index
    %364 = vector.load %arg16[%c0_176, %c0_177] : memref<128x320xf32, #tpu.memory_space<vmem>>, vector<128x256xf32>
    %c0_178 = arith.constant 0 : index
    %c0_179 = arith.constant 0 : index
    %c0_180 = arith.constant 0 : index
    %365 = vector.load %arg11[%c0_178, %c0_179, %c0_180] : memref<5x40x128xf32, #tpu.memory_space<vmem>>, vector<1x40x128xf32>
    %366 = vector.shape_cast %365 : vector<1x40x128xf32> to vector<40x128xf32>
    %cst_181 = arith.constant dense<0.000000e+00> : vector<40x256xf32>
    %367 = tpu.matmul %366, %364, %cst_181 {dimension_numbers = #tpu.dot_dimension_numbers<[1], [0], [0], [1], [0, 0, 1, 1], [], []>} : vector<40x128xf32>, vector<128x256xf32>, vector<40x256xf32> -> vector<40x256xf32>
    %368 = vector.extract_strided_slice %367 {offsets = [0, 0], sizes = [8, 256], strides = [1, 1]} : vector<40x256xf32> to vector<8x256xf32>
    %c2_i32_182 = arith.constant 2 : i32
    %369 = tpu.dynamic_rotate %368 by %c2_i32_182 dim 1 : vector<8x256xf32>, i32 -> vector<8x256xf32>
    %370 = vector.broadcast %6 : vector<1x256xf32> to vector<8x256xf32>
    %371 = arith.mulf %369, %370 : vector<8x256xf32>
    %372 = vector.broadcast %363 : vector<8x1xf32> to vector<8x256xf32>
    %373 = arith.addf %372, %371 : vector<8x256xf32>
    %374 = vector.extract_strided_slice %367 {offsets = [8, 0], sizes = [8, 256], strides = [1, 1]} : vector<40x256xf32> to vector<8x256xf32>
    %c1_i32_183 = arith.constant 1 : i32
    %375 = tpu.dynamic_rotate %374 by %c1_i32_183 dim 1 : vector<8x256xf32>, i32 -> vector<8x256xf32>
    %376 = vector.broadcast %10 : vector<1x256xf32> to vector<8x256xf32>
    %377 = arith.mulf %375, %376 : vector<8x256xf32>
    %378 = arith.addf %373, %377 : vector<8x256xf32>
    %379 = vector.extract_strided_slice %367 {offsets = [16, 0], sizes = [8, 256], strides = [1, 1]} : vector<40x256xf32> to vector<8x256xf32>
    %380 = arith.addf %378, %379 : vector<8x256xf32>
    %381 = vector.extract_strided_slice %367 {offsets = [24, 0], sizes = [8, 256], strides = [1, 1]} : vector<40x256xf32> to vector<8x256xf32>
    %c255_i32_184 = arith.constant 255 : i32
    %382 = tpu.dynamic_rotate %381 by %c255_i32_184 dim 1 : vector<8x256xf32>, i32 -> vector<8x256xf32>
    %383 = vector.broadcast %14 : vector<1x256xf32> to vector<8x256xf32>
    %384 = arith.mulf %382, %383 : vector<8x256xf32>
    %385 = arith.addf %380, %384 : vector<8x256xf32>
    %386 = vector.extract_strided_slice %367 {offsets = [32, 0], sizes = [8, 256], strides = [1, 1]} : vector<40x256xf32> to vector<8x256xf32>
    %c254_i32_185 = arith.constant 254 : i32
    %387 = tpu.dynamic_rotate %386 by %c254_i32_185 dim 1 : vector<8x256xf32>, i32 -> vector<8x256xf32>
    %388 = vector.broadcast %18 : vector<1x256xf32> to vector<8x256xf32>
    %389 = arith.mulf %387, %388 : vector<8x256xf32>
    %390 = arith.addf %385, %389 : vector<8x256xf32>
    %c0_186 = arith.constant 0 : index
    %c16_187 = arith.constant 16 : index
    %391 = vector.load %arg16[%c0_186, %c16_187] : memref<128x320xf32, #tpu.memory_space<vmem>>, vector<128x256xf32>
    %c1_188 = arith.constant 1 : index
    %c0_189 = arith.constant 0 : index
    %c0_190 = arith.constant 0 : index
    %392 = vector.load %arg11[%c1_188, %c0_189, %c0_190] : memref<5x40x128xf32, #tpu.memory_space<vmem>>, vector<1x40x128xf32>
    %393 = vector.shape_cast %392 : vector<1x40x128xf32> to vector<40x128xf32>
    %cst_191 = arith.constant dense<0.000000e+00> : vector<40x256xf32>
    %394 = tpu.matmul %393, %391, %cst_191 {dimension_numbers = #tpu.dot_dimension_numbers<[1], [0], [0], [1], [0, 0, 1, 1], [], []>} : vector<40x128xf32>, vector<128x256xf32>, vector<40x256xf32> -> vector<40x256xf32>
    %395 = vector.extract_strided_slice %394 {offsets = [0, 0], sizes = [8, 256], strides = [1, 1]} : vector<40x256xf32> to vector<8x256xf32>
    %c2_i32_192 = arith.constant 2 : i32
    %396 = tpu.dynamic_rotate %395 by %c2_i32_192 dim 1 : vector<8x256xf32>, i32 -> vector<8x256xf32>
    %397 = vector.broadcast %6 : vector<1x256xf32> to vector<8x256xf32>
    %398 = arith.mulf %396, %397 : vector<8x256xf32>
    %399 = arith.addf %390, %398 : vector<8x256xf32>
    %400 = vector.extract_strided_slice %394 {offsets = [8, 0], sizes = [8, 256], strides = [1, 1]} : vector<40x256xf32> to vector<8x256xf32>
    %c1_i32_193 = arith.constant 1 : i32
    %401 = tpu.dynamic_rotate %400 by %c1_i32_193 dim 1 : vector<8x256xf32>, i32 -> vector<8x256xf32>
    %402 = vector.broadcast %10 : vector<1x256xf32> to vector<8x256xf32>
    %403 = arith.mulf %401, %402 : vector<8x256xf32>
    %404 = arith.addf %399, %403 : vector<8x256xf32>
    %405 = vector.extract_strided_slice %394 {offsets = [16, 0], sizes = [8, 256], strides = [1, 1]} : vector<40x256xf32> to vector<8x256xf32>
    %406 = arith.addf %404, %405 : vector<8x256xf32>
    %407 = vector.extract_strided_slice %394 {offsets = [24, 0], sizes = [8, 256], strides = [1, 1]} : vector<40x256xf32> to vector<8x256xf32>
    %c255_i32_194 = arith.constant 255 : i32
    %408 = tpu.dynamic_rotate %407 by %c255_i32_194 dim 1 : vector<8x256xf32>, i32 -> vector<8x256xf32>
    %409 = vector.broadcast %14 : vector<1x256xf32> to vector<8x256xf32>
    %410 = arith.mulf %408, %409 : vector<8x256xf32>
    %411 = arith.addf %406, %410 : vector<8x256xf32>
    %412 = vector.extract_strided_slice %394 {offsets = [32, 0], sizes = [8, 256], strides = [1, 1]} : vector<40x256xf32> to vector<8x256xf32>
    %c254_i32_195 = arith.constant 254 : i32
    %413 = tpu.dynamic_rotate %412 by %c254_i32_195 dim 1 : vector<8x256xf32>, i32 -> vector<8x256xf32>
    %414 = vector.broadcast %18 : vector<1x256xf32> to vector<8x256xf32>
    %415 = arith.mulf %413, %414 : vector<8x256xf32>
    %416 = arith.addf %411, %415 : vector<8x256xf32>
    %c0_196 = arith.constant 0 : index
    %c32_197 = arith.constant 32 : index
    %417 = vector.load %arg16[%c0_196, %c32_197] : memref<128x320xf32, #tpu.memory_space<vmem>>, vector<128x256xf32>
    %c2_198 = arith.constant 2 : index
    %c0_199 = arith.constant 0 : index
    %c0_200 = arith.constant 0 : index
    %418 = vector.load %arg11[%c2_198, %c0_199, %c0_200] : memref<5x40x128xf32, #tpu.memory_space<vmem>>, vector<1x40x128xf32>
    %419 = vector.shape_cast %418 : vector<1x40x128xf32> to vector<40x128xf32>
    %cst_201 = arith.constant dense<0.000000e+00> : vector<40x256xf32>
    %420 = tpu.matmul %419, %417, %cst_201 {dimension_numbers = #tpu.dot_dimension_numbers<[1], [0], [0], [1], [0, 0, 1, 1], [], []>} : vector<40x128xf32>, vector<128x256xf32>, vector<40x256xf32> -> vector<40x256xf32>
    %421 = vector.extract_strided_slice %420 {offsets = [0, 0], sizes = [8, 256], strides = [1, 1]} : vector<40x256xf32> to vector<8x256xf32>
    %c2_i32_202 = arith.constant 2 : i32
    %422 = tpu.dynamic_rotate %421 by %c2_i32_202 dim 1 : vector<8x256xf32>, i32 -> vector<8x256xf32>
    %423 = vector.broadcast %6 : vector<1x256xf32> to vector<8x256xf32>
    %424 = arith.mulf %422, %423 : vector<8x256xf32>
    %425 = arith.addf %416, %424 : vector<8x256xf32>
    %426 = vector.extract_strided_slice %420 {offsets = [8, 0], sizes = [8, 256], strides = [1, 1]} : vector<40x256xf32> to vector<8x256xf32>
    %c1_i32_203 = arith.constant 1 : i32
    %427 = tpu.dynamic_rotate %426 by %c1_i32_203 dim 1 : vector<8x256xf32>, i32 -> vector<8x256xf32>
    %428 = vector.broadcast %10 : vector<1x256xf32> to vector<8x256xf32>
    %429 = arith.mulf %427, %428 : vector<8x256xf32>
    %430 = arith.addf %425, %429 : vector<8x256xf32>
    %431 = vector.extract_strided_slice %420 {offsets = [16, 0], sizes = [8, 256], strides = [1, 1]} : vector<40x256xf32> to vector<8x256xf32>
    %432 = arith.addf %430, %431 : vector<8x256xf32>
    %433 = vector.extract_strided_slice %420 {offsets = [24, 0], sizes = [8, 256], strides = [1, 1]} : vector<40x256xf32> to vector<8x256xf32>
    %c255_i32_204 = arith.constant 255 : i32
    %434 = tpu.dynamic_rotate %433 by %c255_i32_204 dim 1 : vector<8x256xf32>, i32 -> vector<8x256xf32>
    %435 = vector.broadcast %14 : vector<1x256xf32> to vector<8x256xf32>
    %436 = arith.mulf %434, %435 : vector<8x256xf32>
    %437 = arith.addf %432, %436 : vector<8x256xf32>
    %438 = vector.extract_strided_slice %420 {offsets = [32, 0], sizes = [8, 256], strides = [1, 1]} : vector<40x256xf32> to vector<8x256xf32>
    %c254_i32_205 = arith.constant 254 : i32
    %439 = tpu.dynamic_rotate %438 by %c254_i32_205 dim 1 : vector<8x256xf32>, i32 -> vector<8x256xf32>
    %440 = vector.broadcast %18 : vector<1x256xf32> to vector<8x256xf32>
    %441 = arith.mulf %439, %440 : vector<8x256xf32>
    %442 = arith.addf %437, %441 : vector<8x256xf32>
    %c0_206 = arith.constant 0 : index
    %c48_207 = arith.constant 48 : index
    %443 = vector.load %arg16[%c0_206, %c48_207] : memref<128x320xf32, #tpu.memory_space<vmem>>, vector<128x256xf32>
    %c3_208 = arith.constant 3 : index
    %c0_209 = arith.constant 0 : index
    %c0_210 = arith.constant 0 : index
    %444 = vector.load %arg11[%c3_208, %c0_209, %c0_210] : memref<5x40x128xf32, #tpu.memory_space<vmem>>, vector<1x40x128xf32>
    %445 = vector.shape_cast %444 : vector<1x40x128xf32> to vector<40x128xf32>
    %cst_211 = arith.constant dense<0.000000e+00> : vector<40x256xf32>
    %446 = tpu.matmul %445, %443, %cst_211 {dimension_numbers = #tpu.dot_dimension_numbers<[1], [0], [0], [1], [0, 0, 1, 1], [], []>} : vector<40x128xf32>, vector<128x256xf32>, vector<40x256xf32> -> vector<40x256xf32>
    %447 = vector.extract_strided_slice %446 {offsets = [0, 0], sizes = [8, 256], strides = [1, 1]} : vector<40x256xf32> to vector<8x256xf32>
    %c2_i32_212 = arith.constant 2 : i32
    %448 = tpu.dynamic_rotate %447 by %c2_i32_212 dim 1 : vector<8x256xf32>, i32 -> vector<8x256xf32>
    %449 = vector.broadcast %6 : vector<1x256xf32> to vector<8x256xf32>
    %450 = arith.mulf %448, %449 : vector<8x256xf32>
    %451 = arith.addf %442, %450 : vector<8x256xf32>
    %452 = vector.extract_strided_slice %446 {offsets = [8, 0], sizes = [8, 256], strides = [1, 1]} : vector<40x256xf32> to vector<8x256xf32>
    %c1_i32_213 = arith.constant 1 : i32
    %453 = tpu.dynamic_rotate %452 by %c1_i32_213 dim 1 : vector<8x256xf32>, i32 -> vector<8x256xf32>
    %454 = vector.broadcast %10 : vector<1x256xf32> to vector<8x256xf32>
    %455 = arith.mulf %453, %454 : vector<8x256xf32>
    %456 = arith.addf %451, %455 : vector<8x256xf32>
    %457 = vector.extract_strided_slice %446 {offsets = [16, 0], sizes = [8, 256], strides = [1, 1]} : vector<40x256xf32> to vector<8x256xf32>
    %458 = arith.addf %456, %457 : vector<8x256xf32>
    %459 = vector.extract_strided_slice %446 {offsets = [24, 0], sizes = [8, 256], strides = [1, 1]} : vector<40x256xf32> to vector<8x256xf32>
    %c255_i32_214 = arith.constant 255 : i32
    %460 = tpu.dynamic_rotate %459 by %c255_i32_214 dim 1 : vector<8x256xf32>, i32 -> vector<8x256xf32>
    %461 = vector.broadcast %14 : vector<1x256xf32> to vector<8x256xf32>
    %462 = arith.mulf %460, %461 : vector<8x256xf32>
    %463 = arith.addf %458, %462 : vector<8x256xf32>
    %464 = vector.extract_strided_slice %446 {offsets = [32, 0], sizes = [8, 256], strides = [1, 1]} : vector<40x256xf32> to vector<8x256xf32>
    %c254_i32_215 = arith.constant 254 : i32
    %465 = tpu.dynamic_rotate %464 by %c254_i32_215 dim 1 : vector<8x256xf32>, i32 -> vector<8x256xf32>
    %466 = vector.broadcast %18 : vector<1x256xf32> to vector<8x256xf32>
    %467 = arith.mulf %465, %466 : vector<8x256xf32>
    %468 = arith.addf %463, %467 : vector<8x256xf32>
    %c0_216 = arith.constant 0 : index
    %c64_217 = arith.constant 64 : index
    %469 = vector.load %arg16[%c0_216, %c64_217] : memref<128x320xf32, #tpu.memory_space<vmem>>, vector<128x256xf32>
    %c4_218 = arith.constant 4 : index
    %c0_219 = arith.constant 0 : index
    %c0_220 = arith.constant 0 : index
    %470 = vector.load %arg11[%c4_218, %c0_219, %c0_220] : memref<5x40x128xf32, #tpu.memory_space<vmem>>, vector<1x40x128xf32>
    %471 = vector.shape_cast %470 : vector<1x40x128xf32> to vector<40x128xf32>
    %cst_221 = arith.constant dense<0.000000e+00> : vector<40x256xf32>
    %472 = tpu.matmul %471, %469, %cst_221 {dimension_numbers = #tpu.dot_dimension_numbers<[1], [0], [0], [1], [0, 0, 1, 1], [], []>} : vector<40x128xf32>, vector<128x256xf32>, vector<40x256xf32> -> vector<40x256xf32>
    %473 = vector.extract_strided_slice %472 {offsets = [0, 0], sizes = [8, 256], strides = [1, 1]} : vector<40x256xf32> to vector<8x256xf32>
    %c2_i32_222 = arith.constant 2 : i32
    %474 = tpu.dynamic_rotate %473 by %c2_i32_222 dim 1 : vector<8x256xf32>, i32 -> vector<8x256xf32>
    %475 = vector.broadcast %6 : vector<1x256xf32> to vector<8x256xf32>
    %476 = arith.mulf %474, %475 : vector<8x256xf32>
    %477 = arith.addf %468, %476 : vector<8x256xf32>
    %478 = vector.extract_strided_slice %472 {offsets = [8, 0], sizes = [8, 256], strides = [1, 1]} : vector<40x256xf32> to vector<8x256xf32>
    %c1_i32_223 = arith.constant 1 : i32
    %479 = tpu.dynamic_rotate %478 by %c1_i32_223 dim 1 : vector<8x256xf32>, i32 -> vector<8x256xf32>
    %480 = vector.broadcast %10 : vector<1x256xf32> to vector<8x256xf32>
    %481 = arith.mulf %479, %480 : vector<8x256xf32>
    %482 = arith.addf %477, %481 : vector<8x256xf32>
    %483 = vector.extract_strided_slice %472 {offsets = [16, 0], sizes = [8, 256], strides = [1, 1]} : vector<40x256xf32> to vector<8x256xf32>
    %484 = arith.addf %482, %483 : vector<8x256xf32>
    %485 = vector.extract_strided_slice %472 {offsets = [24, 0], sizes = [8, 256], strides = [1, 1]} : vector<40x256xf32> to vector<8x256xf32>
    %c255_i32_224 = arith.constant 255 : i32
    %486 = tpu.dynamic_rotate %485 by %c255_i32_224 dim 1 : vector<8x256xf32>, i32 -> vector<8x256xf32>
    %487 = vector.broadcast %14 : vector<1x256xf32> to vector<8x256xf32>
    %488 = arith.mulf %486, %487 : vector<8x256xf32>
    %489 = arith.addf %484, %488 : vector<8x256xf32>
    %490 = vector.extract_strided_slice %472 {offsets = [32, 0], sizes = [8, 256], strides = [1, 1]} : vector<40x256xf32> to vector<8x256xf32>
    %c254_i32_225 = arith.constant 254 : i32
    %491 = tpu.dynamic_rotate %490 by %c254_i32_225 dim 1 : vector<8x256xf32>, i32 -> vector<8x256xf32>
    %492 = vector.broadcast %18 : vector<1x256xf32> to vector<8x256xf32>
    %493 = arith.mulf %491, %492 : vector<8x256xf32>
    %494 = arith.addf %489, %493 : vector<8x256xf32>
    %cst_226 = arith.constant dense<0.000000e+00> : vector<4xf32>
    %495 = vector.multi_reduction <add>, %353, %cst_226 [1] : vector<4x256xf32> to vector<4xf32>
    %496 = vector.shape_cast %495 : vector<4xf32> to vector<4x1xf32>
    %497 = arith.mulf %353, %353 : vector<4x256xf32>
    %cst_227 = arith.constant dense<0.000000e+00> : vector<4xf32>
    %498 = vector.multi_reduction <add>, %497, %cst_227 [1] : vector<4x256xf32> to vector<4xf32>
    %499 = vector.shape_cast %498 : vector<4xf32> to vector<4x1xf32>
    %cst_228 = arith.constant 3.906250e-03 : f32
    %500 = vector.broadcast %cst_228 : f32 to vector<4x1xf32>
    %501 = arith.mulf %496, %500 : vector<4x1xf32>
    %502 = arith.mulf %496, %501 : vector<4x1xf32>
    %503 = arith.subf %499, %502 : vector<4x1xf32>
    %cst_229 = arith.constant 0.00392156886 : f32
    %504 = vector.broadcast %cst_229 : f32 to vector<4x1xf32>
    %505 = arith.mulf %503, %504 : vector<4x1xf32>
    %506 = vector.broadcast %501 : vector<4x1xf32> to vector<4x256xf32>
    %507 = arith.subf %353, %506 : vector<4x256xf32>
    %cst_230 = arith.constant 9.99999974E-6 : f32
    %508 = vector.broadcast %cst_230 : f32 to vector<4x1xf32>
    %509 = arith.addf %505, %508 : vector<4x1xf32>
    %510 = math.rsqrt %509 : vector<4x1xf32>
    %511 = vector.broadcast %510 : vector<4x1xf32> to vector<4x256xf32>
    %512 = arith.mulf %507, %511 : vector<4x256xf32>
    %513 = vector.extract_strided_slice %494 {offsets = [0, 0], sizes = [4, 256], strides = [1, 1]} : vector<8x256xf32> to vector<4x256xf32>
    %cst_231 = arith.constant 1.000000e+00 : f32
    %514 = vector.broadcast %cst_231 : f32 to vector<4x256xf32>
    %515 = arith.addf %514, %513 : vector<4x256xf32>
    %516 = arith.mulf %512, %515 : vector<4x256xf32>
    %517 = vector.extract_strided_slice %494 {offsets = [4, 0], sizes = [4, 256], strides = [1, 1]} : vector<8x256xf32> to vector<4x256xf32>
    %518 = arith.addf %516, %517 : vector<4x256xf32>
    %cst_232 = arith.constant 0.000000e+00 : f32
    %519 = vector.broadcast %cst_232 : f32 to vector<4x256xf32>
    %520 = arith.cmpf oge, %518, %519 : vector<4x256xf32>
    %cst_233 = arith.constant 2.000000e-01 : f32
    %521 = vector.broadcast %cst_233 : f32 to vector<4x256xf32>
    %522 = arith.mulf %521, %518 : vector<4x256xf32>
    %523 = arith.select %520, %518, %522 : vector<4x256xi1>, vector<4x256xf32>
    %c0_234 = arith.constant 0 : index
    %c32_235 = arith.constant 32 : index
    %524 = vector.load %arg16[%c0_234, %c32_235] : memref<128x320xf32, #tpu.memory_space<vmem>>, vector<4x256xf32>
    tpu.vector_store %arg16[%c0_234, %c32_235], %523 {strides = array<i32>} : memref<128x320xf32, #tpu.memory_space<vmem>>, vector<4x256xf32>,
    %c0_236 = arith.constant 0 : index
    %c0_237 = arith.constant 0 : index
    %525 = vector.load %arg14[%c0_236, %c0_237] : memref<4x1xf32, #tpu.memory_space<vmem>>, vector<4x1xf32>
    %c0_238 = arith.constant 0 : index
    %c16_239 = arith.constant 16 : index
    %526 = vector.load %arg16[%c0_238, %c16_239] : memref<128x320xf32, #tpu.memory_space<vmem>>, vector<4x256xf32>
    %c0_240 = arith.constant 0 : index
    %c0_241 = arith.constant 0 : index
    %c0_242 = arith.constant 0 : index
    %527 = vector.load %arg13[%c0_240, %c0_241, %c0_242] : memref<3x12x4xf32, #tpu.memory_space<vmem>>, vector<1x12x4xf32>
    %528 = vector.shape_cast %527 : vector<1x12x4xf32> to vector<12x4xf32>
    %cst_243 = arith.constant dense<0.000000e+00> : vector<12x256xf32>
    %529 = tpu.matmul %528, %526, %cst_243 {dimension_numbers = #tpu.dot_dimension_numbers<[1], [0], [0], [1], [0, 0, 1, 1], [], []>} : vector<12x4xf32>, vector<4x256xf32>, vector<12x256xf32> -> vector<12x256xf32>
    %530 = vector.extract_strided_slice %529 {offsets = [0, 0], sizes = [4, 256], strides = [1, 1]} : vector<12x256xf32> to vector<4x256xf32>
    %c1_i32_244 = arith.constant 1 : i32
    %531 = tpu.dynamic_rotate %530 by %c1_i32_244 dim 1 : vector<4x256xf32>, i32 -> vector<4x256xf32>
    %532 = vector.broadcast %10 : vector<1x256xf32> to vector<4x256xf32>
    %533 = arith.mulf %531, %532 : vector<4x256xf32>
    %534 = vector.broadcast %525 : vector<4x1xf32> to vector<4x256xf32>
    %535 = arith.addf %534, %533 : vector<4x256xf32>
    %536 = vector.extract_strided_slice %529 {offsets = [4, 0], sizes = [4, 256], strides = [1, 1]} : vector<12x256xf32> to vector<4x256xf32>
    %537 = arith.addf %535, %536 : vector<4x256xf32>
    %538 = vector.extract_strided_slice %529 {offsets = [8, 0], sizes = [4, 256], strides = [1, 1]} : vector<12x256xf32> to vector<4x256xf32>
    %c255_i32_245 = arith.constant 255 : i32
    %539 = tpu.dynamic_rotate %538 by %c255_i32_245 dim 1 : vector<4x256xf32>, i32 -> vector<4x256xf32>
    %540 = vector.broadcast %14 : vector<1x256xf32> to vector<4x256xf32>
    %541 = arith.mulf %539, %540 : vector<4x256xf32>
    %542 = arith.addf %537, %541 : vector<4x256xf32>
    %c0_246 = arith.constant 0 : index
    %c32_247 = arith.constant 32 : index
    %543 = vector.load %arg16[%c0_246, %c32_247] : memref<128x320xf32, #tpu.memory_space<vmem>>, vector<4x256xf32>
    %c1_248 = arith.constant 1 : index
    %c0_249 = arith.constant 0 : index
    %c0_250 = arith.constant 0 : index
    %544 = vector.load %arg13[%c1_248, %c0_249, %c0_250] : memref<3x12x4xf32, #tpu.memory_space<vmem>>, vector<1x12x4xf32>
    %545 = vector.shape_cast %544 : vector<1x12x4xf32> to vector<12x4xf32>
    %cst_251 = arith.constant dense<0.000000e+00> : vector<12x256xf32>
    %546 = tpu.matmul %545, %543, %cst_251 {dimension_numbers = #tpu.dot_dimension_numbers<[1], [0], [0], [1], [0, 0, 1, 1], [], []>} : vector<12x4xf32>, vector<4x256xf32>, vector<12x256xf32> -> vector<12x256xf32>
    %547 = vector.extract_strided_slice %546 {offsets = [0, 0], sizes = [4, 256], strides = [1, 1]} : vector<12x256xf32> to vector<4x256xf32>
    %c1_i32_252 = arith.constant 1 : i32
    %548 = tpu.dynamic_rotate %547 by %c1_i32_252 dim 1 : vector<4x256xf32>, i32 -> vector<4x256xf32>
    %549 = vector.broadcast %10 : vector<1x256xf32> to vector<4x256xf32>
    %550 = arith.mulf %548, %549 : vector<4x256xf32>
    %551 = arith.addf %542, %550 : vector<4x256xf32>
    %552 = vector.extract_strided_slice %546 {offsets = [4, 0], sizes = [4, 256], strides = [1, 1]} : vector<12x256xf32> to vector<4x256xf32>
    %553 = arith.addf %551, %552 : vector<4x256xf32>
    %554 = vector.extract_strided_slice %546 {offsets = [8, 0], sizes = [4, 256], strides = [1, 1]} : vector<12x256xf32> to vector<4x256xf32>
    %c255_i32_253 = arith.constant 255 : i32
    %555 = tpu.dynamic_rotate %554 by %c255_i32_253 dim 1 : vector<4x256xf32>, i32 -> vector<4x256xf32>
    %556 = vector.broadcast %14 : vector<1x256xf32> to vector<4x256xf32>
    %557 = arith.mulf %555, %556 : vector<4x256xf32>
    %558 = arith.addf %553, %557 : vector<4x256xf32>
    %c0_254 = arith.constant 0 : index
    %c48_255 = arith.constant 48 : index
    %559 = vector.load %arg16[%c0_254, %c48_255] : memref<128x320xf32, #tpu.memory_space<vmem>>, vector<4x256xf32>
    %c2_256 = arith.constant 2 : index
    %c0_257 = arith.constant 0 : index
    %c0_258 = arith.constant 0 : index
    %560 = vector.load %arg13[%c2_256, %c0_257, %c0_258] : memref<3x12x4xf32, #tpu.memory_space<vmem>>, vector<1x12x4xf32>
    %561 = vector.shape_cast %560 : vector<1x12x4xf32> to vector<12x4xf32>
    %cst_259 = arith.constant dense<0.000000e+00> : vector<12x256xf32>
    %562 = tpu.matmul %561, %559, %cst_259 {dimension_numbers = #tpu.dot_dimension_numbers<[1], [0], [0], [1], [0, 0, 1, 1], [], []>} : vector<12x4xf32>, vector<4x256xf32>, vector<12x256xf32> -> vector<12x256xf32>
    %563 = vector.extract_strided_slice %562 {offsets = [0, 0], sizes = [4, 256], strides = [1, 1]} : vector<12x256xf32> to vector<4x256xf32>
    %c1_i32_260 = arith.constant 1 : i32
    %564 = tpu.dynamic_rotate %563 by %c1_i32_260 dim 1 : vector<4x256xf32>, i32 -> vector<4x256xf32>
    %565 = vector.broadcast %10 : vector<1x256xf32> to vector<4x256xf32>
    %566 = arith.mulf %564, %565 : vector<4x256xf32>
    %567 = arith.addf %558, %566 : vector<4x256xf32>
    %568 = vector.extract_strided_slice %562 {offsets = [4, 0], sizes = [4, 256], strides = [1, 1]} : vector<12x256xf32> to vector<4x256xf32>
    %569 = arith.addf %567, %568 : vector<4x256xf32>
    %570 = vector.extract_strided_slice %562 {offsets = [8, 0], sizes = [4, 256], strides = [1, 1]} : vector<12x256xf32> to vector<4x256xf32>
    %c255_i32_261 = arith.constant 255 : i32
    %571 = tpu.dynamic_rotate %570 by %c255_i32_261 dim 1 : vector<4x256xf32>, i32 -> vector<4x256xf32>
    %572 = vector.broadcast %14 : vector<1x256xf32> to vector<4x256xf32>
    %573 = arith.mulf %571, %572 : vector<4x256xf32>
    %574 = arith.addf %569, %573 : vector<4x256xf32>
    %575 = arith.addf %574, %132 : vector<4x256xf32>
    %c0_262 = arith.constant 0 : index
    %c0_263 = arith.constant 0 : index
    %c0_264 = arith.constant 0 : index
    %576 = vector.load %arg15[%c0_262, %c0_263, %c0_264] : memref<1x4x256xf32, #tpu.memory_space<vmem>>, vector<1x4x256xf32>
    %577 = vector.shape_cast %576 : vector<1x4x256xf32> to vector<4x256xf32>
    %578 = vector.shape_cast %575 : vector<4x256xf32> to vector<1x4x256xf32>
    tpu.vector_store %arg15[%c0_262, %c0_263, %c0_264], %578 {strides = array<i32>} : memref<1x4x256xf32, #tpu.memory_space<vmem>>, vector<1x4x256xf32>,
    return
  }
  func.func @transform_0(%arg0: i32) -> (i32, i32, i32) {
    %c0_i32 = arith.constant 0 : i32
    %c0_i32_0 = arith.constant 0 : i32
    %c0_i32_1 = arith.constant 0 : i32
    return %arg0, %c0_i32, %c0_i32_0 : i32, i32, i32
  }
  func.func @transform_1(%arg0: i32) -> (i32, i32, i32) {
    %c0_i32 = arith.constant 0 : i32
    %c0_i32_0 = arith.constant 0 : i32
    %c0_i32_1 = arith.constant 0 : i32
    return %arg0, %c0_i32, %c0_i32_0 : i32, i32, i32
  }
  func.func @transform_2(%arg0: i32) -> (i32, i32) {
    %c0_i32 = arith.constant 0 : i32
    %c0_i32_0 = arith.constant 0 : i32
    %c0_i32_1 = arith.constant 0 : i32
    return %c0_i32, %c0_i32_0 : i32, i32
  }
  func.func @transform_3(%arg0: i32) -> (i32, i32) {
    %c0_i32 = arith.constant 0 : i32
    %c0_i32_0 = arith.constant 0 : i32
    %c0_i32_1 = arith.constant 0 : i32
    return %c0_i32, %c0_i32_0 : i32, i32
  }
  func.func @transform_4(%arg0: i32) -> (i32, i32, i32) {
    %c0_i32 = arith.constant 0 : i32
    %c0_i32_0 = arith.constant 0 : i32
    %c0_i32_1 = arith.constant 0 : i32
    %c0_i32_2 = arith.constant 0 : i32
    return %c0_i32, %c0_i32_0, %c0_i32_1 : i32, i32, i32
  }
  func.func @transform_5(%arg0: i32) -> (i32, i32) {
    %c0_i32 = arith.constant 0 : i32
    %c0_i32_0 = arith.constant 0 : i32
    %c0_i32_1 = arith.constant 0 : i32
    return %c0_i32, %c0_i32_0 : i32, i32
  }
  func.func @transform_6(%arg0: i32) -> (i32, i32, i32) {
    %c0_i32 = arith.constant 0 : i32
    %c0_i32_0 = arith.constant 0 : i32
    %c0_i32_1 = arith.constant 0 : i32
    %c0_i32_2 = arith.constant 0 : i32
    return %c0_i32, %c0_i32_0, %c0_i32_1 : i32, i32, i32
  }
  func.func @transform_7(%arg0: i32) -> (i32, i32) {
    %c0_i32 = arith.constant 0 : i32
    %c0_i32_0 = arith.constant 0 : i32
    %c0_i32_1 = arith.constant 0 : i32
    return %c0_i32, %c0_i32_0 : i32, i32
  }
  func.func @transform_8(%arg0: i32) -> (i32, i32) {
    %c0_i32 = arith.constant 0 : i32
    %c0_i32_0 = arith.constant 0 : i32
    %c0_i32_1 = arith.constant 0 : i32
    return %c0_i32, %c0_i32_0 : i32, i32
  }
  func.func @transform_9(%arg0: i32) -> (i32, i32) {
    %c0_i32 = arith.constant 0 : i32
    %c0_i32_0 = arith.constant 0 : i32
    %c0_i32_1 = arith.constant 0 : i32
    return %c0_i32, %c0_i32_0 : i32, i32
  }
  func.func @transform_10(%arg0: i32) -> (i32, i32, i32) {
    %c0_i32 = arith.constant 0 : i32
    %c0_i32_0 = arith.constant 0 : i32
    %c0_i32_1 = arith.constant 0 : i32
    %c0_i32_2 = arith.constant 0 : i32
    return %c0_i32, %c0_i32_0, %c0_i32_1 : i32, i32, i32
  }
  func.func @transform_11(%arg0: i32) -> (i32, i32) {
    %c0_i32 = arith.constant 0 : i32
    %c0_i32_0 = arith.constant 0 : i32
    %c0_i32_1 = arith.constant 0 : i32
    return %c0_i32, %c0_i32_0 : i32, i32
  }
  func.func @transform_12(%arg0: i32) -> (i32, i32, i32) {
    %c0_i32 = arith.constant 0 : i32
    %c0_i32_0 = arith.constant 0 : i32
    %c0_i32_1 = arith.constant 0 : i32
    %c0_i32_2 = arith.constant 0 : i32
    return %c0_i32, %c0_i32_0, %c0_i32_1 : i32, i32, i32
  }
  func.func @transform_13(%arg0: i32) -> (i32, i32) {
    %c0_i32 = arith.constant 0 : i32
    %c0_i32_0 = arith.constant 0 : i32
    %c0_i32_1 = arith.constant 0 : i32
    return %c0_i32, %c0_i32_0 : i32, i32
  }
  func.func @transform_14(%arg0: i32) -> (i32, i32, i32) {
    %c0_i32 = arith.constant 0 : i32
    %c0_i32_0 = arith.constant 0 : i32
    %c0_i32_1 = arith.constant 0 : i32
    return %arg0, %c0_i32, %c0_i32_0 : i32, i32, i32
  }
}

</mosaic_0001>

<bundles_post_ra>
// kernel: spatial_res_conv_block.1
= control target key start
LH: loop header
LB: loop body
LE: loop exit
PB: predicated region body
PF: predicated region fallthrough
CT: control target
= control target key end

     0   :  { %s7755_s29 = smov 0   ;;  %s10749_s0 = inlined_call_operand.vmem [shape: f32[2,2,256], index: 0, kind: input, shape index: {}]   ;;  %s10750_s1 = inlined_call_operand.vmem [shape: f32[2,4,256], index: 1, kind: input, shape index: {}]   ;;  %s10751_s2 = inlined_call_operand.vmem [shape: f32[128,50], index: 2, kind: input, shape index: {}]   ;;  %s10752_s3 = inlined_call_operand.vmem [shape: f32[128,1], index: 3, kind: input, shape index: {}]   ;;  %s10753_s4 = inlined_call_operand.vmem [shape: f32[5,40,128], index: 4, kind: input, shape index: {}]   ;;  %s10754_s5 = inlined_call_operand.vmem [shape: f32[8,1], index: 5, kind: input, shape index: {}]   ;;  %s10755_s6 = inlined_call_operand.vmem [shape: f32[3,12,4], index: 6, kind: input, shape index: {}]   ;;  %s10756_s7 = inlined_call_operand.vmem [shape: f32[4,1], index: 7, kind: input, shape index: {}]   ;;  %s10757_s8 = inlined_call_operand.vmem [shape: f32[128,50], index: 8, kind: input, shape index: {}]   ;;  %s10758_s9 = inlined_call_operand.vmem [shape: f32[128,1], index: 9, kind: input, shape index: {}]   ;;  %s10759_s10 = inlined_call_operand.vmem [shape: f32[5,40,128], index: 10, kind: input, shape index: {}]   ;;  %s10760_s11 = inlined_call_operand.vmem [shape: f32[8,1], index: 11, kind: input, shape index: {}]   ;;  %s10761_s12 = inlined_call_operand.vmem [shape: f32[3,12,4], index: 12, kind: input, shape index: {}]   ;;  %s10762_s13 = inlined_call_operand.vmem [shape: f32[4,1], index: 13, kind: input, shape index: {}]   ;;  %s10763_s14 = inlined_call_operand.vmem [shape: f32[2,4,256], index: 14, kind: output, shape index: {}]  }
   0x1   :  { %10788 = sst [smem:[#allocation6_spill]] %s10749_s0 }
   0x2   :  { %10789 = sst [smem:[#allocation7_spill]] %s10750_s1 }
   0x3 LB: > { %s6109_s30 = sadd.s32 4294967295, %s7666_s29   ;;  %p6113_p0 = scmp.ge.s32.totalorder %s7666_s29, 1  ;;  %s7666_s29 = sphi %s7755_s29, %s24_s29  }
   0x4   : > { %p422_p1 = scmp.lt.s32.totalorder %s7666_s29, 3 }
   0x6   : > { %p423_p2 = pnand %p6113_p0, %p422_p1 }
   0x8   : > { %426 = sbr.rel (%p423_p2) target bundleno = 3389 (0xd3d), region = 76 }
   0xf   : > { %p7765_p3 = scmp.lt.s32.totalorder %s6109_s30, 1  ;;  %vm517_vm0 = vcmask 261120   ;;  %vm534_vm1 = vcmask 523520   ;;  %v10783_v0 = vmov 0.0   ;;  %s10791_s0 = sld [smem:[#allocation6_spill]]  ;;  %vm569_vm2 = vcmask 1041664  }
  0x10   : > { %518 = vst.msk [vmem:[#allocation2] sm:$0xff] %vm517_vm0, %v10783_v0  ;;  %519 = vst.msk [vmem:[#allocation2 + $0x18] sm:$0xff] %vm517_vm0, %v10783_v0  ;;  %1234 = vmatprep.mubr.f32.mxu1 %v10783_v0  ;;  %3226 = vmatprep.mubr.f32.mxu0 %v10783_v0  ;;  %s10781_s20 = smov 32   ;;  %vm572_vm3 = vcmask 254976   ;;  %s10779_s21 = smov 112   ;;  %v488_v35 = vlaneseq  ;;  %vm652_vm4 = vcmask 916480  }
  0x11   : > { %520 = vst.msk [vmem:[#allocation2 + $0x30] sm:$0xff] %vm517_vm0, %v10783_v0  ;;  %521 = vst.msk [vmem:[#allocation2 + $0x48] sm:$0xff] %vm517_vm0, %v10783_v0  ;;  %s10809_s30 = smov (!%p7765_p3, %s6109_s30), 1  ;;  %s10773_s22 = smov 80   ;;  %vm742_vm11 = vcmask 785408  }
  0x12   : > { %522 = vst.msk [vmem:[#allocation2 + $0x60] sm:$0xff] %vm517_vm0, %v10783_v0  ;;  %523 = vst.msk [vmem:[#allocation2 + $0x78] sm:$0xff] %vm517_vm0, %v10783_v0  ;;  %s6239_s16 = sshll.u32 %s10809_s30, 2  ;;  %s10775_s23 = smov 96   ;;  %v7888_v38 = vand.u32 127, %v488_v35 }
  0x13   : > { %524 = vst.msk [vmem:[#allocation2 + $0x90] sm:$0xff] %vm517_vm0, %v10783_v0  ;;  %525 = vst.msk [vmem:[#allocation2 + $0xa8] sm:$0xff] %vm517_vm0, %v10783_v0  ;;  %s10768_s24 = smov 1   ;;  %s10771_s25 = smov 64  }
  0x14   : > { %526 = vst.msk [vmem:[#allocation2 + $0xc0] sm:$0xff] %vm517_vm0, %v10783_v0  ;;  %527 = vst.msk [vmem:[#allocation2 + $0xd8] sm:$0xff] %vm517_vm0, %v10783_v0  ;;  %s10766_s26 = smov 127   ;;  %s10777_s27 = smov 2   ;;  %v490_v41 = vadd.s32 128, %v7888_v38  ;;  %v7896_v44 = vand.u32 15, %v7888_v38 }
  0x15   : > { %528 = vst.msk [vmem:[#allocation2 + $0xf0] sm:$0xff] %vm517_vm0, %v10783_v0  ;;  %529 = vst.msk [vmem:[#allocation2 + $0x108] sm:$0xff] %vm517_vm0, %v10783_v0  ;;  %s477_s19 = scalar_lea.vmem %s10791_s0, %s6239_s16  ;;  %s10764_s28 = smov 126   ;;  %vm591_vm7 = vcmp.lt.s32.totalorder %v7888_v38, 1  ;;  %vm616_vm10 = vcmp.lt.s32.totalorder %v7888_v38, 127  ;;  %vm580_vm14 = vcmp.lt.s32.totalorder %v7888_v38, 2 }
  0x16   : > { %530 = vst.msk [vmem:[#allocation2 + $0x120] sm:$0xff] %vm517_vm0, %v10783_v0  ;;  %531 = vst.msk [vmem:[#allocation2 + $0x138] sm:$0xff] %vm517_vm0, %v10783_v0  ;;  %v6128_v1 = vld.sshfl [vmem:[%s477_s19] sm:$0x33 pattern:$0x76325410] }
  0x17   : > { %532 = vst.msk [vmem:[#allocation2 + $0x150] sm:$0xff] %vm517_vm0, %v10783_v0  ;;  %533 = vst.msk [vmem:[#allocation2 + $0x168] sm:$0xff] %vm517_vm0, %v10783_v0  ;;  %561 = vrot.lane.b32.xlu0 %v6128_v1, %s10781_s20  ;;  %v560_v2 = vcombine.high %v6128_v1, %v6128_v1  ;;  %v7898_v45 = vand.u32 15, %v490_v41  ;;  %vm499_vm5 = vcmp.ge.s32.totalorder %v7896_v44, 1  ;;  %vm505_vm8 = vcmp.lt.s32.totalorder %v7896_v44, 15  ;;  %s10770_s17 = sshll.u32 %s10809_s30, 3 }
  0x18   : > { %535 = vst.msk [vmem:[#allocation2 + $0x10] sm:$0xff] %vm534_vm1, %v10783_v0  ;;  %536 = vst.msk [vmem:[#allocation2 + $0x28] sm:$0xff] %vm534_vm1, %v10783_v0  ;;  %v7922_v50 = vsel %vm499_vm5, 1.0, %v10783_v0  ;;  %v7943_v58 = vsel %vm505_vm8, 1.0, %v10783_v0  ;;  %vm493_vm12 = vcmp.ge.s32.totalorder %v7896_v44, 2  ;;  %vm511_vm15 = vcmp.lt.s32.totalorder %v7896_v44, 14 }
  0x19   : > { %537 = vst.msk [vmem:[#allocation2 + $0x40] sm:$0xff] %vm534_vm1, %v10783_v0  ;;  %538 = vst.msk [vmem:[#allocation2 + $0x58] sm:$0xff] %vm534_vm1, %v10783_v0  ;;  %vm500_vm6 = vcmp.ge.s32.totalorder %v7898_v45, 1  ;;  %vm506_vm9 = vcmp.lt.s32.totalorder %v7898_v45, 15  ;;  %vm494_vm13 = vcmp.ge.s32.totalorder %v7898_v45, 2  ;;  %vm915_vm5 = vcmask 523264  }
  0x1a   : > { %539 = vst.msk [vmem:[#allocation2 + $0x70] sm:$0xff] %vm534_vm1, %v10783_v0  ;;  %540 = vst.msk [vmem:[#allocation2 + $0x88] sm:$0xff] %vm534_vm1, %v10783_v0  ;;  %v7925_v51 = vsel %vm500_vm6, 1.0, %v10783_v0  ;;  %v7946_v59 = vsel %vm506_vm9, 1.0, %v10783_v0  ;;  %vm1163_vm6 = vcmask 1041408   ;;  %vm1114_vm8 = vcmask 408576  }
  0x1b   : > { %541 = vst.msk [vmem:[#allocation2 + $0xa0] sm:$0xff] %vm534_vm1, %v10783_v0  ;;  %542 = vst.msk [vmem:[#allocation2 + $0xb8] sm:$0xff] %vm534_vm1, %v10783_v0  ;;  %563 = vrot.lane.b32.xlu0 %v560_v2, %s10781_s20  ;;  %vm1523_vm9 = vcmask 1047808   ;;  %s10793_s1 = sld [smem:[#allocation7_spill]]  ;;  %s10795_s18 = smov 1  }
  0x1c   : > { %543 = vst.msk [vmem:[#allocation2 + $0xd0] sm:$0xff] %vm534_vm1, %v10783_v0  ;;  %544 = vst.msk [vmem:[#allocation2 + $0xe8] sm:$0xff] %vm534_vm1, %v10783_v0  ;;  %s10796_s16 = smov 127   ;;  %s10797_s19 = smov 126  }
  0x1d   : > { %545 = vst.msk [vmem:[#allocation2 + $0x100] sm:$0xff] %vm534_vm1, %v10783_v0  ;;  %546 = vst.msk [vmem:[#allocation2 + $0x118] sm:$0xff] %vm534_vm1, %v10783_v0 }
  0x1e   : > { %547 = vst.msk [vmem:[#allocation2 + $0x130] sm:$0xff] %vm534_vm1, %v10783_v0  ;;  %548 = vst.msk [vmem:[#allocation2 + $0x148] sm:$0xff] %vm534_vm1, %v10783_v0 }
  0x1f   : > { %549 = vst.msk [vmem:[#allocation2 + $0x160] sm:$0xff] %vm534_vm1, %v10783_v0  ;;  %550 = vst.msk [vmem:[#allocation2 + $0x178] sm:$0xff] %vm534_vm1, %v10783_v0  ;;  %vm512_vm1 = vcmp.lt.s32.totalorder %v7898_v45, 14 }
  0x89   : > { %v562_v3 = vpop.permute.xlu0 %561 }
  0x8a   : > { %570 = vst.msk [vmem:[#allocation2] sm:$0x3] %vm569_vm2, %v562_v3  ;;  %vm633_vm2 = vcmp.lt.s32.totalorder %v7888_v38, 126 }
  0x8d   : > { %v564_v4 = vpop.permute.xlu0 %563 }
  0x8e   : > { %v565_v5 = vsel %vm517_vm0, %v562_v3, %v564_v4  ;;  %573 = vst.msk [vmem:[#allocation2 + $0x10] sm:$0x3] %vm572_vm3, %v564_v4  ;;  %vm825_vm3 = vcmask 654336  }
  0x8f   : > { %571 = vst [vmem:[#allocation2 + $0x8] sm:$0x3] %v565_v5 }
  0x91   : > { %v640_v6 = vld [vmem:[#allocation2] sm:$0x3] }
  0x92   : > { %v7848_v7 = vld [vmem:[#allocation2] sm:$0x3]  ;;  %646 = vrot.lane.b32.xlu1 %v640_v6, %s10779_s21  ;;  %v689_v20 = vrot.slane %v640_v6, 2 }
  0x93   : > { %819 = vrot.lane.b32.xlu0 %v7848_v7, %s10773_s22  ;;  %v574_v8 = vld [vmem:[#allocation2] sm:$0x3] }
  0x94   : > { %v606_v9 = vrot.slane %v574_v8, 4  ;;  %v730_v10 = vld [vmem:[#allocation2] sm:$0x3] }
  0x95   : > { %v7855_v13 = vld [vmem:[#allocation2] sm:$0x3]  ;;  %v732_v14 = vld [vmem:[#allocation2 + $0x10] sm:$0x3] }
  0x96   : > { %610 = vst [vmem:[#allocation3] sm:$0x30] %v606_v9  ;;  %736 = vrot.lane.b32.xlu1 %v730_v10, %s10775_s23  ;;  %v575_v11 = vld [vmem:[#allocation2 + $0x8] sm:$0x3]  ;;  %v905_v15 = vld [vmem:[#allocation2 + $0x10] sm:$0x3] }
  0x97   : > { %587 = vrot.lane.b32.xlu0 %v574_v8, %s10768_s24  ;;  %v607_v12 = vrot.slane %v575_v11, 4  ;;  %v642_v16 = vld [vmem:[#allocation2 + $0x10] sm:$0x3]  ;;  %v641_v17 = vld [vmem:[#allocation2 + $0x8] sm:$0x3]  ;;  %v948_v24 = vrot.slane %v905_v15, 4 }
  0x98   : > { %v815_v18 = vld [vmem:[#allocation2 + $0x10] sm:$0x3]  ;;  %v814_v19 = vld [vmem:[#allocation2 + $0x8] sm:$0x3]  ;;  %v691_v25 = vrot.slane %v642_v16, 2  ;;  %v690_v26 = vrot.slane %v641_v17, 2 }
  0x99   : > { %611 = vst [vmem:[#allocation3 + $0x8] sm:$0x30] %v607_v12  ;;  %v731_v21 = vld [vmem:[#allocation2 + $0x8] sm:$0x3]  ;;  %v858_v23 = vrot.slane %v815_v18, 6  ;;  %v857_v27 = vrot.slane %v814_v19, 6 }
  0x9a   : > { %909 = vrot.lane.b32.xlu1 %v7855_v13, %s10771_s25  ;;  %v904_v22 = vld [vmem:[#allocation2 + $0x8] sm:$0x3]  ;;  %v7965_v9 = vsel %vm494_vm13, 1.0, %v10783_v0 }
  0x9b   : > { %612 = vrot.lane.b32.xlu0 %v574_v8, %s10766_s26  ;;  %v947_v28 = vrot.slane %v904_v22, 4 }
  0x9e   : > { %740 = vrot.lane.b32.xlu1 %v732_v14, %s10775_s23 }
  0x9f   : > { %576 = vrot.lane.b32.xlu0 %v574_v8, %s10777_s27 }
  0xa2   : > { %913 = vrot.lane.b32.xlu1 %v905_v15, %s10771_s25 }
  0xa3   : > { %629 = vrot.lane.b32.xlu0 %v574_v8, %s10764_s28  ;;  %v7962_v8 = vsel %vm493_vm12, 1.0, %v10783_v0  ;;  %vm3063_vm12 = vcmask 1043456  }
  0xa6   : > { %648 = vrot.lane.b32.xlu1 %v641_v17, %s10779_s21 }
  0xa7   : > { %650 = vrot.lane.b32.xlu0 %v642_v16, %s10779_s21 }
  0xaa   : > { %821 = vrot.lane.b32.xlu1 %v814_v19, %s10773_s22  ;;  %v7981_v19 = vsel %vm511_vm15, 1.0, %v10783_v0  ;;  %vm3129_vm15 = vcmask 1043712  }
  0xab   : > { %823 = vrot.lane.b32.xlu0 %v815_v18, %s10773_s22 }
  0xae   : > { %589 = vrot.lane.b32.xlu1 %v575_v11, %s10768_s24 }
  0xaf   : > { %692 = vrot.lane.b32.xlu0 %v689_v20, %s10779_s21  ;;  %v7984_v20 = vsel %vm512_vm1, 1.0, %v10783_v0  ;;  %vm3132_vm1 = vcmask 257024  }
  0xb0   : > { %10792 = vst [vmem:[#allocation4_spill] sm:$0xff] %v7984_v20 }
  0xb2   : > { %614 = vrot.lane.b32.xlu1 %v575_v11, %s10766_s26 }
  0xb3   : > { %738 = vrot.lane.b32.xlu0 %v731_v21, %s10775_s23 }
  0xb6   : > { %578 = vrot.lane.b32.xlu1 %v575_v11, %s10777_s27 }
  0xb7   : > { %911 = vrot.lane.b32.xlu0 %v904_v22, %s10771_s25 }
  0xba   : > { %631 = vrot.lane.b32.xlu1 %v575_v11, %s10764_s28 }
  0xbb   : > { %863 = vrot.lane.b32.xlu0 %v858_v23, %s10773_s22 }
  0xbe   : > { %696 = vrot.lane.b32.xlu1 %v691_v25, %s10779_s21 }
  0xbf   : > { %953 = vrot.lane.b32.xlu0 %v948_v24, %s10771_s25 }
  0xc2   : > { %861 = vrot.lane.b32.xlu1 %v857_v27, %s10773_s22 }
  0xc3   : > { %694 = vrot.lane.b32.xlu0 %v690_v26, %s10779_s21 }
  0xc6   : > { %951 = vrot.lane.b32.xlu1 %v947_v28, %s10771_s25 }
 0x104   : > { %v647_v29 = vpop.permute.xlu1 %646 }
 0x105   : > { %v7881_v30 = vpop.permute.xlu0 %819 }
 0x108   : > { %v737_v31 = vpop.permute.xlu1 %736 }
 0x109   : > { %v588_v32 = vpop.permute.xlu0 %587 }
 0x10c   : > { %v7883_v33 = vpop.permute.xlu1 %909 }
 0x10d   : > { %v613_v34 = vpop.permute.xlu0 %612 }
 0x110   : > { %v741_v36 = vpop.permute.xlu1 %740 }
 0x111   : > { %v7885_v37 = vpop.permute.xlu0 %576 }
 0x114   : > { %v7890_v39 = vpop.permute.xlu1 %913 }
 0x115   : > { %v7892_v40 = vpop.permute.xlu0 %629 }
 0x118   : > { %v649_v42 = vpop.permute.xlu1 %648 }
 0x119   : > { %v651_v43 = vpop.permute.xlu0 %650  ;;  %v7904_v47 = vsel %vm652_vm4, %v647_v29, %v649_v42 }
 0x11a   : > { %v7901_v46 = vsel %vm652_vm4, %v649_v42, %v651_v43  ;;  %657 = vrot.lane.b32.xlu0 %v7904_v47, %s10777_s27 }
 0x11b   : > { %659 = vrot.lane.b32.xlu1 %v7901_v46, %s10777_s27 }
 0x11c   : > { %v7910_v48 = vpop.permute.xlu1 %821 }
 0x11d   : > { %v7912_v49 = vpop.permute.xlu0 %823 }
 0x11e   : > { %673 = vrot.lane.b32.xlu0 %v7904_v47, %s10768_s24  ;;  %v827_v29 = vsel %vm825_vm3, %v7910_v48, %v7912_v49  ;;  %v1018_v49 = vld [vmem:[%s10752_s3] sm:$0xff] }
 0x11f   : > { %675 = vrot.lane.b32.xlu1 %v7901_v46, %s10768_s24 }
 0x120   : > { %v590_v52 = vpop.permute.xlu1 %589 }
 0x121   : > { %v7927_v53 = vpop.permute.xlu0 %692  ;;  %v592_v54 = vsel %vm591_vm7, %v588_v32, %v590_v52  ;;  %v593_v55 = vsel %vm591_vm7, %v590_v52, %v588_v32 }
 0x122   : > { %v594_v56 = vmul.f32 %v7922_v50, %v593_v55  ;;  %v595_v57 = vmul.f32 %v7925_v51, %v592_v54  ;;  %714 = vrot.lane.b32.xlu0 %v7904_v47, %s10764_s28 }
 0x123   : > { %716 = vrot.lane.b32.xlu1 %v7901_v46, %s10764_s28 }
 0x124   : > { %v598_v60 = vrot.slane %v594_v56, 6  ;;  %v599_v61 = vrot.slane %v595_v57, 6  ;;  %v615_v62 = vpop.permute.xlu1 %614 }
 0x125   : > { %v739_v63 = vpop.permute.xlu0 %738  ;;  %v617_v1 = vsel %vm616_vm10, %v613_v34, %v615_v62  ;;  %v618_v2 = vsel %vm616_vm10, %v615_v62, %v613_v34  ;;  %v1020_v62 = vld [vmem:[%s10752_s3 + $0x10] sm:$0xff] }
 0x126   : > { %v743_v3 = vsel %vm742_vm11, %v737_v31, %v739_v63  ;;  %v744_v4 = vsel %vm742_vm11, %v739_v63, %v741_v36  ;;  %602 = vst [vmem:[#allocation3] sm:$0xc] %v598_v60  ;;  %603 = vst [vmem:[#allocation3 + $0x8] sm:$0xc] %v599_v61  ;;  %v619_v5 = vmul.f32 %v7943_v58, %v617_v1 }
 0x127   : > { %v620_v6 = vmul.f32 %v7946_v59, %v618_v2  ;;  %779 = vst [vmem:[#allocation3 + $0x30] sm:$0x3] %v743_v3  ;;  %780 = vst [vmem:[#allocation3 + $0x38] sm:$0x3] %v744_v4  ;;  %749 = vrot.lane.b32.xlu1 %v744_v4, %s10777_s27  ;;  %747 = vrot.lane.b32.xlu0 %v743_v3, %s10777_s27 }
 0x128   : > { %v623_v10 = vrot.slane %v619_v5, 2  ;;  %v579_v12 = vpop.permute.xlu1 %578 }
 0x129   : > { %v624_v11 = vrot.slane %v620_v6, 2  ;;  %v912_v14 = vpop.permute.xlu0 %911  ;;  %v581_v15 = vsel %vm580_vm14, %v7885_v37, %v579_v12  ;;  %v582_v16 = vsel %vm580_vm14, %v579_v12, %v7885_v37  ;;  %v1019_v12 = vld [vmem:[%s10752_s3 + $0x8] sm:$0xff] }
 0x12a   : > { %627 = vst [vmem:[#allocation3] sm:$0xc0] %v623_v10  ;;  %v583_v17 = vmul.f32 %v7962_v8, %v582_v16  ;;  %v584_v18 = vmul.f32 %v7965_v9, %v581_v15  ;;  %v916_v43 = vsel %vm915_vm5, %v7883_v33, %v912_v14  ;;  %v856_v33 = vrot.slane %v7848_v7, 6 }
 0x12b   : > { %628 = vst [vmem:[#allocation3 + $0x8] sm:$0xc0] %v624_v11  ;;  %765 = vrot.lane.b32.xlu1 %v744_v4, %s10768_s24  ;;  %763 = vrot.lane.b32.xlu0 %v743_v3, %s10768_s24  ;;  %v1021_v11 = vld [vmem:[%s10752_s3 + $0x18] sm:$0xff] }
 0x12c   : > { %585 = vst [vmem:[#allocation3] sm:$0x3] %v583_v17  ;;  %586 = vst [vmem:[#allocation3 + $0x8] sm:$0x3] %v584_v18  ;;  %v632_v21 = vpop.permute.xlu1 %631  ;;  %v1023_v18 = vld [vmem:[%s10752_s3 + $0x28] sm:$0xff] }
 0x12d   : > { %v864_v22 = vpop.permute.xlu0 %863  ;;  %v634_v23 = vsel %vm633_vm2, %v7892_v40, %v632_v21  ;;  %v635_v24 = vsel %vm633_vm2, %v632_v21, %v7892_v40  ;;  %v826_v40 = vsel %vm825_vm3, %v7881_v30, %v7910_v48  ;;  %v917_v30 = vsel %vm915_vm5, %v912_v14, %v7890_v39  ;;  %v1022_v21 = vld [vmem:[%s10752_s3 + $0x20] sm:$0xff] }
 0x12e   : > { %v636_v25 = vmul.f32 %v7981_v19, %v634_v23  ;;  %v637_v26 = vmul.f32 %v7984_v20, %v635_v24  ;;  %v946_v39 = vrot.slane %v7855_v13, 4 }
 0x12f   : > { %783 = vrot.lane.b32.xlu1 %v744_v4, %s10766_s26  ;;  %781 = vrot.lane.b32.xlu0 %v743_v3, %s10766_s26 }
 0x130   : > { %638 = vst [vmem:[#allocation3 + $0x10] sm:$0x3] %v636_v25  ;;  %639 = vst [vmem:[#allocation3 + $0x18] sm:$0x3] %v637_v26  ;;  %v697_v27 = vpop.permute.xlu1 %696 }
 0x131   : > { %v954_v28 = vpop.permute.xlu0 %953 }
 0x133   : > { %799 = vrot.lane.b32.xlu1 %v744_v4, %s10764_s28  ;;  %797 = vrot.lane.b32.xlu0 %v743_v3, %s10764_s28 }
 0x134   : > { %v8001_v31 = vpop.permute.xlu1 %861 }
 0x135   : > { %v695_v32 = vpop.permute.xlu0 %694  ;;  %v866_v34 = vsel %vm825_vm3, %v8001_v31, %v864_v22 }
 0x136   : > { %v698_v36 = vsel %vm652_vm4, %v7927_v53, %v695_v32  ;;  %v699_v37 = vsel %vm652_vm4, %v695_v32, %v697_v27  ;;  %870 = vst [vmem:[#allocation3 + $0x48] sm:$0xc] %v866_v34  ;;  %v1005_v32 = vld [vmem:[#allocation3 + $0x8] sm:$0xff]  ;;  %v1025_v34 = vld [vmem:[%s10752_s3 + $0x38] sm:$0xff] }
 0x137   : > { %702 = vst [vmem:[#allocation3 + $0x10] sm:$0xc0] %v698_v36  ;;  %703 = vst [vmem:[#allocation3 + $0x18] sm:$0xc0] %v699_v37  ;;  %832 = vrot.lane.b32.xlu1 %v827_v29, %s10777_s27  ;;  %830 = vrot.lane.b32.xlu0 %v826_v40, %s10777_s27  ;;  %v1024_v36 = vld [vmem:[%s10752_s3 + $0x30] sm:$0xff] }
 0x138   : > { %v8013_v41 = vpop.permute.xlu1 %951 }
 0x139   : > { %v956_v42 = vsel %vm915_vm5, %v8013_v41, %v954_v28 }
 0x13a   : > { %960 = vst [vmem:[#allocation3 + $0x58] sm:$0x30] %v956_v42 }
 0x13b   : > { %704 = vrot.lane.b32.xlu1 %v7904_v47, %s10766_s26  ;;  %706 = vrot.lane.b32.xlu0 %v7901_v46, %s10766_s26  ;;  %v7678_v46 = vmov 0  }
 0x13c   : > { %6692 = vset.pattern.permute.xlu1 %v7678_v46  ;;  %6693 = vset.pattern.permute.xlu0 %v7678_v46 }
 0x13f   : > { %871 = vrot.lane.b32.xlu1 %v826_v40, %s10766_s26  ;;  %873 = vrot.lane.b32.xlu0 %v827_v29, %s10766_s26 }
 0x143   : > { %887 = vrot.lane.b32.xlu1 %v826_v40, %s10764_s28  ;;  %889 = vrot.lane.b32.xlu0 %v827_v29, %s10764_s28 }
 0x147   : > { %932 = vrot.lane.b32.xlu0 %v917_v30, %s10768_s24  ;;  %930 = vrot.lane.b32.xlu1 %v916_v43, %s10768_s24 }
 0x14b   : > { %963 = vrot.lane.b32.xlu0 %v917_v30, %s10766_s26  ;;  %961 = vrot.lane.b32.xlu1 %v916_v43, %s10766_s26  ;;  %s8733_s26 = scalar_lea.vmem %s10793_s1, %s10770_s17  ;;  %s10802_s1 = smov 64  }
 0x14c   : > { %s10804_s17 = smov 2  }
 0x14f   : > { %848 = vrot.lane.b32.xlu0 %v827_v29, %s10768_s24  ;;  %846 = vrot.lane.b32.xlu1 %v826_v40, %s10768_s24 }
 0x153   : > { %922 = vrot.lane.b32.xlu0 %v917_v30, %s10777_s27  ;;  %920 = vrot.lane.b32.xlu1 %v916_v43, %s10777_s27 }
 0x157   : > { %949 = vrot.lane.b32.xlu0 %v946_v39, %s10771_s25  ;;  %859 = vrot.lane.b32.xlu1 %v856_v33, %s10773_s22 }
 0x15b   : > { %979 = vrot.lane.b32.xlu0 %v917_v30, %s10764_s28  ;;  %977 = vrot.lane.b32.xlu1 %v916_v43, %s10764_s28  ;;  %v1004_v30 = vld [vmem:[#allocation3] sm:$0xff] }
 0x15f   : > { %1036 = vperm.xlu1 %6692, %v1018_v49   ;;  %1041 = vperm.xlu0 %6693, %v1019_v12   ;;  %v1026_v49 = vld [vmem:[%s10752_s3 + $0x40] sm:$0xff]  ;;  %v1031_v12 = vld [vmem:[%s10752_s3 + $0x68] sm:$0xff] }
 0x163   : > { %1046 = vperm.xlu1 %6692, %v1020_v62   ;;  %1056 = vperm.xlu0 %6693, %v1022_v21   ;;  %v1029_v62 = vld [vmem:[%s10752_s3 + $0x58] sm:$0xff] }
 0x167   : > { %1051 = vperm.xlu1 %6692, %v1021_v11   ;;  %1066 = vperm.xlu0 %6693, %v1024_v36  }
 0x16b   : > { %1061 = vperm.xlu1 %6692, %v1023_v18   ;;  %1076 = vperm.xlu0 %6693, %v1026_v49  }
 0x16f   : > { %1071 = vperm.xlu1 %6692, %v1025_v34  }
 0x18c   : > { %v658_v45 = vpop.permute.xlu0 %657 }
 0x18d   : > { %v660_v44 = vpop.permute.xlu1 %659 }
 0x18e   : > { %v661_v47 = vsel %vm580_vm14, %v658_v45, %v660_v44  ;;  %v662_v13 = vsel %vm580_vm14, %v660_v44, %v658_v45 }
 0x18f   : > { %v663_v7 = vmul.f32 %v7962_v8, %v662_v13  ;;  %v664_v48 = vmul.f32 %v7965_v9, %v661_v47 }
 0x190   : > { %v674_v55 = vpop.permute.xlu0 %673 }
 0x191   : > { %v667_v52 = vrot.slane %v663_v7, 6  ;;  %v668_v53 = vrot.slane %v664_v48, 6  ;;  %v676_v54 = vpop.permute.xlu1 %675  ;;  %v1027_v48 = vld [vmem:[%s10752_s3 + $0x48] sm:$0xff] }
 0x192   : > { %v677_v56 = vsel %vm591_vm7, %v674_v55, %v676_v54  ;;  %v678_v57 = vsel %vm591_vm7, %v676_v54, %v674_v55  ;;  %1081 = vperm.xlu1 %6692, %v1027_v48  }
 0x193   : > { %671 = vst [vmem:[#allocation3 + $0x10] sm:$0xc] %v667_v52  ;;  %672 = vst [vmem:[#allocation3 + $0x18] sm:$0xc] %v668_v53  ;;  %v679_v60 = vmul.f32 %v7922_v50, %v678_v57  ;;  %v680_v61 = vmul.f32 %v7925_v51, %v677_v56 }
 0x194   : > { %v715_v3 = vpop.permute.xlu0 %714 }
 0x195   : > { %v683_v63 = vrot.slane %v679_v60, 4  ;;  %v684_v1 = vrot.slane %v680_v61, 4  ;;  %v717_v2 = vpop.permute.xlu1 %716 }
 0x196   : > { %v718_v4 = vsel %vm633_vm2, %v715_v3, %v717_v2  ;;  %v719_v5 = vsel %vm633_vm2, %v717_v2, %v715_v3  ;;  %1091 = vperm.xlu1 %6692, %v1029_v62  }
 0x197   : > { %687 = vst [vmem:[#allocation3 + $0x10] sm:$0x30] %v683_v63  ;;  %688 = vst [vmem:[#allocation3 + $0x18] sm:$0x30] %v684_v1  ;;  %v720_v6 = vmul.f32 %v7981_v19, %v718_v4  ;;  %v721_v10 = vmul.f32 %v7984_v20, %v719_v5  ;;  %v1028_v63 = vld [vmem:[%s10752_s3 + $0x50] sm:$0xff] }
 0x198   : > { %1086 = vperm.xlu0 %6693, %v1028_v63  }
 0x199   : > { %v724_v14 = vrot.slane %v720_v6, 6  ;;  %v725_v15 = vrot.slane %v721_v10, 6  ;;  %v750_v16 = vpop.permute.xlu1 %749  ;;  %v748_v17 = vpop.permute.xlu0 %747 }
 0x19a   : > { %v751_v22 = vsel %vm580_vm14, %v748_v17, %v750_v16  ;;  %v752_v23 = vsel %vm580_vm14, %v750_v16, %v748_v17  ;;  %1101 = vperm.xlu1 %6692, %v1031_v12  }
 0x19b   : > { %728 = vst [vmem:[#allocation3 + $0x20] sm:$0xc] %v724_v14  ;;  %729 = vst [vmem:[#allocation3 + $0x28] sm:$0xc] %v725_v15  ;;  %v753_v24 = vmul.f32 %v7962_v8, %v752_v23  ;;  %v754_v25 = vmul.f32 %v7965_v9, %v751_v22  ;;  %v1030_v14 = vld [vmem:[%s10752_s3 + $0x60] sm:$0xff] }
 0x19c   : > { %1096 = vperm.xlu0 %6693, %v1030_v14  }
 0x19d   : > { %v757_v26 = vrot.slane %v753_v24, 4  ;;  %v758_v27 = vrot.slane %v754_v25, 4  ;;  %v766_v28 = vpop.permute.xlu1 %765  ;;  %v764_v29 = vpop.permute.xlu0 %763  ;;  %v1033_v25 = vld [vmem:[%s10752_s3 + $0x78] sm:$0xff] }
 0x19e   : > { %v767_v37 = vsel %vm591_vm7, %v764_v29, %v766_v28  ;;  %v768_v40 = vsel %vm591_vm7, %v766_v28, %v764_v29  ;;  %v1007_v42 = vld [vmem:[#allocation3 + $0x18] sm:$0xff]  ;;  %v1006_v43 = vld [vmem:[#allocation3 + $0x10] sm:$0xff]  ;;  %1111 = vperm.xlu1 %6692, %v1033_v25  }
 0x19f   : > { %761 = vst [vmem:[#allocation3 + $0x20] sm:$0x30] %v757_v26  ;;  %762 = vst [vmem:[#allocation3 + $0x28] sm:$0x30] %v758_v27  ;;  %v769_v39 = vmul.f32 %v7922_v50, %v768_v40  ;;  %v770_v33 = vmul.f32 %v7925_v51, %v767_v37  ;;  %v6242_v44 = vpack.c.bf16 %v1007_v42, %v1005_v32  ;;  %v1032_v26 = vld [vmem:[%s10752_s3 + $0x70] sm:$0xff] }
 0x1a0   : > { %v6244_v45 = vpack.c.bf16 %v1006_v43, %v1004_v30  ;;  %1106 = vperm.xlu0 %6693, %v1032_v26  }
 0x1a1   : > { %v773_v46 = vrot.slane %v769_v39, 2  ;;  %v774_v47 = vrot.slane %v770_v33, 2  ;;  %v784_v13 = vpop.permute.xlu1 %783  ;;  %6243 = vmatprep.subr.bf16.mxu1 %v6242_v44  ;;  %v782_v7 = vpop.permute.xlu0 %781 }
 0x1a2   : > { %v785_v52 = vsel %vm616_vm10, %v782_v7, %v784_v13  ;;  %v786_v53 = vsel %vm616_vm10, %v784_v13, %v782_v7  ;;  %6245 = vmatpush1.bf16.msra.mxu1 %v6244_v45 }
 0x1a3   : > { %777 = vst [vmem:[#allocation3 + $0x20] sm:$0xc0] %v773_v46  ;;  %778 = vst [vmem:[#allocation3 + $0x28] sm:$0xc0] %v774_v47  ;;  %v787_v54 = vmul.f32 %v7943_v58, %v785_v52  ;;  %v788_v55 = vmul.f32 %v7946_v59, %v786_v53 }
 0x1a5   : > { %v791_v56 = vrot.slane %v787_v54, 6  ;;  %v792_v57 = vrot.slane %v788_v55, 6  ;;  %v800_v60 = vpop.permute.xlu1 %799  ;;  %v798_v61 = vpop.permute.xlu0 %797 }
 0x1a6   : > { %v801_v1 = vsel %vm633_vm2, %v798_v61, %v800_v60  ;;  %v802_v2 = vsel %vm633_vm2, %v800_v60, %v798_v61 }
 0x1a7   : > { %795 = vst [vmem:[#allocation3 + $0x30] sm:$0xc] %v791_v56  ;;  %796 = vst [vmem:[#allocation3 + $0x38] sm:$0xc] %v792_v57  ;;  %v803_v3 = vmul.f32 %v7981_v19, %v801_v1  ;;  %v804_v4 = vmul.f32 %v7984_v20, %v802_v2 }
 0x1a9   : > { %v807_v5 = vrot.slane %v803_v3, 4  ;;  %v808_v6 = vrot.slane %v804_v4, 4  ;;  %v833_v10 = vpop.permute.xlu1 %832  ;;  %v831_v11 = vpop.permute.xlu0 %830 }
 0x1aa   : > { %v834_v15 = vsel %vm580_vm14, %v831_v11, %v833_v10  ;;  %v835_v16 = vsel %vm580_vm14, %v833_v10, %v831_v11 }
 0x1ab   : > { %811 = vst [vmem:[#allocation3 + $0x30] sm:$0x30] %v807_v5  ;;  %812 = vst [vmem:[#allocation3 + $0x38] sm:$0x30] %v808_v6  ;;  %v836_v17 = vmul.f32 %v7962_v8, %v835_v16  ;;  %v837_v18 = vmul.f32 %v7965_v9, %v834_v15 }
 0x1ad   : > { %v840_v21 = vrot.slane %v836_v17, 2  ;;  %v841_v22 = vrot.slane %v837_v18, 2  ;;  %v705_v23 = vpop.permute.xlu1 %704  ;;  %v707_v24 = vpop.permute.xlu0 %706 }
 0x1ae   : > { %v708_v27 = vsel %vm616_vm10, %v705_v23, %v707_v24  ;;  %v709_v28 = vsel %vm616_vm10, %v707_v24, %v705_v23 }
 0x1af   : > { %844 = vst [vmem:[#allocation3 + $0x30] sm:$0xc0] %v840_v21  ;;  %845 = vst [vmem:[#allocation3 + $0x38] sm:$0xc0] %v841_v22  ;;  %v710_v29 = vmul.f32 %v7943_v58, %v708_v27  ;;  %v711_v32 = vmul.f32 %v7946_v59, %v709_v28 }
 0x1b1   : > { %712 = vst [vmem:[#allocation3 + $0x20] sm:$0x3] %v710_v29  ;;  %713 = vst [vmem:[#allocation3 + $0x28] sm:$0x3] %v711_v32  ;;  %v872_v34 = vpop.permute.xlu1 %871  ;;  %v874_v36 = vpop.permute.xlu0 %873 }
 0x1b2   : > { %v875_v37 = vsel %vm616_vm10, %v872_v34, %v874_v36  ;;  %v876_v40 = vsel %vm616_vm10, %v874_v36, %v872_v34 }
 0x1b3   : > { %v877_v42 = vmul.f32 %v7943_v58, %v875_v37  ;;  %v878_v30 = vmul.f32 %v7946_v59, %v876_v40 }
 0x1b5   : > { %v881_v43 = vrot.slane %v877_v42, 4  ;;  %v882_v39 = vrot.slane %v878_v30, 4  ;;  %v888_v33 = vpop.permute.xlu1 %887  ;;  %v890_v44 = vpop.permute.xlu0 %889 }
 0x1b6   : > { %v891_v45 = vsel %vm633_vm2, %v888_v33, %v890_v44  ;;  %v892_v46 = vsel %vm633_vm2, %v890_v44, %v888_v33  ;;  %v1011_v7 = vld [vmem:[#allocation3 + $0x38] sm:$0xff]  ;;  %v1010_v52 = vld [vmem:[#allocation3 + $0x30] sm:$0xff] }
 0x1b7   : > { %885 = vst [vmem:[#allocation3 + $0x40] sm:$0x30] %v881_v43  ;;  %886 = vst [vmem:[#allocation3 + $0x48] sm:$0x30] %v882_v39  ;;  %v893_v47 = vmul.f32 %v7981_v19, %v891_v45  ;;  %v894_v13 = vmul.f32 %v7984_v20, %v892_v46 }
 0x1b8   : > { %v1009_v48 = vld [vmem:[#allocation3 + $0x28] sm:$0xff]  ;;  %v1008_v49 = vld [vmem:[#allocation3 + $0x20] sm:$0xff] }
 0x1b9   : > { %v897_v53 = vrot.slane %v893_v47, 2  ;;  %v898_v54 = vrot.slane %v894_v13, 2  ;;  %v931_v55 = vpop.permute.xlu1 %930  ;;  %v933_v56 = vpop.permute.xlu0 %932  ;;  %v6246_v57 = vpack.c.bf16 %v1011_v7, %v1009_v48  ;;  %v6248_v60 = vpack.c.bf16 %v1010_v52, %v1008_v49  ;;  %v988_v48 = vld [vmem:[%s10751_s2] sm:$0xff]  ;;  %v989_v49 = vld [vmem:[%s10751_s2 + $0x8] sm:$0xff]  ;;  %v990_v52 = vld [vmem:[%s10751_s2 + $0x10] sm:$0xff] }
 0x1ba   : > { %v934_v61 = vsel %vm591_vm7, %v931_v55, %v933_v56  ;;  %v935_v62 = vsel %vm591_vm7, %v933_v56, %v931_v55  ;;  %v993_v55 = vld [vmem:[%s10751_s2 + $0x28] sm:$0xff]  ;;  %v994_v56 = vld [vmem:[%s10751_s2 + $0x30] sm:$0xff] }
 0x1bb   : > { %901 = vst [vmem:[#allocation3 + $0x40] sm:$0xc0] %v897_v53  ;;  %902 = vst [vmem:[#allocation3 + $0x48] sm:$0xc0] %v898_v54  ;;  %v936_v63 = vmul.f32 %v7922_v50, %v935_v62  ;;  %v937_v1 = vmul.f32 %v7925_v51, %v934_v61  ;;  %6247 = vmatprep.subr.bf16.mxu1 %v6246_v57  ;;  %v991_v53 = vld [vmem:[%s10751_s2 + $0x18] sm:$0xff]  ;;  %v992_v54 = vld [vmem:[%s10751_s2 + $0x20] sm:$0xff] }
 0x1bc   : > { %6249 = vmatpush1.bf16.msra.mxu1 %v6248_v60  ;;  %v995_v57 = vld [vmem:[%s10751_s2 + $0x38] sm:$0xff]  ;;  %v996_v60 = vld [vmem:[%s10751_s2 + $0x40] sm:$0xff]  ;;  %v997_v61 = vld [vmem:[%s10751_s2 + $0x48] sm:$0xff] }
 0x1bd   : > { %v940_v2 = vrot.slane %v936_v63, 6  ;;  %v941_v3 = vrot.slane %v937_v1, 6  ;;  %v962_v4 = vpop.permute.xlu1 %961  ;;  %v964_v5 = vpop.permute.xlu0 %963  ;;  %v998_v62 = vld [vmem:[%s10751_s2 + $0x50] sm:$0xff]  ;;  %v999_v63 = vld [vmem:[%s10751_s2 + $0x58] sm:$0xff]  ;;  %v1000_v1 = vld [vmem:[%s10751_s2 + $0x60] sm:$0xff] }
 0x1be   : > { %v965_v6 = vsel %vm616_vm10, %v962_v4, %v964_v5  ;;  %v966_v10 = vsel %vm616_vm10, %v964_v5, %v962_v4  ;;  %v1003_v4 = vld [vmem:[%s10751_s2 + $0x78] sm:$0xff] }
 0x1bf   : > { %944 = vst [vmem:[#allocation3 + $0x50] sm:$0xc] %v940_v2  ;;  %945 = vst [vmem:[#allocation3 + $0x58] sm:$0xc] %v941_v3  ;;  %v967_v11 = vmul.f32 %v7943_v58, %v965_v6  ;;  %v968_v12 = vmul.f32 %v7946_v59, %v966_v10  ;;  %v1001_v2 = vld [vmem:[%s10751_s2 + $0x68] sm:$0xff]  ;;  %v1002_v3 = vld [vmem:[%s10751_s2 + $0x70] sm:$0xff] }
 0x1c1   : > { %v971_v14 = vrot.slane %v967_v11, 2  ;;  %v972_v15 = vrot.slane %v968_v12, 2  ;;  %v847_v16 = vpop.permute.xlu1 %846  ;;  %v849_v17 = vpop.permute.xlu0 %848 }
 0x1c2   : > { %v850_v18 = vsel %vm591_vm7, %v847_v16, %v849_v17  ;;  %v851_v21 = vsel %vm591_vm7, %v849_v17, %v847_v16 }
 0x1c3   : > { %975 = vst [vmem:[#allocation3 + $0x50] sm:$0xc0] %v971_v14  ;;  %976 = vst [vmem:[#allocation3 + $0x58] sm:$0xc0] %v972_v15  ;;  %v852_v22 = vmul.f32 %v7922_v50, %v851_v21  ;;  %v853_v23 = vmul.f32 %v7925_v51, %v850_v18 }
 0x1c5   : > { %854 = vst [vmem:[#allocation3 + $0x40] sm:$0x3] %v852_v22  ;;  %855 = vst [vmem:[#allocation3 + $0x48] sm:$0x3] %v853_v23  ;;  %v921_v24 = vpop.permute.xlu1 %920  ;;  %v923_v25 = vpop.permute.xlu0 %922 }
 0x1c6   : > { %v924_v26 = vsel %vm580_vm14, %v921_v24, %v923_v25  ;;  %v925_v27 = vsel %vm580_vm14, %v923_v25, %v921_v24 }
 0x1c7   : > { %v926_v28 = vmul.f32 %v7962_v8, %v925_v27  ;;  %v927_v29 = vmul.f32 %v7965_v9, %v924_v26 }
 0x1c9   : > { %928 = vst [vmem:[#allocation3 + $0x50] sm:$0x3] %v926_v28  ;;  %929 = vst [vmem:[#allocation3 + $0x58] sm:$0x3] %v927_v29  ;;  %v860_v32 = vpop.permute.xlu1 %859  ;;  %v950_v34 = vpop.permute.xlu0 %949 }
 0x1ca   : > { %v865_v36 = vsel %vm825_vm3, %v860_v32, %v8001_v31  ;;  %v955_v37 = vsel %vm915_vm5, %v950_v34, %v8013_v41 }
 0x1cb   : > { %869 = vst [vmem:[#allocation3 + $0x40] sm:$0xc] %v865_v36  ;;  %959 = vst [vmem:[#allocation3 + $0x50] sm:$0x30] %v955_v37 }
 0x1cc   : > { %v1013_v44 = vld [vmem:[#allocation3 + $0x48] sm:$0xff] }
 0x1cd   : > { %v978_v40 = vpop.permute.xlu1 %977  ;;  %v980_v42 = vpop.permute.xlu0 %979 }
 0x1ce   : > { %v981_v30 = vsel %vm633_vm2, %v978_v40, %v980_v42  ;;  %v982_v43 = vsel %vm633_vm2, %v980_v42, %v978_v40 }
 0x1cf   : > { %v983_v39 = vmul.f32 %v7981_v19, %v981_v30  ;;  %v984_v33 = vmul.f32 %v7984_v20, %v982_v43 }
 0x1d0   : > { %v1015_v45 = vld [vmem:[#allocation3 + $0x58] sm:$0xff] }
 0x1d1   : > { %985 = vst [vmem:[#allocation3 + $0x60] sm:$0x3] %v983_v39  ;;  %986 = vst [vmem:[#allocation3 + $0x68] sm:$0x3] %v984_v33  ;;  %v6250_v31 = vpack.c.bf16 %v1015_v45, %v1013_v44 }
 0x1d2   : > { %v1012_v41 = vld [vmem:[#allocation3 + $0x40] sm:$0xff]  ;;  %v1014_v46 = vld [vmem:[#allocation3 + $0x50] sm:$0xff] }
 0x1d3   : > { %6251 = vmatprep.subr.bf16.mxu1 %v6250_v31  ;;  %v6252_v47 = vpack.c.bf16 %v1014_v46, %v1012_v41 }
 0x1d5   : > { %6253 = vmatpush1.bf16.msra.mxu1 %v6252_v47 }
 0x1d8   : > { %v1017_v13 = vld [vmem:[#allocation3 + $0x68] sm:$0x3]  ;;  %v1016_v7 = vld [vmem:[#allocation3 + $0x60] sm:$0x3] }
 0x1d9   : > { %6129 = vmatprep.subr.msk.mxu1 %vm1163_vm6, %v1017_v13 }
 0x1da   : > { %6130 = vmatpush1.msk.msra.mxu1 %vm1163_vm6, %v1016_v7 }
 0x1db   : > { %6131 = vmatmul.mubr.msk.f32.vlgmr.msra.gmra.mrb[0].mxu1 %vm1114_vm8, %v988_v48 }
 0x1dc   : > { %1240 = vmatprep.mubr.f32.mxu1 %v10783_v0 }
 0x1de   : > { %v1037_v5 = vpop.permute.xlu1 %1036  ;;  %v1042_v15 = vpop.permute.xlu0 %1041 }
 0x1df   : > { %6132 = vmatmul.mubr.msk.f32.gmra.mrb[2].mxu1 %vm1114_vm8, %v989_v49 }
 0x1e0   : > { %1246 = vmatprep.mubr.f32.mxu1 %v10783_v0 }
 0x1e2   : > { %v1047_v22 = vpop.permute.xlu1 %1046  ;;  %v1057_v39 = vpop.permute.xlu0 %1056 }
 0x1e3   : > { %6133 = vmatmul.mubr.msk.f32.gmra.mrb[4].mxu1 %vm1114_vm8, %v990_v52 }
 0x1e4   : > { %1252 = vmatprep.mubr.f32.mxu1 %v10783_v0 }
 0x1e6   : > { %v1052_v34 = vpop.permute.xlu1 %1051 }
 0x1e7   : > { %6134 = vmatmul.mubr.msk.f32.gmra.mrb[6].mxu1 %vm1114_vm8, %v991_v53 }
 0x1e8   : > { %1258 = vmatprep.mubr.f32.mxu1 %v10783_v0 }
 0x1ea   : > { %v1062_v47 = vpop.permute.xlu1 %1061 }
 0x1eb   : > { %6135 = vmatmul.mubr.msk.f32.gmra.mrb[8].mxu1 %vm1114_vm8, %v992_v54  ;;  %v1067_v54 = vpop.permute.xlu0 %1066 }
 0x1ec   : > { %1264 = vmatprep.mubr.f32.mxu1 %v10783_v0 }
 0x1ef   : > { %6136 = vmatmul.mubr.msk.f32.gmra.mrb[10].mxu1 %vm1114_vm8, %v993_v55 }
 0x1f0   : > { %1270 = vmatprep.mubr.f32.mxu1 %v10783_v0 }
 0x1f3   : > { %6137 = vmatmul.mubr.msk.f32.gmra.mrb[12].mxu1 %vm1114_vm8, %v994_v56 }
 0x1f4   : > { %1276 = vmatprep.mubr.f32.mxu1 %v10783_v0 }
 0x1f7   : > { %6138 = vmatmul.mubr.msk.f32.gmra.mrb[14].mxu1 %vm1114_vm8, %v995_v57 }
 0x1f8   : > { %1282 = vmatprep.mubr.f32.mxu1 %v10783_v0 }
 0x1fb   : > { %6139 = vmatmul.mubr.msk.f32.gmra.mrb[16].mxu1 %vm1114_vm8, %v996_v60 }
 0x1fc   : > { %1288 = vmatprep.mubr.f32.mxu1 %v10783_v0 }
 0x1ff   : > { %6140 = vmatmul.mubr.msk.f32.gmra.mrb[18].mxu1 %vm1114_vm8, %v997_v61 }
 0x200   : > { %1294 = vmatprep.mubr.f32.mxu1 %v10783_v0 }
 0x203   : > { %6141 = vmatmul.mubr.msk.f32.gmra.mrb[20].mxu1 %vm1114_vm8, %v998_v62 }
 0x204   : > { %1300 = vmatprep.mubr.f32.mxu1 %v10783_v0 }
 0x207   : > { %6142 = vmatmul.mubr.msk.f32.gmra.mrb[22].mxu1 %vm1114_vm8, %v999_v63  ;;  %v1072_v63 = vpop.permute.xlu1 %1071 }
 0x208   : > { %1306 = vmatprep.mubr.f32.mxu1 %v10783_v0 }
 0x20b   : > { %6143 = vmatmul.mubr.msk.f32.gmra.mrb[24].mxu1 %vm1114_vm8, %v1000_v1 }
 0x20c   : > { %1312 = vmatprep.mubr.f32.mxu1 %v10783_v0 }
 0x20f   : > { %6144 = vmatmul.mubr.msk.f32.gmra.mrb[26].mxu1 %vm1114_vm8, %v1001_v2 }
 0x210   : > { %1318 = vmatprep.mubr.f32.mxu1 %v10783_v0 }
 0x213   : > { %6145 = vmatmul.mubr.msk.f32.gmra.mrb[28].mxu1 %vm1114_vm8, %v1002_v3 }
 0x214   : > { %1324 = vmatprep.mubr.f32.mxu1 %v10783_v0 }
 0x217   : > { %6146 = vmatmul.mubr.msk.f32.gmra.mrb[30].mxu1 %vm1114_vm8, %v1003_v4 }
 0x218   : > { %1674 = vmatprep.mubr.f32.mxu1 %v10783_v0 }
 0x2ae   : > { %v1236_v6 = vpop.f32.mrb[0].mxu1 }
 0x2af   : > { %v1237_v10 = vadd.f32 %v1236_v6, %v1037_v5  ;;  %v1238_v11 = vpop.f32.mrb[1].mxu1 }
 0x2b0   : > { %v1239_v12 = vadd.f32 %v1238_v11, %v1037_v5 }
 0x2b1   : > { %v1331_v14 = vmax.f32 %v1237_v10, 0.0  ;;  %v1077_v10 = vpop.permute.xlu0 %1076 }
 0x2b2   : > { %v1332_v16 = vmax.f32 %v1239_v12, 0.0  ;;  %v1242_v17 = vpop.f32.mrb[2].mxu1 }
 0x2b3   : > { %v1243_v18 = vadd.f32 %v1242_v17, %v1042_v15  ;;  %v1244_v21 = vpop.f32.mrb[3].mxu1  ;;  %1395 = vrot.lane.b32.xlu0 %v1331_v14, %s10781_s20 }
 0x2b4   : > { %v1245_v23 = vadd.f32 %v1244_v21, %v1042_v15  ;;  %1397 = vrot.lane.b32.xlu1 %v1332_v16, %s10781_s20 }
 0x2b5   : > { %v1333_v24 = vmax.f32 %v1243_v18, 0.0  ;;  %v1082_v18 = vpop.permute.xlu1 %1081 }
 0x2b6   : > { %v1334_v25 = vmax.f32 %v1245_v23, 0.0  ;;  %v1248_v26 = vpop.f32.mrb[4].mxu1 }
 0x2b7   : > { %v1249_v27 = vadd.f32 %v1248_v26, %v1047_v22  ;;  %v1250_v28 = vpop.f32.mrb[5].mxu1  ;;  %1399 = vrot.lane.b32.xlu0 %v1333_v24, %s10781_s20 }
 0x2b8   : > { %v1251_v29 = vadd.f32 %v1250_v28, %v1047_v22  ;;  %1401 = vrot.lane.b32.xlu1 %v1334_v25, %s10781_s20 }
 0x2b9   : > { %v1335_v32 = vmax.f32 %v1249_v27, 0.0  ;;  %v1087_v27 = vpop.permute.xlu0 %1086 }
 0x2ba   : > { %v1336_v36 = vmax.f32 %v1251_v29, 0.0  ;;  %v1254_v37 = vpop.f32.mrb[6].mxu1 }
 0x2bb   : > { %v1255_v40 = vadd.f32 %v1254_v37, %v1052_v34  ;;  %v1256_v42 = vpop.f32.mrb[7].mxu1  ;;  %1403 = vrot.lane.b32.xlu0 %v1335_v32, %s10781_s20 }
 0x2bc   : > { %v1257_v30 = vadd.f32 %v1256_v42, %v1052_v34  ;;  %1405 = vrot.lane.b32.xlu1 %v1336_v36, %s10781_s20 }
 0x2bd   : > { %v1337_v43 = vmax.f32 %v1255_v40, 0.0  ;;  %v1092_v40 = vpop.permute.xlu1 %1091 }
 0x2be   : > { %v1338_v33 = vmax.f32 %v1257_v30, 0.0  ;;  %v1260_v44 = vpop.f32.mrb[8].mxu1 }
 0x2bf   : > { %v1261_v45 = vadd.f32 %v1260_v44, %v1057_v39  ;;  %v1262_v31 = vpop.f32.mrb[9].mxu1  ;;  %1407 = vrot.lane.b32.xlu0 %v1337_v43, %s10781_s20 }
 0x2c0   : > { %v1263_v41 = vadd.f32 %v1262_v31, %v1057_v39  ;;  %1409 = vrot.lane.b32.xlu1 %v1338_v33, %s10781_s20 }
 0x2c1   : > { %v1339_v46 = vmax.f32 %v1261_v45, 0.0  ;;  %v1097_v45 = vpop.permute.xlu0 %1096 }
 0x2c2   : > { %v1340_v13 = vmax.f32 %v1263_v41, 0.0  ;;  %v1266_v7 = vpop.f32.mrb[10].mxu1 }
 0x2c3   : > { %v1267_v48 = vadd.f32 %v1266_v7, %v1062_v47  ;;  %v1268_v49 = vpop.f32.mrb[11].mxu1  ;;  %1411 = vrot.lane.b32.xlu0 %v1339_v46, %s10781_s20 }
 0x2c4   : > { %v1269_v52 = vadd.f32 %v1268_v49, %v1062_v47  ;;  %1413 = vrot.lane.b32.xlu1 %v1340_v13, %s10781_s20 }
 0x2c5   : > { %v1341_v53 = vmax.f32 %v1267_v48, 0.0  ;;  %v1102_v48 = vpop.permute.xlu1 %1101 }
 0x2c6   : > { %v1342_v55 = vmax.f32 %v1269_v52, 0.0  ;;  %v1272_v56 = vpop.f32.mrb[12].mxu1 }
 0x2c7   : > { %v1273_v57 = vadd.f32 %v1272_v56, %v1067_v54  ;;  %v1274_v60 = vpop.f32.mrb[13].mxu1  ;;  %1415 = vrot.lane.b32.xlu0 %v1341_v53, %s10781_s20 }
 0x2c8   : > { %v1275_v61 = vadd.f32 %v1274_v60, %v1067_v54  ;;  %1417 = vrot.lane.b32.xlu1 %v1342_v55, %s10781_s20 }
 0x2c9   : > { %v1343_v62 = vmax.f32 %v1273_v57, 0.0  ;;  %v1107_v57 = vpop.permute.xlu0 %1106 }
 0x2ca   : > { %v1344_v1 = vmax.f32 %v1275_v61, 0.0  ;;  %v1278_v2 = vpop.f32.mrb[14].mxu1 }
 0x2cb   : > { %v1279_v3 = vadd.f32 %v1278_v2, %v1072_v63  ;;  %v1280_v4 = vpop.f32.mrb[15].mxu1  ;;  %1419 = vrot.lane.b32.xlu0 %v1343_v62, %s10781_s20 }
 0x2cc   : > { %v1281_v5 = vadd.f32 %v1280_v4, %v1072_v63  ;;  %1421 = vrot.lane.b32.xlu1 %v1344_v1, %s10781_s20 }
 0x2cd   : > { %v1345_v6 = vmax.f32 %v1279_v3, 0.0  ;;  %v1112_v3 = vpop.permute.xlu1 %1111 }
 0x2ce   : > { %v1346_v11 = vmax.f32 %v1281_v5, 0.0  ;;  %v1284_v12 = vpop.f32.mrb[16].mxu1 }
 0x2cf   : > { %v1285_v14 = vadd.f32 %v1284_v12, %v1077_v10  ;;  %v1286_v15 = vpop.f32.mrb[17].mxu1  ;;  %1423 = vrot.lane.b32.xlu0 %v1345_v6, %s10781_s20 }
 0x2d0   : > { %v1287_v16 = vadd.f32 %v1286_v15, %v1077_v10  ;;  %1425 = vrot.lane.b32.xlu1 %v1346_v11, %s10781_s20 }
 0x2d1   : > { %v1347_v17 = vmax.f32 %v1285_v14, 0.0 }
 0x2d2   : > { %v1348_v21 = vmax.f32 %v1287_v16, 0.0  ;;  %v1290_v22 = vpop.f32.mrb[18].mxu1 }
 0x2d3   : > { %v1291_v23 = vadd.f32 %v1290_v22, %v1082_v18  ;;  %v1292_v24 = vpop.f32.mrb[19].mxu1  ;;  %1427 = vrot.lane.b32.xlu0 %v1347_v17, %s10781_s20 }
 0x2d4   : > { %v1293_v25 = vadd.f32 %v1292_v24, %v1082_v18  ;;  %1429 = vrot.lane.b32.xlu1 %v1348_v21, %s10781_s20 }
 0x2d5   : > { %v1349_v26 = vmax.f32 %v1291_v23, 0.0 }
 0x2d6   : > { %v1350_v28 = vmax.f32 %v1293_v25, 0.0  ;;  %v1296_v29 = vpop.f32.mrb[20].mxu1 }
 0x2d7   : > { %v1297_v32 = vadd.f32 %v1296_v29, %v1087_v27  ;;  %v1298_v34 = vpop.f32.mrb[21].mxu1  ;;  %1431 = vrot.lane.b32.xlu0 %v1349_v26, %s10781_s20 }
 0x2d8   : > { %v1299_v36 = vadd.f32 %v1298_v34, %v1087_v27  ;;  %1433 = vrot.lane.b32.xlu1 %v1350_v28, %s10781_s20 }
 0x2d9   : > { %v1351_v37 = vmax.f32 %v1297_v32, 0.0 }
 0x2da   : > { %v1352_v42 = vmax.f32 %v1299_v36, 0.0  ;;  %v1302_v30 = vpop.f32.mrb[22].mxu1 }
 0x2db   : > { %v1303_v43 = vadd.f32 %v1302_v30, %v1092_v40  ;;  %v1304_v39 = vpop.f32.mrb[23].mxu1  ;;  %1435 = vrot.lane.b32.xlu0 %v1351_v37, %s10781_s20 }
 0x2dc   : > { %v1305_v33 = vadd.f32 %v1304_v39, %v1092_v40  ;;  %1437 = vrot.lane.b32.xlu1 %v1352_v42, %s10781_s20 }
 0x2dd   : > { %v1353_v44 = vmax.f32 %v1303_v43, 0.0 }
 0x2de   : > { %v1354_v31 = vmax.f32 %v1305_v33, 0.0  ;;  %v1308_v41 = vpop.f32.mrb[24].mxu1 }
 0x2df   : > { %v1309_v46 = vadd.f32 %v1308_v41, %v1097_v45  ;;  %v1310_v47 = vpop.f32.mrb[25].mxu1  ;;  %1439 = vrot.lane.b32.xlu0 %v1353_v44, %s10781_s20 }
 0x2e0   : > { %v1311_v13 = vadd.f32 %v1310_v47, %v1097_v45  ;;  %1441 = vrot.lane.b32.xlu1 %v1354_v31, %s10781_s20 }
 0x2e1   : > { %v1355_v7 = vmax.f32 %v1309_v46, 0.0 }
 0x2e2   : > { %v1356_v49 = vmax.f32 %v1311_v13, 0.0  ;;  %v1314_v52 = vpop.f32.mrb[26].mxu1 }
 0x2e3   : > { %v1315_v53 = vadd.f32 %v1314_v52, %v1102_v48  ;;  %v1316_v54 = vpop.f32.mrb[27].mxu1  ;;  %1443 = vrot.lane.b32.xlu0 %v1355_v7, %s10781_s20 }
 0x2e4   : > { %v1317_v55 = vadd.f32 %v1316_v54, %v1102_v48  ;;  %1445 = vrot.lane.b32.xlu1 %v1356_v49, %s10781_s20 }
 0x2e5   : > { %v1357_v56 = vmax.f32 %v1315_v53, 0.0 }
 0x2e6   : > { %v1358_v60 = vmax.f32 %v1317_v55, 0.0  ;;  %v1320_v61 = vpop.f32.mrb[28].mxu1 }
 0x2e7   : > { %v1321_v62 = vadd.f32 %v1320_v61, %v1107_v57  ;;  %v1322_v63 = vpop.f32.mrb[29].mxu1  ;;  %1447 = vrot.lane.b32.xlu0 %v1357_v56, %s10781_s20 }
 0x2e8   : > { %v1323_v1 = vadd.f32 %v1322_v63, %v1107_v57  ;;  %1449 = vrot.lane.b32.xlu1 %v1358_v60, %s10781_s20 }
 0x2e9   : > { %v1359_v2 = vmax.f32 %v1321_v62, 0.0 }
 0x2ea   : > { %v1360_v4 = vmax.f32 %v1323_v1, 0.0  ;;  %v1326_v5 = vpop.f32.mrb[30].mxu1 }
 0x2eb   : > { %v1327_v6 = vadd.f32 %v1326_v5, %v1112_v3  ;;  %v1328_v10 = vpop.f32.mrb[31].mxu1  ;;  %1451 = vrot.lane.b32.xlu0 %v1359_v2, %s10781_s20 }
 0x2ec   : > { %v1329_v11 = vadd.f32 %v1328_v10, %v1112_v3  ;;  %1453 = vrot.lane.b32.xlu1 %v1360_v4, %s10781_s20 }
 0x2ed   : > { %v1361_v12 = vmax.f32 %v1327_v6, 0.0 }
 0x2ee   : > { %v1362_v14 = vmax.f32 %v1329_v11, 0.0 }
 0x2ef   : > { %1455 = vrot.lane.b32.xlu0 %v1361_v12, %s10781_s20 }
 0x2f0   : > { %1457 = vrot.lane.b32.xlu1 %v1362_v14, %s10781_s20 }
 0x325   : > { %v1396_v15 = vpop.permute.xlu0 %1395 }
 0x326   : > { %1524 = vst.msk [vmem:[#allocation2] sm:$0xff] %vm1523_vm9, %v1396_v15  ;;  %v1398_v16 = vpop.permute.xlu1 %1397 }
 0x327   : > { %v1459_v17 = vsel %vm517_vm0, %v1396_v15, %v1398_v16  ;;  %1526 = vst.msk [vmem:[#allocation2 + $0x10] sm:$0xff] %vm517_vm0, %v1398_v16 }
 0x328   : > { %1525 = vst [vmem:[#allocation2 + $0x8] sm:$0xff] %v1459_v17 }
 0x329   : > { %v1400_v18 = vpop.permute.xlu0 %1399 }
 0x32a   : > { %1527 = vst.msk [vmem:[#allocation2 + $0x18] sm:$0xff] %vm1523_vm9, %v1400_v18  ;;  %v1402_v21 = vpop.permute.xlu1 %1401 }
 0x32b   : > { %v1460_v22 = vsel %vm517_vm0, %v1400_v18, %v1402_v21  ;;  %1529 = vst.msk [vmem:[#allocation2 + $0x28] sm:$0xff] %vm517_vm0, %v1402_v21 }
 0x32c   : > { %v6254_v23 = vpack.c.bf16 %v1460_v22, %v1459_v17 }
 0x32d   : > { %v1404_v24 = vpop.permute.xlu0 %1403  ;;  %v1573_v29 = vld [vmem:[#allocation2] sm:$0xff] }
 0x32e   : > { %1530 = vst.msk [vmem:[#allocation2 + $0x30] sm:$0xff] %vm1523_vm9, %v1404_v24  ;;  %v1406_v25 = vpop.permute.xlu1 %1405  ;;  %v1754_v26 = vld [vmem:[#allocation2 + $0x10] sm:$0xff]  ;;  %6255 = vmatprep.subr.bf16.mxu1 %v6254_v23 }
 0x32f   : > { %1532 = vst.msk [vmem:[#allocation2 + $0x40] sm:$0xff] %vm517_vm0, %v1406_v25  ;;  %v8313_v27 = vpack.i.bf16 %v1754_v26, %v1459_v17  ;;  %v1461_v40 = vsel %vm517_vm0, %v1404_v24, %v1406_v25 }
 0x331   : > { %v1408_v28 = vpop.permute.xlu0 %1407  ;;  %6695 = vrot.lane.b32.xlu0 %v8313_v27, %s10779_s21  ;;  %v1575_v32 = vld [vmem:[#allocation2 + $0x18] sm:$0xff] }
 0x332   : > { %1533 = vst.msk [vmem:[#allocation2 + $0x48] sm:$0xff] %vm1523_vm9, %v1408_v28  ;;  %v1410_v34 = vpop.permute.xlu1 %1409  ;;  %v1757_v36 = vld [vmem:[#allocation2 + $0x28] sm:$0xff]  ;;  %v6256_v37 = vpack.c.bf16 %v1575_v32, %v1573_v29  ;;  %v8337_v7 = vpack.i.bf16 %v1575_v32, %v1573_v29 }
 0x333   : > { %v1462_v42 = vsel %vm517_vm0, %v1408_v28, %v1410_v34  ;;  %1535 = vst.msk [vmem:[#allocation2 + $0x58] sm:$0xff] %vm517_vm0, %v1410_v34  ;;  %v8321_v30 = vpack.i.bf16 %v1757_v36, %v1460_v22 }
 0x334   : > { %6257 = vmatpush1.bf16.msra.mxu1 %v6256_v37  ;;  %v6258_v43 = vpack.c.bf16 %v1462_v42, %v1461_v40 }
 0x335   : > { %v1412_v39 = vpop.permute.xlu0 %1411  ;;  %6700 = vrot.lane.b32.xlu0 %v8313_v27, %s10775_s23  ;;  %6720 = vrot.lane.b32.xlu1 %v8321_v30, %s10779_s21  ;;  %v1577_v45 = vld [vmem:[#allocation2 + $0x30] sm:$0xff] }
 0x336   : > { %1536 = vst.msk [vmem:[#allocation2 + $0x60] sm:$0xff] %vm1523_vm9, %v1412_v39  ;;  %v1414_v33 = vpop.permute.xlu1 %1413  ;;  %6259 = vmatprep.subr.bf16.mxu1 %v6258_v43  ;;  %v1760_v48 = vld [vmem:[#allocation2 + $0x40] sm:$0xff] }
 0x337   : > { %1538 = vst.msk [vmem:[#allocation2 + $0x70] sm:$0xff] %vm517_vm0, %v1414_v33  ;;  %v1463_v47 = vsel %vm517_vm0, %v1412_v39, %v1414_v33  ;;  %v8345_v54 = vpack.i.bf16 %v1760_v48, %v1461_v40 }
 0x339   : > { %v1416_v44 = vpop.permute.xlu0 %1415  ;;  %6705 = vrot.lane.b32.xlu0 %v8313_v27, %s10773_s22  ;;  %6725 = vrot.lane.b32.xlu1 %v8321_v30, %s10775_s23  ;;  %v1579_v31 = vld [vmem:[#allocation2 + $0x48] sm:$0xff] }
 0x33a   : > { %1539 = vst.msk [vmem:[#allocation2 + $0x78] sm:$0xff] %vm1523_vm9, %v1416_v44  ;;  %v1418_v41 = vpop.permute.xlu1 %1417  ;;  %v6260_v46 = vpack.c.bf16 %v1579_v31, %v1577_v45  ;;  %v1763_v55 = vld [vmem:[#allocation2 + $0x58] sm:$0xff]  ;;  %v8366_v6 = vpack.i.bf16 %v1579_v31, %v1577_v45 }
 0x33b   : > { %v1464_v13 = vsel %vm517_vm0, %v1416_v44, %v1418_v41  ;;  %1541 = vst.msk [vmem:[#allocation2 + $0x88] sm:$0xff] %vm517_vm0, %v1418_v41  ;;  %v8357_v2 = vpack.i.bf16 %v1763_v55, %v1462_v42 }
 0x33c   : > { %6261 = vmatpush1.bf16.msra.mxu1 %v6260_v46  ;;  %v6262_v49 = vpack.c.bf16 %v1464_v13, %v1463_v47 }
 0x33d   : > { %v1420_v52 = vpop.permute.xlu0 %1419  ;;  %6710 = vrot.lane.b32.xlu0 %v8337_v7, %s10779_s21  ;;  %6730 = vrot.lane.b32.xlu1 %v8321_v30, %s10773_s22  ;;  %v1581_v57 = vld [vmem:[#allocation2 + $0x60] sm:$0xff] }
 0x33e   : > { %1542 = vst.msk [vmem:[#allocation2 + $0x90] sm:$0xff] %vm1523_vm9, %v1420_v52  ;;  %v1422_v53 = vpop.permute.xlu1 %1421  ;;  %6263 = vmatprep.subr.bf16.mxu1 %v6262_v49  ;;  %v1766_v10 = vld [vmem:[#allocation2 + $0x70] sm:$0xff] }
 0x33f   : > { %1544 = vst.msk [vmem:[#allocation2 + $0xa0] sm:$0xff] %vm517_vm0, %v1422_v53  ;;  %v1465_v63 = vsel %vm517_vm0, %v1420_v52, %v1422_v53  ;;  %v8386_v21 = vpack.i.bf16 %v1766_v10, %v1463_v47 }
 0x341   : > { %v1424_v56 = vpop.permute.xlu0 %1423  ;;  %6715 = vrot.lane.b32.xlu0 %v8337_v7, %s10775_s23  ;;  %6735 = vrot.lane.b32.xlu1 %v8345_v54, %s10779_s21  ;;  %v1583_v60 = vld [vmem:[#allocation2 + $0x78] sm:$0xff] }
 0x342   : > { %1545 = vst.msk [vmem:[#allocation2 + $0xa8] sm:$0xff] %vm1523_vm9, %v1424_v56  ;;  %v1426_v61 = vpop.permute.xlu1 %1425  ;;  %v6264_v62 = vpack.c.bf16 %v1583_v60, %v1581_v57  ;;  %v1769_v22 = vld [vmem:[#allocation2 + $0x88] sm:$0xff]  ;;  %v8416_v42 = vpack.i.bf16 %v1583_v60, %v1581_v57 }
 0x343   : > { %v8354_v1 = vsel %vm517_vm0, %v1424_v56, %v1426_v61  ;;  %1547 = vst.msk [vmem:[#allocation2 + $0xb8] sm:$0xff] %vm517_vm0, %v1426_v61  ;;  %v8396_v26 = vpack.i.bf16 %v1769_v22, %v1464_v13 }
 0x344   : > { %6265 = vmatpush1.bf16.msra.mxu1 %v6264_v62  ;;  %v6266_v3 = vpack.c.bf16 %v8354_v1, %v1465_v63 }
 0x345   : > { %v1428_v4 = vpop.permute.xlu0 %1427  ;;  %6740 = vrot.lane.b32.xlu1 %v8345_v54, %s10775_s23  ;;  %6755 = vrot.lane.b32.xlu0 %v8357_v2, %s10779_s21  ;;  %v8372_v12 = vld [vmem:[#allocation2 + $0x90] sm:$0xff] }
 0x346   : > { %1548 = vst.msk [vmem:[#allocation2 + $0xc0] sm:$0xff] %vm1523_vm9, %v1428_v4  ;;  %v1430_v5 = vpop.permute.xlu1 %1429  ;;  %6267 = vmatprep.subr.bf16.mxu1 %v6266_v3  ;;  %v1772_v43 = vld [vmem:[#allocation2 + $0xa0] sm:$0xff] }
 0x347   : > { %1550 = vst.msk [vmem:[#allocation2 + $0xd0] sm:$0xff] %vm517_vm0, %v1430_v5  ;;  %v8380_v17 = vsel %vm517_vm0, %v1428_v4, %v1430_v5  ;;  %v8426_v45 = vpack.i.bf16 %v1772_v43, %v1465_v63 }
 0x349   : > { %v1432_v11 = vpop.permute.xlu0 %1431  ;;  %6745 = vrot.lane.b32.xlu1 %v8366_v6, %s10779_s21  ;;  %6760 = vrot.lane.b32.xlu0 %v8357_v2, %s10775_s23  ;;  %v8374_v14 = vld [vmem:[#allocation2 + $0xa8] sm:$0xff] }
 0x34a   : > { %1551 = vst.msk [vmem:[#allocation2 + $0xd8] sm:$0xff] %vm1523_vm9, %v1432_v11  ;;  %v1434_v15 = vpop.permute.xlu1 %1433  ;;  %v6268_v16 = vpack.c.bf16 %v8374_v14, %v8372_v12  ;;  %v1775_v31 = vld [vmem:[#allocation2 + $0xb8] sm:$0xff]  ;;  %v8456_v60 = vpack.i.bf16 %v8374_v14, %v8372_v12 }
 0x34b   : > { %v8383_v18 = vsel %vm517_vm0, %v1432_v11, %v1434_v15  ;;  %1553 = vst.msk [vmem:[#allocation2 + $0xe8] sm:$0xff] %vm517_vm0, %v1434_v15  ;;  %v8444_v53 = vpack.i.bf16 %v1775_v31, %v8354_v1 }
 0x34c   : > { %6269 = vmatpush1.bf16.msra.mxu1 %v6268_v16  ;;  %v6270_v23 = vpack.c.bf16 %v8383_v18, %v8380_v17 }
 0x34d   : > { %v1436_v24 = vpop.permute.xlu0 %1435  ;;  %6750 = vrot.lane.b32.xlu1 %v8366_v6, %s10775_s23  ;;  %6765 = vrot.lane.b32.xlu0 %v8386_v21, %s10779_s21  ;;  %v8402_v29 = vld [vmem:[#allocation2 + $0xc0] sm:$0xff] }
 0x34e   : > { %1554 = vst.msk [vmem:[#allocation2 + $0xf0] sm:$0xff] %vm1523_vm9, %v1436_v24  ;;  %v1438_v25 = vpop.permute.xlu1 %1437  ;;  %6271 = vmatprep.subr.bf16.mxu1 %v6270_v23  ;;  %v1778_v61 = vld [vmem:[#allocation2 + $0xd0] sm:$0xff] }
 0x34f   : > { %1556 = vst.msk [vmem:[#allocation2 + $0x100] sm:$0xff] %vm517_vm0, %v1438_v25  ;;  %v8410_v37 = vsel %vm517_vm0, %v1436_v24, %v1438_v25  ;;  %v8467_v11 = vpack.i.bf16 %v1778_v61, %v8380_v17 }
 0x351   : > { %v1440_v28 = vpop.permute.xlu0 %1439  ;;  %6770 = vrot.lane.b32.xlu0 %v8386_v21, %s10775_s23  ;;  %6785 = vrot.lane.b32.xlu1 %v8396_v26, %s10779_s21  ;;  %v8404_v32 = vld [vmem:[#allocation2 + $0xd8] sm:$0xff] }
 0x352   : > { %1557 = vst.msk [vmem:[#allocation2 + $0x108] sm:$0xff] %vm1523_vm9, %v1440_v28  ;;  %v1442_v34 = vpop.permute.xlu1 %1441  ;;  %v6272_v36 = vpack.c.bf16 %v8404_v32, %v8402_v29  ;;  %v1781_v12 = vld [vmem:[#allocation2 + $0xe8] sm:$0xff]  ;;  %v8482_v23 = vpack.i.bf16 %v8404_v32, %v8402_v29 }
 0x353   : > { %v8413_v40 = vsel %vm517_vm0, %v1440_v28, %v1442_v34  ;;  %1559 = vst.msk [vmem:[#allocation2 + $0x118] sm:$0xff] %vm517_vm0, %v1442_v34  ;;  %v8474_v15 = vpack.i.bf16 %v1781_v12, %v8383_v18  ;;  %v1605_v18 = vld [vmem:[%s10753_s4] sm:$0xff]  ;;  %v1606_v29 = vld [vmem:[%s10753_s4 + $0x8] sm:$0xff]  ;;  %v1607_v34 = vld [vmem:[%s10753_s4 + $0x10] sm:$0xff] }
 0x354   : > { %6273 = vmatpush1.bf16.msra.mxu1 %v6272_v36  ;;  %v6274_v39 = vpack.c.bf16 %v8413_v40, %v8410_v37 }
 0x355   : > { %v1444_v33 = vpop.permute.xlu0 %1443  ;;  %6775 = vrot.lane.b32.xlu0 %v8416_v42, %s10779_s21  ;;  %6790 = vrot.lane.b32.xlu1 %v8396_v26, %s10775_s23  ;;  %v8432_v46 = vld [vmem:[#allocation2 + $0xf0] sm:$0xff] }
 0x356   : > { %1560 = vst.msk [vmem:[#allocation2 + $0x120] sm:$0xff] %vm1523_vm9, %v1444_v33  ;;  %v1446_v44 = vpop.permute.xlu1 %1445  ;;  %6275 = vmatprep.subr.bf16.mxu1 %v6274_v39  ;;  %v1784_v24 = vld [vmem:[#allocation2 + $0x100] sm:$0xff] }
 0x357   : > { %1562 = vst.msk [vmem:[#allocation2 + $0x130] sm:$0xff] %vm517_vm0, %v1446_v44  ;;  %v8437_v49 = vsel %vm517_vm0, %v1444_v33, %v1446_v44  ;;  %v8492_v25 = vpack.i.bf16 %v1784_v24, %v8410_v37  ;;  %v1609_v33 = vld [vmem:[%s10753_s4 + $0x20] sm:$0xff] }
 0x359   : > { %v1448_v41 = vpop.permute.xlu0 %1447  ;;  %6780 = vrot.lane.b32.xlu0 %v8416_v42, %s10775_s23  ;;  %6795 = vrot.lane.b32.xlu1 %v8426_v45, %s10779_s21  ;;  %v1595_v47 = vld [vmem:[#allocation2 + $0x108] sm:$0xff] }
 0x35a   : > { %1563 = vst.msk [vmem:[#allocation2 + $0x138] sm:$0xff] %vm1523_vm9, %v1448_v41  ;;  %v1450_v13 = vpop.permute.xlu1 %1449  ;;  %v6276_v48 = vpack.c.bf16 %v1595_v47, %v8432_v46  ;;  %v1787_v28 = vld [vmem:[#allocation2 + $0x118] sm:$0xff]  ;;  %v8514_v36 = vpack.i.bf16 %v1595_v47, %v8432_v46 }
 0x35b   : > { %v8440_v52 = vsel %vm517_vm0, %v1448_v41, %v1450_v13  ;;  %1565 = vst.msk [vmem:[#allocation2 + $0x148] sm:$0xff] %vm517_vm0, %v1450_v13  ;;  %v8503_v32 = vpack.i.bf16 %v1787_v28, %v8413_v40  ;;  %v1608_v40 = vld [vmem:[%s10753_s4 + $0x18] sm:$0xff] }
 0x35c   : > { %6277 = vmatpush1.bf16.msra.mxu1 %v6276_v48  ;;  %v6278_v55 = vpack.c.bf16 %v8440_v52, %v8437_v49 }
 0x35d   : > { %v1452_v56 = vpop.permute.xlu0 %1451  ;;  %6800 = vrot.lane.b32.xlu1 %v8426_v45, %s10775_s23  ;;  %6815 = vrot.lane.b32.xlu0 %v8444_v53, %s10779_s21  ;;  %v1597_v63 = vld [vmem:[#allocation2 + $0x120] sm:$0xff] }
 0x35e   : > { %1566 = vst.msk [vmem:[#allocation2 + $0x150] sm:$0xff] %vm1523_vm9, %v1452_v56  ;;  %v1454_v57 = vpop.permute.xlu1 %1453  ;;  %6279 = vmatprep.subr.bf16.mxu1 %v6278_v55  ;;  %v1790_v37 = vld [vmem:[#allocation2 + $0x130] sm:$0xff] }
 0x35f   : > { %1568 = vst.msk [vmem:[#allocation2 + $0x160] sm:$0xff] %vm517_vm0, %v1454_v57  ;;  %v1473_v5 = vsel %vm517_vm0, %v1452_v56, %v1454_v57  ;;  %v8525_v43 = vpack.i.bf16 %v1790_v37, %v8437_v49 }
 0x361   : > { %v1456_v62 = vpop.permute.xlu0 %1455  ;;  %6805 = vrot.lane.b32.xlu1 %v8456_v60, %s10779_s21  ;;  %6820 = vrot.lane.b32.xlu0 %v8444_v53, %s10775_s23  ;;  %v1599_v1 = vld [vmem:[#allocation2 + $0x138] sm:$0xff] }
 0x362   : > { %1569 = vst.msk [vmem:[#allocation2 + $0x168] sm:$0xff] %vm1523_vm9, %v1456_v62  ;;  %v1458_v3 = vpop.permute.xlu1 %1457  ;;  %v6280_v4 = vpack.c.bf16 %v1599_v1, %v1597_v63  ;;  %v1793_v39 = vld [vmem:[#allocation2 + $0x148] sm:$0xff]  ;;  %v8543_v31 = vpack.i.bf16 %v1599_v1, %v1597_v63 }
 0x363   : > { %v1474_v10 = vsel %vm517_vm0, %v1456_v62, %v1458_v3  ;;  %1571 = vst.msk [vmem:[#allocation2 + $0x178] sm:$0xff] %vm517_vm0, %v1458_v3  ;;  %v8536_v44 = vpack.i.bf16 %v1793_v39, %v8440_v52 }
 0x364   : > { %6281 = vmatpush1.bf16.msra.mxu1 %v6280_v4  ;;  %v6282_v14 = vpack.c.bf16 %v1474_v10, %v1473_v5 }
 0x365   : > { %6810 = vrot.lane.b32.xlu1 %v8456_v60, %s10775_s23  ;;  %6825 = vrot.lane.b32.xlu0 %v8467_v11, %s10779_s21  ;;  %v1601_v16 = vld [vmem:[#allocation2 + $0x150] sm:$0xff] }
 0x366   : > { %6283 = vmatprep.subr.bf16.mxu1 %v6282_v14  ;;  %v1796_v41 = vld [vmem:[#allocation2 + $0x160] sm:$0xff] }
 0x367   : > { %v8549_v46 = vpack.i.bf16 %v1796_v41, %v1473_v5 }
 0x369   : > { %6830 = vrot.lane.b32.xlu0 %v8467_v11, %s10775_s23  ;;  %6845 = vrot.lane.b32.xlu1 %v8474_v15, %s10779_s21  ;;  %v1603_v17 = vld [vmem:[#allocation2 + $0x168] sm:$0xff] }
 0x36a   : > { %v6284_v22 = vpack.c.bf16 %v1603_v17, %v1601_v16  ;;  %v1799_v47 = vld [vmem:[#allocation2 + $0x178] sm:$0xff]  ;;  %v8561_v48 = vpack.i.bf16 %v1603_v17, %v1601_v16 }
 0x36b   : > { %v8555_v13 = vpack.i.bf16 %v1799_v47, %v1474_v10 }
 0x36c   : > { %6285 = vmatpush1.bf16.msra.mxu1 %v6284_v22 }
 0x36d   : > { %6835 = vrot.lane.b32.xlu0 %v8482_v23, %s10779_s21  ;;  %6850 = vrot.lane.b32.xlu1 %v8474_v15, %s10775_s23 }
 0x36f   : > { %1675 = vmatmul.mubr.f32.vlgmr.msra.gmra.mrb[32].mxu1 %v1605_v18 }
 0x370   : > { %1680 = vmatprep.mubr.f32.mxu1 %v10783_v0 }
 0x371   : > { %6840 = vrot.lane.b32.xlu0 %v8482_v23, %s10775_s23  ;;  %6855 = vrot.lane.b32.xlu1 %v8492_v25, %s10779_s21 }
 0x373   : > { %1681 = vmatmul.mubr.f32.gmra.mrb[34].mxu1 %v1606_v29 }
 0x374   : > { %1686 = vmatprep.mubr.f32.mxu1 %v10783_v0 }
 0x375   : > { %6860 = vrot.lane.b32.xlu1 %v8492_v25, %s10775_s23  ;;  %6875 = vrot.lane.b32.xlu0 %v8503_v32, %s10779_s21 }
 0x377   : > { %1687 = vmatmul.mubr.f32.gmra.mrb[36].mxu1 %v1607_v34 }
 0x378   : > { %1692 = vmatprep.mubr.f32.mxu1 %v10783_v0 }
 0x379   : > { %6865 = vrot.lane.b32.xlu1 %v8514_v36, %s10779_s21  ;;  %6880 = vrot.lane.b32.xlu0 %v8503_v32, %s10775_s23 }
 0x37b   : > { %1693 = vmatmul.mubr.f32.gmra.mrb[38].mxu1 %v1608_v40 }
 0x37c   : > { %1698 = vmatprep.mubr.f32.mxu1 %v10783_v0 }
 0x37d   : > { %6870 = vrot.lane.b32.xlu1 %v8514_v36, %s10775_s23  ;;  %6885 = vrot.lane.b32.xlu0 %v8525_v43, %s10779_s21 }
 0x37f   : > { %1699 = vmatmul.mubr.f32.gmra.mrb[40].mxu1 %v1609_v33 }
 0x380   : > { %2078 = vmatprep.mubr.f32.mxu1 %v10783_v0 }
 0x381   : > { %6890 = vrot.lane.b32.xlu0 %v8525_v43, %s10775_s23  ;;  %6905 = vrot.lane.b32.xlu1 %v8536_v44, %s10779_s21 }
 0x385   : > { %6895 = vrot.lane.b32.xlu0 %v8543_v31, %s10779_s21  ;;  %6910 = vrot.lane.b32.xlu1 %v8536_v44, %s10775_s23 }
 0x389   : > { %6900 = vrot.lane.b32.xlu0 %v8543_v31, %s10775_s23  ;;  %6915 = vrot.lane.b32.xlu1 %v8549_v46, %s10779_s21 }
 0x38d   : > { %6920 = vrot.lane.b32.xlu1 %v8549_v46, %s10775_s23  ;;  %6935 = vrot.lane.b32.xlu0 %v8555_v13, %s10779_s21 }
 0x391   : > { %6925 = vrot.lane.b32.xlu1 %v8561_v48, %s10779_s21  ;;  %6940 = vrot.lane.b32.xlu0 %v8337_v7, %s10773_s22 }
 0x395   : > { %6930 = vrot.lane.b32.xlu1 %v8561_v48, %s10775_s23  ;;  %6950 = vrot.lane.b32.xlu0 %v8357_v2, %s10773_s22 }
 0x399   : > { %6945 = vrot.lane.b32.xlu1 %v8345_v54, %s10773_s22  ;;  %6960 = vrot.lane.b32.xlu0 %v8386_v21, %s10773_s22 }
 0x39d   : > { %6955 = vrot.lane.b32.xlu1 %v8366_v6, %s10773_s22  ;;  %6970 = vrot.lane.b32.xlu0 %v8416_v42, %s10773_s22 }
 0x3a1   : > { %6965 = vrot.lane.b32.xlu1 %v8396_v26, %s10773_s22  ;;  %6980 = vrot.lane.b32.xlu0 %v8444_v53, %s10773_s22 }
 0x3a3   : > { %v6696_v49 = vpop.permute.xlu0 %6695 }
 0x3a4   : > { %v6698_v52 = vunpack.i.h.bf16 %v6696_v49  ;;  %v6697_v55 = vunpack.i.l.bf16 %v6696_v49 }
 0x3a5   : > { %6975 = vrot.lane.b32.xlu1 %v8426_v45, %s10773_s22  ;;  %6990 = vrot.lane.b32.xlu0 %v8467_v11, %s10773_s22 }
 0x3a6   : > { %v1951_v63 = vsel %vm652_vm4, %v6697_v55, %v6698_v52 }
 0x3a7   : > { %v6721_v56 = vpop.permute.xlu1 %6720  ;;  %v8587_v57 = vpop.permute.xlu0 %6700 }
 0x3a8   : > { %v6723_v61 = vunpack.i.h.bf16 %v6721_v56  ;;  %v6722_v62 = vunpack.i.l.bf16 %v6721_v56 }
 0x3a9   : > { %6985 = vrot.lane.b32.xlu1 %v8456_v60, %s10773_s22  ;;  %7000 = vrot.lane.b32.xlu0 %v8482_v23, %s10773_s22 }
 0x3aa   : > { %v1953_v1 = vsel %vm652_vm4, %v6722_v62, %v6723_v61 }
 0x3ab   : > { %v8595_v3 = vpop.permute.xlu1 %6725  ;;  %v8597_v4 = vpop.permute.xlu0 %6705  ;;  %v6286_v5 = vpack.c.bf16 %v1953_v1, %v1951_v63 }
 0x3ad   : > { %6995 = vrot.lane.b32.xlu1 %v8474_v15, %s10773_s22  ;;  %7010 = vrot.lane.b32.xlu0 %v8555_v13, %s10775_s23  ;;  %s10799_s23 = smov 80  }
 0x3ae   : > { %6287 = vmatprep.subr.bf16.mxu1 %v6286_v5 }
 0x3af   : > { %v8603_v10 = vpop.permute.xlu1 %6730  ;;  %v6711_v12 = vpop.permute.xlu0 %6710 }
 0x3b0   : > { %v6713_v14 = vunpack.i.h.bf16 %v6711_v12  ;;  %v6712_v16 = vunpack.i.l.bf16 %v6711_v12 }
 0x3b1   : > { %7005 = vrot.lane.b32.xlu1 %v8492_v25, %s10773_s22  ;;  %7015 = vrot.lane.b32.xlu0 %v8503_v32, %s10773_s22 }
 0x3b2   : > { %v1952_v17 = vsel %vm652_vm4, %v6713_v14, %v6722_v62  ;;  %v1950_v22 = vsel %vm652_vm4, %v6712_v16, %v6697_v55 }
 0x3b3   : > { %v6736_v24 = vpop.permute.xlu1 %6735  ;;  %v8611_v18 = vpop.permute.xlu0 %6715  ;;  %v6288_v28 = vpack.c.bf16 %v1952_v17, %v1950_v22 }
 0x3b4   : > { %v6738_v29 = vunpack.i.h.bf16 %v6736_v24  ;;  %v6737_v34 = vunpack.i.l.bf16 %v6736_v24 }
 0x3b5   : > { %7020 = vrot.lane.b32.xlu1 %v8514_v36, %s10773_s22  ;;  %7025 = vrot.lane.b32.xlu0 %v8525_v43, %s10773_s22 }
 0x3b6   : > { %6289 = vmatpush1.bf16.msra.mxu1 %v6288_v28  ;;  %v1955_v41 = vsel %vm652_vm4, %v6737_v34, %v6738_v29 }
 0x3b7   : > { %v8617_v37 = vpop.permute.xlu1 %6740  ;;  %v6756_v40 = vpop.permute.xlu0 %6755 }
 0x3b8   : > { %v6758_v39 = vunpack.i.h.bf16 %v6756_v40  ;;  %v6757_v33 = vunpack.i.l.bf16 %v6756_v40 }
 0x3b9   : > { %7030 = vrot.lane.b32.xlu1 %v8536_v44, %s10773_s22  ;;  %7035 = vrot.lane.b32.xlu0 %v8543_v31, %s10773_s22 }
 0x3ba   : > { %v1957_v47 = vsel %vm652_vm4, %v6757_v33, %v6758_v39 }
 0x3bb   : > { %v6746_v49 = vpop.permute.xlu1 %6745  ;;  %v8625_v52 = vpop.permute.xlu0 %6760  ;;  %v6290_v55 = vpack.c.bf16 %v1957_v47, %v1955_v41 }
 0x3bc   : > { %v6748_v56 = vunpack.i.h.bf16 %v6746_v49  ;;  %v6747_v61 = vunpack.i.l.bf16 %v6746_v49 }
 0x3bd   : > { %7040 = vrot.lane.b32.xlu1 %v8549_v46, %s10773_s22  ;;  %7050 = vrot.lane.b32.xlu0 %v8313_v27, %s10771_s25 }
 0x3be   : > { %v1954_v62 = vsel %vm652_vm4, %v6747_v61, %v6737_v34  ;;  %v1956_v63 = vsel %vm652_vm4, %v6748_v56, %v6757_v33  ;;  %6291 = vmatprep.subr.bf16.mxu1 %v6290_v55 }
 0x3bf   : > { %v8633_v1 = vpop.permute.xlu1 %6750  ;;  %v6766_v5 = vpop.permute.xlu0 %6765  ;;  %v6292_v12 = vpack.c.bf16 %v1956_v63, %v1954_v62 }
 0x3c0   : > { %v6768_v14 = vunpack.i.h.bf16 %v6766_v5  ;;  %v6767_v16 = vunpack.i.l.bf16 %v6766_v5 }
 0x3c1   : > { %7045 = vrot.lane.b32.xlu1 %v8561_v48, %s10773_s22  ;;  %7060 = vrot.lane.b32.xlu0 %v8337_v7, %s10771_s25 }
 0x3c2   : > { %6293 = vmatpush1.bf16.msra.mxu1 %v6292_v12  ;;  %v1959_v28 = vsel %vm652_vm4, %v6767_v16, %v6768_v14 }
 0x3c3   : > { %v6786_v17 = vpop.permute.xlu1 %6785  ;;  %v8639_v27 = vpop.permute.xlu0 %6770 }
 0x3c4   : > { %v6788_v22 = vunpack.i.h.bf16 %v6786_v17  ;;  %v6787_v24 = vunpack.i.l.bf16 %v6786_v17 }
 0x3c5   : > { %7055 = vrot.lane.b32.xlu1 %v8321_v30, %s10771_s25  ;;  %7070 = vrot.lane.b32.xlu0 %v8357_v2, %s10771_s25 }
 0x3c6   : > { %v1961_v29 = vsel %vm652_vm4, %v6787_v24, %v6788_v22 }
 0x3c7   : > { %v8647_v34 = vpop.permute.xlu1 %6790  ;;  %v6776_v7 = vpop.permute.xlu0 %6775  ;;  %v6294_v40 = vpack.c.bf16 %v1961_v29, %v1959_v28 }
 0x3c8   : > { %v6778_v39 = vunpack.i.h.bf16 %v6776_v7  ;;  %v6777_v33 = vunpack.i.l.bf16 %v6776_v7 }
 0x3c9   : > { %7065 = vrot.lane.b32.xlu1 %v8345_v54, %s10771_s25  ;;  %7080 = vrot.lane.b32.xlu0 %v8386_v21, %s10771_s25 }
 0x3ca   : > { %v1960_v30 = vsel %vm652_vm4, %v6778_v39, %v6787_v24  ;;  %v1958_v2 = vsel %vm652_vm4, %v6777_v33, %v6767_v16  ;;  %6295 = vmatprep.subr.bf16.mxu1 %v6294_v40 }
 0x3cb   : > { %v6796_v41 = vpop.permute.xlu1 %6795  ;;  %v8655_v47 = vpop.permute.xlu0 %6780  ;;  %v6296_v49 = vpack.c.bf16 %v1960_v30, %v1958_v2 }
 0x3cc   : > { %v6798_v55 = vunpack.i.h.bf16 %v6796_v41  ;;  %v6797_v54 = vunpack.i.l.bf16 %v6796_v41 }
 0x3cd   : > { %7075 = vrot.lane.b32.xlu1 %v8366_v6, %s10771_s25  ;;  %7090 = vrot.lane.b32.xlu0 %v8555_v13, %s10773_s22  ;;  %s10798_s22 = smov 96  }
 0x3ce   : > { %6297 = vmatpush1.bf16.msra.mxu1 %v6296_v49  ;;  %v1963_v63 = vsel %vm652_vm4, %v6797_v54, %v6798_v55 }
 0x3cf   : > { %v8661_v56 = vpop.permute.xlu1 %6800  ;;  %v6816_v21 = vpop.permute.xlu0 %6815 }
 0x3d0   : > { %v6818_v61 = vunpack.i.h.bf16 %v6816_v21  ;;  %v6817_v62 = vunpack.i.l.bf16 %v6816_v21 }
 0x3d1   : > { %7085 = vrot.lane.b32.xlu1 %v8396_v26, %s10771_s25  ;;  %7095 = vrot.lane.b32.xlu0 %v8416_v42, %s10771_s25 }
 0x3d2   : > { %v1965_v6 = vsel %vm652_vm4, %v6817_v62, %v6818_v61 }
 0x3d3   : > { %v6806_v5 = vpop.permute.xlu1 %6805  ;;  %v8669_v12 = vpop.permute.xlu0 %6820  ;;  %v6298_v14 = vpack.c.bf16 %v1965_v6, %v1963_v63 }
 0x3d4   : > { %v6808_v16 = vunpack.i.h.bf16 %v6806_v5  ;;  %v6807_v17 = vunpack.i.l.bf16 %v6806_v5 }
 0x3d5   : > { %7100 = vrot.lane.b32.xlu1 %v8426_v45, %s10771_s25  ;;  %7105 = vrot.lane.b32.xlu0 %v8444_v53, %s10771_s25 }
 0x3d6   : > { %v1962_v26 = vsel %vm652_vm4, %v6807_v17, %v6797_v54  ;;  %v1964_v42 = vsel %vm652_vm4, %v6808_v16, %v6817_v62  ;;  %6299 = vmatprep.subr.bf16.mxu1 %v6298_v14 }
 0x3d7   : > { %v8677_v22 = vpop.permute.xlu1 %6810  ;;  %v6826_v24 = vpop.permute.xlu0 %6825  ;;  %v6300_v28 = vpack.c.bf16 %v1964_v42, %v1962_v26 }
 0x3d8   : > { %v6828_v29 = vunpack.i.h.bf16 %v6826_v24  ;;  %v6827_v45 = vunpack.i.l.bf16 %v6826_v24 }
 0x3d9   : > { %7110 = vrot.lane.b32.xlu1 %v8456_v60, %s10771_s25  ;;  %7115 = vrot.lane.b32.xlu0 %v8467_v11, %s10771_s25 }
 0x3da   : > { %6301 = vmatpush1.bf16.msra.mxu1 %v6300_v28  ;;  %v1967_v33 = vsel %vm652_vm4, %v6827_v45, %v6828_v29 }
 0x3db   : > { %v6846_v7 = vpop.permute.xlu1 %6845  ;;  %v8683_v53 = vpop.permute.xlu0 %6830 }
 0x3dc   : > { %v6848_v40 = vunpack.i.h.bf16 %v6846_v7  ;;  %v6847_v39 = vunpack.i.l.bf16 %v6846_v7 }
 0x3dd   : > { %7120 = vrot.lane.b32.xlu1 %v8474_v15, %s10771_s25  ;;  %7125 = vrot.lane.b32.xlu0 %v8482_v23, %s10771_s25 }
 0x3de   : > { %v1969_v60 = vsel %vm652_vm4, %v6847_v39, %v6848_v40 }
 0x3df   : > { %v8691_v30 = vpop.permute.xlu1 %6850  ;;  %v6836_v11 = vpop.permute.xlu0 %6835  ;;  %v6302_v2 = vpack.c.bf16 %v1969_v60, %v1967_v33 }
 0x3e0   : > { %v6838_v41 = vunpack.i.h.bf16 %v6836_v11  ;;  %v6837_v49 = vunpack.i.l.bf16 %v6836_v11 }
 0x3e1   : > { %7130 = vrot.lane.b32.xlu1 %v8492_v25, %s10771_s25  ;;  %7135 = vrot.lane.b32.xlu0 %v8503_v32, %s10771_s25 }
 0x3e2   : > { %v1968_v15 = vsel %vm652_vm4, %v6838_v41, %v6847_v39  ;;  %v1966_v23 = vsel %vm652_vm4, %v6837_v49, %v6827_v45  ;;  %6303 = vmatprep.subr.bf16.mxu1 %v6302_v2  ;;  %v8740_v2 = vld [vmem:[%s8733_s26] sm:$0xff] }
 0x3e3   : > { %v6856_v55 = vpop.permute.xlu1 %6855  ;;  %v8699_v54 = vpop.permute.xlu0 %6840  ;;  %v6304_v21 = vpack.c.bf16 %v1968_v15, %v1966_v23 }
 0x3e4   : > { %v6858_v61 = vunpack.i.h.bf16 %v6856_v55  ;;  %v6857_v25 = vunpack.i.l.bf16 %v6856_v55 }
 0x3e5   : > { %7140 = vrot.lane.b32.xlu1 %v8514_v36, %s10771_s25  ;;  %7145 = vrot.lane.b32.xlu0 %v8525_v43, %s10771_s25 }
 0x3e6   : > { %6305 = vmatpush1.bf16.msra.mxu1 %v6304_v21  ;;  %v1971_v5 = vsel %vm652_vm4, %v6857_v25, %v6858_v61 }
 0x3e7   : > { %v8705_v62 = vpop.permute.xlu1 %6860  ;;  %v6876_v32 = vpop.permute.xlu0 %6875 }
 0x3e8   : > { %v6878_v63 = vunpack.i.h.bf16 %v6876_v32  ;;  %v6877_v6 = vunpack.i.l.bf16 %v6876_v32 }
 0x3e9   : > { %7150 = vrot.lane.b32.xlu1 %v8536_v44, %s10771_s25  ;;  %7155 = vrot.lane.b32.xlu0 %v8543_v31, %s10771_s25 }
 0x3ea   : > { %v1973_v36 = vsel %vm652_vm4, %v6877_v6, %v6878_v63 }
 0x3eb   : > { %v6866_v43 = vpop.permute.xlu1 %6865  ;;  %v8713_v14 = vpop.permute.xlu0 %6880  ;;  %v6306_v16 = vpack.c.bf16 %v1973_v36, %v1971_v5 }
 0x3ec   : > { %v6868_v17 = vunpack.i.h.bf16 %v6866_v43  ;;  %v6867_v26 = vunpack.i.l.bf16 %v6866_v43  ;;  %v6703_v43 = vunpack.i.h.bf16 %v8587_v57 }
 0x3ed   : > { %7160 = vrot.lane.b32.xlu1 %v8549_v46, %s10771_s25  ;;  %7165 = vrot.lane.b32.xlu0 %v8555_v13, %s10771_s25 }
 0x3ee   : > { %v1970_v44 = vsel %vm652_vm4, %v6867_v26, %v6857_v25  ;;  %v1972_v31 = vsel %vm652_vm4, %v6868_v17, %v6877_v6  ;;  %6307 = vmatprep.subr.bf16.mxu1 %v6306_v16  ;;  %v3069_v25 = vmul.f32 %v8740_v2, %v8740_v2  ;;  %v6702_v16 = vunpack.i.l.bf16 %v8587_v57 }
 0x3ef   : > { %v8721_v42 = vpop.permute.xlu1 %6870  ;;  %v6886_v24 = vpop.permute.xlu0 %6885  ;;  %v6308_v28 = vpack.c.bf16 %v1972_v31, %v1970_v44  ;;  %v6728_v44 = vunpack.i.h.bf16 %v8595_v3  ;;  %v6727_v31 = vunpack.i.l.bf16 %v8595_v3 }
 0x3f0   : > { %v6888_v29 = vunpack.i.h.bf16 %v6886_v24  ;;  %v6887_v46 = vunpack.i.l.bf16 %v6886_v24  ;;  %v3071_v36 = vcombine.high %v3069_v25, %v3069_v25  ;;  %v6718_v24 = vunpack.i.h.bf16 %v8611_v18 }
 0x3f1   : > { %7170 = vrot.lane.b32.xlu1 %v8561_v48, %s10771_s25  ;;  %6309 = vmatpush1.bf16.msra.mxu1 %v6308_v28  ;;  %v3073_v57 = vsel %vm3063_vm12, %v3069_v25, 0.0 }
 0x3f2   : > { %v1975_v39 = vsel %vm652_vm4, %v6887_v46, %v6888_v29  ;;  %v3074_v3 = vsel %vm3063_vm12, %v3071_v36, 0.0 }
 0x3f3   : > { %v6906_v45 = vpop.permute.xlu1 %6905  ;;  %v8726_v7 = vpop.permute.xlu0 %6890 }
 0x3f4   : > { %v6908_v13 = vunpack.i.h.bf16 %v6906_v45  ;;  %v6907_v40 = vunpack.i.l.bf16 %v6906_v45 }
 0x3f6   : > { %v1977_v48 = vsel %vm652_vm4, %v6907_v40, %v6908_v13 }
 0x3f7   : > { %v8737_v33 = vpop.permute.xlu1 %6910  ;;  %v6896_v60 = vpop.permute.xlu0 %6895  ;;  %v6310_v11 = vpack.c.bf16 %v1977_v48, %v1975_v39 }
 0x3f8   : > { %v6898_v41 = vunpack.i.h.bf16 %v6896_v60  ;;  %v6897_v49 = vunpack.i.l.bf16 %v6896_v60  ;;  %v2254_v60 = vsel %vm742_vm11, %v6702_v16, %v6703_v43 }
 0x3f9   : > { %6311 = vmatprep.subr.bf16.mxu1 %v6310_v11  ;;  %v2255_v11 = vsel %vm742_vm11, %v6718_v24, %v6727_v31  ;;  %v6772_v24 = vunpack.i.l.bf16 %v8639_v27 }
 0x3fa   : > { %v1976_v15 = vsel %vm652_vm4, %v6898_v41, %v6907_v40  ;;  %v1974_v23 = vsel %vm652_vm4, %v6897_v49, %v6887_v46  ;;  %v6717_v46 = vunpack.i.l.bf16 %v8611_v18  ;;  %v6763_v41 = vunpack.i.h.bf16 %v8625_v52 }
 0x3fb   : > { %v6916_v55 = vpop.permute.xlu1 %6915  ;;  %v8744_v21 = vpop.permute.xlu0 %6900  ;;  %v6312_v61 = vpack.c.bf16 %v1976_v15, %v1974_v23  ;;  %v6762_v49 = vunpack.i.l.bf16 %v8625_v52  ;;  %v2256_v18 = vsel %vm742_vm11, %v6727_v31, %v6728_v44  ;;  %v6743_v15 = vunpack.i.h.bf16 %v8617_v37 }
 0x3fc   : > { %v6918_v32 = vunpack.i.h.bf16 %v6916_v55  ;;  %v6917_v63 = vunpack.i.l.bf16 %v6916_v55  ;;  %v6742_v23 = vunpack.i.l.bf16 %v8617_v37  ;;  %v2253_v25 = vsel %vm742_vm11, %v6717_v46, %v6702_v16 }
 0x3fd   : > { %6313 = vmatpush1.bf16.msra.mxu1 %v6312_v61  ;;  %v3075_v44 = vadd.f32 %v3074_v3, %v3073_v57  ;;  %v6793_v31 = vunpack.i.h.bf16 %v8647_v34  ;;  %v6792_v37 = vunpack.i.l.bf16 %v8647_v34  ;;  %v2260_v16 = vsel %vm742_vm11, %v6762_v49, %v6763_v41 }
 0x3fe   : > { %v1979_v28 = vsel %vm652_vm4, %v6917_v63, %v6918_v32  ;;  %v6753_v32 = vunpack.i.h.bf16 %v8633_v1  ;;  %v6822_v3 = vunpack.i.l.bf16 %v8669_v12 }
 0x3ff   : > { %v8748_v6 = vpop.permute.xlu1 %6920  ;;  %v6936_v5 = vpop.permute.xlu0 %6935 }
 0x400   : > { %v6938_v17 = vunpack.i.h.bf16 %v6936_v5  ;;  %v6937_v26 = vunpack.i.l.bf16 %v6936_v5  ;;  %v6752_v5 = vunpack.i.l.bf16 %v8633_v1  ;;  %v8786_v1 = vcombine.high %v8740_v2, %v8740_v2 }
 0x401   : > { %v2259_v46 = vsel %vm742_vm11, %v6753_v32, %v6762_v49  ;;  %v6803_v49 = vunpack.i.h.bf16 %v8661_v56 }
 0x402   : > { %v1981_v29 = vsel %vm652_vm4, %v6937_v26, %v6938_v17  ;;  %v6318_v17 = vpack.c.bf16 %v2256_v18, %v2254_v60  ;;  %10794 = vst [vmem:[#allocation5_spill] sm:$0xff] %v8786_v1  ;;  %v2257_v34 = vsel %vm742_vm11, %v6752_v5, %v6742_v23  ;;  %v6823_v60 = vunpack.i.h.bf16 %v8669_v12 }
 0x403   : > { %v6926_v45 = vpop.permute.xlu1 %6925  ;;  %v8758_v13 = vpop.permute.xlu0 %6940  ;;  %v6314_v40 = vpack.c.bf16 %v1981_v29, %v1979_v28  ;;  %v6320_v28 = vpack.c.bf16 %v2255_v11, %v2253_v25  ;;  %v2258_v29 = vsel %vm742_vm11, %v6742_v23, %v6743_v15  ;;  %v2264_v11 = vsel %vm742_vm11, %v6792_v37, %v6793_v31 }
 0x404   : > { %v6928_v39 = vunpack.i.h.bf16 %v6926_v45  ;;  %v6927_v48 = vunpack.i.l.bf16 %v6926_v45  ;;  %v6783_v45 = vunpack.i.h.bf16 %v8655_v47  ;;  %v3065_v41 = vsel %vm3063_vm12, %v8786_v1, 0.0 }
 0x405   : > { %6315 = vmatprep.subr.bf16.mxu1 %v6314_v40  ;;  %v6782_v40 = vunpack.i.l.bf16 %v8655_v47  ;;  %v6148_v47 = vld [vmem:[%s10753_s4 + $0x30] sm:$0xff]  ;;  %v6324_v18 = vpack.c.bf16 %v2259_v46, %v2257_v34  ;;  %v6853_v5 = vunpack.i.h.bf16 %v8691_v30  ;;  %v6833_v31 = vunpack.i.h.bf16 %v8683_v53 }
 0x406   : > { %v1978_v55 = vsel %vm652_vm4, %v6927_v48, %v6917_v63  ;;  %v1980_v61 = vsel %vm652_vm4, %v6928_v39, %v6937_v26  ;;  %v6147_v63 = vld [vmem:[%s10753_s4 + $0x28] sm:$0xff]  ;;  %v6773_v26 = vunpack.i.h.bf16 %v8639_v27  ;;  %v6322_v48 = vpack.c.bf16 %v2260_v16, %v2258_v29 }
 0x407   : > { %v8774_v36 = vpop.permute.xlu1 %6930  ;;  %v8776_v52 = vpop.permute.xlu0 %6950  ;;  %v6316_v43 = vpack.c.bf16 %v1980_v61, %v1978_v55  ;;  %v3064_v27 = vsel %vm3063_vm12, %v8740_v2, 0.0  ;;  %v6802_v2 = vunpack.i.l.bf16 %v8661_v56  ;;  %v2263_v15 = vsel %vm742_vm11, %v6783_v45, %v6792_v37 }
 0x408   : > { %v2262_v12 = vsel %vm742_vm11, %v6772_v24, %v6773_v26  ;;  %v2261_v23 = vsel %vm742_vm11, %v6782_v40, %v6772_v24  ;;  %v6813_v55 = vunpack.i.h.bf16 %v8677_v22  ;;  %v6812_v61 = vunpack.i.l.bf16 %v8677_v22 }
 0x409   : > { %6317 = vmatpush1.bf16.msra.mxu1 %v6316_v43  ;;  %v6852_v56 = vunpack.i.l.bf16 %v8691_v30  ;;  %v6326_v43 = vpack.c.bf16 %v2264_v11, %v2262_v12  ;;  %v3066_v22 = vadd.f32 %v3065_v41, %v3064_v27  ;;  %v6832_v37 = vunpack.i.l.bf16 %v8683_v53 }
 0x40a   : > { %6319 = vmatprep.subr.bf16.mxu1 %v6318_v17  ;;  %v6149_v17 = vld [vmem:[%s10753_s4 + $0x38] sm:$0xff]  ;;  %v2266_v30 = vsel %vm742_vm11, %v6802_v2, %v6803_v49  ;;  %v2265_v16 = vsel %vm742_vm11, %v6812_v61, %v6802_v2  ;;  %v2267_v26 = vsel %vm742_vm11, %v6813_v55, %v6822_v3  ;;  %v6843_v24 = vunpack.i.h.bf16 %v8699_v54 }
 0x40b   : > { %v8795_v57 = vpop.permute.xlu1 %6945  ;;  %v8797_v39 = vpop.permute.xlu0 %6960  ;;  %v6883_v46 = vunpack.i.h.bf16 %v8713_v14  ;;  %v6882_v53 = vunpack.i.l.bf16 %v8713_v14  ;;  %v2272_v40 = vsel %vm742_vm11, %v6852_v56, %v6853_v5  ;;  %v6862_v27 = vunpack.i.l.bf16 %v8705_v62 }
 0x40c   : > { %3076 = vadd.xlane.f32.xlu0 %v3075_v44  ;;  %2079 = vmatmul.mubr.f32.vlgmr.msra.gmra.mrb[42].mxu1 %v6147_v63  ;;  %v2268_v44 = vsel %vm742_vm11, %v6822_v3, %v6823_v60  ;;  %v6328_v63 = vpack.c.bf16 %v2263_v15, %v2261_v23  ;;  %v6332_v60 = vpack.c.bf16 %v2267_v26, %v2265_v16  ;;  %v6872_v11 = vunpack.i.l.bf16 %v8721_v42  ;;  %v6151_v23 = vld [vmem:[%s10753_s4 + $0x48] sm:$0xff] }
 0x40d   : > { %6321 = vmatpush1.bf16.msra.mxu1 %v6320_v28  ;;  %2084 = vmatprep.mubr.f32.mxu1 %v10783_v0  ;;  %v6842_v28 = vunpack.i.l.bf16 %v8699_v54  ;;  %v6330_v45 = vpack.c.bf16 %v2268_v44, %v2266_v30  ;;  %v6863_v54 = vunpack.i.h.bf16 %v8705_v62  ;;  %v2270_v3 = vsel %vm742_vm11, %v6832_v37, %v6833_v31 }
 0x40e   : > { %6323 = vmatprep.subr.bf16.mxu1 %v6322_v48  ;;  %v6150_v48 = vld [vmem:[%s10753_s4 + $0x40] sm:$0xff]  ;;  %v2271_v14 = vsel %vm742_vm11, %v6843_v24, %v6852_v56  ;;  %v6334_v2 = vpack.c.bf16 %v2272_v40, %v2270_v3  ;;  %v6913_v62 = vunpack.i.h.bf16 %v8737_v33  ;;  %v6912_v12 = vunpack.i.l.bf16 %v8737_v33 }
 0x40f   : > { %v8817_v25 = vpop.permute.xlu1 %6955  ;;  %v8819_v32 = vpop.permute.xlu0 %6970  ;;  %v2276_v15 = vsel %vm742_vm11, %v6882_v53, %v6883_v46  ;;  %v6893_v55 = vunpack.i.h.bf16 %v8726_v7  ;;  %v6892_v61 = vunpack.i.l.bf16 %v8726_v7  ;;  %v2273_v5 = vsel %vm742_vm11, %v6872_v11, %v6862_v27  ;;  %v1572_v46 = vld [vmem:[%s10754_s5] sm:$0xff] }
 0x410   : > { %2085 = vmatmul.mubr.f32.gmra.mrb[44].mxu1 %v6148_v47  ;;  %v2269_v47 = vsel %vm742_vm11, %v6842_v28, %v6832_v37  ;;  %v6902_v31 = vunpack.i.l.bf16 %v8744_v21  ;;  %v2280_v7 = vsel %vm742_vm11, %v6912_v12, %v6913_v62  ;;  %v6923_v37 = vunpack.i.h.bf16 %v8748_v6 }
 0x411   : > { %6325 = vmatpush1.bf16.msra.mxu1 %v6324_v18  ;;  %2090 = vmatprep.mubr.f32.mxu1 %v10783_v0  ;;  %v6873_v18 = vunpack.i.h.bf16 %v8721_v42  ;;  %v2274_v42 = vsel %vm742_vm11, %v6862_v27, %v6863_v54  ;;  %v2278_v30 = vsel %vm742_vm11, %v6892_v61, %v6893_v55  ;;  %v6733_v16 = vunpack.i.h.bf16 %v8603_v10 }
 0x412   : > { %6327 = vmatprep.subr.bf16.mxu1 %v6326_v43  ;;  %v6336_v43 = vpack.c.bf16 %v2271_v14, %v2269_v47  ;;  %v6732_v26 = vunpack.i.l.bf16 %v8603_v10  ;;  %v6708_v54 = vunpack.i.h.bf16 %v8597_v4  ;;  %v6707_v27 = vunpack.i.l.bf16 %v8597_v4 }
 0x413   : > { %v8835_v29 = vpop.permute.xlu1 %6965  ;;  %v8837_v34 = vpop.permute.xlu0 %6980  ;;  %v2275_v44 = vsel %vm742_vm11, %v6873_v18, %v6882_v53  ;;  %v6342_v53 = vpack.c.bf16 %v2280_v7, %v2278_v30  ;;  %v6933_v10 = vunpack.i.h.bf16 %v8774_v36  ;;  %v6943_v4 = vunpack.i.h.bf16 %v8758_v13 }
 0x414   : > { %2091 = vmatmul.mubr.f32.gmra.mrb[36].mxu1 %v6149_v17  ;;  %v6338_v17 = vpack.c.bf16 %v2276_v15, %v2274_v42  ;;  %v6340_v28 = vpack.c.bf16 %v2275_v44, %v2273_v5  ;;  %v2559_v62 = vsel %vm825_vm3, %v6732_v26, %v6733_v16  ;;  %v6948_v15 = vunpack.i.h.bf16 %v8795_v57 }
 0x415   : > { %6329 = vmatpush1.bf16.msra.mxu1 %v6328_v63  ;;  %2096 = vmatprep.mubr.f32.mxu1 %v10783_v0  ;;  %v6922_v63 = vunpack.i.l.bf16 %v8748_v6  ;;  %v2277_v6 = vsel %vm742_vm11, %v6902_v31, %v6892_v61  ;;  %v2557_v55 = vsel %vm825_vm3, %v6707_v27, %v6708_v54  ;;  %v6953_v42 = vunpack.i.h.bf16 %v8776_v52  ;;  %v6153_v54 = vld [vmem:[%s10753_s4 + $0x58] sm:$0xff] }
 0x416   : > { %6331 = vmatprep.subr.bf16.mxu1 %v6330_v45  ;;  %3067 = vadd.xlane.f32.xlu1 %v3066_v22  ;;  %v6903_v22 = vunpack.i.h.bf16 %v8744_v21  ;;  %v6350_v5 = vpack.c.bf16 %v2559_v62, %v2557_v55  ;;  %v2558_v31 = vsel %vm825_vm3, %v6943_v4, %v6732_v26  ;;  %v6963_v30 = vunpack.i.h.bf16 %v8797_v39 }
 0x417   : > { %v8852_v41 = vpop.permute.xlu1 %6975  ;;  %v8854_v49 = vpop.permute.xlu0 %6990  ;;  %v2282_v3 = vsel %vm742_vm11, %v6922_v63, %v6923_v37  ;;  %v6968_v37 = vunpack.i.h.bf16 %v8835_v29  ;;  %v6962_v16 = vunpack.i.l.bf16 %v8797_v39 }
 0x418   : > { %2097 = vmatmul.mubr.f32.gmra.mrb[46].mxu1 %v6150_v48  ;;  %v2279_v45 = vsel %vm742_vm11, %v6903_v22, %v6912_v12  ;;  %v6942_v12 = vunpack.i.l.bf16 %v8758_v13  ;;  %v6957_v13 = vunpack.i.l.bf16 %v8817_v25  ;;  %v6978_v39 = vunpack.i.h.bf16 %v8852_v41 }
 0x419   : > { %6333 = vmatpush1.bf16.msra.mxu1 %v6332_v60  ;;  %2102 = vmatprep.mubr.f32.mxu1 %v10783_v0  ;;  %v6932_v60 = vunpack.i.l.bf16 %v8774_v36  ;;  %v6993_v55 = vunpack.i.h.bf16 %v8854_v49 }
 0x41a   : > { %6335 = vmatprep.subr.bf16.mxu1 %v6334_v2  ;;  %v6344_v2 = vpack.c.bf16 %v2279_v45, %v2277_v6  ;;  %v2556_v7 = vsel %vm825_vm3, %v6942_v12, %v6707_v27  ;;  %v6972_v27 = vunpack.i.l.bf16 %v8819_v32 }
 0x41b   : > { %v8868_v33 = vpop.permute.xlu1 %6985  ;;  %v8870_v56 = vpop.permute.xlu0 %7000  ;;  %v2281_v61 = vsel %vm742_vm11, %v6932_v60, %v6922_v63  ;;  %v6967_v63 = vunpack.i.l.bf16 %v8835_v29  ;;  %v6352_v29 = vpack.c.bf16 %v2558_v31, %v2556_v7  ;;  %v2565_v60 = vsel %vm825_vm3, %v6962_v16, %v6963_v30 }
 0x41c   : > { %2103 = vmatmul.mubr.f32.gmra.mrb[48].mxu1 %v6151_v23  ;;  %v6947_v23 = vunpack.i.l.bf16 %v8795_v57  ;;  %v6988_v4 = vunpack.i.h.bf16 %v8868_v33  ;;  %v6987_v12 = vunpack.i.l.bf16 %v8868_v33  ;;  %v6992_v33 = vunpack.i.l.bf16 %v8854_v49 }
 0x41d   : > { %6337 = vmatpush1.bf16.msra.mxu1 %v6336_v43  ;;  %2381 = vmatprep.mubr.f32.mxu1 %v10783_v0  ;;  %v6952_v43 = vunpack.i.l.bf16 %v8776_v52  ;;  %v6152_v52 = vld [vmem:[%s10753_s4 + $0x50] sm:$0xff]  ;;  %v2567_v6 = vsel %vm825_vm3, %v6967_v63, %v6968_v37 }
 0x41e   : > { %6339 = vmatprep.subr.bf16.mxu1 %v6338_v17  ;;  %v6958_v17 = vunpack.i.h.bf16 %v8817_v25  ;;  %v2561_v25 = vsel %vm825_vm3, %v6947_v23, %v6948_v15  ;;  %v2560_v26 = vsel %vm825_vm3, %v6957_v13, %v6947_v23  ;;  %v6358_v62 = vpack.c.bf16 %v2567_v6, %v2565_v60 }
 0x41f   : > { %v8882_v24 = vpop.permute.xlu1 %6995  ;;  %v7011_v21 = vpop.permute.xlu0 %7010  ;;  %v2564_v23 = vsel %vm825_vm3, %v6972_v27, %v6962_v16 }
 0x420   : > { %v7013_v40 = vunpack.i.h.bf16 %v7011_v21  ;;  %v7012_v48 = vunpack.i.l.bf16 %v7011_v21  ;;  %v2562_v21 = vsel %vm825_vm3, %v6958_v17, %v6952_v43 }
 0x421   : > { %6341 = vmatpush1.bf16.msra.mxu1 %v6340_v28 }
 0x422   : > { %1715 = vperm.xlu0 %6693, %v1572_v46   ;;  %6343 = vmatprep.subr.bf16.mxu1 %v6342_v53  ;;  %v2284_v14 = vsel %vm742_vm11, %v7012_v48, %v7013_v40  ;;  %v2283_v36 = vsel %vm742_vm11, %v6933_v10, %v7012_v48  ;;  %v2563_v53 = vsel %vm825_vm3, %v6952_v43, %v6953_v42  ;;  %v6973_v40 = vunpack.i.h.bf16 %v8819_v32 }
 0x423   : > { %v8895_v47 = vpop.permute.xlu1 %7005  ;;  %v8897_v11 = vpop.permute.xlu0 %7015  ;;  %v6346_v18 = vpack.c.bf16 %v2284_v14, %v2282_v3  ;;  %v6348_v57 = vpack.c.bf16 %v2283_v36, %v2281_v61  ;;  %v6354_v45 = vpack.c.bf16 %v2563_v53, %v2561_v25  ;;  %v6977_v48 = vunpack.i.l.bf16 %v8852_v41 }
 0x424   : > { %v6356_v10 = vpack.c.bf16 %v2562_v21, %v2560_v26  ;;  %v2566_v3 = vsel %vm825_vm3, %v6973_v40, %v6967_v63  ;;  %v6983_v14 = vunpack.i.h.bf16 %v8837_v34  ;;  %v6998_v32 = vunpack.i.h.bf16 %v8882_v24  ;;  %v6155_v63 = vld [vmem:[%s10753_s4 + $0x68] sm:$0xff] }
 0x425   : > { %6345 = vmatpush1.bf16.msra.mxu1 %v6344_v2  ;;  %v6982_v2 = vunpack.i.l.bf16 %v8837_v34  ;;  %v6997_v36 = vunpack.i.l.bf16 %v8882_v24  ;;  %v6154_v34 = vld [vmem:[%s10753_s4 + $0x60] sm:$0xff]  ;;  %v2569_v15 = vsel %vm825_vm3, %v6977_v48, %v6978_v39  ;;  %v6360_v42 = vpack.c.bf16 %v2566_v3, %v2564_v23  ;;  %v6156_v39 = vld [vmem:[%s10753_s4 + $0x70] sm:$0xff] }
 0x426   : > { %6347 = vmatprep.subr.bf16.mxu1 %v6346_v18  ;;  %v2568_v43 = vsel %vm825_vm3, %v6987_v12, %v6977_v48  ;;  %v7008_v31 = vunpack.i.h.bf16 %v8895_v47  ;;  %v7007_v7 = vunpack.i.l.bf16 %v8895_v47  ;;  %v7018_v49 = vunpack.i.h.bf16 %v8897_v11 }
 0x427   : > { %v8911_v44 = vpop.permute.xlu1 %7020  ;;  %v8913_v22 = vpop.permute.xlu0 %7025  ;;  %v2570_v17 = vsel %vm825_vm3, %v6988_v4, %v6982_v2  ;;  %v7017_v37 = vunpack.i.l.bf16 %v8897_v11  ;;  %v7002_v25 = vunpack.i.l.bf16 %v8870_v56  ;;  %v2573_v26 = vsel %vm825_vm3, %v6992_v33, %v6993_v55 }
 0x428   : > { %v6364_v47 = vpack.c.bf16 %v2570_v17, %v2568_v43  ;;  %v7023_v21 = vunpack.i.h.bf16 %v8911_v44  ;;  %v2577_v6 = vsel %vm825_vm3, %v7007_v7, %v7008_v31  ;;  %v7027_v27 = vunpack.i.l.bf16 %v8913_v22 }
 0x429   : > { %6349 = vmatpush1.bf16.msra.mxu1 %v6348_v57  ;;  %v2575_v57 = vsel %vm825_vm3, %v6997_v36, %v6998_v32  ;;  %v2579_v40 = vsel %vm825_vm3, %v7017_v37, %v7018_v49  ;;  %v2572_v48 = vsel %vm825_vm3, %v7002_v25, %v6992_v33 }
 0x42a   : > { %6351 = vmatprep.subr.bf16.mxu1 %v6350_v5  ;;  %v2571_v5 = vsel %vm825_vm3, %v6982_v2, %v6983_v14  ;;  %v6366_v53 = vpack.c.bf16 %v2575_v57, %v2573_v26  ;;  %v2578_v2 = vsel %vm825_vm3, %v7023_v21, %v7017_v37 }
 0x42b   : > { %v8927_v28 = vpop.permute.xlu1 %7030  ;;  %v8929_v46 = vpop.permute.xlu0 %7035  ;;  %v6362_v13 = vpack.c.bf16 %v2571_v5, %v2569_v15 }
 0x42c   : > { %2382 = vmatmul.mubr.f32.vlgmr.msra.gmra.mrb[50].mxu1 %v6152_v52  ;;  %v7003_v52 = vunpack.i.h.bf16 %v8870_v56  ;;  %v7032_v56 = vunpack.i.l.bf16 %v8927_v28 }
 0x42d   : > { %6353 = vmatpush1.bf16.msra.mxu1 %v6352_v29  ;;  %2387 = vmatprep.mubr.f32.mxu1 %v10783_v0  ;;  %v7022_v29 = vunpack.i.l.bf16 %v8911_v44  ;;  %v7038_v44 = vunpack.i.h.bf16 %v8929_v46 }
 0x42e   : > { %6355 = vmatprep.subr.bf16.mxu1 %v6354_v45  ;;  %v2574_v11 = vsel %vm825_vm3, %v7003_v52, %v6997_v36  ;;  %v7033_v45 = vunpack.i.h.bf16 %v8927_v28  ;;  %v7028_v28 = vunpack.i.h.bf16 %v8913_v22 }
 0x42f   : > { %v8945_v41 = vpop.permute.xlu1 %7040  ;;  %v8947_v18 = vpop.permute.xlu0 %7050  ;;  %v6368_v3 = vpack.c.bf16 %v2574_v11, %v2572_v48  ;;  %v2576_v14 = vsel %vm825_vm3, %v7022_v29, %v7007_v7 }
 0x430   : > { %2388 = vmatmul.mubr.f32.gmra.mrb[52].mxu1 %v6153_v54  ;;  %v7037_v54 = vunpack.i.l.bf16 %v8929_v46  ;;  %v2583_v4 = vsel %vm825_vm3, %v7032_v56, %v7033_v45  ;;  %v2582_v46 = vsel %vm825_vm3, %v7038_v44, %v7032_v56  ;;  %v7043_v12 = vunpack.i.h.bf16 %v8945_v41 }
 0x431   : > { %6357 = vmatpush1.bf16.msra.mxu1 %v6356_v10  ;;  %2393 = vmatprep.mubr.f32.mxu1 %v10783_v0  ;;  %v7042_v32 = vunpack.i.l.bf16 %v8945_v41  ;;  %v6372_v15 = vpack.c.bf16 %v2578_v2, %v2576_v14  ;;  %v2581_v23 = vsel %vm825_vm3, %v7027_v27, %v7028_v28  ;;  %v7053_v49 = vunpack.i.h.bf16 %v8947_v18  ;;  %v6157_v2 = vld [vmem:[%s10753_s4 + $0x78] sm:$0xff] }
 0x432   : > { %6359 = vmatprep.subr.bf16.mxu1 %v6358_v62  ;;  %v6370_v62 = vpack.c.bf16 %v2579_v40, %v2577_v6  ;;  %v2580_v22 = vsel %vm825_vm3, %v7037_v54, %v7027_v27  ;;  %v7052_v37 = vunpack.i.l.bf16 %v8947_v18 }
 0x433   : > { %v8961_v61 = vpop.permute.xlu1 %7045  ;;  %v8963_v24 = vpop.permute.xlu0 %7060  ;;  %v6376_v17 = vpack.c.bf16 %v2582_v46, %v2580_v22  ;;  %v2585_v31 = vsel %vm825_vm3, %v7042_v32, %v7043_v12 }
 0x434   : > { %2394 = vmatmul.mubr.f32.gmra.mrb[36].mxu1 %v6154_v34  ;;  %v7047_v41 = vunpack.i.l.bf16 %v8961_v61  ;;  %v2860_v48 = vsel %vm915_vm5, %v7052_v37, %v7053_v49 }
 0x435   : > { %6361 = vmatpush1.bf16.msra.mxu1 %v6360_v42  ;;  %2399 = vmatprep.mubr.f32.mxu1 %v10783_v0  ;;  %v6374_v42 = vpack.c.bf16 %v2583_v4, %v2581_v23 }
 0x436   : > { %6363 = vmatprep.subr.bf16.mxu1 %v6362_v13  ;;  %v7048_v13 = vunpack.i.h.bf16 %v8961_v61  ;;  %v2584_v45 = vsel %vm825_vm3, %v7047_v41, %v7042_v32 }
 0x437   : > { %v8979_v30 = vpop.permute.xlu1 %7055  ;;  %v8981_v16 = vpop.permute.xlu0 %7070 }
 0x438   : > { %2400 = vmatmul.mubr.f32.gmra.mrb[54].mxu1 %v6155_v63  ;;  %v7058_v5 = vunpack.i.h.bf16 %v8979_v30  ;;  %v7057_v43 = vunpack.i.l.bf16 %v8979_v30  ;;  %v7062_v63 = vunpack.i.l.bf16 %v8963_v24  ;;  %v7073_v61 = vunpack.i.h.bf16 %v8981_v16 }
 0x439   : > { %6365 = vmatpush1.bf16.msra.mxu1 %v6364_v47  ;;  %2405 = vmatprep.mubr.f32.mxu1 %v10783_v0  ;;  %v7063_v47 = vunpack.i.h.bf16 %v8963_v24  ;;  %v7072_v26 = vunpack.i.l.bf16 %v8981_v16 }
 0x43a   : > { %6367 = vmatprep.subr.bf16.mxu1 %v6366_v53  ;;  %v2862_v53 = vsel %vm915_vm5, %v7057_v43, %v7058_v5  ;;  %v2859_v16 = vsel %vm915_vm5, %v7062_v63, %v7052_v37 }
 0x43b   : > { %v9000_v10 = vpop.permute.xlu1 %7065  ;;  %v9002_v60 = vpop.permute.xlu0 %7080  ;;  %v2861_v24 = vsel %vm915_vm5, %v7063_v47, %v7057_v43  ;;  %v6382_v27 = vpack.c.bf16 %v2862_v53, %v2860_v48 }
 0x43c   : > { %2406 = vmatmul.mubr.f32.gmra.mrb[56].mxu1 %v6156_v39  ;;  %v7068_v29 = vunpack.i.h.bf16 %v9000_v10  ;;  %v7067_v18 = vunpack.i.l.bf16 %v9000_v10  ;;  %v2866_v10 = vsel %vm915_vm5, %v7072_v26, %v7073_v61  ;;  %v7083_v46 = vunpack.i.h.bf16 %v9002_v60 }
 0x43d   : > { %6369 = vmatpush1.bf16.msra.mxu1 %v6368_v3  ;;  %2684 = vmatprep.mubr.f32.mxu1 %v10783_v0  ;;  %v7082_v22 = vunpack.i.l.bf16 %v9002_v60  ;;  %v6158_v60 = vld [vmem:[%s10753_s4 + $0x80] sm:$0xff] }
 0x43e   : > { %6371 = vmatprep.subr.bf16.mxu1 %v6370_v62  ;;  %v6384_v62 = vpack.c.bf16 %v2861_v24, %v2859_v16  ;;  %v2864_v4 = vsel %vm915_vm5, %v7067_v18, %v7068_v29 }
 0x43f   : > { %v9012_v36 = vpop.permute.xlu1 %7075  ;;  %v7091_v34 = vpop.permute.xlu0 %7090  ;;  %v6386_v43 = vpack.c.bf16 %v2866_v10, %v2864_v4 }
 0x440   : > { %v7093_v55 = vunpack.i.h.bf16 %v7091_v34  ;;  %v7092_v33 = vunpack.i.l.bf16 %v7091_v34  ;;  %v7078_v44 = vunpack.i.h.bf16 %v9012_v36  ;;  %v7077_v54 = vunpack.i.l.bf16 %v9012_v36 }
 0x441   : > { %6373 = vmatpush1.bf16.msra.mxu1 %v6372_v15 }
 0x442   : > { %6375 = vmatprep.subr.bf16.mxu1 %v6374_v42  ;;  %v1676_v57 = vpop.f32.mrb[32].mxu1  ;;  %v2587_v7 = vsel %vm825_vm3, %v7092_v33, %v7093_v55  ;;  %v2586_v11 = vsel %vm825_vm3, %v7048_v13, %v7092_v33  ;;  %v2863_v42 = vsel %vm915_vm5, %v7077_v54, %v7067_v18  ;;  %v2865_v5 = vsel %vm915_vm5, %v7078_v44, %v7072_v26 }
 0x443   : > { %v7086_v52 = vpop.permute.xlu1 %7085  ;;  %v7096_v25 = vpop.permute.xlu0 %7095  ;;  %1705 = vrot.lane.b32.xlu1 %v1676_v57, %s10777_s27  ;;  %v6378_v30 = vpack.c.bf16 %v2587_v7, %v2585_v31  ;;  %v6380_v39 = vpack.c.bf16 %v2586_v11, %v2584_v45  ;;  %v2868_v7 = vsel %vm915_vm5, %v7082_v22, %v7083_v46 }
 0x444   : > { %v1678_v21 = vpop.f32.mrb[33].mxu1  ;;  %v7088_v3 = vunpack.i.h.bf16 %v7086_v52  ;;  %v7087_v14 = vunpack.i.l.bf16 %v7086_v52  ;;  %v7098_v12 = vunpack.i.h.bf16 %v7096_v25  ;;  %v7097_v32 = vunpack.i.l.bf16 %v7096_v25 }
 0x445   : > { %6377 = vmatpush1.bf16.msra.mxu1 %v6376_v17  ;;  %1707 = vrot.lane.b32.xlu0 %v1678_v21, %s10777_s27  ;;  %v6388_v52 = vpack.c.bf16 %v2865_v5, %v2863_v42  ;;  %v6159_v21 = vld [vmem:[%s10753_s4 + $0x88] sm:$0xff] }
 0x446   : > { %6379 = vmatprep.subr.bf16.mxu1 %v6378_v30  ;;  %v1682_v56 = vpop.f32.mrb[34].mxu1  ;;  %v2870_v17 = vsel %vm915_vm5, %v7087_v14, %v7088_v3  ;;  %v2869_v13 = vsel %vm915_vm5, %v7098_v12, %v7087_v14  ;;  %v2867_v41 = vsel %vm915_vm5, %v7097_v32, %v7082_v22  ;;  %v6160_v14 = vld [vmem:[%s10753_s4 + $0x90] sm:$0xff] }
 0x447   : > { %v7101_v6 = vpop.permute.xlu1 %7100  ;;  %v9036_v40 = vpop.permute.xlu0 %7105  ;;  %1720 = vrot.lane.b32.xlu1 %v1682_v56, %s10795_s18  ;;  %v6390_v11 = vpack.c.bf16 %v2870_v17, %v2868_v7  ;;  %v6392_v29 = vpack.c.bf16 %v2869_v13, %v2867_v41 }
 0x448   : > { %v1684_v28 = vpop.f32.mrb[35].mxu1  ;;  %v7103_v36 = vunpack.i.h.bf16 %v7101_v6  ;;  %v7102_v34 = vunpack.i.l.bf16 %v7101_v6  ;;  %v7108_v15 = vunpack.i.h.bf16 %v9036_v40  ;;  %v7107_v23 = vunpack.i.l.bf16 %v9036_v40 }
 0x449   : > { %6381 = vmatpush1.bf16.msra.mxu1 %v6380_v39  ;;  %1722 = vrot.lane.b32.xlu0 %v1684_v28, %s10795_s18 }
 0x44a   : > { %6383 = vmatprep.subr.bf16.mxu1 %v6382_v27  ;;  %v2872_v25 = vsel %vm915_vm5, %v7102_v34, %v7103_v36  ;;  %v2874_v30 = vsel %vm915_vm5, %v7107_v23, %v7108_v15 }
 0x44b   : > { %v7111_v55 = vpop.permute.xlu1 %7110  ;;  %v7116_v33 = vpop.permute.xlu0 %7115  ;;  %v6394_v56 = vpack.c.bf16 %v2874_v30, %v2872_v25 }
 0x44c   : > { %2685 = vmatmul.mubr.f32.vlgmr.msra.gmra.mrb[58].mxu1 %v6157_v2  ;;  %v7112_v57 = vunpack.i.l.bf16 %v7111_v55  ;;  %v7113_v49 = vunpack.i.h.bf16 %v7111_v55  ;;  %v7118_v53 = vunpack.i.h.bf16 %v7116_v33  ;;  %v7117_v45 = vunpack.i.l.bf16 %v7116_v33  ;;  %v6161_v55 = vld [vmem:[%s10753_s4 + $0x98] sm:$0xff] }
 0x44d   : > { %6385 = vmatpush1.bf16.msra.mxu1 %v6384_v62  ;;  %2690 = vmatprep.mubr.f32.mxu1 %v10783_v0 }
 0x44e   : > { %6387 = vmatprep.subr.bf16.mxu1 %v6386_v43  ;;  %v1694_v31 = vpop.f32.mrb[38].mxu1  ;;  %v2871_v18 = vsel %vm915_vm5, %v7112_v57, %v7102_v34  ;;  %v2873_v16 = vsel %vm915_vm5, %v7113_v49, %v7107_v23  ;;  %v2876_v2 = vsel %vm915_vm5, %v7117_v45, %v7118_v53 }
 0x44f   : > { %v7121_v37 = vpop.permute.xlu1 %7120  ;;  %v7126_v63 = vpop.permute.xlu0 %7125  ;;  %1732 = vrot.lane.b32.xlu1 %v1694_v31, %s10796_s16  ;;  %v6396_v12 = vpack.c.bf16 %v2873_v16, %v2871_v18 }
 0x450   : > { %v7123_v47 = vunpack.i.h.bf16 %v7121_v37  ;;  %v7122_v61 = vunpack.i.l.bf16 %v7121_v37  ;;  %2691 = vmatmul.mubr.f32.gmra.mrb[60].mxu1 %v6158_v60  ;;  %v1696_v26 = vpop.f32.mrb[39].mxu1  ;;  %v7128_v6 = vunpack.i.h.bf16 %v7126_v63  ;;  %v7127_v40 = vunpack.i.l.bf16 %v7126_v63 }
 0x451   : > { %6389 = vmatpush1.bf16.msra.mxu1 %v6388_v52  ;;  %1734 = vrot.lane.b32.xlu0 %v1696_v26, %s10796_s16 }
 0x452   : > { %6391 = vmatprep.subr.bf16.mxu1 %v6390_v11  ;;  %2696 = vmatprep.mubr.f32.mxu1 %v10783_v0  ;;  %v1700_v24 = vpop.f32.mrb[40].mxu1  ;;  %v2878_v44 = vsel %vm915_vm5, %v7122_v61, %v7123_v47  ;;  %v2877_v62 = vsel %vm915_vm5, %v7128_v6, %v7122_v61  ;;  %v2875_v4 = vsel %vm915_vm5, %v7127_v40, %v7117_v45 }
 0x453   : > { %v7131_v39 = vpop.permute.xlu1 %7130  ;;  %v7136_v48 = vpop.permute.xlu0 %7135  ;;  %1742 = vrot.lane.b32.xlu1 %v1700_v24, %s10797_s19  ;;  %v6398_v32 = vpack.c.bf16 %v2878_v44, %v2876_v2  ;;  %v6400_v13 = vpack.c.bf16 %v2877_v62, %v2875_v4 }
 0x454   : > { %v7133_v54 = vunpack.i.h.bf16 %v7131_v39  ;;  %v7132_v28 = vunpack.i.l.bf16 %v7131_v39  ;;  %v7138_v27 = vunpack.i.h.bf16 %v7136_v48  ;;  %v7137_v10 = vunpack.i.l.bf16 %v7136_v48  ;;  %2697 = vmatmul.mubr.f32.gmra.mrb[36].mxu1 %v6159_v21  ;;  %v1702_v3 = vpop.f32.mrb[41].mxu1 }
 0x455   : > { %6393 = vmatpush1.bf16.msra.mxu1 %v6392_v29  ;;  %1744 = vrot.lane.b32.xlu0 %v1702_v3, %s10797_s19  ;;  %v6166_v3 = vld [vmem:[%s10753_s4 + $0xc0] sm:$0xff] }
 0x456   : > { %6395 = vmatprep.subr.bf16.mxu1 %v6394_v56  ;;  %2702 = vmatprep.mubr.f32.mxu1 %v10783_v0  ;;  %v2880_v15 = vsel %vm915_vm5, %v7132_v28, %v7133_v54  ;;  %v2882_v23 = vsel %vm915_vm5, %v7137_v10, %v7138_v27  ;;  %v6162_v54 = vld [vmem:[%s10753_s4 + $0xa0] sm:$0xff]  ;;  %v6164_v27 = vld [vmem:[%s10753_s4 + $0xb0] sm:$0xff] }
 0x457   : > { %v7141_v46 = vpop.permute.xlu1 %7140  ;;  %v7146_v22 = vpop.permute.xlu0 %7145  ;;  %v6402_v41 = vpack.c.bf16 %v2882_v23, %v2880_v15 }
 0x458   : > { %v7143_v36 = vunpack.i.h.bf16 %v7141_v46  ;;  %v7142_v34 = vunpack.i.l.bf16 %v7141_v46  ;;  %2703 = vmatmul.mubr.f32.gmra.mrb[62].mxu1 %v6160_v14  ;;  %v7148_v33 = vunpack.i.h.bf16 %v7146_v22  ;;  %v7147_v42 = vunpack.i.l.bf16 %v7146_v22 }
 0x459   : > { %6397 = vmatpush1.bf16.msra.mxu1 %v6396_v12  ;;  %2708 = vmatprep.mubr.f32.mxu1 %v10783_v0 }
 0x45a   : > { %6399 = vmatprep.subr.bf16.mxu1 %v6398_v32  ;;  %v2879_v5 = vsel %vm915_vm5, %v7142_v34, %v7132_v28  ;;  %v2881_v43 = vsel %vm915_vm5, %v7143_v36, %v7137_v10  ;;  %v2884_v37 = vsel %vm915_vm5, %v7147_v42, %v7148_v33  ;;  %v6163_v28 = vld [vmem:[%s10753_s4 + $0xa8] sm:$0xff]  ;;  %v6165_v10 = vld [vmem:[%s10753_s4 + $0xb8] sm:$0xff] }
 0x45b   : > { %v7151_v60 = vpop.permute.xlu1 %7150  ;;  %v7156_v17 = vpop.permute.xlu0 %7155  ;;  %v6404_v61 = vpack.c.bf16 %v2881_v43, %v2879_v5 }
 0x45c   : > { %v7153_v57 = vunpack.i.h.bf16 %v7151_v60  ;;  %v7152_v31 = vunpack.i.l.bf16 %v7151_v60  ;;  %v7158_v7 = vunpack.i.h.bf16 %v7156_v17  ;;  %v7157_v49 = vunpack.i.l.bf16 %v7156_v17  ;;  %2709 = vmatmul.mubr.f32.gmra.mrb[64].mxu1 %v6161_v55 }
 0x45d   : > { %6401 = vmatpush1.bf16.msra.mxu1 %v6400_v13  ;;  %2987 = vmatprep.mubr.f32.mxu1 %v10783_v0 }
 0x45e   : > { %6403 = vmatprep.subr.bf16.mxu1 %v6402_v41  ;;  %v2886_v63 = vsel %vm915_vm5, %v7152_v31, %v7153_v57  ;;  %v2885_v52 = vsel %vm915_vm5, %v7158_v7, %v7152_v31  ;;  %v2883_v25 = vsel %vm915_vm5, %v7157_v49, %v7147_v42 }
 0x45f   : > { %v7161_v30 = vpop.permute.xlu1 %7160  ;;  %v7166_v47 = vpop.permute.xlu0 %7165  ;;  %v6406_v26 = vpack.c.bf16 %v2886_v63, %v2884_v37  ;;  %v6408_v56 = vpack.c.bf16 %v2885_v52, %v2883_v25 }
 0x460   : > { %v7163_v11 = vunpack.i.h.bf16 %v7161_v30  ;;  %v7162_v21 = vunpack.i.l.bf16 %v7161_v30  ;;  %v7168_v29 = vunpack.i.h.bf16 %v7166_v47  ;;  %v7167_v18 = vunpack.i.l.bf16 %v7166_v47 }
 0x461   : > { %6405 = vmatpush1.bf16.msra.mxu1 %v6404_v61 }
 0x462   : > { %6407 = vmatprep.subr.bf16.mxu1 %v6406_v26  ;;  %v2888_v53 = vsel %vm915_vm5, %v7162_v21, %v7163_v11  ;;  %v2890_v45 = vsel %vm915_vm5, %v7167_v18, %v7168_v29 }
 0x463   : > { %v7171_v24 = vpop.permute.xlu1 %7170  ;;  %v6410_v16 = vpack.c.bf16 %v2890_v45, %v2888_v53 }
 0x464   : > { %v7173_v6 = vunpack.i.h.bf16 %v7171_v24  ;;  %v7172_v40 = vunpack.i.l.bf16 %v7171_v24 }
 0x465   : > { %6409 = vmatpush1.bf16.msra.mxu1 %v6408_v56 }
 0x466   : > { %v2887_v39 = vsel %vm915_vm5, %v7172_v40, %v7162_v21  ;;  %v2889_v48 = vsel %vm915_vm5, %v7173_v6, %v7167_v18  ;;  %6411 = vmatprep.subr.bf16.mxu1 %v6410_v16 }
 0x467   : > { %v6412_v44 = vpack.c.bf16 %v2889_v48, %v2887_v39 }
 0x469   : > { %6413 = vmatpush1.bf16.msra.mxu1 %v6412_v44 }
 0x46c   : > { %2988 = vmatmul.mubr.f32.vlgmr.msra.gmra.mrb[66].mxu1 %v6162_v54 }
 0x46d   : > { %2993 = vmatprep.mubr.f32.mxu1 %v10783_v0 }
 0x470   : > { %2994 = vmatmul.mubr.f32.gmra.mrb[68].mxu1 %v6163_v28 }
 0x471   : > { %2999 = vmatprep.mubr.f32.mxu1 %v10783_v0 }
 0x474   : > { %3000 = vmatmul.mubr.f32.gmra.mrb[36].mxu1 %v6164_v27 }
 0x475   : > { %3005 = vmatprep.mubr.f32.mxu1 %v10783_v0 }
 0x478   : > { %3006 = vmatmul.mubr.f32.gmra.mrb[70].mxu1 %v6165_v10 }
 0x479   : > { %3011 = vmatprep.mubr.f32.mxu1 %v10783_v0 }
 0x47c   : > { %3012 = vmatmul.mubr.f32.gmra.mrb[72].mxu1 %v6166_v3 }
 0x47d   : > { %5743 = vmatprep.mubr.f32.mxu1 %v10783_v0 }
 0x499   : > { %v9155_v21 = vpop.xlane.xlu0 %3076 }
 0x4a1   : > { %v1716_v18 = vpop.permute.xlu0 %1715 }
 0x4a3   : > { %v9157_v29 = vpop.xlane.xlu1 %3067 }
 0x4b5   : > { %v1706_v53 = vpop.permute.xlu1 %1705 }
 0x4b7   : > { %v1708_v45 = vpop.permute.xlu0 %1707 }
 0x4b9   : > { %v1721_v24 = vpop.permute.xlu1 %1720 }
 0x4bb   : > { %v1723_v56 = vpop.permute.xlu0 %1722 }
 0x4c1   : > { %v1733_v16 = vpop.permute.xlu1 %1732 }
 0x4c3   : > { %v1735_v6 = vpop.permute.xlu0 %1734 }
 0x4c5   : > { %v1743_v40 = vpop.permute.xlu1 %1742 }
 0x4c7   : > { %v1745_v39 = vpop.permute.xlu0 %1744 }
 0x4df   : > { %v2080_v14 = vpop.f32.mrb[42].mxu1 }
 0x4e0   : > { %v2082_v2 = vpop.f32.mrb[43].mxu1  ;;  %2109 = vrot.lane.b32.xlu1 %v2080_v14, %s10777_s27 }
 0x4e1   : > { %2111 = vrot.lane.b32.xlu0 %v2082_v2, %s10777_s27 }
 0x4e3   : > { %v2086_v62 = vpop.f32.mrb[44].mxu1 }
 0x4e4   : > { %v2088_v4 = vpop.f32.mrb[45].mxu1  ;;  %2119 = vrot.lane.b32.xlu1 %v2086_v62, %s10795_s18 }
 0x4e5   : > { %2121 = vrot.lane.b32.xlu0 %v2088_v4, %s10795_s18 }
 0x4eb   : > { %v2098_v46 = vpop.f32.mrb[46].mxu1 }
 0x4ec   : > { %2131 = vrot.lane.b32.xlu0 %v2098_v46, %s10796_s16  ;;  %v2100_v22 = vpop.f32.mrb[47].mxu1 }
 0x4ef   : > { %v2104_v12 = vpop.f32.mrb[48].mxu1 }
 0x4f0   : > { %2133 = vrot.lane.b32.xlu0 %v2100_v22, %s10796_s16  ;;  %v2106_v32 = vpop.f32.mrb[49].mxu1 }
 0x4f4   : > { %2141 = vrot.lane.b32.xlu0 %v2104_v12, %s10797_s19  ;;  %v1709_v12 = vsel %vm580_vm14, %v1706_v53, %v1708_v45 }
 0x4f8   : > { %2143 = vrot.lane.b32.xlu0 %v2106_v32, %s10797_s19  ;;  %v1710_v32 = vsel %vm580_vm14, %v1708_v45, %v1706_v53 }
 0x4ff   : > { %v2383_v36 = vpop.f32.mrb[50].mxu1 }
 0x500   : > { %2412 = vrot.lane.b32.xlu1 %v2383_v36, %s10777_s27  ;;  %v2385_v34 = vpop.f32.mrb[51].mxu1 }
 0x501   : > { %2414 = vrot.lane.b32.xlu0 %v2385_v34, %s10777_s27  ;;  %v1724_v34 = vsel %vm591_vm7, %v1721_v24, %v1723_v56 }
 0x503   : > { %v2389_v15 = vpop.f32.mrb[52].mxu1 }
 0x504   : > { %2422 = vrot.lane.b32.xlu1 %v2389_v15, %s10795_s18  ;;  %v2391_v23 = vpop.f32.mrb[53].mxu1  ;;  %v1725_v15 = vsel %vm591_vm7, %v1723_v56, %v1721_v24 }
 0x508   : > { %2424 = vrot.lane.b32.xlu1 %v2391_v23, %s10795_s18  ;;  %v1711_v23 = vmul.f32 %v7962_v8, %v1710_v32 }
 0x50b   : > { %v2401_v55 = vpop.f32.mrb[54].mxu1 }
 0x50c   : > { %2434 = vrot.lane.b32.xlu1 %v2401_v55, %s10796_s16  ;;  %v2403_v33 = vpop.f32.mrb[55].mxu1  ;;  %v1712_v55 = vmul.f32 %v7965_v9, %v1709_v12 }
 0x50f   : > { %v2407_v42 = vpop.f32.mrb[56].mxu1 }
 0x510   : > { %2436 = vrot.lane.b32.xlu1 %v2403_v33, %s10796_s16  ;;  %v2409_v5 = vpop.f32.mrb[57].mxu1  ;;  %v1736_v33 = vsel %vm616_vm10, %v1733_v16, %v1735_v6 }
 0x511   : > { %2446 = vrot.lane.b32.xlu0 %v2409_v5, %s10797_s19  ;;  %v1726_v5 = vmul.f32 %v7922_v50, %v1725_v15 }
 0x514   : > { %2444 = vrot.lane.b32.xlu1 %v2407_v42, %s10797_s19  ;;  %v1737_v42 = vsel %vm616_vm10, %v1735_v6, %v1733_v16 }
 0x51f   : > { %v2686_v43 = vpop.f32.mrb[58].mxu1 }
 0x520   : > { %v2688_v60 = vpop.f32.mrb[59].mxu1  ;;  %2715 = vrot.lane.b32.xlu1 %v2686_v43, %s10777_s27  ;;  %v1727_v43 = vmul.f32 %v7925_v51, %v1724_v34 }
 0x521   : > { %2717 = vrot.lane.b32.xlu0 %v2688_v60, %s10777_s27 }
 0x523   : > { %v2692_v17 = vpop.f32.mrb[60].mxu1 }
 0x524   : > { %v2694_v13 = vpop.f32.mrb[61].mxu1  ;;  %2725 = vrot.lane.b32.xlu1 %v2692_v17, %s10795_s18 }
 0x525   : > { %2727 = vrot.lane.b32.xlu0 %v2694_v13, %s10795_s18  ;;  %v1746_v13 = vsel %vm633_vm2, %v1743_v40, %v1745_v39 }
 0x52b   : > { %v2704_v41 = vpop.f32.mrb[62].mxu1 }
 0x52c   : > { %v2706_v57 = vpop.f32.mrb[63].mxu1  ;;  %2737 = vrot.lane.b32.xlu1 %v2704_v41, %s10796_s16  ;;  %v1747_v41 = vsel %vm633_vm2, %v1745_v39, %v1743_v40 }
 0x52d   : > { %2739 = vrot.lane.b32.xlu0 %v2706_v57, %s10796_s16  ;;  %v1718_v57 = vadd.f32 %v1716_v18, %v1711_v23 }
 0x52f   : > { %v2710_v31 = vpop.f32.mrb[64].mxu1 }
 0x530   : > { %v2712_v7 = vpop.f32.mrb[65].mxu1  ;;  %2747 = vrot.lane.b32.xlu1 %v2710_v31, %s10797_s19  ;;  %v1719_v31 = vadd.f32 %v1716_v18, %v1712_v55 }
 0x531   : > { %2749 = vrot.lane.b32.xlu0 %v2712_v7, %s10797_s19  ;;  %v1738_v7 = vmul.f32 %v7943_v58, %v1736_v33 }
 0x53f   : > { %v2989_v49 = vpop.f32.mrb[66].mxu1 }
 0x540   : > { %3018 = vrot.lane.b32.xlu1 %v2989_v49, %s10777_s27  ;;  %v2991_v37 = vpop.f32.mrb[67].mxu1  ;;  %v1739_v49 = vmul.f32 %v7946_v59, %v1737_v42 }
 0x541   : > { %3020 = vrot.lane.b32.xlu0 %v2991_v37, %s10777_s27 }
 0x543   : > { %v2995_v63 = vpop.f32.mrb[68].mxu1 }
 0x544   : > { %3028 = vrot.lane.b32.xlu1 %v2995_v63, %s10795_s18  ;;  %v2997_v52 = vpop.f32.mrb[69].mxu1 }
 0x545   : > { %3030 = vrot.lane.b32.xlu0 %v2997_v52, %s10795_s18  ;;  %v1728_v52 = vadd.f32 %v1726_v5, %v1718_v57 }
 0x547   : > { %v9147_v25 = vpop.f32.mrb[36].mxu1  ;;  %v6588_v24 = vadd.f32 %v1738_v7, %v1728_v52 }
 0x548   : > { %v9149_v30 = vpop.f32.mrb[37].mxu1 }
 0x54b   : > { %v3007_v47 = vpop.f32.mrb[70].mxu1 }
 0x54c   : > { %3040 = vrot.lane.b32.xlu1 %v3007_v47, %s10796_s16  ;;  %v3009_v61 = vpop.f32.mrb[71].mxu1  ;;  %v1729_v47 = vadd.f32 %v1727_v43, %v1719_v31 }
 0x54d   : > { %3042 = vrot.lane.b32.xlu0 %v3009_v61, %s10796_s16  ;;  %v1748_v61 = vmul.f32 %v7981_v19, %v1746_v13 }
 0x54e   : > { %v6605_v56 = vadd.f32 %v1739_v49, %v1729_v47 }
 0x54f   : > { %v3013_v26 = vpop.f32.mrb[72].mxu1 }
 0x550   : > { %3050 = vrot.lane.b32.xlu1 %v3013_v26, %s10797_s19  ;;  %v3015_v11 = vpop.f32.mrb[73].mxu1  ;;  %v1749_v26 = vmul.f32 %v7984_v20, %v1747_v41 }
 0x551   : > { %3052 = vrot.lane.b32.xlu0 %v3015_v11, %s10797_s19 }
 0x552   : > { %v2110_v48 = vpop.permute.xlu1 %2109 }
 0x553   : > { %v2112_v44 = vpop.permute.xlu0 %2111 }
 0x554   : > { %v2113_v37 = vsel %vm580_vm14, %v2110_v48, %v2112_v44  ;;  %v2114_v63 = vsel %vm580_vm14, %v2112_v44, %v2110_v48  ;;  %v6589_v48 = vadd.f32 %v6588_v24, %v1748_v61  ;;  %v6606_v44 = vadd.f32 %v6605_v56, %v1749_v26 }
 0x555   : > { %v2115_v16 = vmul.f32 %v7962_v8, %v2114_v63  ;;  %v2116_v6 = vmul.f32 %v7965_v9, %v2113_v37 }
 0x556   : > { %v2120_v54 = vpop.permute.xlu1 %2119 }
 0x557   : > { %v2122_v28 = vpop.permute.xlu0 %2121  ;;  %v6590_v34 = vadd.f32 %v6589_v48, %v2115_v16  ;;  %v6607_v15 = vadd.f32 %v6606_v44, %v2116_v6 }
 0x558   : > { %v2123_v18 = vsel %vm591_vm7, %v2120_v54, %v2122_v28  ;;  %v2124_v45 = vsel %vm591_vm7, %v2122_v28, %v2120_v54 }
 0x559   : > { %v2125_v12 = vmul.f32 %v7922_v50, %v2124_v45  ;;  %v2126_v32 = vmul.f32 %v7925_v51, %v2123_v18 }
 0x55b   : > { %v6591_v43 = vadd.f32 %v6590_v34, %v2125_v12  ;;  %v6608_v13 = vadd.f32 %v6607_v15, %v2126_v32 }
 0x55e   : > { %v2132_v10 = vpop.permute.xlu0 %2131 }
 0x562   : > { %v2134_v14 = vpop.permute.xlu0 %2133 }
 0x563   : > { %v2135_v40 = vsel %vm616_vm10, %v2132_v10, %v2134_v14  ;;  %v2136_v39 = vsel %vm616_vm10, %v2134_v14, %v2132_v10  ;;  %v9212_v14 = vmul.f32 0.00390625, %v9157_v29 }
 0x564   : > { %v2137_v23 = vmul.f32 %v7943_v58, %v2135_v40  ;;  %v2138_v55 = vmul.f32 %v7946_v59, %v2136_v39 }
 0x565   : > { %v3079_v63 = vmul.f32 %v9212_v14, %v9157_v29 }
 0x566   : > { %v2142_v62 = vpop.permute.xlu0 %2141  ;;  %v6592_v31 = vadd.f32 %v6591_v43, %v2137_v23  ;;  %v6609_v7 = vadd.f32 %v6608_v13, %v2138_v55 }
 0x56a   : > { %v2144_v46 = vpop.permute.xlu0 %2143 }
 0x56b   : > { %v2145_v54 = vsel %vm633_vm2, %v2142_v62, %v2144_v46  ;;  %v2146_v28 = vsel %vm633_vm2, %v2144_v46, %v2142_v62 }
 0x56c   : > { %v2147_v62 = vmul.f32 %v7981_v19, %v2145_v54  ;;  %v2148_v46 = vmul.f32 %v7984_v20, %v2146_v28 }
 0x56e   : > { %v6610_v47 = vadd.f32 %v6609_v7, %v2148_v46 }
 0x572   : > { %v2413_v27 = vpop.permute.xlu1 %2412 }
 0x573   : > { %v2415_v36 = vpop.permute.xlu0 %2414 }
 0x574   : > { %v2416_v42 = vsel %vm580_vm14, %v2413_v27, %v2415_v36  ;;  %v2417_v5 = vsel %vm580_vm14, %v2415_v36, %v2413_v27 }
 0x575   : > { %v2418_v49 = vmul.f32 %v7962_v8, %v2417_v5  ;;  %v2419_v27 = vmul.f32 %v7965_v9, %v2416_v42 }
 0x576   : > { %v9159_v3 = vpop.permute.xlu1 %2422 }
 0x577   : > { %v6611_v24 = vadd.f32 %v6610_v47, %v2419_v27 }
 0x57a   : > { %v2425_v2 = vpop.permute.xlu1 %2424 }
 0x57b   : > { %v2426_v41 = vsel %vm591_vm7, %v9159_v3, %v2425_v2  ;;  %v2427_v57 = vsel %vm591_vm7, %v2425_v2, %v9159_v3  ;;  %v6593_v2 = vadd.f32 %v6592_v31, %v2147_v62  ;;  %v7679_v31 = vmov 839922192  }
 0x57c   : > { %v2428_v61 = vmul.f32 %v7922_v50, %v2427_v57  ;;  %v2429_v26 = vmul.f32 %v7925_v51, %v2426_v41  ;;  %v3084_v7 = vunpack.c.l.s4 %v7679_v31 }
 0x57d   : > { %v6594_v45 = vadd.f32 %v6593_v2, %v2418_v49 }
 0x57e   : > { %v9161_v4 = vpop.permute.xlu1 %2434  ;;  %v6612_v39 = vadd.f32 %v6611_v24, %v2429_v26  ;;  %v3085_v26 = vunpack.c.0.s8 %v3084_v7 }
 0x57f   : > { %v6595_v40 = vadd.f32 %v6594_v45, %v2428_v61 }
 0x582   : > { %v9163_v22 = vpop.permute.xlu1 %2436 }
 0x583   : > { %v2447_v17 = vpop.permute.xlu0 %2446  ;;  %v2438_v52 = vsel %vm616_vm10, %v9161_v4, %v9163_v22  ;;  %v2439_v3 = vsel %vm616_vm10, %v9163_v22, %v9161_v4  ;;  %v3080_v4 = vsub.f32 %v9155_v21, %v3079_v63 }
 0x584   : > { %v2440_v56 = vmul.f32 %v7943_v58, %v2438_v52  ;;  %v2441_v16 = vmul.f32 %v7946_v59, %v2439_v3  ;;  %v3087_v52 = vshrl.u32 %v488_v35, 7 }
 0x586   : > { %v2445_v60 = vpop.permute.xlu1 %2444  ;;  %v6596_v32 = vadd.f32 %v6595_v40, %v2440_v56  ;;  %v6613_v54 = vadd.f32 %v6612_v39, %v2441_v16 }
 0x587   : > { %v2448_v18 = vsel %vm633_vm2, %v2445_v60, %v2447_v17  ;;  %v2449_v29 = vsel %vm633_vm2, %v2447_v17, %v2445_v60 }
 0x588   : > { %v2450_v48 = vmul.f32 %v7981_v19, %v2448_v18  ;;  %v2451_v60 = vmul.f32 %v7984_v20, %v2449_v29 }
 0x58a   : > { %v6597_v23 = vadd.f32 %v6596_v32, %v2450_v48  ;;  %v6614_v55 = vadd.f32 %v6613_v54, %v2451_v60 }
 0x592   : > { %v2716_v11 = vpop.permute.xlu1 %2715 }
 0x593   : > { %v2718_v53 = vpop.permute.xlu0 %2717 }
 0x594   : > { %v2719_v22 = vsel %vm580_vm14, %v2716_v11, %v2718_v53  ;;  %v2720_v6 = vsel %vm580_vm14, %v2718_v53, %v2716_v11  ;;  %v3081_v53 = vmul.f32 0.003921569, %v3080_v4 }
 0x595   : > { %v2721_v28 = vmul.f32 %v7962_v8, %v2720_v6  ;;  %v2722_v11 = vmul.f32 %v7965_v9, %v2719_v22  ;;  %v3088_v22 = vsub.s32 %v3085_v26, %v3087_v52 }
 0x596   : > { %v2726_v33 = vpop.permute.xlu1 %2725  ;;  %v3092_v49 = vadd.f32 1e-05, %v3081_v53 }
 0x597   : > { %v2728_v10 = vpop.permute.xlu0 %2727  ;;  %v6598_v62 = vadd.f32 %v6597_v23, %v2721_v28  ;;  %v6615_v46 = vadd.f32 %v6614_v55, %v2722_v11 }
 0x598   : > { %v2729_v12 = vsel %vm591_vm7, %v2726_v33, %v2728_v10  ;;  %v2730_v21 = vsel %vm591_vm7, %v2728_v10, %v2726_v33  ;;  %7654 = vrsqrt.f32 %v3092_v49 }
 0x599   : > { %v2731_v42 = vmul.f32 %v7922_v50, %v2730_v21  ;;  %v2732_v5 = vmul.f32 %v7925_v51, %v2729_v12 }
 0x59b   : > { %v6599_v27 = vadd.f32 %v6598_v62, %v2731_v42 }
 0x59e   : > { %v2738_v36 = vpop.permute.xlu1 %2737 }
 0x59f   : > { %v2740_v37 = vpop.permute.xlu0 %2739 }
 0x5a0   : > { %v2741_v34 = vsel %vm616_vm10, %v2738_v36, %v2740_v37  ;;  %v2742_v15 = vsel %vm616_vm10, %v2740_v37, %v2738_v36  ;;  %v6616_v36 = vadd.f32 %v6615_v46, %v2732_v5 }
 0x5a1   : > { %v2743_v41 = vmul.f32 %v7943_v58, %v2741_v34  ;;  %v2744_v57 = vmul.f32 %v7946_v59, %v2742_v15 }
 0x5a2   : > { %v2748_v17 = vpop.permute.xlu1 %2747  ;;  %v7655_v15 = vpop.eup %7654 }
 0x5a3   : > { %v2750_v44 = vpop.permute.xlu0 %2749  ;;  %v6600_v3 = vadd.f32 %v6599_v27, %v2743_v41  ;;  %v6617_v2 = vadd.f32 %v6616_v36, %v2744_v57  ;;  %v3101_v62 = vrot.slane %v7655_v15, %v3088_v22  ;;  %v3139_v15 = vld [vmem:[%s10755_s6 + $0x8] sm:$0xf] }
 0x5a4   : > { %v2751_v43 = vsel %vm633_vm2, %v2748_v17, %v2750_v44  ;;  %v2752_v13 = vsel %vm633_vm2, %v2750_v44, %v2748_v17 }
 0x5a5   : > { %v2753_v37 = vmul.f32 %v7981_v19, %v2751_v43  ;;  %v2754_v63 = vmul.f32 %v7984_v20, %v2752_v13  ;;  %v7658_v43 = vld [vmem:[%s8733_s26] sm:$0xff] }
 0x5a7   : > { %v6601_v45 = vadd.f32 %v6600_v3, %v2753_v37  ;;  %v6618_v24 = vadd.f32 %v6617_v2, %v2754_v63 }
 0x5a9   : > { %v6602_v40 = vadd.f32 %v6601_v45, %v9147_v25  ;;  %v6619_v39 = vadd.f32 %v6618_v24, %v9149_v30  ;;  %v3089_v30 = vrot.slane %v9212_v14, %v3088_v22  ;;  %v3556_v45 = vld [vmem:[%s10758_s9 + $0x10] sm:$0xff]  ;;  %v3555_v24 = vld [vmem:[%s10758_s9 + $0x8] sm:$0xff]  ;;  %v3562_v22 = vld [vmem:[%s10758_s9 + $0x40] sm:$0xff] }
 0x5ab   : > { %v3091_v13 = vsub.f32 %v7658_v43, %v3089_v30  ;;  %v3138_v30 = vld [vmem:[%s10755_s6] sm:$0xff]  ;;  %v3543_v43 = vld [vmem:[#allocation3 + $0x18] sm:$0xff] }
 0x5ad   : > { %v3103_v7 = vmul.f32 %v3101_v62, %v3091_v13  ;;  %v6172_v62 = vld [vmem:[%s10755_s6 + $0x18] sm:$0xf] }
 0x5b2   : > { %v3019_v33 = vpop.permute.xlu1 %3018 }
 0x5b3   : > { %v3021_v10 = vpop.permute.xlu0 %3020 }
 0x5b4   : > { %v3022_v18 = vsel %vm580_vm14, %v3019_v33, %v3021_v10  ;;  %v3023_v29 = vsel %vm580_vm14, %v3021_v10, %v3019_v33 }
 0x5b5   : > { %v3024_v16 = vmul.f32 %v7962_v8, %v3023_v29  ;;  %v3025_v4 = vmul.f32 %v7965_v9, %v3022_v18  ;;  %v3554_v29 = vld [vmem:[%s10758_s9] sm:$0xff] }
 0x5b6   : > { %v3029_v47 = vpop.permute.xlu1 %3028 }
 0x5b7   : > { %v3031_v61 = vpop.permute.xlu0 %3030  ;;  %v6603_v21 = vadd.f32 %v6602_v40, %v3024_v16  ;;  %v6620_v32 = vadd.f32 %v6619_v39, %v3025_v4  ;;  %v3560_v16 = vld [vmem:[%s10758_s9 + $0x30] sm:$0xff]  ;;  %v3559_v4 = vld [vmem:[%s10758_s9 + $0x28] sm:$0xff] }
 0x5b8   : > { %v3032_v56 = vsel %vm591_vm7, %v3029_v47, %v3031_v61  ;;  %v3033_v35 = vsel %vm591_vm7, %v3031_v61, %v3029_v47  ;;  %v3564_v40 = vld [vmem:[%s10758_s9 + $0x50] sm:$0xff]  ;;  %v3563_v39 = vld [vmem:[%s10758_s9 + $0x48] sm:$0xff] }
 0x5b9   : > { %v3034_v48 = vmul.f32 %v7922_v50, %v3033_v35  ;;  %v3035_v60 = vmul.f32 %v7925_v51, %v3032_v56  ;;  %v3558_v56 = vld [vmem:[%s10758_s9 + $0x20] sm:$0xff]  ;;  %v3557_v35 = vld [vmem:[%s10758_s9 + $0x18] sm:$0xff] }
 0x5bb   : > { %v6604_v11 = vadd.f32 %v6603_v21, %v3034_v48  ;;  %v6621_v53 = vadd.f32 %v6620_v32, %v3035_v60  ;;  %v3566_v48 = vld [vmem:[%s10758_s9 + $0x60] sm:$0xff]  ;;  %v3565_v60 = vld [vmem:[%s10758_s9 + $0x58] sm:$0xff] }
 0x5be   : > { %v3041_v6 = vpop.permute.xlu1 %3040 }
 0x5bf   : > { %v3043_v17 = vpop.permute.xlu0 %3042 }
 0x5c0   : > { %v3044_v44 = vsel %vm616_vm10, %v3041_v6, %v3043_v17  ;;  %v3045_v12 = vsel %vm616_vm10, %v3043_v17, %v3041_v6  ;;  %v3561_v6 = vld [vmem:[%s10758_s9 + $0x38] sm:$0xff]  ;;  %v3568_v17 = vld [vmem:[%s10758_s9 + $0x70] sm:$0xff] }
 0x5c1   : > { %v3046_v54 = vmul.f32 %v7943_v58, %v3044_v44  ;;  %v3047_v25 = vmul.f32 %v7946_v59, %v3045_v12  ;;  %v3567_v44 = vld [vmem:[%s10758_s9 + $0x68] sm:$0xff]  ;;  %v3569_v12 = vld [vmem:[%s10758_s9 + $0x78] sm:$0xff] }
 0x5c2   : > { %v3051_v28 = vpop.permute.xlu1 %3050 }
 0x5c3   : > { %v3053_v34 = vpop.permute.xlu0 %3052  ;;  %v3048_v42 = vadd.f32 %v6604_v11, %v3046_v54  ;;  %v3049_v5 = vadd.f32 %v6621_v53, %v3047_v25 }
 0x5c4   : > { %v3054_v23 = vsel %vm633_vm2, %v3051_v28, %v3053_v34  ;;  %v3055_v55 = vsel %vm633_vm2, %v3053_v34, %v3051_v28 }
 0x5c5   : > { %v3056_v33 = vmul.f32 %v7981_v19, %v3054_v23  ;;  %v3057_v10 = vmul.f32 %v7984_v20, %v3055_v55 }
 0x5c7   : > { %v3058_v14 = vadd.f32 %v3056_v33, %v3048_v42  ;;  %v3059_v46 = vadd.f32 %v3057_v10, %v3049_v5  ;;  %v6171_v33 = vld [vmem:[%s10755_s6 + $0x10] sm:$0xff] }
 0x5c9   : > { %v3104_v41 = vadd.f32 1.0, %v3058_v14  ;;  %v3105_v57 = vadd.f32 1.0, %v3059_v46  ;;  %v3113_v31 = vcombine.high %v3058_v14, %v3059_v46  ;;  %v3541_v14 = vld [vmem:[#allocation3 + $0x8] sm:$0xff] }
 0x5cb   : > { %v3108_v49 = vcombine.low %v3104_v41, %v3105_v57  ;;  %v6414_v41 = vpack.c.bf16 %v3543_v43, %v3541_v14  ;;  %v3542_v57 = vld [vmem:[#allocation3 + $0x10] sm:$0xff] }
 0x5cd   : > { %v3110_v27 = vmul.f32 %v3108_v49, %v3103_v7  ;;  %v3545_v7 = vld [vmem:[#allocation3 + $0x28] sm:$0xff]  ;;  %v3540_v49 = vld [vmem:[#allocation3] sm:$0xff] }
 0x5cf   : > { %v3115_v36 = vadd.f32 %v3113_v31, %v3110_v27  ;;  %v6177_v31 = vld [vmem:[%s10755_s6 + $0x20] sm:$0xff]  ;;  %v6416_v27 = vpack.c.bf16 %v3542_v57, %v3540_v49 }
 0x5d1   : > { %vm3116_vm13 = vcmp.ge.f32.partialorder %v3115_v36, 0.0  ;;  %v3117_v37 = vmul.f32 0.2, %v3115_v36 }
 0x5d3   : > { %v3118_v63 = vsel %vm3116_vm13, %v3115_v36, %v3117_v37  ;;  %vm3151_vm13 = vcmask 31744   ;;  %v3547_v36 = vld [vmem:[#allocation3 + $0x38] sm:$0xff] }
 0x5d4   : > { %3121 = vrot.lane.b32.xlu1 %v3118_v63, %s10781_s20  ;;  %v3120_v52 = vcombine.high %v3118_v63, %v3118_v63  ;;  %v6418_v37 = vpack.c.bf16 %v3547_v36, %v3545_v7  ;;  %v3544_v63 = vld [vmem:[#allocation3 + $0x20] sm:$0xff] }
 0x5d6   : > { %3123 = vrot.lane.b32.xlu0 %v3120_v52, %s10781_s20  ;;  %v3551_v52 = vld [vmem:[#allocation3 + $0x58] sm:$0xff]  ;;  %s10800_s20 = smov 32  }
 0x646   : > { %v3122_v3 = vpop.permute.xlu1 %3121 }
 0x647   : > { %3130 = vst.msk [vmem:[#allocation2] sm:$0xf] %vm3129_vm15, %v3122_v3 }
 0x648   : > { %v3124_v2 = vpop.permute.xlu0 %3123 }
 0x649   : > { %v3125_v47 = vsel %vm517_vm0, %v3122_v3, %v3124_v2  ;;  %3133 = vst.msk [vmem:[#allocation2 + $0x10] sm:$0xf] %vm3132_vm1, %v3124_v2  ;;  %v6178_v3 = vld [vmem:[%s10755_s6 + $0x28] sm:$0xf]  ;;  %v3546_v2 = vld [vmem:[#allocation3 + $0x30] sm:$0xff] }
 0x64a   : > { %3131 = vst [vmem:[#allocation2 + $0x8] sm:$0xf] %v3125_v47  ;;  %v6420_v47 = vpack.c.bf16 %v3546_v2, %v3544_v63 }
 0x64e   : > { %v3135_v18 = vld [vmem:[#allocation2] sm:$0xf] }
 0x650   : > { %v3137_v61 = vld [vmem:[#allocation2 + $0x10] sm:$0xf] }
 0x651   : > { %3147 = vrot.lane.b32.xlu0 %v3137_v61, %s10779_s21  ;;  %v3136_v26 = vld [vmem:[#allocation2 + $0x8] sm:$0xf] }
 0x652   : > { %3145 = vrot.lane.b32.xlu1 %v3136_v26, %s10779_s21 }
 0x655   : > { %3277 = vrot.lane.b32.xlu0 %v3136_v26, %s10798_s22 }
 0x656   : > { %3143 = vrot.lane.b32.xlu1 %v3135_v18, %s10779_s21  ;;  %s10801_s21 = smov 112  }
 0x659   : > { %3275 = vrot.lane.b32.xlu0 %v3135_v18, %s10798_s22 }
 0x65a   : > { %3279 = vrot.lane.b32.xlu1 %v3137_v61, %s10798_s22 }
 0x65d   : > { %3405 = vrot.lane.b32.xlu0 %v3137_v61, %s10799_s23  ;;  %v3549_v61 = vld [vmem:[#allocation3 + $0x48] sm:$0xff] }
 0x65e   : > { %3403 = vrot.lane.b32.xlu1 %v3136_v26, %s10799_s23  ;;  %v6422_v26 = vpack.c.bf16 %v3551_v52, %v3549_v61 }
 0x661   : > { %3572 = vperm.xlu0 %6693, %v3554_v29   ;;  %v3550_v29 = vld [vmem:[#allocation3 + $0x50] sm:$0xff] }
 0x662   : > { %3401 = vrot.lane.b32.xlu1 %v3135_v18, %s10799_s23  ;;  %v3548_v18 = vld [vmem:[#allocation3 + $0x40] sm:$0xff] }
 0x665   : > { %3582 = vperm.xlu0 %6693, %v3556_v45   ;;  %v6424_v45 = vpack.c.bf16 %v3550_v29, %v3548_v18 }
 0x666   : > { %3577 = vperm.xlu1 %6692, %v3555_v24   ;;  %v3553_v24 = vld [vmem:[#allocation3 + $0x68] sm:$0x3] }
 0x669   : > { %3592 = vperm.xlu0 %6693, %v3558_v56   ;;  %v3524_v56 = vld [vmem:[%s10757_s8] sm:$0xff] }
 0x66a   : > { %3587 = vperm.xlu1 %6692, %v3557_v35   ;;  %v3552_v35 = vld [vmem:[#allocation3 + $0x60] sm:$0x3] }
 0x66d   : > { %3602 = vperm.xlu0 %6693, %v3560_v16   ;;  %v3525_v16 = vld [vmem:[%s10757_s8 + $0x8] sm:$0xff] }
 0x66e   : > { %3597 = vperm.xlu1 %6692, %v3559_v4   ;;  %v3526_v4 = vld [vmem:[%s10757_s8 + $0x10] sm:$0xff] }
 0x671   : > { %3612 = vperm.xlu0 %6693, %v3562_v22   ;;  %v3527_v22 = vld [vmem:[%s10757_s8 + $0x18] sm:$0xff] }
 0x672   : > { %3607 = vperm.xlu1 %6692, %v3561_v6   ;;  %v3528_v6 = vld [vmem:[%s10757_s8 + $0x20] sm:$0xff] }
 0x675   : > { %3622 = vperm.xlu0 %6693, %v3564_v40   ;;  %v3529_v40 = vld [vmem:[%s10757_s8 + $0x28] sm:$0xff] }
 0x676   : > { %3617 = vperm.xlu1 %6692, %v3563_v39   ;;  %v3530_v39 = vld [vmem:[%s10757_s8 + $0x30] sm:$0xff] }
 0x679   : > { %3632 = vperm.xlu0 %6693, %v3566_v48   ;;  %v3531_v48 = vld [vmem:[%s10757_s8 + $0x38] sm:$0xff] }
 0x67a   : > { %3627 = vperm.xlu1 %6692, %v3565_v60   ;;  %v3532_v60 = vld [vmem:[%s10757_s8 + $0x40] sm:$0xff] }
 0x67d   : > { %3642 = vperm.xlu0 %6693, %v3568_v17   ;;  %v3533_v17 = vld [vmem:[%s10757_s8 + $0x48] sm:$0xff] }
 0x67e   : > { %3637 = vperm.xlu1 %6692, %v3567_v44   ;;  %v3534_v44 = vld [vmem:[%s10757_s8 + $0x50] sm:$0xff] }
 0x682   : > { %3647 = vperm.xlu1 %6692, %v3569_v12   ;;  %v3535_v12 = vld [vmem:[%s10757_s8 + $0x58] sm:$0xff] }
 0x6c3   : > { %v3148_v21 = vpop.permute.xlu0 %3147 }
 0x6c4   : > { %v3146_v32 = vpop.permute.xlu1 %3145 }
 0x6c5   : > { %v3150_v54 = vsel %vm652_vm4, %v3146_v32, %v3148_v21  ;;  %v3536_v21 = vld [vmem:[%s10757_s8 + $0x60] sm:$0xff] }
 0x6c6   : > { %6167 = vmatprep.subr.msk.mxu0 %vm3063_vm12, %v3150_v54  ;;  %v3538_v54 = vld [vmem:[%s10757_s8 + $0x70] sm:$0xff] }
 0x6c7   : > { %v3278_v25 = vpop.permute.xlu0 %3277 }
 0x6c8   : > { %v3144_v28 = vpop.permute.xlu1 %3143 }
 0x6c9   : > { %v3149_v11 = vsel %vm652_vm4, %v3144_v28, %v3146_v32  ;;  %v3537_v32 = vld [vmem:[%s10757_s8 + $0x68] sm:$0xff] }
 0x6ca   : > { %6168 = vmatpush1.msk.msra.mxu0 %vm3063_vm12, %v3149_v11 }
 0x6cb   : > { %v3276_v53 = vpop.permute.xlu0 %3275  ;;  %6169 = vmatmul.mubr.msk.f32.vlgmr.msra.gmra.mrb[0].mxu0 %vm3151_vm13, %v3138_v30 }
 0x6cc   : > { %v3280_v34 = vpop.permute.xlu1 %3279  ;;  %3232 = vmatprep.mubr.f32.mxu0 %v10783_v0  ;;  %v3281_v55 = vsel %vm742_vm11, %v3276_v53, %v3278_v25 }
 0x6cd   : > { %v3282_v23 = vsel %vm742_vm11, %v3278_v25, %v3280_v34  ;;  %v3539_v25 = vld [vmem:[%s10757_s8 + $0x78] sm:$0xff] }
 0x6ce   : > { %6173 = vmatprep.subr.msk.mxu0 %vm3063_vm12, %v3282_v23 }
 0x6cf   : > { %v3406_v42 = vpop.permute.xlu0 %3405  ;;  %6170 = vmatmul.mubr.msk.f32.gmra.mrb[2].mxu0 %vm3151_vm13, %v3139_v15 }
 0x6d0   : > { %6174 = vmatpush1.msk.msra.mxu0 %vm3063_vm12, %v3281_v55  ;;  %v3404_v5 = vpop.permute.xlu1 %3403  ;;  %3357 = vmatprep.mubr.f32.mxu0 %v10783_v0 }
 0x6d1   : > { %v3408_v10 = vsel %vm825_vm3, %v3404_v5, %v3406_v42 }
 0x6d2   : > { %6179 = vmatprep.subr.msk.mxu0 %vm3063_vm12, %v3408_v10 }
 0x6d3   : > { %6175 = vmatmul.mubr.msk.f32.vlgmr.msra.gmra.mrb[4].mxu0 %vm3151_vm13, %v6171_v33 }
 0x6d4   : > { %v3402_v13 = vpop.permute.xlu1 %3401  ;;  %3363 = vmatprep.mubr.f32.mxu0 %v10783_v0 }
 0x6d5   : > { %v3407_v46 = vsel %vm825_vm3, %v3402_v13, %v3404_v5 }
 0x6d6   : > { %6180 = vmatpush1.msk.msra.mxu0 %vm3063_vm12, %v3407_v46 }
 0x6d7   : > { %6176 = vmatmul.mubr.msk.f32.gmra.mrb[6].mxu0 %vm3151_vm13, %v6172_v62  ;;  %6415 = vmatprep.subr.bf16.mxu0 %v6414_v41 }
 0x6d8   : > { %3483 = vmatprep.mubr.f32.mxu0 %v10783_v0 }
 0x6db   : > { %6181 = vmatmul.mubr.msk.f32.vlgmr.msra.gmra.mrb[8].mxu0 %vm3151_vm13, %v6177_v31 }
 0x6dc   : > { %6417 = vmatpush1.bf16.msra.mxu0 %v6416_v27  ;;  %3489 = vmatprep.mubr.f32.mxu0 %v10783_v0 }
 0x6dd   : > { %6419 = vmatprep.subr.bf16.mxu0 %v6418_v37 }
 0x6df   : > { %6182 = vmatmul.mubr.msk.f32.gmra.mrb[10].mxu0 %vm3151_vm13, %v6178_v3 }
 0x6e0   : > { %6421 = vmatpush1.bf16.msra.mxu0 %v6420_v47  ;;  %3768 = vmatprep.mubr.f32.mxu0 %v10783_v0  ;;  %v3573_v43 = vpop.permute.xlu0 %3572 }
 0x6e1   : > { %6423 = vmatprep.subr.bf16.mxu0 %v6422_v26 }
 0x6e4   : > { %6425 = vmatpush1.bf16.msra.mxu0 %v6424_v45  ;;  %v3583_v63 = vpop.permute.xlu0 %3582 }
 0x6e5   : > { %6183 = vmatprep.subr.msk.mxu0 %vm1163_vm6, %v3553_v24  ;;  %v3578_v57 = vpop.permute.xlu1 %3577 }
 0x6e8   : > { %6184 = vmatpush1.msk.msra.mxu0 %vm1163_vm6, %v3552_v35 }
 0x6e9   : > { %6185 = vmatmul.mubr.msk.f32.vlgmr.msra.gmra.mrb[12].mxu0 %vm1114_vm8, %v3524_v56  ;;  %v3588_v18 = vpop.permute.xlu1 %3587 }
 0x6ea   : > { %3774 = vmatprep.mubr.f32.mxu0 %v10783_v0 }
 0x6ed   : > { %6186 = vmatmul.mubr.msk.f32.gmra.mrb[14].mxu0 %vm1114_vm8, %v3525_v16 }
 0x6ee   : > { %3780 = vmatprep.mubr.f32.mxu0 %v10783_v0 }
 0x6f1   : > { %6187 = vmatmul.mubr.msk.f32.gmra.mrb[16].mxu0 %vm1114_vm8, %v3526_v4  ;;  %v3593_v4 = vpop.permute.xlu0 %3592 }
 0x6f2   : > { %3786 = vmatprep.mubr.f32.mxu0 %v10783_v0 }
 0x6f5   : > { %6188 = vmatmul.mubr.msk.f32.gmra.mrb[18].mxu0 %vm1114_vm8, %v3527_v22 }
 0x6f6   : > { %3792 = vmatprep.mubr.f32.mxu0 %v10783_v0 }
 0x6f9   : > { %6189 = vmatmul.mubr.msk.f32.gmra.mrb[20].mxu0 %vm1114_vm8, %v3528_v6 }
 0x6fa   : > { %3798 = vmatprep.mubr.f32.mxu0 %v10783_v0 }
 0x6fd   : > { %6190 = vmatmul.mubr.msk.f32.gmra.mrb[22].mxu0 %vm1114_vm8, %v3529_v40 }
 0x6fe   : > { %3804 = vmatprep.mubr.f32.mxu0 %v10783_v0 }
 0x701   : > { %6191 = vmatmul.mubr.msk.f32.gmra.mrb[24].mxu0 %vm1114_vm8, %v3530_v39 }
 0x702   : > { %3810 = vmatprep.mubr.f32.mxu0 %v10783_v0 }
 0x705   : > { %6192 = vmatmul.mubr.msk.f32.gmra.mrb[26].mxu0 %vm1114_vm8, %v3531_v48 }
 0x706   : > { %3816 = vmatprep.mubr.f32.mxu0 %v10783_v0 }
 0x709   : > { %6193 = vmatmul.mubr.msk.f32.gmra.mrb[28].mxu0 %vm1114_vm8, %v3532_v60 }
 0x70a   : > { %3822 = vmatprep.mubr.f32.mxu0 %v10783_v0 }
 0x70d   : > { %6194 = vmatmul.mubr.msk.f32.gmra.mrb[30].mxu0 %vm1114_vm8, %v3533_v17  ;;  %v3598_v17 = vpop.permute.xlu1 %3597 }
 0x70e   : > { %3828 = vmatprep.mubr.f32.mxu0 %v10783_v0 }
 0x711   : > { %6195 = vmatmul.mubr.msk.f32.gmra.mrb[32].mxu0 %vm1114_vm8, %v3534_v44 }
 0x712   : > { %3834 = vmatprep.mubr.f32.mxu0 %v10783_v0 }
 0x715   : > { %6196 = vmatmul.mubr.msk.f32.gmra.mrb[34].mxu0 %vm1114_vm8, %v3535_v12 }
 0x716   : > { %3840 = vmatprep.mubr.f32.mxu0 %v10783_v0 }
 0x719   : > { %6197 = vmatmul.mubr.msk.f32.gmra.mrb[36].mxu0 %vm1114_vm8, %v3536_v21 }
 0x71a   : > { %3846 = vmatprep.mubr.f32.mxu0 %v10783_v0 }
 0x71d   : > { %6198 = vmatmul.mubr.msk.f32.gmra.mrb[38].mxu0 %vm1114_vm8, %v3537_v32 }
 0x71e   : > { %3852 = vmatprep.mubr.f32.mxu0 %v10783_v0 }
 0x721   : > { %6199 = vmatmul.mubr.msk.f32.gmra.mrb[40].mxu0 %vm1114_vm8, %v3538_v54 }
 0x722   : > { %3858 = vmatprep.mubr.f32.mxu0 %v10783_v0 }
 0x725   : > { %6200 = vmatmul.mubr.msk.f32.gmra.mrb[42].mxu0 %vm1114_vm8, %v3539_v25 }
 0x726   : > { %4207 = vmatprep.mubr.f32.mxu0 %v10783_v0 }
 0x79e   : > { %v9488_v28 = vpop.f32.mrb[0].mxu0 }
 0x79f   : > { %v9490_v30 = vpop.f32.mrb[1].mxu0 }
 0x7a2   : > { %v9492_v11 = vpop.f32.mrb[2].mxu0 }
 0x7a3   : > { %v9494_v53 = vpop.f32.mrb[3].mxu0 }
 0x7a6   : > { %v9496_v34 = vpop.f32.mrb[4].mxu0 }
 0x7a7   : > { %v9498_v15 = vpop.f32.mrb[5].mxu0 }
 0x7aa   : > { %v9500_v23 = vpop.f32.mrb[6].mxu0 }
 0x7ab   : > { %v9502_v55 = vpop.f32.mrb[7].mxu0 }
 0x7ae   : > { %v9504_v42 = vpop.f32.mrb[8].mxu0 }
 0x7af   : > { %v9506_v5 = vpop.f32.mrb[9].mxu0 }
 0x7b2   : > { %v9508_v33 = vpop.f32.mrb[10].mxu0 }
 0x7b3   : > { %v9510_v10 = vpop.f32.mrb[11].mxu0 }
 0x7bc   : > { %v3770_v13 = vpop.f32.mrb[12].mxu0 }
 0x7bd   : > { %v3771_v62 = vadd.f32 %v3770_v13, %v3573_v43  ;;  %v3772_v14 = vpop.f32.mrb[13].mxu0 }
 0x7be   : > { %v3773_v46 = vadd.f32 %v3772_v14, %v3573_v43  ;;  %v3603_v43 = vpop.permute.xlu0 %3602 }
 0x7bf   : > { %v3865_v41 = vmax.f32 %v3771_v62, 0.0 }
 0x7c0   : > { %v3866_v31 = vmax.f32 %v3773_v46, 0.0  ;;  %v3776_v7 = vpop.f32.mrb[14].mxu0 }
 0x7c1   : > { %v3777_v49 = vadd.f32 %v3776_v7, %v3578_v57  ;;  %v3778_v27 = vpop.f32.mrb[15].mxu0  ;;  %3929 = vrot.lane.b32.xlu0 %v3865_v41, %s10800_s20 }
 0x7c2   : > { %v3779_v36 = vadd.f32 %v3778_v27, %v3578_v57  ;;  %3931 = vrot.lane.b32.xlu1 %v3866_v31, %s10800_s20  ;;  %v3608_v31 = vpop.permute.xlu1 %3607 }
 0x7c3   : > { %v3867_v37 = vmax.f32 %v3777_v49, 0.0 }
 0x7c4   : > { %v3868_v52 = vmax.f32 %v3779_v36, 0.0  ;;  %v3782_v3 = vpop.f32.mrb[16].mxu0 }
 0x7c5   : > { %v3783_v2 = vadd.f32 %v3782_v3, %v3583_v63  ;;  %v3784_v47 = vpop.f32.mrb[17].mxu0  ;;  %3933 = vrot.lane.b32.xlu0 %v3867_v37, %s10800_s20 }
 0x7c6   : > { %v3785_v61 = vadd.f32 %v3784_v47, %v3583_v63  ;;  %3935 = vrot.lane.b32.xlu1 %v3868_v52, %s10800_s20  ;;  %v3613_v52 = vpop.permute.xlu0 %3612 }
 0x7c7   : > { %v3869_v26 = vmax.f32 %v3783_v2, 0.0 }
 0x7c8   : > { %v3870_v29 = vmax.f32 %v3785_v61, 0.0  ;;  %v3788_v45 = vpop.f32.mrb[18].mxu0 }
 0x7c9   : > { %v3789_v24 = vadd.f32 %v3788_v45, %v3588_v18  ;;  %v3790_v56 = vpop.f32.mrb[19].mxu0  ;;  %3937 = vrot.lane.b32.xlu0 %v3869_v26, %s10800_s20 }
 0x7ca   : > { %v3791_v35 = vadd.f32 %v3790_v56, %v3588_v18  ;;  %3939 = vrot.lane.b32.xlu1 %v3870_v29, %s10800_s20  ;;  %v3618_v29 = vpop.permute.xlu1 %3617 }
 0x7cb   : > { %v3871_v16 = vmax.f32 %v3789_v24, 0.0 }
 0x7cc   : > { %v3872_v22 = vmax.f32 %v3791_v35, 0.0  ;;  %v3794_v6 = vpop.f32.mrb[20].mxu0 }
 0x7cd   : > { %v3795_v40 = vadd.f32 %v3794_v6, %v3593_v4  ;;  %v3796_v39 = vpop.f32.mrb[21].mxu0  ;;  %3941 = vrot.lane.b32.xlu0 %v3871_v16, %s10800_s20 }
 0x7ce   : > { %v3797_v48 = vadd.f32 %v3796_v39, %v3593_v4  ;;  %3943 = vrot.lane.b32.xlu1 %v3872_v22, %s10800_s20  ;;  %v3623_v22 = vpop.permute.xlu0 %3622 }
 0x7cf   : > { %v3873_v60 = vmax.f32 %v3795_v40, 0.0 }
 0x7d0   : > { %v3874_v44 = vmax.f32 %v3797_v48, 0.0  ;;  %v3800_v12 = vpop.f32.mrb[22].mxu0 }
 0x7d1   : > { %v3801_v21 = vadd.f32 %v3800_v12, %v3598_v17  ;;  %v3802_v32 = vpop.f32.mrb[23].mxu0  ;;  %3945 = vrot.lane.b32.xlu0 %v3873_v60, %s10800_s20 }
 0x7d2   : > { %v3803_v54 = vadd.f32 %v3802_v32, %v3598_v17  ;;  %3947 = vrot.lane.b32.xlu1 %v3874_v44, %s10800_s20  ;;  %v3628_v44 = vpop.permute.xlu1 %3627 }
 0x7d3   : > { %v3875_v25 = vmax.f32 %v3801_v21, 0.0 }
 0x7d4   : > { %v3876_v13 = vmax.f32 %v3803_v54, 0.0  ;;  %v3806_v62 = vpop.f32.mrb[24].mxu0 }
 0x7d5   : > { %v3807_v14 = vadd.f32 %v3806_v62, %v3603_v43  ;;  %v3808_v46 = vpop.f32.mrb[25].mxu0  ;;  %3949 = vrot.lane.b32.xlu0 %v3875_v25, %s10800_s20 }
 0x7d6   : > { %v3809_v41 = vadd.f32 %v3808_v46, %v3603_v43  ;;  %3951 = vrot.lane.b32.xlu1 %v3876_v13, %s10800_s20  ;;  %v3633_v13 = vpop.permute.xlu0 %3632 }
 0x7d7   : > { %v3877_v57 = vmax.f32 %v3807_v14, 0.0 }
 0x7d8   : > { %v3878_v7 = vmax.f32 %v3809_v41, 0.0  ;;  %v3812_v49 = vpop.f32.mrb[26].mxu0 }
 0x7d9   : > { %v3813_v27 = vadd.f32 %v3812_v49, %v3608_v31  ;;  %v3814_v36 = vpop.f32.mrb[27].mxu0  ;;  %3953 = vrot.lane.b32.xlu0 %v3877_v57, %s10800_s20 }
 0x7da   : > { %v3815_v37 = vadd.f32 %v3814_v36, %v3608_v31  ;;  %3955 = vrot.lane.b32.xlu1 %v3878_v7, %s10800_s20  ;;  %v3638_v7 = vpop.permute.xlu1 %3637 }
 0x7db   : > { %v3879_v63 = vmax.f32 %v3813_v27, 0.0 }
 0x7dc   : > { %v3880_v3 = vmax.f32 %v3815_v37, 0.0  ;;  %v3818_v2 = vpop.f32.mrb[28].mxu0 }
 0x7dd   : > { %v3819_v47 = vadd.f32 %v3818_v2, %v3613_v52  ;;  %v3820_v61 = vpop.f32.mrb[29].mxu0  ;;  %3957 = vrot.lane.b32.xlu0 %v3879_v63, %s10800_s20 }
 0x7de   : > { %v3821_v26 = vadd.f32 %v3820_v61, %v3613_v52  ;;  %3959 = vrot.lane.b32.xlu1 %v3880_v3, %s10800_s20  ;;  %v3643_v3 = vpop.permute.xlu0 %3642 }
 0x7df   : > { %v3881_v18 = vmax.f32 %v3819_v47, 0.0 }
 0x7e0   : > { %v3882_v45 = vmax.f32 %v3821_v26, 0.0  ;;  %v3824_v24 = vpop.f32.mrb[30].mxu0 }
 0x7e1   : > { %v3825_v56 = vadd.f32 %v3824_v24, %v3618_v29  ;;  %v3826_v35 = vpop.f32.mrb[31].mxu0  ;;  %3961 = vrot.lane.b32.xlu0 %v3881_v18, %s10800_s20 }
 0x7e2   : > { %v3827_v16 = vadd.f32 %v3826_v35, %v3618_v29  ;;  %3963 = vrot.lane.b32.xlu1 %v3882_v45, %s10800_s20  ;;  %v3648_v45 = vpop.permute.xlu1 %3647 }
 0x7e3   : > { %v3883_v4 = vmax.f32 %v3825_v56, 0.0 }
 0x7e4   : > { %v3884_v6 = vmax.f32 %v3827_v16, 0.0  ;;  %v3830_v40 = vpop.f32.mrb[32].mxu0 }
 0x7e5   : > { %v3831_v39 = vadd.f32 %v3830_v40, %v3623_v22  ;;  %v3832_v48 = vpop.f32.mrb[33].mxu0  ;;  %3965 = vrot.lane.b32.xlu0 %v3883_v4, %s10800_s20 }
 0x7e6   : > { %v3833_v60 = vadd.f32 %v3832_v48, %v3623_v22  ;;  %3967 = vrot.lane.b32.xlu1 %v3884_v6, %s10800_s20 }
 0x7e7   : > { %v3885_v17 = vmax.f32 %v3831_v39, 0.0 }
 0x7e8   : > { %v3886_v12 = vmax.f32 %v3833_v60, 0.0  ;;  %v3836_v21 = vpop.f32.mrb[34].mxu0 }
 0x7e9   : > { %v3837_v32 = vadd.f32 %v3836_v21, %v3628_v44  ;;  %v3838_v54 = vpop.f32.mrb[35].mxu0  ;;  %3969 = vrot.lane.b32.xlu0 %v3885_v17, %s10800_s20 }
 0x7ea   : > { %v3839_v25 = vadd.f32 %v3838_v54, %v3628_v44  ;;  %3971 = vrot.lane.b32.xlu1 %v3886_v12, %s10800_s20 }
 0x7eb   : > { %v3887_v43 = vmax.f32 %v3837_v32, 0.0 }
 0x7ec   : > { %v3888_v62 = vmax.f32 %v3839_v25, 0.0  ;;  %v3842_v14 = vpop.f32.mrb[36].mxu0 }
 0x7ed   : > { %v3843_v46 = vadd.f32 %v3842_v14, %v3633_v13  ;;  %v3844_v41 = vpop.f32.mrb[37].mxu0  ;;  %3973 = vrot.lane.b32.xlu0 %v3887_v43, %s10800_s20 }
 0x7ee   : > { %v3845_v57 = vadd.f32 %v3844_v41, %v3633_v13  ;;  %3975 = vrot.lane.b32.xlu1 %v3888_v62, %s10800_s20 }
 0x7ef   : > { %v3889_v31 = vmax.f32 %v3843_v46, 0.0 }
 0x7f0   : > { %v3890_v49 = vmax.f32 %v3845_v57, 0.0  ;;  %v3848_v27 = vpop.f32.mrb[38].mxu0 }
 0x7f1   : > { %v3849_v36 = vadd.f32 %v3848_v27, %v3638_v7  ;;  %v3850_v37 = vpop.f32.mrb[39].mxu0  ;;  %3977 = vrot.lane.b32.xlu0 %v3889_v31, %s10800_s20 }
 0x7f2   : > { %v3851_v63 = vadd.f32 %v3850_v37, %v3638_v7  ;;  %3979 = vrot.lane.b32.xlu1 %v3890_v49, %s10800_s20 }
 0x7f3   : > { %v3891_v52 = vmax.f32 %v3849_v36, 0.0 }
 0x7f4   : > { %v3892_v2 = vmax.f32 %v3851_v63, 0.0  ;;  %v3854_v47 = vpop.f32.mrb[40].mxu0 }
 0x7f5   : > { %v3855_v61 = vadd.f32 %v3854_v47, %v3643_v3  ;;  %v3856_v26 = vpop.f32.mrb[41].mxu0  ;;  %3981 = vrot.lane.b32.xlu0 %v3891_v52, %s10800_s20 }
 0x7f6   : > { %v3857_v18 = vadd.f32 %v3856_v26, %v3643_v3  ;;  %3983 = vrot.lane.b32.xlu1 %v3892_v2, %s10800_s20 }
 0x7f7   : > { %v3893_v29 = vmax.f32 %v3855_v61, 0.0 }
 0x7f8   : > { %v3894_v24 = vmax.f32 %v3857_v18, 0.0  ;;  %v3860_v56 = vpop.f32.mrb[42].mxu0 }
 0x7f9   : > { %v3861_v35 = vadd.f32 %v3860_v56, %v3648_v45  ;;  %v3862_v16 = vpop.f32.mrb[43].mxu0  ;;  %3985 = vrot.lane.b32.xlu0 %v3893_v29, %s10800_s20 }
 0x7fa   : > { %v3863_v4 = vadd.f32 %v3862_v16, %v3648_v45  ;;  %3987 = vrot.lane.b32.xlu1 %v3894_v24, %s10800_s20 }
 0x7fb   : > { %v3895_v22 = vmax.f32 %v3861_v35, 0.0 }
 0x7fc   : > { %v3896_v6 = vmax.f32 %v3863_v4, 0.0 }
 0x7fd   : > { %3989 = vrot.lane.b32.xlu0 %v3895_v22, %s10800_s20 }
 0x7fe   : > { %3991 = vrot.lane.b32.xlu1 %v3896_v6, %s10800_s20 }
 0x833   : > { %v3930_v40 = vpop.permute.xlu0 %3929 }
 0x834   : > { %4057 = vst.msk [vmem:[#allocation2] sm:$0xff] %vm1523_vm9, %v3930_v40  ;;  %v3932_v39 = vpop.permute.xlu1 %3931 }
 0x835   : > { %v3993_v48 = vsel %vm517_vm0, %v3930_v40, %v3932_v39  ;;  %4059 = vst.msk [vmem:[#allocation2 + $0x10] sm:$0xff] %vm517_vm0, %v3932_v39 }
 0x836   : > { %4058 = vst [vmem:[#allocation2 + $0x8] sm:$0xff] %v3993_v48 }
 0x837   : > { %v3934_v60 = vpop.permute.xlu0 %3933 }
 0x838   : > { %4060 = vst.msk [vmem:[#allocation2 + $0x18] sm:$0xff] %vm1523_vm9, %v3934_v60  ;;  %v3936_v17 = vpop.permute.xlu1 %3935 }
 0x839   : > { %v3994_v44 = vsel %vm517_vm0, %v3934_v60, %v3936_v17  ;;  %4062 = vst.msk [vmem:[#allocation2 + $0x28] sm:$0xff] %vm517_vm0, %v3936_v17 }
 0x83a   : > { %v6426_v12 = vpack.c.bf16 %v3994_v44, %v3993_v48 }
 0x83b   : > { %v3938_v21 = vpop.permute.xlu0 %3937  ;;  %v4106_v62 = vld [vmem:[#allocation2] sm:$0xff] }
 0x83c   : > { %4063 = vst.msk [vmem:[#allocation2 + $0x30] sm:$0xff] %vm1523_vm9, %v3938_v21  ;;  %v3940_v32 = vpop.permute.xlu1 %3939  ;;  %v4287_v54 = vld [vmem:[#allocation2 + $0x10] sm:$0xff]  ;;  %6427 = vmatprep.subr.bf16.mxu0 %v6426_v12 }
 0x83d   : > { %v3995_v25 = vsel %vm517_vm0, %v3938_v21, %v3940_v32  ;;  %4065 = vst.msk [vmem:[#allocation2 + $0x40] sm:$0xff] %vm517_vm0, %v3940_v32  ;;  %v9553_v43 = vpack.i.bf16 %v4287_v54, %v3993_v48 }
 0x83f   : > { %v3942_v13 = vpop.permute.xlu0 %3941  ;;  %7175 = vrot.lane.b32.xlu0 %v9553_v43, %s10801_s21  ;;  %v4108_v14 = vld [vmem:[#allocation2 + $0x18] sm:$0xff] }
 0x840   : > { %4066 = vst.msk [vmem:[#allocation2 + $0x48] sm:$0xff] %vm1523_vm9, %v3942_v13  ;;  %v3944_v46 = vpop.permute.xlu1 %3943  ;;  %v4290_v41 = vld [vmem:[#allocation2 + $0x28] sm:$0xff]  ;;  %v6428_v57 = vpack.c.bf16 %v4108_v14, %v4106_v62  ;;  %v9576_v26 = vpack.i.bf16 %v4108_v14, %v4106_v62 }
 0x841   : > { %v3996_v31 = vsel %vm517_vm0, %v3942_v13, %v3944_v46  ;;  %4068 = vst.msk [vmem:[#allocation2 + $0x58] sm:$0xff] %vm517_vm0, %v3944_v46  ;;  %v9560_v7 = vpack.i.bf16 %v4290_v41, %v3994_v44 }
 0x842   : > { %6429 = vmatpush1.bf16.msra.mxu0 %v6428_v57  ;;  %v6430_v49 = vpack.c.bf16 %v3996_v31, %v3995_v25 }
 0x843   : > { %v3946_v27 = vpop.permute.xlu0 %3945  ;;  %7180 = vrot.lane.b32.xlu0 %v9553_v43, %s10798_s22  ;;  %7200 = vrot.lane.b32.xlu1 %v9560_v7, %s10801_s21  ;;  %v4110_v52 = vld [vmem:[#allocation2 + $0x30] sm:$0xff] }
 0x844   : > { %4069 = vst.msk [vmem:[#allocation2 + $0x60] sm:$0xff] %vm1523_vm9, %v3946_v27  ;;  %v3948_v36 = vpop.permute.xlu1 %3947  ;;  %6431 = vmatprep.subr.bf16.mxu0 %v6430_v49  ;;  %v4293_v18 = vld [vmem:[#allocation2 + $0x40] sm:$0xff] }
 0x845   : > { %v3997_v37 = vsel %vm517_vm0, %v3946_v27, %v3948_v36  ;;  %4071 = vst.msk [vmem:[#allocation2 + $0x70] sm:$0xff] %vm517_vm0, %v3948_v36  ;;  %v9587_v35 = vpack.i.bf16 %v4293_v18, %v3995_v25 }
 0x847   : > { %v3950_v63 = vpop.permute.xlu0 %3949  ;;  %7185 = vrot.lane.b32.xlu0 %v9553_v43, %s10799_s23  ;;  %7205 = vrot.lane.b32.xlu1 %v9560_v7, %s10798_s22  ;;  %v4112_v3 = vld [vmem:[#allocation2 + $0x48] sm:$0xff] }
 0x848   : > { %4072 = vst.msk [vmem:[#allocation2 + $0x78] sm:$0xff] %vm1523_vm9, %v3950_v63  ;;  %v3952_v2 = vpop.permute.xlu1 %3951  ;;  %v6432_v47 = vpack.c.bf16 %v4112_v3, %v4110_v52  ;;  %v4296_v16 = vld [vmem:[#allocation2 + $0x58] sm:$0xff]  ;;  %v9611_v32 = vpack.i.bf16 %v4112_v3, %v4110_v52 }
 0x849   : > { %v3998_v61 = vsel %vm517_vm0, %v3950_v63, %v3952_v2  ;;  %4074 = vst.msk [vmem:[#allocation2 + $0x88] sm:$0xff] %vm517_vm0, %v3952_v2  ;;  %v9598_v60 = vpack.i.bf16 %v4296_v16, %v3996_v31 }
 0x84a   : > { %6433 = vmatpush1.bf16.msra.mxu0 %v6432_v47  ;;  %v6434_v29 = vpack.c.bf16 %v3998_v61, %v3997_v37 }
 0x84b   : > { %v3954_v45 = vpop.permute.xlu0 %3953  ;;  %7190 = vrot.lane.b32.xlu0 %v9576_v26, %s10801_s21  ;;  %7210 = vrot.lane.b32.xlu1 %v9560_v7, %s10799_s23  ;;  %v4114_v22 = vld [vmem:[#allocation2 + $0x60] sm:$0xff] }
 0x84c   : > { %4075 = vst.msk [vmem:[#allocation2 + $0x90] sm:$0xff] %vm1523_vm9, %v3954_v45  ;;  %v3956_v24 = vpop.permute.xlu1 %3955  ;;  %6435 = vmatprep.subr.bf16.mxu0 %v6434_v29  ;;  %v4299_v54 = vld [vmem:[#allocation2 + $0x70] sm:$0xff] }
 0x84d   : > { %v9584_v56 = vsel %vm517_vm0, %v3954_v45, %v3956_v24  ;;  %4077 = vst.msk [vmem:[#allocation2 + $0xa0] sm:$0xff] %vm517_vm0, %v3956_v24  ;;  %v9628_v57 = vpack.i.bf16 %v4299_v54, %v3997_v37 }
 0x84f   : > { %v3958_v4 = vpop.permute.xlu0 %3957  ;;  %7195 = vrot.lane.b32.xlu0 %v9576_v26, %s10798_s22  ;;  %7215 = vrot.lane.b32.xlu1 %v9587_v35, %s10801_s21  ;;  %v4116_v6 = vld [vmem:[#allocation2 + $0x78] sm:$0xff] }
 0x850   : > { %4078 = vst.msk [vmem:[#allocation2 + $0xa8] sm:$0xff] %vm1523_vm9, %v3958_v4  ;;  %v3960_v40 = vpop.permute.xlu1 %3959  ;;  %v6436_v39 = vpack.c.bf16 %v4116_v6, %v4114_v22  ;;  %v4302_v31 = vld [vmem:[#allocation2 + $0x88] sm:$0xff]  ;;  %v9658_v29 = vpack.i.bf16 %v4116_v6, %v4114_v22 }
 0x851   : > { %v9595_v48 = vsel %vm517_vm0, %v3958_v4, %v3960_v40  ;;  %4080 = vst.msk [vmem:[#allocation2 + $0xb8] sm:$0xff] %vm517_vm0, %v3960_v40  ;;  %v9641_v37 = vpack.i.bf16 %v4302_v31, %v3998_v61 }
 0x852   : > { %6437 = vmatpush1.bf16.msra.mxu0 %v6436_v39  ;;  %v6438_v17 = vpack.c.bf16 %v9595_v48, %v9584_v56 }
 0x853   : > { %v3962_v44 = vpop.permute.xlu0 %3961  ;;  %7220 = vrot.lane.b32.xlu1 %v9587_v35, %s10798_s22  ;;  %7235 = vrot.lane.b32.xlu0 %v9598_v60, %s10801_s21  ;;  %v9617_v13 = vld [vmem:[#allocation2 + $0x90] sm:$0xff] }
 0x854   : > { %4081 = vst.msk [vmem:[#allocation2 + $0xc0] sm:$0xff] %vm1523_vm9, %v3962_v44  ;;  %v3964_v12 = vpop.permute.xlu1 %3963  ;;  %6439 = vmatprep.subr.bf16.mxu0 %v6438_v17  ;;  %v4305_v45 = vld [vmem:[#allocation2 + $0xa0] sm:$0xff] }
 0x855   : > { %v9608_v21 = vsel %vm517_vm0, %v3962_v44, %v3964_v12  ;;  %4083 = vst.msk [vmem:[#allocation2 + $0xd0] sm:$0xff] %vm517_vm0, %v3964_v12  ;;  %v9672_v22 = vpack.i.bf16 %v4305_v45, %v9584_v56 }
 0x857   : > { %v3966_v25 = vpop.permute.xlu0 %3965  ;;  %7225 = vrot.lane.b32.xlu1 %v9611_v32, %s10801_s21  ;;  %7240 = vrot.lane.b32.xlu0 %v9598_v60, %s10798_s22  ;;  %v9619_v62 = vld [vmem:[#allocation2 + $0xa8] sm:$0xff] }
 0x858   : > { %4084 = vst.msk [vmem:[#allocation2 + $0xd8] sm:$0xff] %vm1523_vm9, %v3966_v25  ;;  %v3968_v14 = vpop.permute.xlu1 %3967  ;;  %v6440_v46 = vpack.c.bf16 %v9619_v62, %v9617_v13  ;;  %v4308_v6 = vld [vmem:[#allocation2 + $0xb8] sm:$0xff] }
 0x859   : > { %v9625_v41 = vsel %vm517_vm0, %v3966_v25, %v3968_v14  ;;  %4086 = vst.msk [vmem:[#allocation2 + $0xe8] sm:$0xff] %vm517_vm0, %v3968_v14  ;;  %v9684_v56 = vpack.i.bf16 %v4308_v6, %v9595_v48  ;;  %v9699_v48 = vpack.i.bf16 %v9619_v62, %v9617_v13 }
 0x85a   : > { %6441 = vmatpush1.bf16.msra.mxu0 %v6440_v46  ;;  %v6442_v49 = vpack.c.bf16 %v9625_v41, %v9608_v21 }
 0x85b   : > { %v3970_v27 = vpop.permute.xlu0 %3969  ;;  %7230 = vrot.lane.b32.xlu1 %v9611_v32, %s10798_s22  ;;  %7245 = vrot.lane.b32.xlu0 %v9628_v57, %s10801_s21  ;;  %v9647_v3 = vld [vmem:[#allocation2 + $0xc0] sm:$0xff] }
 0x85c   : > { %4087 = vst.msk [vmem:[#allocation2 + $0xf0] sm:$0xff] %vm1523_vm9, %v3970_v27  ;;  %v3972_v36 = vpop.permute.xlu1 %3971  ;;  %6443 = vmatprep.subr.bf16.mxu0 %v6442_v49 }
 0x85d   : > { %v9638_v63 = vsel %vm517_vm0, %v3970_v27, %v3972_v36  ;;  %4089 = vst.msk [vmem:[#allocation2 + $0x100] sm:$0xff] %vm517_vm0, %v3972_v36  ;;  %v4311_v27 = vld [vmem:[#allocation2 + $0xd0] sm:$0xff] }
 0x85e   : > { %v9709_v13 = vpack.i.bf16 %v4311_v27, %v9608_v21 }
 0x85f   : > { %v3974_v52 = vpop.permute.xlu0 %3973  ;;  %7250 = vrot.lane.b32.xlu0 %v9628_v57, %s10798_s22  ;;  %7265 = vrot.lane.b32.xlu1 %v9641_v37, %s10801_s21  ;;  %v9649_v2 = vld [vmem:[#allocation2 + $0xd8] sm:$0xff] }
 0x860   : > { %4090 = vst.msk [vmem:[#allocation2 + $0x108] sm:$0xff] %vm1523_vm9, %v3974_v52  ;;  %v3976_v47 = vpop.permute.xlu1 %3975  ;;  %v6444_v18 = vpack.c.bf16 %v9649_v2, %v9647_v3  ;;  %v4314_v62 = vld [vmem:[#allocation2 + $0xe8] sm:$0xff] }
 0x861   : > { %v9655_v61 = vsel %vm517_vm0, %v3974_v52, %v3976_v47  ;;  %4092 = vst.msk [vmem:[#allocation2 + $0x118] sm:$0xff] %vm517_vm0, %v3976_v47 }
 0x862   : > { %6445 = vmatpush1.bf16.msra.mxu0 %v6444_v18  ;;  %v6446_v24 = vpack.c.bf16 %v9655_v61, %v9638_v63 }
 0x863   : > { %v3978_v16 = vpop.permute.xlu0 %3977  ;;  %7255 = vrot.lane.b32.xlu0 %v9658_v29, %s10801_s21  ;;  %7270 = vrot.lane.b32.xlu1 %v9641_v37, %s10798_s22  ;;  %v4126_v17 = vld [vmem:[#allocation2 + $0xf0] sm:$0xff] }
 0x864   : > { %4093 = vst.msk [vmem:[#allocation2 + $0x120] sm:$0xff] %vm1523_vm9, %v3978_v16  ;;  %v3980_v4 = vpop.permute.xlu1 %3979  ;;  %6447 = vmatprep.subr.bf16.mxu0 %v6446_v24 }
 0x865   : > { %v9668_v40 = vsel %vm517_vm0, %v3978_v16, %v3980_v4  ;;  %4095 = vst.msk [vmem:[#allocation2 + $0x130] sm:$0xff] %vm517_vm0, %v3980_v4  ;;  %v9717_v4 = vpack.i.bf16 %v4314_v62, %v9625_v41  ;;  %v4138_v41 = vld [vmem:[%s10759_s10] sm:$0xff] }
 0x867   : > { %v3982_v39 = vpop.permute.xlu0 %3981  ;;  %7260 = vrot.lane.b32.xlu0 %v9658_v29, %s10798_s22  ;;  %7275 = vrot.lane.b32.xlu1 %v9672_v22, %s10801_s21  ;;  %v4128_v44 = vld [vmem:[#allocation2 + $0x108] sm:$0xff] }
 0x868   : > { %4096 = vst.msk [vmem:[#allocation2 + $0x138] sm:$0xff] %vm1523_vm9, %v3982_v39  ;;  %v3984_v12 = vpop.permute.xlu1 %3983  ;;  %v6448_v54 = vpack.c.bf16 %v4128_v44, %v4126_v17 }
 0x869   : > { %v9680_v25 = vsel %vm517_vm0, %v3982_v39, %v3984_v12  ;;  %4098 = vst.msk [vmem:[#allocation2 + $0x148] sm:$0xff] %vm517_vm0, %v3984_v12  ;;  %v9725_v12 = vpack.i.bf16 %v9649_v2, %v9647_v3  ;;  %v4139_v3 = vld [vmem:[%s10759_s10 + $0x8] sm:$0xff] }
 0x86a   : > { %6449 = vmatpush1.bf16.msra.mxu0 %v6448_v54  ;;  %v6450_v14 = vpack.c.bf16 %v9680_v25, %v9668_v40  ;;  %v4317_v54 = vld [vmem:[#allocation2 + $0x100] sm:$0xff] }
 0x86b   : > { %v3986_v46 = vpop.permute.xlu0 %3985  ;;  %7280 = vrot.lane.b32.xlu1 %v9672_v22, %s10798_s22  ;;  %7295 = vrot.lane.b32.xlu0 %v9684_v56, %s10801_s21  ;;  %v4130_v52 = vld [vmem:[#allocation2 + $0x120] sm:$0xff] }
 0x86c   : > { %4099 = vst.msk [vmem:[#allocation2 + $0x150] sm:$0xff] %vm1523_vm9, %v3986_v46  ;;  %v3988_v31 = vpop.permute.xlu1 %3987  ;;  %6451 = vmatprep.subr.bf16.mxu0 %v6450_v14  ;;  %v9735_v14 = vpack.i.bf16 %v4317_v54, %v9638_v63  ;;  %v4140_v63 = vld [vmem:[%s10759_s10 + $0x10] sm:$0xff] }
 0x86d   : > { %v9694_v49 = vsel %vm517_vm0, %v3986_v46, %v3988_v31  ;;  %4101 = vst.msk [vmem:[#allocation2 + $0x160] sm:$0xff] %vm517_vm0, %v3988_v31  ;;  %v4320_v46 = vld [vmem:[#allocation2 + $0x118] sm:$0xff]  ;;  %v9756_v31 = vpack.i.bf16 %v4128_v44, %v4126_v17  ;;  %v4323_v27 = vld [vmem:[#allocation2 + $0x130] sm:$0xff]  ;;  %v4142_v44 = vld [vmem:[%s10759_s10 + $0x20] sm:$0xff] }
 0x86e   : > { %v9746_v2 = vpack.i.bf16 %v4320_v46, %v9655_v61  ;;  %v4141_v61 = vld [vmem:[%s10759_s10 + $0x18] sm:$0xff] }
 0x86f   : > { %v3990_v36 = vpop.permute.xlu0 %3989  ;;  %7285 = vrot.lane.b32.xlu1 %v9699_v48, %s10801_s21  ;;  %7300 = vrot.lane.b32.xlu0 %v9684_v56, %s10798_s22  ;;  %v4132_v47 = vld [vmem:[#allocation2 + $0x138] sm:$0xff] }
 0x870   : > { %4102 = vst.msk [vmem:[#allocation2 + $0x168] sm:$0xff] %vm1523_vm9, %v3990_v36  ;;  %v3992_v18 = vpop.permute.xlu1 %3991  ;;  %v6452_v45 = vpack.c.bf16 %v4132_v47, %v4130_v52  ;;  %v4326_v17 = vld [vmem:[#allocation2 + $0x148] sm:$0xff] }
 0x871   : > { %v4008_v24 = vsel %vm517_vm0, %v3990_v36, %v3992_v18  ;;  %4104 = vst.msk [vmem:[#allocation2 + $0x178] sm:$0xff] %vm517_vm0, %v3992_v18  ;;  %v9767_v36 = vpack.i.bf16 %v4323_v27, %v9668_v40  ;;  %v9778_v18 = vpack.i.bf16 %v4326_v17, %v9680_v25  ;;  %v9785_v40 = vpack.i.bf16 %v4132_v47, %v4130_v52 }
 0x872   : > { %6453 = vmatpush1.bf16.msra.mxu0 %v6452_v45  ;;  %v6454_v16 = vpack.c.bf16 %v4008_v24, %v9694_v49 }
 0x873   : > { %7290 = vrot.lane.b32.xlu1 %v9699_v48, %s10798_s22  ;;  %7305 = vrot.lane.b32.xlu0 %v9709_v13, %s10801_s21  ;;  %v4134_v21 = vld [vmem:[#allocation2 + $0x150] sm:$0xff] }
 0x874   : > { %6455 = vmatprep.subr.bf16.mxu0 %v6454_v16  ;;  %v4329_v45 = vld [vmem:[#allocation2 + $0x160] sm:$0xff] }
 0x875   : > { %v9792_v25 = vpack.i.bf16 %v4329_v45, %v9694_v49 }
 0x877   : > { %7310 = vrot.lane.b32.xlu0 %v9709_v13, %s10798_s22  ;;  %7325 = vrot.lane.b32.xlu1 %v9717_v4, %s10801_s21  ;;  %v4136_v6 = vld [vmem:[#allocation2 + $0x168] sm:$0xff] }
 0x878   : > { %v6456_v39 = vpack.c.bf16 %v4136_v6, %v4134_v21  ;;  %v4332_v62 = vld [vmem:[#allocation2 + $0x178] sm:$0xff]  ;;  %v9804_v52 = vpack.i.bf16 %v4136_v6, %v4134_v21 }
 0x879   : > { %v9798_v16 = vpack.i.bf16 %v4332_v62, %v4008_v24 }
 0x87a   : > { %6457 = vmatpush1.bf16.msra.mxu0 %v6456_v39 }
 0x87b   : > { %7315 = vrot.lane.b32.xlu0 %v9725_v12, %s10801_s21  ;;  %7330 = vrot.lane.b32.xlu1 %v9717_v4, %s10798_s22 }
 0x87d   : > { %4208 = vmatmul.mubr.f32.vlgmr.msra.gmra.mrb[44].mxu0 %v4138_v41 }
 0x87e   : > { %4213 = vmatprep.mubr.f32.mxu0 %v10783_v0 }
 0x87f   : > { %7320 = vrot.lane.b32.xlu0 %v9725_v12, %s10798_s22  ;;  %7335 = vrot.lane.b32.xlu1 %v9735_v14, %s10801_s21 }
 0x881   : > { %4214 = vmatmul.mubr.f32.gmra.mrb[46].mxu0 %v4139_v3 }
 0x882   : > { %4219 = vmatprep.mubr.f32.mxu0 %v10783_v0 }
 0x883   : > { %7340 = vrot.lane.b32.xlu1 %v9735_v14, %s10798_s22  ;;  %7355 = vrot.lane.b32.xlu0 %v9746_v2, %s10801_s21 }
 0x885   : > { %4220 = vmatmul.mubr.f32.gmra.mrb[48].mxu0 %v4140_v63 }
 0x886   : > { %4225 = vmatprep.mubr.f32.mxu0 %v10783_v0 }
 0x887   : > { %7345 = vrot.lane.b32.xlu1 %v9756_v31, %s10801_s21  ;;  %7360 = vrot.lane.b32.xlu0 %v9746_v2, %s10798_s22 }
 0x889   : > { %4226 = vmatmul.mubr.f32.gmra.mrb[50].mxu0 %v4141_v61 }
 0x88a   : > { %4231 = vmatprep.mubr.f32.mxu0 %v10783_v0 }
 0x88b   : > { %7350 = vrot.lane.b32.xlu1 %v9756_v31, %s10798_s22  ;;  %7365 = vrot.lane.b32.xlu0 %v9767_v36, %s10801_s21 }
 0x88d   : > { %4232 = vmatmul.mubr.f32.gmra.mrb[52].mxu0 %v4142_v44 }
 0x88e   : > { %4611 = vmatprep.mubr.f32.mxu0 %v10783_v0 }
 0x88f   : > { %7370 = vrot.lane.b32.xlu0 %v9767_v36, %s10798_s22  ;;  %7385 = vrot.lane.b32.xlu1 %v9778_v18, %s10801_s21 }
 0x893   : > { %7375 = vrot.lane.b32.xlu0 %v9785_v40, %s10801_s21  ;;  %7390 = vrot.lane.b32.xlu1 %v9778_v18, %s10798_s22 }
 0x897   : > { %7380 = vrot.lane.b32.xlu0 %v9785_v40, %s10798_s22  ;;  %7395 = vrot.lane.b32.xlu1 %v9792_v25, %s10801_s21 }
 0x89b   : > { %7400 = vrot.lane.b32.xlu1 %v9792_v25, %s10798_s22  ;;  %7415 = vrot.lane.b32.xlu0 %v9798_v16, %s10801_s21 }
 0x89f   : > { %7405 = vrot.lane.b32.xlu1 %v9804_v52, %s10801_s21  ;;  %7420 = vrot.lane.b32.xlu0 %v9576_v26, %s10799_s23 }
 0x8a3   : > { %7410 = vrot.lane.b32.xlu1 %v9804_v52, %s10798_s22  ;;  %7430 = vrot.lane.b32.xlu0 %v9598_v60, %s10799_s23 }
 0x8a7   : > { %7425 = vrot.lane.b32.xlu1 %v9587_v35, %s10799_s23  ;;  %7440 = vrot.lane.b32.xlu0 %v9628_v57, %s10799_s23 }
 0x8ab   : > { %7435 = vrot.lane.b32.xlu1 %v9611_v32, %s10799_s23  ;;  %7450 = vrot.lane.b32.xlu0 %v9658_v29, %s10799_s23 }
 0x8af   : > { %7445 = vrot.lane.b32.xlu1 %v9641_v37, %s10799_s23  ;;  %7460 = vrot.lane.b32.xlu0 %v9684_v56, %s10799_s23 }
 0x8b1   : > { %v7176_v49 = vpop.permute.xlu0 %7175 }
 0x8b2   : > { %v7178_v47 = vunpack.i.h.bf16 %v7176_v49  ;;  %v7177_v24 = vunpack.i.l.bf16 %v7176_v49 }
 0x8b3   : > { %7455 = vrot.lane.b32.xlu1 %v9672_v22, %s10799_s23  ;;  %7470 = vrot.lane.b32.xlu0 %v9709_v13, %s10799_s23 }
 0x8b4   : > { %v4484_v41 = vsel %vm652_vm4, %v7177_v24, %v7178_v47 }
 0x8b5   : > { %v9830_v21 = vpop.permute.xlu0 %7180  ;;  %v7201_v6 = vpop.permute.xlu1 %7200 }
 0x8b6   : > { %v7203_v39 = vunpack.i.h.bf16 %v7201_v6  ;;  %v7202_v54 = vunpack.i.l.bf16 %v7201_v6 }
 0x8b7   : > { %7465 = vrot.lane.b32.xlu1 %v9699_v48, %s10799_s23  ;;  %7480 = vrot.lane.b32.xlu0 %v9725_v12, %s10799_s23 }
 0x8b8   : > { %v4486_v46 = vsel %vm652_vm4, %v7202_v54, %v7203_v39 }
 0x8b9   : > { %v9838_v3 = vpop.permute.xlu0 %7185  ;;  %v9840_v63 = vpop.permute.xlu1 %7205  ;;  %v6458_v27 = vpack.c.bf16 %v4486_v46, %v4484_v41 }
 0x8bb   : > { %7475 = vrot.lane.b32.xlu1 %v9717_v4, %s10799_s23  ;;  %7490 = vrot.lane.b32.xlu0 %v9798_v16, %s10798_s22 }
 0x8bc   : > { %6459 = vmatprep.subr.bf16.mxu0 %v6458_v27 }
 0x8bd   : > { %v7191_v61 = vpop.permute.xlu0 %7190  ;;  %v9846_v17 = vpop.permute.xlu1 %7210 }
 0x8be   : > { %v7193_v44 = vunpack.i.h.bf16 %v7191_v61  ;;  %v7192_v45 = vunpack.i.l.bf16 %v7191_v61 }
 0x8bf   : > { %7485 = vrot.lane.b32.xlu1 %v9735_v14, %s10799_s23  ;;  %7495 = vrot.lane.b32.xlu0 %v9746_v2, %s10799_s23 }
 0x8c0   : > { %v4483_v62 = vsel %vm652_vm4, %v7192_v45, %v7177_v24  ;;  %v4485_v49 = vsel %vm652_vm4, %v7193_v44, %v7202_v54 }
 0x8c1   : > { %v9854_v47 = vpop.permute.xlu0 %7195  ;;  %v7216_v6 = vpop.permute.xlu1 %7215  ;;  %v6460_v39 = vpack.c.bf16 %v4485_v49, %v4483_v62 }
 0x8c2   : > { %v7218_v41 = vunpack.i.h.bf16 %v7216_v6  ;;  %v7217_v46 = vunpack.i.l.bf16 %v7216_v6 }
 0x8c3   : > { %7500 = vrot.lane.b32.xlu1 %v9756_v31, %s10799_s23  ;;  %7505 = vrot.lane.b32.xlu0 %v9767_v36, %s10799_s23 }
 0x8c4   : > { %6461 = vmatpush1.bf16.msra.mxu0 %v6460_v39  ;;  %v4488_v54 = vsel %vm652_vm4, %v7217_v46, %v7218_v41 }
 0x8c5   : > { %v7236_v27 = vpop.permute.xlu0 %7235  ;;  %v9860_v61 = vpop.permute.xlu1 %7220 }
 0x8c6   : > { %v7238_v0 = vunpack.i.h.bf16 %v7236_v27  ;;  %v7237_v24 = vunpack.i.l.bf16 %v7236_v27 }
 0x8c7   : > { %7510 = vrot.lane.b32.xlu1 %v9778_v18, %s10799_s23  ;;  %7515 = vrot.lane.b32.xlu0 %v9785_v40, %s10799_s23 }
 0x8c8   : > { %v4490_v44 = vsel %vm652_vm4, %v7237_v24, %v7238_v0 }
 0x8c9   : > { %v9868_v45 = vpop.permute.xlu0 %7240  ;;  %v7226_v62 = vpop.permute.xlu1 %7225  ;;  %v6462_v49 = vpack.c.bf16 %v4490_v44, %v4488_v54 }
 0x8ca   : > { %v7228_v6 = vunpack.i.h.bf16 %v7226_v62  ;;  %v7227_v39 = vunpack.i.l.bf16 %v7226_v62 }
 0x8cb   : > { %7520 = vrot.lane.b32.xlu1 %v9792_v25, %s10799_s23  ;;  %7530 = vrot.lane.b32.xlu0 %v9553_v43, %s10802_s1 }
 0x8cc   : > { %v4489_v27 = vsel %vm652_vm4, %v7228_v6, %v7237_v24  ;;  %v4487_v1 = vsel %vm652_vm4, %v7227_v39, %v7217_v46  ;;  %6463 = vmatprep.subr.bf16.mxu0 %v6462_v49 }
 0x8cd   : > { %v7246_v41 = vpop.permute.xlu0 %7245  ;;  %v9876_v20 = vpop.permute.xlu1 %7230  ;;  %v6464_v0 = vpack.c.bf16 %v4489_v27, %v4487_v1 }
 0x8ce   : > { %v7248_v54 = vunpack.i.h.bf16 %v7246_v41  ;;  %v7247_v44 = vunpack.i.l.bf16 %v7246_v41 }
 0x8cf   : > { %7525 = vrot.lane.b32.xlu1 %v9804_v52, %s10799_s23  ;;  %7540 = vrot.lane.b32.xlu0 %v9576_v26, %s10802_s1 }
 0x8d0   : > { %6465 = vmatpush1.bf16.msra.mxu0 %v6464_v0  ;;  %v4492_v1 = vsel %vm652_vm4, %v7247_v44, %v7248_v54 }
 0x8d1   : > { %v9882_v62 = vpop.permute.xlu0 %7250  ;;  %v7266_v43 = vpop.permute.xlu1 %7265 }
 0x8d2   : > { %v7268_v24 = vunpack.i.h.bf16 %v7266_v43  ;;  %v7267_v6 = vunpack.i.l.bf16 %v7266_v43 }
 0x8d3   : > { %7535 = vrot.lane.b32.xlu1 %v9560_v7, %s10802_s1  ;;  %7550 = vrot.lane.b32.xlu0 %v9598_v60, %s10802_s1 }
 0x8d4   : > { %v4494_v46 = vsel %vm652_vm4, %v7267_v6, %v7268_v24 }
 0x8d5   : > { %v7256_v49 = vpop.permute.xlu0 %7255  ;;  %v9890_v26 = vpop.permute.xlu1 %7270  ;;  %v6466_v39 = vpack.c.bf16 %v4494_v46, %v4492_v1 }
 0x8d6   : > { %v7258_v27 = vunpack.i.h.bf16 %v7256_v49  ;;  %v7257_v41 = vunpack.i.l.bf16 %v7256_v49 }
 0x8d7   : > { %7545 = vrot.lane.b32.xlu1 %v9587_v35, %s10802_s1  ;;  %7560 = vrot.lane.b32.xlu0 %v9628_v57, %s10802_s1 }
 0x8d8   : > { %v4491_v7 = vsel %vm652_vm4, %v7257_v41, %v7247_v44  ;;  %v4493_v60 = vsel %vm652_vm4, %v7258_v27, %v7267_v6  ;;  %6467 = vmatprep.subr.bf16.mxu0 %v6466_v39 }
 0x8d9   : > { %v9898_v0 = vpop.permute.xlu0 %7260  ;;  %v7276_v54 = vpop.permute.xlu1 %7275  ;;  %v6468_v43 = vpack.c.bf16 %v4493_v60, %v4491_v7 }
 0x8da   : > { %v7278_v24 = vunpack.i.h.bf16 %v7276_v54  ;;  %v7277_v35 = vunpack.i.l.bf16 %v7276_v54 }
 0x8db   : > { %7555 = vrot.lane.b32.xlu1 %v9611_v32, %s10802_s1  ;;  %7570 = vrot.lane.b32.xlu0 %v9798_v16, %s10799_s23 }
 0x8dc   : > { %6469 = vmatpush1.bf16.msra.mxu0 %v6468_v43  ;;  %v4496_v6 = vsel %vm652_vm4, %v7277_v35, %v7278_v24 }
 0x8dd   : > { %v7296_v1 = vpop.permute.xlu0 %7295  ;;  %v9904_v57 = vpop.permute.xlu1 %7280 }
 0x8de   : > { %v7298_v44 = vunpack.i.h.bf16 %v7296_v1  ;;  %v7297_v46 = vunpack.i.l.bf16 %v7296_v1 }
 0x8df   : > { %7565 = vrot.lane.b32.xlu1 %v9641_v37, %s10802_s1  ;;  %7575 = vrot.lane.b32.xlu0 %v9658_v29, %s10802_s1 }
 0x8e0   : > { %v4498_v32 = vsel %vm652_vm4, %v7297_v46, %v7298_v44 }
 0x8e1   : > { %v9912_v49 = vpop.permute.xlu0 %7300  ;;  %v7286_v39 = vpop.permute.xlu1 %7285  ;;  %v6470_v27 = vpack.c.bf16 %v4498_v32, %v4496_v6 }
 0x8e2   : > { %v7288_v41 = vunpack.i.h.bf16 %v7286_v39  ;;  %v7287_v7 = vunpack.i.l.bf16 %v7286_v39 }
 0x8e3   : > { %7580 = vrot.lane.b32.xlu1 %v9672_v22, %s10802_s1  ;;  %7585 = vrot.lane.b32.xlu0 %v9684_v56, %s10802_s1 }
 0x8e4   : > { %v4497_v37 = vsel %vm652_vm4, %v7288_v41, %v7297_v46  ;;  %v4495_v29 = vsel %vm652_vm4, %v7287_v7, %v7277_v35  ;;  %6471 = vmatprep.subr.bf16.mxu0 %v6470_v27 }
 0x8e5   : > { %v7306_v60 = vpop.permute.xlu0 %7305  ;;  %v9920_v54 = vpop.permute.xlu1 %7290  ;;  %v6472_v43 = vpack.c.bf16 %v4497_v37, %v4495_v29 }
 0x8e6   : > { %v7308_v24 = vunpack.i.h.bf16 %v7306_v60  ;;  %v7307_v22 = vunpack.i.l.bf16 %v7306_v60 }
 0x8e7   : > { %7590 = vrot.lane.b32.xlu1 %v9699_v48, %s10802_s1  ;;  %7595 = vrot.lane.b32.xlu0 %v9709_v13, %s10802_s1 }
 0x8e8   : > { %6473 = vmatpush1.bf16.msra.mxu0 %v6472_v43  ;;  %v4500_v35 = vsel %vm652_vm4, %v7307_v22, %v7308_v24 }
 0x8e9   : > { %v9926_v1 = vpop.permute.xlu0 %7310  ;;  %v7326_v56 = vpop.permute.xlu1 %7325 }
 0x8ea   : > { %v7328_v44 = vunpack.i.h.bf16 %v7326_v56  ;;  %v7327_v46 = vunpack.i.l.bf16 %v7326_v56 }
 0x8eb   : > { %7600 = vrot.lane.b32.xlu1 %v9717_v4, %s10802_s1  ;;  %7605 = vrot.lane.b32.xlu0 %v9725_v12, %s10802_s1 }
 0x8ec   : > { %v4502_v48 = vsel %vm652_vm4, %v7327_v46, %v7328_v44 }
 0x8ed   : > { %v7316_v6 = vpop.permute.xlu0 %7315  ;;  %v9934_v13 = vpop.permute.xlu1 %7330  ;;  %v6474_v32 = vpack.c.bf16 %v4502_v48, %v4500_v35  ;;  %v3134_v48 = vld [vmem:[%s10756_s7] sm:$0xf] }
 0x8ee   : > { %v7318_v39 = vunpack.i.h.bf16 %v7316_v6  ;;  %v7317_v27 = vunpack.i.l.bf16 %v7316_v6 }
 0x8ef   : > { %7610 = vrot.lane.b32.xlu1 %v9735_v14, %s10802_s1  ;;  %7615 = vrot.lane.b32.xlu0 %v9746_v2, %s10802_s1 }
 0x8f0   : > { %v4499_v4 = vsel %vm652_vm4, %v7317_v27, %v7307_v22  ;;  %v4501_v12 = vsel %vm652_vm4, %v7318_v39, %v7327_v46  ;;  %6475 = vmatprep.subr.bf16.mxu0 %v6474_v32 }
 0x8f1   : > { %v9942_v41 = vpop.permute.xlu0 %7320  ;;  %v7336_v7 = vpop.permute.xlu1 %7335  ;;  %v6476_v37 = vpack.c.bf16 %v4501_v12, %v4499_v4 }
 0x8f2   : > { %v7338_v29 = vunpack.i.h.bf16 %v7336_v7  ;;  %v7337_v14 = vunpack.i.l.bf16 %v7336_v7 }
 0x8f3   : > { %7620 = vrot.lane.b32.xlu1 %v9756_v31, %s10802_s1  ;;  %7625 = vrot.lane.b32.xlu0 %v9767_v36, %s10802_s1 }
 0x8f4   : > { %6477 = vmatpush1.bf16.msra.mxu0 %v6476_v37  ;;  %v4504_v22 = vsel %vm652_vm4, %v7337_v14, %v7338_v29 }
 0x8f5   : > { %v7356_v60 = vpop.permute.xlu0 %7355  ;;  %v9948_v2 = vpop.permute.xlu1 %7340 }
 0x8f6   : > { %v7358_v43 = vunpack.i.h.bf16 %v7356_v60  ;;  %v7357_v24 = vunpack.i.l.bf16 %v7356_v60 }
 0x8f7   : > { %7630 = vrot.lane.b32.xlu1 %v9778_v18, %s10802_s1  ;;  %7635 = vrot.lane.b32.xlu0 %v9785_v40, %s10802_s1 }
 0x8f8   : > { %v4506_v31 = vsel %vm652_vm4, %v7357_v24, %v7358_v43 }
 0x8f9   : > { %v9956_v56 = vpop.permute.xlu0 %7360  ;;  %v7346_v36 = vpop.permute.xlu1 %7345  ;;  %v6478_v44 = vpack.c.bf16 %v4506_v31, %v4504_v22 }
 0x8fa   : > { %v7348_v46 = vunpack.i.h.bf16 %v7346_v36  ;;  %v7347_v35 = vunpack.i.l.bf16 %v7346_v36 }
 0x8fb   : > { %7640 = vrot.lane.b32.xlu1 %v9792_v25, %s10802_s1  ;;  %7645 = vrot.lane.b32.xlu0 %v9798_v16, %s10802_s1 }
 0x8fc   : > { %v4505_v18 = vsel %vm652_vm4, %v7348_v46, %v7357_v24  ;;  %v4503_v40 = vsel %vm652_vm4, %v7347_v35, %v7337_v14  ;;  %6479 = vmatprep.subr.bf16.mxu0 %v6478_v44 }
 0x8fd   : > { %v7366_v6 = vpop.permute.xlu0 %7365  ;;  %v9967_v32 = vpop.permute.xlu1 %7350  ;;  %v6480_v39 = vpack.c.bf16 %v4505_v18, %v4503_v40 }
 0x8fe   : > { %v7368_v25 = vunpack.i.h.bf16 %v7366_v6  ;;  %v7367_v27 = vunpack.i.l.bf16 %v7366_v6  ;;  %v7208_v6 = vunpack.i.h.bf16 %v9840_v63 }
 0x8ff   : > { %7650 = vrot.lane.b32.xlu1 %v9804_v52, %s10802_s1  ;;  %3249 = vperm.xlu0 %6693, %v3134_v48  }
 0x900   : > { %6481 = vmatpush1.bf16.msra.mxu0 %v6480_v39  ;;  %v4508_v37 = vsel %vm652_vm4, %v7367_v27, %v7368_v25  ;;  %v7207_v39 = vunpack.i.l.bf16 %v9840_v63  ;;  %v7198_v63 = vunpack.i.h.bf16 %v9854_v47 }
 0x901   : > { %v9971_v16 = vpop.permute.xlu0 %7370  ;;  %v7386_v4 = vpop.permute.xlu1 %7385 }
 0x902   : > { %v7388_v12 = vunpack.i.h.bf16 %v7386_v4  ;;  %v7387_v7 = vunpack.i.l.bf16 %v7386_v4  ;;  %v7183_v4 = vunpack.i.h.bf16 %v9830_v21 }
 0x903   : > { %3241 = vrot.lane.b32.xlu0 %v9490_v30, %s10795_s18  ;;  %3239 = vrot.lane.b32.xlu1 %v9488_v28, %s10795_s18 }
 0x904   : > { %v4510_v29 = vsel %vm652_vm4, %v7387_v7, %v7388_v12  ;;  %v7182_v12 = vunpack.i.l.bf16 %v9830_v21  ;;  %v7243_v21 = vunpack.i.h.bf16 %v9868_v45 }
 0x905   : > { %v7376_v52 = vpop.permute.xlu0 %7375  ;;  %v9979_v14 = vpop.permute.xlu1 %7390  ;;  %v6482_v60 = vpack.c.bf16 %v4510_v29, %v4508_v37 }
 0x906   : > { %v7378_v43 = vunpack.i.h.bf16 %v7376_v52  ;;  %v7377_v24 = vunpack.i.l.bf16 %v7376_v52  ;;  %v7197_v52 = vunpack.i.l.bf16 %v9854_v47  ;;  %v7223_v47 = vunpack.i.h.bf16 %v9860_v61 }
 0x907   : > { %3264 = vrot.lane.b32.xlu0 %v9494_v53, %s10796_s16  ;;  %3262 = vrot.lane.b32.xlu1 %v9492_v11, %s10796_s16 }
 0x908   : > { %v4507_v22 = vsel %vm652_vm4, %v7377_v24, %v7367_v27  ;;  %v4509_v31 = vsel %vm652_vm4, %v7378_v43, %v7387_v7  ;;  %6483 = vmatprep.subr.bf16.mxu0 %v6482_v60  ;;  %v7242_v43 = vunpack.i.l.bf16 %v9868_v45  ;;  %v4788_v45 = vsel %vm742_vm11, %v7198_v63, %v7207_v39 }
 0x909   : > { %v9987_v36 = vpop.permute.xlu0 %7380  ;;  %v7396_v44 = vpop.permute.xlu1 %7395  ;;  %v6484_v46 = vpack.c.bf16 %v4509_v31, %v4507_v22  ;;  %v7222_v31 = vunpack.i.l.bf16 %v9860_v61  ;;  %v7263_v63 = vunpack.i.h.bf16 %v9898_v0 }
 0x90a   : > { %v7398_v35 = vunpack.i.h.bf16 %v7396_v44  ;;  %v7397_v53 = vunpack.i.l.bf16 %v7396_v44 }
 0x90b   : > { %3372 = vrot.lane.b32.xlu0 %v9498_v15, %s10795_s18  ;;  %3370 = vrot.lane.b32.xlu1 %v9496_v34, %s10795_s18 }
 0x90c   : > { %6485 = vmatpush1.bf16.msra.mxu0 %v6484_v46  ;;  %v4512_v25 = vsel %vm652_vm4, %v7397_v53, %v7398_v35 }
 0x90d   : > { %v7416_v18 = vpop.permute.xlu0 %7415  ;;  %v9993_v11 = vpop.permute.xlu1 %7400 }
 0x90e   : > { %v7418_v40 = vunpack.i.h.bf16 %v7416_v18  ;;  %v7417_v48 = vunpack.i.l.bf16 %v7416_v18  ;;  %v4787_v18 = vsel %vm742_vm11, %v7182_v12, %v7183_v4  ;;  %v7252_v4 = vunpack.i.l.bf16 %v9882_v62 }
 0x90f   : > { %3390 = vrot.lane.b32.xlu0 %v9502_v55, %s10796_s16  ;;  %3388 = vrot.lane.b32.xlu1 %v9500_v23, %s10796_s16  ;;  %v4789_v23 = vsel %vm742_vm11, %v7207_v39, %v7208_v6  ;;  %v7273_v6 = vunpack.i.h.bf16 %v9890_v26  ;;  %v6201_v39 = vld [vmem:[%s10759_s10 + $0x28] sm:$0xff] }
 0x910   : > { %v4514_v27 = vsel %vm652_vm4, %v7417_v48, %v7418_v40  ;;  %v4786_v40 = vsel %vm742_vm11, %v7197_v52, %v7182_v12  ;;  %v6490_v61 = vpack.c.bf16 %v4789_v23, %v4787_v18  ;;  %v7262_v52 = vunpack.i.l.bf16 %v9898_v0 }
 0x911   : > { %v10005_v7 = vpop.permute.xlu0 %7420  ;;  %v7406_v37 = vpop.permute.xlu1 %7405  ;;  %v6486_v29 = vpack.c.bf16 %v4514_v27, %v4512_v25  ;;  %v7272_v25 = vunpack.i.l.bf16 %v9890_v26  ;;  %v4793_v27 = vsel %vm742_vm11, %v7242_v43, %v7243_v21  ;;  %v6492_v12 = vpack.c.bf16 %v4788_v45, %v4786_v40  ;;  %v6202_v21 = vld [vmem:[%s10759_s10 + $0x30] sm:$0xff] }
 0x912   : > { %v7408_v55 = vunpack.i.h.bf16 %v7406_v37  ;;  %v7407_v60 = vunpack.i.l.bf16 %v7406_v37  ;;  %v4791_v37 = vsel %vm742_vm11, %v7222_v31, %v7223_v47  ;;  %v10803_v23 = vmov 0.0  }
 0x913   : > { %3498 = vrot.lane.b32.xlu0 %v9506_v5, %s10795_s18  ;;  %3496 = vrot.lane.b32.xlu1 %v9504_v42, %s10795_s18  ;;  %v4796_v18 = vsel %vm742_vm11, %v7263_v63, %v7272_v25  ;;  %v7293_v40 = vunpack.i.h.bf16 %v9920_v54  ;;  %v7292_v45 = vunpack.i.l.bf16 %v9920_v54  ;;  %v7363_v63 = vunpack.i.h.bf16 %v9956_v56 }
 0x914   : > { %v4513_v24 = vsel %vm652_vm4, %v7408_v55, %v7417_v48  ;;  %v4511_v22 = vsel %vm652_vm4, %v7407_v60, %v7397_v53  ;;  %6487 = vmatprep.subr.bf16.mxu0 %v6486_v29  ;;  %v7233_v48 = vunpack.i.h.bf16 %v9876_v20  ;;  %v7232_v53 = vunpack.i.l.bf16 %v9876_v20 }
 0x915   : > { %v10020_v44 = vpop.permute.xlu0 %7430  ;;  %v10022_v46 = vpop.permute.xlu1 %7410  ;;  %v6488_v35 = vpack.c.bf16 %v4513_v24, %v4511_v22  ;;  %v7253_v20 = vunpack.i.h.bf16 %v9882_v62  ;;  %v7303_v55 = vunpack.i.h.bf16 %v9912_v49  ;;  %v7302_v62 = vunpack.i.l.bf16 %v9912_v49 }
 0x916   : > { %v4792_v26 = vsel %vm742_vm11, %v7233_v48, %v7242_v43  ;;  %v4790_v29 = vsel %vm742_vm11, %v7232_v53, %v7222_v31  ;;  %v6494_v60 = vpack.c.bf16 %v4793_v27, %v4791_v37  ;;  %v4797_v43 = vsel %vm742_vm11, %v7272_v25, %v7273_v6  ;;  %v6203_v6 = vld [vmem:[%s10759_s10 + $0x38] sm:$0xff] }
 0x917   : > { %3516 = vrot.lane.b32.xlu0 %v9510_v10, %s10796_s16  ;;  %3514 = vrot.lane.b32.xlu1 %v9508_v33, %s10796_s16  ;;  %v7283_v24 = vunpack.i.h.bf16 %v9904_v57  ;;  %v7282_v22 = vunpack.i.l.bf16 %v9904_v57  ;;  %v6496_v49 = vpack.c.bf16 %v4792_v26, %v4790_v29  ;;  %v4795_v31 = vsel %vm742_vm11, %v7252_v4, %v7253_v20 }
 0x918   : > { %6489 = vmatpush1.bf16.msra.mxu0 %v6488_v35  ;;  %v4794_v35 = vsel %vm742_vm11, %v7262_v52, %v7252_v4  ;;  %v7333_v48 = vunpack.i.h.bf16 %v9934_v13  ;;  %v7332_v57 = vunpack.i.l.bf16 %v9934_v13  ;;  %v6498_v53 = vpack.c.bf16 %v4797_v43, %v4795_v31 }
 0x919   : > { %6491 = vmatprep.subr.bf16.mxu0 %v6490_v61  ;;  %v10041_v10 = vpop.permute.xlu0 %7440  ;;  %v10043_v33 = vpop.permute.xlu1 %7425  ;;  %v4801_v61 = vsel %vm742_vm11, %v7302_v62, %v7303_v55  ;;  %v7313_v25 = vunpack.i.h.bf16 %v9926_v1  ;;  %v6500_v13 = vpack.c.bf16 %v4796_v18, %v4794_v35  ;;  %v4799_v20 = vsel %vm742_vm11, %v7282_v22, %v7283_v24  ;;  %v6204_v55 = vld [vmem:[%s10759_s10 + $0x40] sm:$0xff] }
 0x91a   : > { %v4800_v4 = vsel %vm742_vm11, %v7293_v40, %v7302_v62  ;;  %v7322_v37 = vunpack.i.l.bf16 %v9942_v41  ;;  %v6502_v26 = vpack.c.bf16 %v4801_v61, %v4799_v20  ;;  %v7323_v29 = vunpack.i.h.bf16 %v9942_v41 }
 0x91b   : > { %4612 = vmatmul.mubr.f32.vlgmr.msra.gmra.mrb[54].mxu0 %v6201_v39  ;;  %v7312_v39 = vunpack.i.l.bf16 %v9926_v1  ;;  %v7362_v1 = vunpack.i.l.bf16 %v9956_v56  ;;  %v4805_v52 = vsel %vm742_vm11, %v7332_v57, %v7333_v48  ;;  %v7343_v62 = vunpack.i.h.bf16 %v9948_v2 }
 0x91c   : > { %6493 = vmatpush1.bf16.msra.mxu0 %v6492_v12  ;;  %4617 = vmatprep.mubr.f32.mxu0 %v10803_v23  ;;  %v4798_v12 = vsel %vm742_vm11, %v7292_v45, %v7282_v22  ;;  %v7353_v31 = vunpack.i.h.bf16 %v9967_v32  ;;  %v7352_v35 = vunpack.i.l.bf16 %v9967_v32  ;;  %v7393_v18 = vunpack.i.h.bf16 %v9979_v14  ;;  %v6205_v45 = vld [vmem:[%s10759_s10 + $0x48] sm:$0xff] }
 0x91d   : > { %6495 = vmatprep.subr.bf16.mxu0 %v6494_v60  ;;  %v10059_v0 = vpop.permute.xlu0 %7450  ;;  %v10061_v47 = vpop.permute.xlu1 %7435  ;;  %v7342_v60 = vunpack.i.l.bf16 %v9948_v2  ;;  %v4803_v56 = vsel %vm742_vm11, %v7312_v39, %v7313_v25  ;;  %v4802_v43 = vsel %vm742_vm11, %v7322_v37, %v7312_v39  ;;  %v6504_v24 = vpack.c.bf16 %v4800_v4, %v4798_v12 }
 0x91e   : > { %v6506_v22 = vpack.c.bf16 %v4805_v52, %v4803_v56  ;;  %v4809_v2 = vsel %vm742_vm11, %v7362_v1, %v7363_v63  ;;  %v7392_v40 = vunpack.i.l.bf16 %v9979_v14  ;;  %v7372_v61 = vunpack.i.l.bf16 %v9971_v16 }
 0x91f   : > { %4618 = vmatmul.mubr.f32.gmra.mrb[56].mxu0 %v6202_v21  ;;  %v4807_v32 = vsel %vm742_vm11, %v7342_v60, %v7343_v62  ;;  %v4808_v25 = vsel %vm742_vm11, %v7353_v31, %v7362_v1  ;;  %v4806_v39 = vsel %vm742_vm11, %v7352_v35, %v7342_v60  ;;  %v7382_v20 = vunpack.i.l.bf16 %v9987_v36 }
 0x920   : > { %6497 = vmatpush1.bf16.msra.mxu0 %v6496_v49  ;;  %4623 = vmatprep.mubr.f32.mxu0 %v10803_v23  ;;  %v4804_v49 = vsel %vm742_vm11, %v7323_v29, %v7332_v57  ;;  %v6510_v14 = vpack.c.bf16 %v4809_v2, %v4807_v32  ;;  %v7403_v4 = vunpack.i.h.bf16 %v9993_v11  ;;  %v7402_v12 = vunpack.i.l.bf16 %v9993_v11 }
 0x921   : > { %6499 = vmatprep.subr.bf16.mxu0 %v6498_v53  ;;  %v10077_v54 = vpop.permute.xlu0 %7460  ;;  %v10079_v27 = vpop.permute.xlu1 %7445  ;;  %v7373_v53 = vunpack.i.h.bf16 %v9971_v16  ;;  %v4813_v37 = vsel %vm742_vm11, %v7392_v40, %v7393_v18  ;;  %v6512_v1 = vpack.c.bf16 %v4808_v25, %v4806_v39  ;;  %v7213_v60 = vunpack.i.h.bf16 %v9846_v17 }
 0x922   : > { %v7212_v56 = vunpack.i.l.bf16 %v9846_v17  ;;  %v7412_v31 = vunpack.i.l.bf16 %v10022_v46  ;;  %v7423_v17 = vunpack.i.h.bf16 %v10005_v7  ;;  %v7432_v39 = vunpack.i.l.bf16 %v10020_v44 }
 0x923   : > { %4624 = vmatmul.mubr.f32.gmra.mrb[48].mxu0 %v6203_v6  ;;  %v6508_v6 = vpack.c.bf16 %v4804_v49, %v4802_v43  ;;  %v4811_v52 = vsel %vm742_vm11, %v7372_v61, %v7373_v53  ;;  %v4815_v43 = vsel %vm742_vm11, %v7402_v12, %v7403_v4  ;;  %v7413_v49 = vunpack.i.h.bf16 %v10022_v46 }
 0x924   : > { %6501 = vmatpush1.bf16.msra.mxu0 %v6500_v13  ;;  %4629 = vmatprep.mubr.f32.mxu0 %v10803_v23  ;;  %v7383_v13 = vunpack.i.h.bf16 %v9987_v36  ;;  %v7188_v36 = vunpack.i.h.bf16 %v9838_v3  ;;  %v6514_v62 = vpack.c.bf16 %v4813_v37, %v4811_v52  ;;  %v7428_v53 = vunpack.i.h.bf16 %v10043_v33 }
 0x925   : > { %6503 = vmatprep.subr.bf16.mxu0 %v6502_v26  ;;  %v10095_v41 = vpop.permute.xlu0 %7470  ;;  %v10097_v21 = vpop.permute.xlu1 %7455  ;;  %v5092_v46 = vsel %vm825_vm3, %v7212_v56, %v7213_v60  ;;  %v5091_v37 = vsel %vm825_vm3, %v7423_v17, %v7212_v56 }
 0x926   : > { %v4812_v11 = vsel %vm742_vm11, %v7383_v13, %v7392_v40  ;;  %v7438_v13 = vunpack.i.h.bf16 %v10061_v47  ;;  %v7458_v60 = vunpack.i.h.bf16 %v10097_v21  ;;  %v7457_v56 = vunpack.i.l.bf16 %v10097_v21 }
 0x927   : > { %4630 = vmatmul.mubr.f32.gmra.mrb[58].mxu0 %v6204_v55  ;;  %v4810_v55 = vsel %vm742_vm11, %v7382_v20, %v7372_v61  ;;  %v7433_v61 = vunpack.i.h.bf16 %v10020_v44  ;;  %v6206_v44 = vld [vmem:[%s10759_s10 + $0x50] sm:$0xff] }
 0x928   : > { %6505 = vmatpush1.bf16.msra.mxu0 %v6504_v24  ;;  %4635 = vmatprep.mubr.f32.mxu0 %v10803_v23  ;;  %v6516_v40 = vpack.c.bf16 %v4812_v11, %v4810_v55  ;;  %v5095_v55 = vsel %vm825_vm3, %v7438_v13, %v7432_v39 }
 0x929   : > { %6507 = vmatprep.subr.bf16.mxu0 %v6506_v22  ;;  %v10111_v48 = vpop.permute.xlu0 %7480  ;;  %v10113_v57 = vpop.permute.xlu1 %7465  ;;  %v7187_v22 = vunpack.i.l.bf16 %v9838_v3  ;;  %v7427_v3 = vunpack.i.l.bf16 %v10043_v33  ;;  %v7437_v33 = vunpack.i.l.bf16 %v10061_v47 }
 0x92b   : > { %4636 = vmatmul.mubr.f32.gmra.mrb[60].mxu0 %v6205_v45  ;;  %v7422_v45 = vunpack.i.l.bf16 %v10005_v7  ;;  %v5090_v7 = vsel %vm825_vm3, %v7187_v22, %v7188_v36  ;;  %v5094_v47 = vsel %vm825_vm3, %v7427_v3, %v7428_v53  ;;  %v7467_v53 = vunpack.i.l.bf16 %v10113_v57 }
 0x92c   : > { %6509 = vmatpush1.bf16.msra.mxu0 %v6508_v6  ;;  %4914 = vmatprep.mubr.f32.mxu0 %v10803_v23  ;;  %v4814_v6 = vsel %vm742_vm11, %v7412_v31, %v7402_v12  ;;  %v7443_v12 = vunpack.i.h.bf16 %v10041_v10 }
 0x92d   : > { %6511 = vmatprep.subr.bf16.mxu0 %v6510_v14  ;;  %v7491_v16 = vpop.permute.xlu0 %7490  ;;  %v10126_v26 = vpop.permute.xlu1 %7475  ;;  %v5089_v4 = vsel %vm825_vm3, %v7422_v45, %v7187_v22  ;;  %v6207_v22 = vld [vmem:[%s10759_s10 + $0x58] sm:$0xff] }
 0x92e   : > { %v7493_v29 = vunpack.i.h.bf16 %v7491_v16  ;;  %v7492_v63 = vunpack.i.l.bf16 %v7491_v16  ;;  %v6522_v16 = vpack.c.bf16 %v5092_v46, %v5090_v7  ;;  %v6524_v11 = vpack.c.bf16 %v5091_v37, %v5089_v4  ;;  %v6208_v7 = vld [vmem:[%s10759_s10 + $0x60] sm:$0xff] }
 0x92f   : > { %v7477_v46 = vunpack.i.l.bf16 %v10126_v26  ;;  %v5101_v37 = vsel %vm825_vm3, %v7467_v53, %v7457_v56 }
 0x930   : > { %6513 = vmatpush1.bf16.msra.mxu0 %v6512_v1  ;;  %v4817_v24 = vsel %vm742_vm11, %v7492_v63, %v7493_v29  ;;  %v4816_v32 = vsel %vm742_vm11, %v7413_v49, %v7492_v63  ;;  %v7442_v29 = vunpack.i.l.bf16 %v10041_v10  ;;  %v7448_v63 = vunpack.i.h.bf16 %v10079_v27 }
 0x931   : > { %6515 = vmatprep.subr.bf16.mxu0 %v6514_v62  ;;  %v10139_v35 = vpop.permute.xlu0 %7495  ;;  %v10141_v2 = vpop.permute.xlu1 %7485  ;;  %v6518_v18 = vpack.c.bf16 %v4817_v24, %v4815_v43  ;;  %v6520_v20 = vpack.c.bf16 %v4816_v32, %v4814_v6  ;;  %v7447_v1 = vunpack.i.l.bf16 %v10079_v27  ;;  %v5093_v10 = vsel %vm825_vm3, %v7437_v33, %v7427_v3 }
 0x932   : > { %v5096_v62 = vsel %vm825_vm3, %v7432_v39, %v7433_v61  ;;  %v7453_v27 = vunpack.i.h.bf16 %v10059_v0  ;;  %v7452_v24 = vunpack.i.l.bf16 %v10059_v0  ;;  %v5098_v49 = vsel %vm825_vm3, %v7442_v29, %v7443_v12 }
 0x933   : > { %v6526_v43 = vpack.c.bf16 %v5096_v62, %v5094_v47  ;;  %v5100_v31 = vsel %vm825_vm3, %v7447_v1, %v7448_v63  ;;  %v6528_v45 = vpack.c.bf16 %v5095_v55, %v5093_v10  ;;  %v7468_v32 = vunpack.i.h.bf16 %v10113_v57  ;;  %v6209_v47 = vld [vmem:[%s10759_s10 + $0x68] sm:$0xff] }
 0x934   : > { %6517 = vmatpush1.bf16.msra.mxu0 %v6516_v40  ;;  %v7462_v40 = vunpack.i.l.bf16 %v10077_v54  ;;  %v5099_v21 = vsel %vm825_vm3, %v7453_v27, %v7447_v1  ;;  %v7478_v3 = vunpack.i.h.bf16 %v10126_v26  ;;  %v6530_v61 = vpack.c.bf16 %v5100_v31, %v5098_v49  ;;  %v6210_v49 = vld [vmem:[%s10759_s10 + $0x70] sm:$0xff] }
 0x935   : > { %6519 = vmatprep.subr.bf16.mxu0 %v6518_v18  ;;  %v10151_v14 = vpop.permute.xlu0 %7505  ;;  %v10153_v25 = vpop.permute.xlu1 %7500  ;;  %v7463_v18 = vunpack.i.h.bf16 %v10077_v54  ;;  %v5102_v54 = vsel %vm825_vm3, %v7457_v56, %v7458_v60  ;;  %v5097_v6 = vsel %vm825_vm3, %v7452_v24, %v7442_v29  ;;  %v7473_v39 = vunpack.i.h.bf16 %v10095_v41 }
 0x936   : > { %v7472_v57 = vunpack.i.l.bf16 %v10095_v41  ;;  %v6532_v33 = vpack.c.bf16 %v5099_v21, %v5097_v6  ;;  %v5103_v4 = vsel %vm825_vm3, %v7468_v32, %v7462_v40  ;;  %v7498_v29 = vunpack.i.h.bf16 %v10139_v35 }
 0x937   : > { %v7497_v63 = vunpack.i.l.bf16 %v10139_v35  ;;  %v7488_v41 = vunpack.i.h.bf16 %v10141_v2  ;;  %v7487_v1 = vunpack.i.l.bf16 %v10141_v2  ;;  %v7482_v55 = vunpack.i.l.bf16 %v10111_v48 }
 0x938   : > { %6521 = vmatpush1.bf16.msra.mxu0 %v6520_v20  ;;  %v5104_v20 = vsel %vm825_vm3, %v7462_v40, %v7463_v18  ;;  %v6536_v62 = vpack.c.bf16 %v5103_v4, %v5101_v37  ;;  %v7503_v60 = vunpack.i.h.bf16 %v10153_v25  ;;  %v7502_v56 = vunpack.i.l.bf16 %v10153_v25 }
 0x939   : > { %6523 = vmatprep.subr.bf16.mxu0 %v6522_v16  ;;  %v10169_v52 = vpop.permute.xlu0 %7515  ;;  %v10171_v36 = vpop.permute.xlu1 %7510  ;;  %v6534_v12 = vpack.c.bf16 %v5104_v20, %v5102_v54  ;;  %v5108_v16 = vsel %vm825_vm3, %v7477_v46, %v7478_v3  ;;  %v5105_v31 = vsel %vm825_vm3, %v7482_v55, %v7472_v57  ;;  %v7508_v40 = vunpack.i.h.bf16 %v10151_v14 }
 0x93a   : > { %v7513_v24 = vunpack.i.h.bf16 %v10171_v36  ;;  %v7507_v21 = vunpack.i.l.bf16 %v10151_v14  ;;  %v5111_v32 = vsel %vm825_vm3, %v7503_v60, %v7497_v63  ;;  %v5109_v53 = vsel %vm825_vm3, %v7502_v56, %v7487_v1 }
 0x93b   : > { %4915 = vmatmul.mubr.f32.vlgmr.msra.gmra.mrb[62].mxu0 %v6206_v44  ;;  %v7483_v44 = vunpack.i.h.bf16 %v10111_v48  ;;  %v5112_v48 = vsel %vm825_vm3, %v7497_v63, %v7498_v29  ;;  %v7518_v3 = vunpack.i.h.bf16 %v10169_v52 }
 0x93c   : > { %6525 = vmatpush1.bf16.msra.mxu0 %v6524_v11  ;;  %4920 = vmatprep.mubr.f32.mxu0 %v10803_v23  ;;  %v5106_v11 = vsel %vm825_vm3, %v7472_v57, %v7473_v39  ;;  %v5114_v20 = vsel %vm825_vm3, %v7507_v21, %v7508_v40 }
 0x93d   : > { %6527 = vmatprep.subr.bf16.mxu0 %v6526_v43  ;;  %v10189_v17 = vpop.permute.xlu0 %7530  ;;  %v10191_v0 = vpop.permute.xlu1 %7520  ;;  %v5107_v2 = vsel %vm825_vm3, %v7483_v44, %v7477_v46  ;;  %v6538_v27 = vpack.c.bf16 %v5108_v16, %v5106_v11  ;;  %v5110_v43 = vsel %vm825_vm3, %v7487_v1, %v7488_v41  ;;  %v7517_v46 = vunpack.i.l.bf16 %v10169_v52 }
 0x93e   : > { %v7522_v54 = vunpack.i.l.bf16 %v10191_v0  ;;  %v7533_v37 = vunpack.i.h.bf16 %v10189_v17  ;;  %v7532_v1 = vunpack.i.l.bf16 %v10189_v17 }
 0x93f   : > { %4921 = vmatmul.mubr.f32.gmra.mrb[64].mxu0 %v6207_v22  ;;  %v7512_v22 = vunpack.i.l.bf16 %v10171_v36  ;;  %v6542_v36 = vpack.c.bf16 %v5112_v48, %v5110_v43  ;;  %v5113_v52 = vsel %vm825_vm3, %v7517_v46, %v7507_v21 }
 0x940   : > { %6529 = vmatpush1.bf16.msra.mxu0 %v6528_v45  ;;  %4926 = vmatprep.mubr.f32.mxu0 %v10803_v23  ;;  %v6540_v45 = vpack.c.bf16 %v5107_v2, %v5105_v31 }
 0x941   : > { %6531 = vmatprep.subr.bf16.mxu0 %v6530_v61  ;;  %v10205_v13 = vpop.permute.xlu0 %7540  ;;  %v10207_v26 = vpop.permute.xlu1 %7525  ;;  %v7523_v61 = vunpack.i.h.bf16 %v10191_v0  ;;  %v5116_v6 = vsel %vm825_vm3, %v7512_v22, %v7513_v24  ;;  %v5115_v4 = vsel %vm825_vm3, %v7518_v3, %v7512_v22 }
 0x942   : > { %v6546_v0 = vpack.c.bf16 %v5116_v6, %v5114_v20  ;;  %v7528_v44 = vunpack.i.h.bf16 %v10207_v26  ;;  %v7542_v56 = vunpack.i.l.bf16 %v10205_v13 }
 0x943   : > { %4927 = vmatmul.mubr.f32.gmra.mrb[48].mxu0 %v6208_v7  ;;  %v5118_v29 = vsel %vm825_vm3, %v7522_v54, %v7523_v61 }
 0x944   : > { %6533 = vmatpush1.bf16.msra.mxu0 %v6532_v33  ;;  %4932 = vmatprep.mubr.f32.mxu0 %v10803_v23  ;;  %v6544_v33 = vpack.c.bf16 %v5111_v32, %v5109_v53  ;;  %v5392_v61 = vsel %vm915_vm5, %v7542_v56, %v7532_v1 }
 0x945   : > { %6535 = vmatprep.subr.bf16.mxu0 %v6534_v12  ;;  %v10223_v10 = vpop.permute.xlu0 %7550  ;;  %v10225_v35 = vpop.permute.xlu1 %7535 }
 0x946   : > { %v7538_v12 = vunpack.i.h.bf16 %v10225_v35  ;;  %v7537_v16 = vunpack.i.l.bf16 %v10225_v35  ;;  %v7543_v35 = vunpack.i.h.bf16 %v10205_v13  ;;  %v7553_v22 = vunpack.i.h.bf16 %v10223_v10 }
 0x947   : > { %4933 = vmatmul.mubr.f32.gmra.mrb[66].mxu0 %v6209_v47  ;;  %v7527_v47 = vunpack.i.l.bf16 %v10207_v26  ;;  %v5393_v13 = vsel %vm915_vm5, %v7532_v1, %v7533_v37  ;;  %v6212_v1 = vld [vmem:[%s10759_s10 + $0x80] sm:$0xff] }
 0x948   : > { %6537 = vmatpush1.bf16.msra.mxu0 %v6536_v62  ;;  %4938 = vmatprep.mubr.f32.mxu0 %v10803_v23  ;;  %v6548_v62 = vpack.c.bf16 %v5115_v4, %v5113_v52  ;;  %v5395_v26 = vsel %vm915_vm5, %v7537_v16, %v7538_v12 }
 0x949   : > { %6539 = vmatprep.subr.bf16.mxu0 %v6538_v27  ;;  %v10240_v25 = vpop.permute.xlu0 %7560  ;;  %v10242_v18 = vpop.permute.xlu1 %7545  ;;  %v5117_v24 = vsel %vm825_vm3, %v7527_v47, %v7522_v54  ;;  %v6554_v46 = vpack.c.bf16 %v5395_v26, %v5393_v13 }
 0x94a   : > { %v7548_v43 = vunpack.i.h.bf16 %v10242_v18  ;;  %v7547_v17 = vunpack.i.l.bf16 %v10242_v18  ;;  %v5394_v18 = vsel %vm915_vm5, %v7543_v35, %v7537_v16  ;;  %v7563_v6 = vunpack.i.h.bf16 %v10240_v25 }
 0x94b   : > { %4939 = vmatmul.mubr.f32.gmra.mrb[68].mxu0 %v6210_v49  ;;  %v7552_v49 = vunpack.i.l.bf16 %v10223_v10  ;;  %v6211_v10 = vld [vmem:[%s10759_s10 + $0x78] sm:$0xff] }
 0x94c   : > { %6541 = vmatpush1.bf16.msra.mxu0 %v6540_v45  ;;  %5217 = vmatprep.mubr.f32.mxu0 %v10803_v23  ;;  %v5397_v54 = vsel %vm915_vm5, %v7547_v17, %v7548_v43 }
 0x94d   : > { %6543 = vmatprep.subr.bf16.mxu0 %v6542_v36  ;;  %v7571_v14 = vpop.permute.xlu0 %7570  ;;  %v7556_v7 = vpop.permute.xlu1 %7555 }
 0x94e   : > { %v7573_v39 = vunpack.i.h.bf16 %v7571_v14  ;;  %v7572_v57 = vunpack.i.l.bf16 %v7571_v14  ;;  %v7558_v45 = vunpack.i.h.bf16 %v7556_v7  ;;  %v7557_v36 = vunpack.i.l.bf16 %v7556_v7 }
 0x94f   : > { %v7562_v14 = vunpack.i.l.bf16 %v10240_v25 }
 0x950   : > { %6545 = vmatpush1.bf16.msra.mxu0 %v6544_v33  ;;  %v5120_v63 = vsel %vm825_vm3, %v7572_v57, %v7573_v39  ;;  %v10262_v41 = vpop.f32.mrb[44].mxu0  ;;  %v5119_v60 = vsel %vm825_vm3, %v7528_v44, %v7572_v57  ;;  %v6556_v57 = vpack.c.bf16 %v5394_v18, %v5392_v61  ;;  %v5399_v33 = vsel %vm915_vm5, %v7552_v49, %v7553_v22  ;;  %v6213_v22 = vld [vmem:[%s10759_s10 + $0x88] sm:$0xff] }
 0x951   : > { %6547 = vmatprep.subr.bf16.mxu0 %v6546_v0  ;;  %v7576_v55 = vpop.permute.xlu0 %7575  ;;  %v7566_v11 = vpop.permute.xlu1 %7565  ;;  %v6550_v2 = vpack.c.bf16 %v5120_v63, %v5118_v29  ;;  %v6552_v21 = vpack.c.bf16 %v5119_v60, %v5117_v24  ;;  %v5398_v20 = vsel %vm915_vm5, %v7558_v45, %v7552_v49  ;;  %v5396_v52 = vsel %vm915_vm5, %v7557_v36, %v7547_v17 }
 0x952   : > { %v10267_v27 = vpop.f32.mrb[45].mxu0  ;;  %v7568_v53 = vunpack.i.h.bf16 %v7566_v11  ;;  %v7567_v3 = vunpack.i.l.bf16 %v7566_v11  ;;  %v7578_v4 = vunpack.i.h.bf16 %v7576_v55  ;;  %v7577_v37 = vunpack.i.l.bf16 %v7576_v55 }
 0x953   : > { %v6558_v0 = vpack.c.bf16 %v5399_v33, %v5397_v54  ;;  %v6560_v11 = vpack.c.bf16 %v5398_v20, %v5396_v52 }
 0x954   : > { %6549 = vmatpush1.bf16.msra.mxu0 %v6548_v62  ;;  %v10275_v48 = vpop.f32.mrb[46].mxu0  ;;  %v5403_v12 = vsel %vm915_vm5, %v7567_v3, %v7568_v53  ;;  %v5400_v62 = vsel %vm915_vm5, %v7577_v37, %v7562_v14  ;;  %v5402_v35 = vsel %vm915_vm5, %v7578_v4, %v7567_v3 }
 0x955   : > { %6551 = vmatprep.subr.bf16.mxu0 %v6550_v2  ;;  %v10280_v31 = vpop.permute.xlu0 %7585  ;;  %v10282_v40 = vpop.permute.xlu1 %7580  ;;  %v5401_v2 = vsel %vm915_vm5, %v7562_v14, %v7563_v6  ;;  %v6564_v13 = vpack.c.bf16 %v5402_v35, %v5400_v62 }
 0x956   : > { %v10286_v32 = vpop.f32.mrb[47].mxu0  ;;  %v7588_v16 = vunpack.i.h.bf16 %v10280_v31  ;;  %v7587_v25 = vunpack.i.l.bf16 %v10280_v31  ;;  %v7583_v29 = vunpack.i.h.bf16 %v10282_v40  ;;  %v7582_v63 = vunpack.i.l.bf16 %v10282_v40 }
 0x957   : > { %v6562_v24 = vpack.c.bf16 %v5403_v12, %v5401_v2 }
 0x958   : > { %6553 = vmatpush1.bf16.msra.mxu0 %v6552_v21  ;;  %v5405_v49 = vsel %vm915_vm5, %v7582_v63, %v7583_v29  ;;  %v5407_v31 = vsel %vm915_vm5, %v7587_v25, %v7588_v16 }
 0x959   : > { %6555 = vmatprep.subr.bf16.mxu0 %v6554_v46  ;;  %v10295_v7 = vpop.permute.xlu0 %7595  ;;  %v7591_v39 = vpop.permute.xlu1 %7590  ;;  %v6566_v54 = vpack.c.bf16 %v5407_v31, %v5405_v49 }
 0x95a   : > { %v7593_v60 = vunpack.i.h.bf16 %v7591_v39  ;;  %v7592_v56 = vunpack.i.l.bf16 %v7591_v39  ;;  %v7598_v18 = vunpack.i.h.bf16 %v10295_v7  ;;  %v7597_v21 = vunpack.i.l.bf16 %v10295_v7  ;;  %v6214_v7 = vld [vmem:[%s10759_s10 + $0x90] sm:$0xff] }
 0x95b   : > { %5218 = vmatmul.mubr.f32.vlgmr.msra.gmra.mrb[70].mxu0 %v6211_v10 }
 0x95c   : > { %6557 = vmatpush1.bf16.msra.mxu0 %v6556_v57  ;;  %5223 = vmatprep.mubr.f32.mxu0 %v10803_v23  ;;  %v10309_v44 = vpop.f32.mrb[50].mxu0  ;;  %v5406_v53 = vsel %vm915_vm5, %v7593_v60, %v7587_v25  ;;  %v5404_v3 = vsel %vm915_vm5, %v7592_v56, %v7582_v63  ;;  %v5409_v37 = vsel %vm915_vm5, %v7597_v21, %v7598_v18 }
 0x95d   : > { %6559 = vmatprep.subr.bf16.mxu0 %v6558_v0  ;;  %v7606_v47 = vpop.permute.xlu0 %7605  ;;  %v7601_v55 = vpop.permute.xlu1 %7600  ;;  %v6568_v20 = vpack.c.bf16 %v5406_v53, %v5404_v3 }
 0x95e   : > { %v10314_v43 = vpop.f32.mrb[51].mxu0  ;;  %v7603_v17 = vunpack.i.h.bf16 %v7601_v55  ;;  %v7602_v26 = vunpack.i.l.bf16 %v7601_v55  ;;  %v7608_v46 = vunpack.i.h.bf16 %v7606_v47  ;;  %v7607_v61 = vunpack.i.l.bf16 %v7606_v47  ;;  %v6215_v47 = vld [vmem:[%s10759_s10 + $0x98] sm:$0xff] }
 0x95f   : > { %5224 = vmatmul.mubr.f32.gmra.mrb[72].mxu0 %v6212_v1 }
 0x960   : > { %6561 = vmatpush1.bf16.msra.mxu0 %v6560_v11  ;;  %5229 = vmatprep.mubr.f32.mxu0 %v10803_v23  ;;  %v10322_v40 = vpop.f32.mrb[52].mxu0  ;;  %v5411_v6 = vsel %vm915_vm5, %v7602_v26, %v7603_v17  ;;  %v5408_v0 = vsel %vm915_vm5, %v7607_v61, %v7597_v21  ;;  %v5410_v12 = vsel %vm915_vm5, %v7608_v46, %v7602_v26 }
 0x961   : > { %6563 = vmatprep.subr.bf16.mxu0 %v6562_v24  ;;  %v7616_v45 = vpop.permute.xlu0 %7615  ;;  %v7611_v36 = vpop.permute.xlu1 %7610  ;;  %v6570_v29 = vpack.c.bf16 %v5411_v6, %v5409_v37  ;;  %v6572_v2 = vpack.c.bf16 %v5410_v12, %v5408_v0 }
 0x962   : > { %v10328_v10 = vpop.f32.mrb[53].mxu0  ;;  %v7618_v14 = vunpack.i.h.bf16 %v7616_v45  ;;  %v7617_v39 = vunpack.i.l.bf16 %v7616_v45  ;;  %v7613_v57 = vunpack.i.h.bf16 %v7611_v36  ;;  %v7612_v33 = vunpack.i.l.bf16 %v7611_v36 }
 0x963   : > { %5230 = vmatmul.mubr.f32.gmra.mrb[48].mxu0 %v6213_v22 }
 0x964   : > { %6565 = vmatpush1.bf16.msra.mxu0 %v6564_v13  ;;  %5235 = vmatprep.mubr.f32.mxu0 %v10803_v23  ;;  %v5413_v55 = vsel %vm915_vm5, %v7612_v33, %v7613_v57  ;;  %v5415_v11 = vsel %vm915_vm5, %v7617_v39, %v7618_v14 }
 0x965   : > { %6567 = vmatprep.subr.bf16.mxu0 %v6566_v54  ;;  %v7626_v52 = vpop.permute.xlu0 %7625  ;;  %v7621_v4 = vpop.permute.xlu1 %7620  ;;  %v6574_v49 = vpack.c.bf16 %v5415_v11, %v5413_v55 }
 0x966   : > { %v7623_v16 = vunpack.i.h.bf16 %v7621_v4  ;;  %v7622_v25 = vunpack.i.l.bf16 %v7621_v4  ;;  %v7628_v63 = vunpack.i.h.bf16 %v7626_v52  ;;  %v7627_v1 = vunpack.i.l.bf16 %v7626_v52 }
 0x967   : > { %5236 = vmatmul.mubr.f32.gmra.mrb[74].mxu0 %v6214_v7 }
 0x968   : > { %6569 = vmatpush1.bf16.msra.mxu0 %v6568_v20  ;;  %5241 = vmatprep.mubr.f32.mxu0 %v10803_v23  ;;  %v5414_v60 = vsel %vm915_vm5, %v7623_v16, %v7617_v39  ;;  %v5412_v56 = vsel %vm915_vm5, %v7622_v25, %v7612_v33  ;;  %v5417_v31 = vsel %vm915_vm5, %v7627_v1, %v7628_v63  ;;  %v6216_v16 = vld [vmem:[%s10759_s10 + $0xa0] sm:$0xff]  ;;  %v6217_v25 = vld [vmem:[%s10759_s10 + $0xa8] sm:$0xff] }
 0x969   : > { %6571 = vmatprep.subr.bf16.mxu0 %v6570_v29  ;;  %v7636_v62 = vpop.permute.xlu0 %7635  ;;  %v7631_v35 = vpop.permute.xlu1 %7630  ;;  %v6576_v18 = vpack.c.bf16 %v5414_v60, %v5412_v56  ;;  %v6219_v60 = vld [vmem:[%s10759_s10 + $0xb8] sm:$0xff]  ;;  %v3256_v56 = vrot.slane %v9488_v28, 4  ;;  %v6220_v28 = vld [vmem:[%s10759_s10 + $0xc0] sm:$0xff] }
 0x96a   : > { %v7633_v17 = vunpack.i.h.bf16 %v7631_v35  ;;  %v7632_v26 = vunpack.i.l.bf16 %v7631_v35  ;;  %v7638_v24 = vunpack.i.h.bf16 %v7636_v62  ;;  %v7637_v22 = vunpack.i.l.bf16 %v7636_v62 }
 0x96b   : > { %5242 = vmatmul.mubr.f32.gmra.mrb[76].mxu0 %v6215_v47 }
 0x96c   : > { %6573 = vmatpush1.bf16.msra.mxu0 %v6572_v2  ;;  %v5419_v13 = vsel %vm915_vm5, %v7632_v26, %v7633_v17  ;;  %5520 = vmatprep.mubr.f32.mxu0 %v10803_v23  ;;  %v5416_v54 = vsel %vm915_vm5, %v7637_v22, %v7627_v1  ;;  %v5418_v6 = vsel %vm915_vm5, %v7638_v24, %v7632_v26  ;;  %v6218_v1 = vld [vmem:[%s10759_s10 + $0xb0] sm:$0xff]  ;;  %v3257_v17 = vrot.slane %v9490_v30, 4 }
 0x96d   : > { %6575 = vmatprep.subr.bf16.mxu0 %v6574_v49  ;;  %v7646_v21 = vpop.permute.xlu0 %7645  ;;  %v7641_v45 = vpop.permute.xlu1 %7640  ;;  %v6578_v36 = vpack.c.bf16 %v5419_v13, %v5417_v31  ;;  %v6580_v7 = vpack.c.bf16 %v5418_v6, %v5416_v54 }
 0x96e   : > { %v7648_v53 = vunpack.i.h.bf16 %v7646_v21  ;;  %v7647_v3 = vunpack.i.l.bf16 %v7646_v21  ;;  %v7643_v46 = vunpack.i.h.bf16 %v7641_v45  ;;  %v7642_v61 = vunpack.i.l.bf16 %v7641_v45 }
 0x970   : > { %6577 = vmatpush1.bf16.msra.mxu0 %v6576_v18  ;;  %v5421_v14 = vsel %vm915_vm5, %v7642_v61, %v7643_v46  ;;  %v5423_v39 = vsel %vm915_vm5, %v7647_v3, %v7648_v53 }
 0x971   : > { %6579 = vmatprep.subr.bf16.mxu0 %v6578_v36  ;;  %v7651_v57 = vpop.permute.xlu1 %7650  ;;  %v6582_v33 = vpack.c.bf16 %v5423_v39, %v5421_v14  ;;  %v3382_v14 = vrot.slane %v9496_v34, 4  ;;  %v3383_v39 = vrot.slane %v9498_v15, 4 }
 0x972   : > { %v7653_v20 = vunpack.i.h.bf16 %v7651_v57  ;;  %v7652_v52 = vunpack.i.l.bf16 %v7651_v57 }
 0x974   : > { %v5422_v4 = vsel %vm915_vm5, %v7653_v20, %v7647_v3  ;;  %v5420_v37 = vsel %vm915_vm5, %v7652_v52, %v7642_v61  ;;  %6581 = vmatpush1.bf16.msra.mxu0 %v6580_v7 }
 0x975   : > { %v6584_v0 = vpack.c.bf16 %v5422_v4, %v5420_v37  ;;  %6583 = vmatprep.subr.bf16.mxu0 %v6582_v33  ;;  %v3240_v12 = vpop.permute.xlu1 %3239 }
 0x978   : > { %6585 = vmatpush1.bf16.msra.mxu0 %v6584_v0 }
 0x979   : > { %v3263_v29 = vpop.permute.xlu1 %3262 }
 0x97b   : > { %5521 = vmatmul.mubr.f32.vlgmr.msra.gmra.mrb[78].mxu0 %v6216_v16 }
 0x97c   : > { %5526 = vmatprep.mubr.f32.mxu0 %v10803_v23 }
 0x97d   : > { %v3371_v2 = vpop.permute.xlu1 %3370 }
 0x97e   : > { %v3250_v63 = vpop.permute.xlu0 %3249 }
 0x97f   : > { %5527 = vmatmul.mubr.f32.gmra.mrb[80].mxu0 %v6217_v25 }
 0x980   : > { %5532 = vmatprep.mubr.f32.mxu0 %v10803_v23 }
 0x981   : > { %v3389_v30 = vpop.permute.xlu1 %3388 }
 0x982   : > { %v3242_v47 = vpop.permute.xlu0 %3241 }
 0x983   : > { %v3243_v55 = vsel %vm591_vm7, %v3240_v12, %v3242_v47  ;;  %v3244_v11 = vsel %vm591_vm7, %v3242_v47, %v3240_v12  ;;  %5533 = vmatmul.mubr.f32.gmra.mrb[48].mxu0 %v6218_v1 }
 0x984   : > { %v3245_v62 = vmul.f32 %v7922_v50, %v3244_v11  ;;  %v3246_v35 = vmul.f32 %v7925_v51, %v3243_v55  ;;  %5538 = vmatprep.mubr.f32.mxu0 %v10803_v23  ;;  %v3508_v55 = vrot.slane %v9504_v42, 4  ;;  %v3509_v11 = vrot.slane %v9506_v5, 4 }
 0x985   : > { %v3497_v4 = vpop.permute.xlu1 %3496 }
 0x986   : > { %v3252_v26 = vadd.f32 %v3250_v63, %v3245_v62  ;;  %v3253_v24 = vadd.f32 %v3250_v63, %v3246_v35  ;;  %v3265_v22 = vpop.permute.xlu0 %3264 }
 0x987   : > { %v3266_v49 = vsel %vm616_vm10, %v3263_v29, %v3265_v22  ;;  %v3267_v31 = vsel %vm616_vm10, %v3265_v22, %v3263_v29  ;;  %5539 = vmatmul.mubr.f32.gmra.mrb[82].mxu0 %v6219_v60 }
 0x988   : > { %v3260_v13 = vadd.f32 %v3256_v56, %v3252_v26  ;;  %v3261_v18 = vadd.f32 %v3257_v17, %v3253_v24  ;;  %v3268_v21 = vmul.f32 %v7943_v58, %v3266_v49  ;;  %v3269_v45 = vmul.f32 %v7946_v59, %v3267_v31  ;;  %5544 = vmatprep.mubr.f32.mxu0 %v10803_v23 }
 0x98a   : > { %v3373_v36 = vpop.permute.xlu0 %3372  ;;  %v3270_v46 = vadd.f32 %v3268_v21, %v3260_v13  ;;  %v3271_v61 = vadd.f32 %v3269_v45, %v3261_v18 }
 0x98b   : > { %v3374_v53 = vsel %vm591_vm7, %v3371_v2, %v3373_v36  ;;  %v3375_v3 = vsel %vm591_vm7, %v3373_v36, %v3371_v2  ;;  %5545 = vmatmul.mubr.f32.gmra.mrb[84].mxu0 %v6220_v28  ;;  %v3515_v2 = vpop.permute.xlu1 %3514 }
 0x98c   : > { %v3376_v54 = vmul.f32 %v7922_v50, %v3375_v3  ;;  %v3377_v6 = vmul.f32 %v7925_v51, %v3374_v53  ;;  %5737 = vmatprep.mubr.f32.mxu0 %v10803_v23  ;;  %v4105_v53 = vld [vmem:[%s10760_s11] sm:$0xff] }
 0x98e   : > { %v3378_v57 = vadd.f32 %v3376_v54, %v3270_v46  ;;  %v3379_v33 = vadd.f32 %v3377_v6, %v3271_v61  ;;  %v3391_v7 = vpop.permute.xlu0 %3390 }
 0x98f   : > { %v3392_v20 = vsel %vm616_vm10, %v3389_v30, %v3391_v7  ;;  %v3393_v52 = vsel %vm616_vm10, %v3391_v7, %v3389_v30 }
 0x990   : > { %v3386_v37 = vadd.f32 %v3382_v14, %v3378_v57  ;;  %v3387_v0 = vadd.f32 %v3383_v39, %v3379_v33  ;;  %v3394_v12 = vmul.f32 %v7943_v58, %v3392_v20  ;;  %v3395_v16 = vmul.f32 %v7946_v59, %v3393_v52 }
 0x992   : > { %v3499_v25 = vpop.permute.xlu0 %3498  ;;  %v3396_v29 = vadd.f32 %v3394_v12, %v3386_v37  ;;  %v3397_v63 = vadd.f32 %v3395_v16, %v3387_v0 }
 0x993   : > { %v3500_v34 = vsel %vm591_vm7, %v3497_v4, %v3499_v25  ;;  %v3501_v15 = vsel %vm591_vm7, %v3499_v25, %v3497_v4 }
 0x994   : > { %v3502_v1 = vmul.f32 %v7922_v50, %v3501_v15  ;;  %v3503_v47 = vmul.f32 %v7925_v51, %v3500_v34 }
 0x996   : > { %v3504_v62 = vadd.f32 %v3502_v1, %v3396_v29  ;;  %v3505_v35 = vadd.f32 %v3503_v47, %v3397_v63  ;;  %v3517_v60 = vpop.permute.xlu0 %3516 }
 0x997   : > { %v3518_v56 = vsel %vm616_vm10, %v3515_v2, %v3517_v60  ;;  %v3519_v17 = vsel %vm616_vm10, %v3517_v60, %v3515_v2 }
 0x998   : > { %v3512_v26 = vadd.f32 %v3508_v55, %v3504_v62  ;;  %v3513_v24 = vadd.f32 %v3509_v11, %v3505_v35  ;;  %v3520_v22 = vmul.f32 %v7943_v58, %v3518_v56  ;;  %v3521_v49 = vmul.f32 %v7946_v59, %v3519_v17 }
 0x99a   : > { %v10417_v31 = vadd.f32 %v3520_v22, %v3512_v26  ;;  %v10419_v42 = vadd.f32 %v3521_v49, %v3513_v24 }
 0x99c   : > { %v5593_v5 = vsel %vm3063_vm12, %v10417_v31, 0.0  ;;  %v5594_v13 = vsel %vm3063_vm12, %v10419_v42, 0.0  ;;  %v5598_v18 = vmul.f32 %v10417_v31, %v10417_v31  ;;  %v5599_v21 = vmul.f32 %v10419_v42, %v10419_v42 }
 0x99d   : > { %v5595_v45 = vadd.f32 %v5594_v13, %v5593_v5 }
 0x99e   : > { %v5600_v28 = vsel %vm3063_vm12, %v5598_v18, 0.0  ;;  %v5601_v30 = vsel %vm3063_vm12, %v5599_v21, 0.0 }
 0x99f   : > { %5596 = vadd.xlane.f32.xlu0 %v5595_v45  ;;  %v5602_v36 = vadd.f32 %v5601_v30, %v5600_v28 }
 0x9a1   : > { %5603 = vadd.xlane.f32.xlu1 %v5602_v36 }
 0x9b2   : > { %4248 = vperm.xlu1 %6692, %v4105_v53  }
 0x9b5   : > { %4238 = vrot.lane.b32.xlu0 %v10262_v41, %s10804_s17 }
 0x9b6   : > { %4240 = vrot.lane.b32.xlu1 %v10267_v27, %s10804_s17 }
 0x9b9   : > { %4253 = vrot.lane.b32.xlu0 %v10275_v48, %s10795_s18 }
 0x9ba   : > { %4255 = vrot.lane.b32.xlu1 %v10286_v32, %s10795_s18 }
 0x9bd   : > { %4265 = vrot.lane.b32.xlu0 %v10309_v44, %s10796_s16 }
 0x9be   : > { %4267 = vrot.lane.b32.xlu1 %v10314_v43, %s10796_s16 }
 0x9c1   : > { %4275 = vrot.lane.b32.xlu0 %v10322_v40, %s10797_s19 }
 0x9c2   : > { %4277 = vrot.lane.b32.xlu1 %v10328_v10, %s10797_s19 }
 0x9ee   : > { %v4613_v41 = vpop.f32.mrb[54].mxu0 }
 0x9ef   : > { %v4615_v27 = vpop.f32.mrb[55].mxu0  ;;  %4642 = vrot.lane.b32.xlu0 %v4613_v41, %s10804_s17 }
 0x9f0   : > { %4644 = vrot.lane.b32.xlu1 %v4615_v27, %s10804_s17 }
 0x9f2   : > { %v4619_v48 = vpop.f32.mrb[56].mxu0 }
 0x9f3   : > { %v4621_v32 = vpop.f32.mrb[57].mxu0  ;;  %4652 = vrot.lane.b32.xlu0 %v4619_v48, %s10795_s18 }
 0x9f4   : > { %4654 = vrot.lane.b32.xlu1 %v4621_v32, %s10795_s18 }
 0x9fa   : > { %v4631_v44 = vpop.f32.mrb[58].mxu0 }
 0x9fb   : > { %4664 = vrot.lane.b32.xlu1 %v4631_v44, %s10796_s16  ;;  %v4633_v43 = vpop.f32.mrb[59].mxu0 }
 0x9fe   : > { %v4637_v40 = vpop.f32.mrb[60].mxu0 }
 0x9ff   : > { %4666 = vrot.lane.b32.xlu1 %v4633_v43, %s10796_s16  ;;  %v4639_v10 = vpop.f32.mrb[61].mxu0 }
 0xa03   : > { %4674 = vrot.lane.b32.xlu1 %v4637_v40, %s10797_s19 }
 0xa07   : > { %4676 = vrot.lane.b32.xlu1 %v4639_v10, %s10797_s19 }
 0xa0e   : > { %v4916_v3 = vpop.f32.mrb[62].mxu0 }
 0xa0f   : > { %4945 = vrot.lane.b32.xlu0 %v4916_v3, %s10804_s17  ;;  %v4918_v46 = vpop.f32.mrb[63].mxu0 }
 0xa10   : > { %4947 = vrot.lane.b32.xlu1 %v4918_v46, %s10804_s17 }
 0xa12   : > { %v4922_v61 = vpop.f32.mrb[64].mxu0 }
 0xa13   : > { %4955 = vrot.lane.b32.xlu0 %v4922_v61, %s10795_s18  ;;  %v4924_v54 = vpop.f32.mrb[65].mxu0 }
 0xa17   : > { %4957 = vrot.lane.b32.xlu0 %v4924_v54, %s10795_s18 }
 0xa1a   : > { %v4934_v6 = vpop.f32.mrb[66].mxu0 }
 0xa1b   : > { %4967 = vrot.lane.b32.xlu0 %v4934_v6, %s10796_s16  ;;  %v4936_v14 = vpop.f32.mrb[67].mxu0 }
 0xa1e   : > { %v4940_v39 = vpop.f32.mrb[68].mxu0 }
 0xa1f   : > { %4969 = vrot.lane.b32.xlu0 %v4936_v14, %s10796_s16  ;;  %v4942_v57 = vpop.f32.mrb[69].mxu0 }
 0xa20   : > { %4979 = vrot.lane.b32.xlu1 %v4942_v57, %s10797_s19 }
 0xa23   : > { %4977 = vrot.lane.b32.xlu0 %v4940_v39, %s10797_s19 }
 0xa2c   : > { %v5597_v33 = vpop.xlane.xlu0 %5596 }
 0xa2d   : > { %v5605_v7 = vmul.f32 0.00390625, %v5597_v33 }
 0xa2e   : > { %v5219_v20 = vpop.f32.mrb[70].mxu0  ;;  %v5604_v37 = vpop.xlane.xlu1 %5603 }
 0xa2f   : > { %v5606_v52 = vmul.f32 %v5605_v7, %v5597_v33  ;;  %v5221_v4 = vpop.f32.mrb[71].mxu0  ;;  %5248 = vrot.lane.b32.xlu0 %v5219_v20, %s10804_s17  ;;  %v5609_v47 = vsub.f32 %v10417_v31, %v5605_v7  ;;  %v5610_v55 = vsub.f32 %v10419_v42, %v5605_v7 }
 0xa30   : > { %5250 = vrot.lane.b32.xlu1 %v5221_v4, %s10804_s17  ;;  %v4239_v13 = vpop.permute.xlu0 %4238 }
 0xa31   : > { %v5607_v0 = vsub.f32 %v5604_v37, %v5606_v52 }
 0xa32   : > { %v5225_v12 = vpop.f32.mrb[72].mxu0  ;;  %v4249_v5 = vpop.permute.xlu1 %4248 }
 0xa33   : > { %v5608_v16 = vmul.f32 0.003921569, %v5607_v0  ;;  %v5227_v25 = vpop.f32.mrb[73].mxu0  ;;  %5258 = vrot.lane.b32.xlu0 %v5225_v12, %s10795_s18 }
 0xa34   : > { %5260 = vrot.lane.b32.xlu1 %v5227_v25, %s10795_s18  ;;  %v4254_v21 = vpop.permute.xlu0 %4253 }
 0xa35   : > { %v5611_v34 = vadd.f32 1e-05, %v5608_v16 }
 0xa36   : > { %v4241_v18 = vpop.permute.xlu1 %4240 }
 0xa37   : > { %7656 = vrsqrt.f32 %v5611_v34  ;;  %v4242_v14 = vsel %vm580_vm14, %v4239_v13, %v4241_v18  ;;  %v4243_v39 = vsel %vm580_vm14, %v4241_v18, %v4239_v13 }
 0xa38   : > { %v4266_v28 = vpop.permute.xlu0 %4265  ;;  %v4244_v20 = vmul.f32 %v7962_v8, %v4243_v39  ;;  %v4245_v52 = vmul.f32 %v7965_v9, %v4242_v14 }
 0xa3a   : > { %v5237_v15 = vpop.f32.mrb[74].mxu0  ;;  %v4256_v45 = vpop.permute.xlu1 %4255 }
 0xa3b   : > { %v5239_v29 = vpop.f32.mrb[75].mxu0  ;;  %5270 = vrot.lane.b32.xlu0 %v5237_v15, %s10796_s16  ;;  %v4257_v33 = vsel %vm591_vm7, %v4254_v21, %v4256_v45  ;;  %v4258_v7 = vsel %vm591_vm7, %v4256_v45, %v4254_v21 }
 0xa3c   : > { %5272 = vrot.lane.b32.xlu1 %v5239_v29, %s10796_s16  ;;  %v4276_v36 = vpop.permute.xlu0 %4275  ;;  %v4259_v0 = vmul.f32 %v7922_v50, %v4258_v7  ;;  %v4260_v12 = vmul.f32 %v7925_v51, %v4257_v33  ;;  %v4251_v29 = vadd.f32 %v4249_v5, %v4244_v20 }
 0xa3e   : > { %v5243_v63 = vpop.f32.mrb[76].mxu0  ;;  %v4268_v30 = vpop.permute.xlu1 %4267 }
 0xa3f   : > { %v5245_v1 = vpop.f32.mrb[77].mxu0  ;;  %5280 = vrot.lane.b32.xlu0 %v5243_v63, %s10797_s19  ;;  %v4269_v4 = vsel %vm616_vm10, %v4266_v28, %v4268_v30  ;;  %v4270_v37 = vsel %vm616_vm10, %v4268_v30, %v4266_v28  ;;  %v4252_v63 = vadd.f32 %v4249_v5, %v4245_v52 }
 0xa40   : > { %5282 = vrot.lane.b32.xlu1 %v5245_v1, %s10797_s19  ;;  %v4271_v1 = vmul.f32 %v7943_v58, %v4269_v4 }
 0xa41   : > { %v7657_v11 = vpop.eup %7656 }
 0xa42   : > { %v10476_v2 = vmul.f32 %v7657_v11, %v5609_v47  ;;  %v10478_v62 = vmul.f32 %v7657_v11, %v5610_v55  ;;  %v4278_v53 = vpop.permute.xlu1 %4277  ;;  %v4272_v47 = vmul.f32 %v7946_v59, %v4270_v37 }
 0xa43   : > { %v4279_v34 = vsel %vm633_vm2, %v4276_v36, %v4278_v53  ;;  %v4280_v15 = vsel %vm633_vm2, %v4278_v53, %v4276_v36 }
 0xa4e   : > { %v5522_v35 = vpop.f32.mrb[78].mxu0 }
 0xa4f   : > { %5551 = vrot.lane.b32.xlu0 %v5522_v35, %s10804_s17  ;;  %v5524_v60 = vpop.f32.mrb[79].mxu0  ;;  %v4261_v35 = vadd.f32 %v4259_v0, %v4251_v29 }
 0xa50   : > { %5553 = vrot.lane.b32.xlu1 %v5524_v60, %s10804_s17  ;;  %v4262_v60 = vadd.f32 %v4260_v12, %v4252_v63 }
 0xa51   : > { %v6622_v13 = vadd.f32 %v4271_v1, %v4261_v35 }
 0xa52   : > { %v5528_v56 = vpop.f32.mrb[80].mxu0  ;;  %v6639_v18 = vadd.f32 %v4272_v47, %v4262_v60 }
 0xa53   : > { %5561 = vrot.lane.b32.xlu0 %v5528_v56, %s10795_s18  ;;  %v5530_v17 = vpop.f32.mrb[81].mxu0  ;;  %v4281_v56 = vmul.f32 %v7981_v19, %v4279_v34 }
 0xa54   : > { %5563 = vrot.lane.b32.xlu1 %v5530_v17, %s10795_s18  ;;  %v10805_v17 = vld [vmem:[#allocation4_spill] sm:$0xff] }
 0xa55   : > { %v6623_v36 = vadd.f32 %v6622_v13, %v4281_v56 }
 0xa56   : > { %v10484_v26 = vpop.f32.mrb[48].mxu0 }
 0xa57   : > { %v10486_v24 = vpop.f32.mrb[49].mxu0 }
 0xa5a   : > { %v5540_v22 = vpop.f32.mrb[82].mxu0 }
 0xa5b   : > { %5573 = vrot.lane.b32.xlu0 %v5540_v22, %s10796_s16  ;;  %v5542_v49 = vpop.f32.mrb[83].mxu0  ;;  %v4282_v22 = vmul.f32 %v10805_v17, %v4280_v15 }
 0xa5c   : > { %5575 = vrot.lane.b32.xlu1 %v5542_v49, %s10796_s16 }
 0xa5d   : > { %v6640_v53 = vadd.f32 %v6639_v18, %v4282_v22 }
 0xa5e   : > { %v5546_v31 = vpop.f32.mrb[84].mxu0 }
 0xa5f   : > { %5583 = vrot.lane.b32.xlu0 %v5546_v31, %s10797_s19  ;;  %v5548_v42 = vpop.f32.mrb[85].mxu0 }
 0xa60   : > { %5585 = vrot.lane.b32.xlu1 %v5548_v42, %s10797_s19 }
 0xa61   : > { %v4643_v41 = vpop.permute.xlu0 %4642 }
 0xa62   : > { %v4645_v27 = vpop.permute.xlu1 %4644 }
 0xa63   : > { %v4646_v55 = vsel %vm580_vm14, %v4643_v41, %v4645_v27  ;;  %v4647_v11 = vsel %vm580_vm14, %v4645_v27, %v4643_v41 }
 0xa64   : > { %v4648_v21 = vmul.f32 %v7962_v8, %v4647_v11  ;;  %v4649_v45 = vmul.f32 %v7965_v9, %v4646_v55 }
 0xa65   : > { %v4653_v48 = vpop.permute.xlu0 %4652 }
 0xa66   : > { %v4655_v32 = vpop.permute.xlu1 %4654  ;;  %v6624_v14 = vadd.f32 %v6623_v36, %v4648_v21  ;;  %v6641_v39 = vadd.f32 %v6640_v53, %v4649_v45 }
 0xa67   : > { %v4656_v42 = vsel %vm591_vm7, %v4653_v48, %v4655_v32  ;;  %v4657_v5 = vsel %vm591_vm7, %v4655_v32, %v4653_v48 }
 0xa68   : > { %v4658_v41 = vmul.f32 %v7922_v50, %v4657_v5  ;;  %v4659_v27 = vmul.f32 %v7925_v51, %v4656_v42 }
 0xa6a   : > { %v6625_v4 = vadd.f32 %v6624_v14, %v4658_v41  ;;  %v6642_v37 = vadd.f32 %v6641_v39, %v4659_v27 }
 0xa6d   : > { %v4665_v43 = vpop.permute.xlu1 %4664 }
 0xa71   : > { %v4667_v10 = vpop.permute.xlu1 %4666 }
 0xa72   : > { %v4668_v28 = vsel %vm616_vm10, %v4665_v43, %v4667_v10  ;;  %v4669_v30 = vsel %vm616_vm10, %v4667_v10, %v4665_v43 }
 0xa73   : > { %v4670_v33 = vmul.f32 %v7943_v58, %v4668_v28  ;;  %v4671_v7 = vmul.f32 %v7946_v59, %v4669_v30 }
 0xa75   : > { %v4675_v46 = vpop.permute.xlu1 %4674  ;;  %v6626_v34 = vadd.f32 %v6625_v4, %v4670_v33  ;;  %v6643_v15 = vadd.f32 %v6642_v37, %v4671_v7 }
 0xa79   : > { %v4677_v54 = vpop.permute.xlu1 %4676 }
 0xa7a   : > { %v4678_v48 = vsel %vm633_vm2, %v4675_v46, %v4677_v54  ;;  %v4679_v32 = vsel %vm633_vm2, %v4677_v54, %v4675_v46 }
 0xa7b   : > { %v4680_v0 = vmul.f32 %v7981_v19, %v4678_v48  ;;  %v4681_v46 = vmul.f32 %v10805_v17, %v4679_v32 }
 0xa7d   : > { %v6627_v55 = vadd.f32 %v6626_v34, %v4680_v0 }
 0xa81   : > { %v4946_v44 = vpop.permute.xlu0 %4945 }
 0xa82   : > { %v4948_v57 = vpop.permute.xlu1 %4947 }
 0xa83   : > { %v4949_v10 = vsel %vm580_vm14, %v4946_v44, %v4948_v57  ;;  %v4950_v52 = vsel %vm580_vm14, %v4948_v57, %v4946_v44 }
 0xa84   : > { %v4951_v29 = vmul.f32 %v7962_v8, %v4950_v52  ;;  %v4952_v63 = vmul.f32 %v7965_v9, %v4949_v10 }
 0xa85   : > { %v4956_v40 = vpop.permute.xlu0 %4955 }
 0xa86   : > { %v6628_v56 = vadd.f32 %v6627_v55, %v4951_v29 }
 0xa89   : > { %v4958_v3 = vpop.permute.xlu0 %4957 }
 0xa8a   : > { %v4959_v54 = vsel %vm591_vm7, %v4956_v40, %v4958_v3  ;;  %v4960_v12 = vsel %vm591_vm7, %v4958_v3, %v4956_v40  ;;  %v6644_v40 = vadd.f32 %v6643_v15, %v4681_v46 }
 0xa8b   : > { %v4961_v3 = vmul.f32 %v7922_v50, %v4960_v12  ;;  %v4962_v11 = vmul.f32 %v7925_v51, %v4959_v54 }
 0xa8c   : > { %v6645_v22 = vadd.f32 %v6644_v40, %v4952_v63 }
 0xa8d   : > { %v10492_v61 = vpop.permute.xlu0 %4967  ;;  %v6629_v13 = vadd.f32 %v6628_v56, %v4961_v3 }
 0xa8e   : > { %v6646_v18 = vadd.f32 %v6645_v22, %v4962_v11 }
 0xa91   : > { %v10494_v6 = vpop.permute.xlu0 %4969 }
 0xa92   : > { %v4980_v25 = vpop.permute.xlu1 %4979  ;;  %v4971_v57 = vsel %vm616_vm10, %v10492_v61, %v10494_v6  ;;  %v4972_v47 = vsel %vm616_vm10, %v10494_v6, %v10492_v61 }
 0xa93   : > { %v4973_v42 = vmul.f32 %v7943_v58, %v4971_v57  ;;  %v4974_v5 = vmul.f32 %v7946_v59, %v4972_v47 }
 0xa95   : > { %v4978_v16 = vpop.permute.xlu0 %4977  ;;  %v6630_v36 = vadd.f32 %v6629_v13, %v4973_v42  ;;  %v6647_v53 = vadd.f32 %v6646_v18, %v4974_v5 }
 0xa96   : > { %v4981_v35 = vsel %vm633_vm2, %v4978_v16, %v4980_v25  ;;  %v4982_v60 = vsel %vm633_vm2, %v4980_v25, %v4978_v16 }
 0xa97   : > { %v4983_v21 = vmul.f32 %v7981_v19, %v4981_v35  ;;  %v4984_v45 = vmul.f32 %v10805_v17, %v4982_v60 }
 0xa99   : > { %v6631_v48 = vadd.f32 %v6630_v36, %v4983_v21  ;;  %v6648_v32 = vadd.f32 %v6647_v53, %v4984_v45 }
 0xaa1   : > { %v5249_v49 = vpop.permute.xlu0 %5248 }
 0xaa2   : > { %v5251_v31 = vpop.permute.xlu1 %5250 }
 0xaa3   : > { %v5252_v61 = vsel %vm580_vm14, %v5249_v49, %v5251_v31  ;;  %v5253_v6 = vsel %vm580_vm14, %v5251_v31, %v5249_v49 }
 0xaa4   : > { %v5254_v41 = vmul.f32 %v7962_v8, %v5253_v6  ;;  %v5255_v49 = vmul.f32 %v7965_v9, %v5252_v61 }
 0xaa5   : > { %v5259_v20 = vpop.permute.xlu0 %5258 }
 0xaa6   : > { %v5261_v43 = vpop.permute.xlu1 %5260  ;;  %v6632_v10 = vadd.f32 %v6631_v48, %v5254_v41  ;;  %v6649_v52 = vadd.f32 %v6648_v32, %v5255_v49 }
 0xaa7   : > { %v5262_v25 = vsel %vm591_vm7, %v5259_v20, %v5261_v43  ;;  %v5263_v30 = vsel %vm591_vm7, %v5261_v43, %v5259_v20 }
 0xaa8   : > { %v5264_v14 = vmul.f32 %v7922_v50, %v5263_v30  ;;  %v5265_v39 = vmul.f32 %v7925_v51, %v5262_v25 }
 0xaaa   : > { %v6633_v0 = vadd.f32 %v6632_v10, %v5264_v14  ;;  %v6650_v46 = vadd.f32 %v6649_v52, %v5265_v39 }
 0xaad   : > { %v5271_v1 = vpop.permute.xlu0 %5270 }
 0xaae   : > { %v5273_v44 = vpop.permute.xlu1 %5272 }
 0xaaf   : > { %v5274_v31 = vsel %vm616_vm10, %v5271_v1, %v5273_v44  ;;  %v5275_v27 = vsel %vm616_vm10, %v5273_v44, %v5271_v1 }
 0xab0   : > { %v5276_v4 = vmul.f32 %v7943_v58, %v5274_v31  ;;  %v5277_v37 = vmul.f32 %v7946_v59, %v5275_v27 }
 0xab1   : > { %v5281_v28 = vpop.permute.xlu0 %5280 }
 0xab2   : > { %v5283_v16 = vpop.permute.xlu1 %5282  ;;  %v6634_v34 = vadd.f32 %v6633_v0, %v5276_v4  ;;  %v6651_v15 = vadd.f32 %v6650_v46, %v5277_v37  ;;  %v5646_v0 = vld [vmem:[%s10762_s13] sm:$0xf] }
 0xab3   : > { %v5284_v20 = vsel %vm633_vm2, %v5281_v28, %v5283_v16  ;;  %v5285_v43 = vsel %vm633_vm2, %v5283_v16, %v5281_v28 }
 0xab4   : > { %v5286_v54 = vmul.f32 %v7981_v19, %v5284_v20  ;;  %v5287_v12 = vmul.f32 %v10805_v17, %v5285_v43 }
 0xab6   : > { %v6635_v57 = vadd.f32 %v6634_v34, %v5286_v54  ;;  %v6652_v47 = vadd.f32 %v6651_v15, %v5287_v12 }
 0xab8   : > { %v6636_v60 = vadd.f32 %v6635_v57, %v10484_v26  ;;  %v6653_v56 = vadd.f32 %v6652_v47, %v10486_v24 }
 0xac1   : > { %v5552_v33 = vpop.permute.xlu0 %5551 }
 0xac2   : > { %v5554_v7 = vpop.permute.xlu1 %5553 }
 0xac3   : > { %v5555_v1 = vsel %vm580_vm14, %v5552_v33, %v5554_v7  ;;  %v5556_v44 = vsel %vm580_vm14, %v5554_v7, %v5552_v33 }
 0xac4   : > { %v5557_v3 = vmul.f32 %v7962_v8, %v5556_v44  ;;  %v5558_v11 = vmul.f32 %v7965_v9, %v5555_v1  ;;  %v5651_v1 = vld [vmem:[%s10761_s12 + $0x8] sm:$0xf] }
 0xac5   : > { %v5562_v29 = vpop.permute.xlu0 %5561 }
 0xac6   : > { %v5564_v63 = vpop.permute.xlu1 %5563  ;;  %v6637_v13 = vadd.f32 %v6636_v60, %v5557_v3  ;;  %v6654_v8 = vadd.f32 %v6653_v56, %v5558_v11  ;;  %v6226_v60 = vld [vmem:[%s10761_s12 + $0x18] sm:$0xf] }
 0xac7   : > { %v5565_v55 = vsel %vm591_vm7, %v5562_v29, %v5564_v63  ;;  %v5566_v40 = vsel %vm591_vm7, %v5564_v63, %v5562_v29  ;;  %v5650_v63 = vld [vmem:[%s10761_s12] sm:$0xff] }
 0xac8   : > { %v5567_v22 = vmul.f32 %v7922_v50, %v5566_v40  ;;  %v5568_v42 = vmul.f32 %v7925_v51, %v5565_v55  ;;  %v6225_v40 = vld [vmem:[%s10761_s12 + $0x10] sm:$0xff] }
 0xaca   : > { %v6638_v21 = vadd.f32 %v6637_v13, %v5567_v22  ;;  %v6655_v24 = vadd.f32 %v6654_v8, %v5568_v42  ;;  %v6231_v42 = vld [vmem:[%s10761_s12 + $0x20] sm:$0xff] }
 0xacd   : > { %v5574_v35 = vpop.permute.xlu0 %5573 }
 0xace   : > { %v5576_v5 = vpop.permute.xlu1 %5575 }
 0xacf   : > { %v5577_v61 = vsel %vm616_vm10, %v5574_v35, %v5576_v5  ;;  %v5578_v6 = vsel %vm616_vm10, %v5576_v5, %v5574_v35  ;;  %v6232_v5 = vld [vmem:[%s10761_s12 + $0x28] sm:$0xf] }
 0xad0   : > { %v5579_v9 = vmul.f32 %v7943_v58, %v5577_v61  ;;  %v5580_v18 = vmul.f32 %v7946_v59, %v5578_v6 }
 0xad1   : > { %v5584_v26 = vpop.permute.xlu0 %5583 }
 0xad2   : > { %v5586_v45 = vpop.permute.xlu1 %5585  ;;  %v5581_v25 = vadd.f32 %v6638_v21, %v5579_v9  ;;  %v5582_v30 = vadd.f32 %v6655_v24, %v5580_v18 }
 0xad3   : > { %v5587_v28 = vsel %vm633_vm2, %v5584_v26, %v5586_v45  ;;  %v5588_v16 = vsel %vm633_vm2, %v5586_v45, %v5584_v26 }
 0xad4   : > { %v5589_v36 = vmul.f32 %v7981_v19, %v5587_v28  ;;  %v5590_v53 = vmul.f32 %v10805_v17, %v5588_v16 }
 0xad6   : > { %v5591_v41 = vadd.f32 %v5589_v36, %v5581_v25  ;;  %v5592_v49 = vadd.f32 %v5590_v53, %v5582_v30 }
 0xad8   : > { %v5615_v31 = vadd.f32 1.0, %v5591_v41  ;;  %v5616_v27 = vadd.f32 1.0, %v5592_v49  ;;  %v5621_v14 = vrot.slane %v5591_v41, 4  ;;  %v5622_v39 = vrot.slane %v5592_v49, 4 }
 0xada   : > { %v5617_v48 = vmul.f32 %v5615_v31, %v10476_v2  ;;  %v5618_v32 = vmul.f32 %v5616_v27, %v10478_v62 }
 0xadc   : > { %v5626_v33 = vadd.f32 %v5622_v39, %v5618_v32  ;;  %v5625_v7 = vadd.f32 %v5621_v14, %v5617_v48 }
 0xade   : > { %vm5628_vm14 = vcmp.ge.f32.partialorder %v5626_v33, 0.0  ;;  %v5630_v20 = vmul.f32 0.2, %v5626_v33  ;;  %vm5627_vm2 = vcmp.ge.f32.partialorder %v5625_v7, 0.0  ;;  %v5629_v43 = vmul.f32 0.2, %v5625_v7 }
 0xae0   : > { %v5632_v10 = vsel %vm5628_vm14, %v5626_v33, %v5630_v20  ;;  %v5631_v19 = vsel %vm5627_vm2, %v5625_v7, %v5629_v43 }
 0xae1   : > { %5637 = vrot.lane.b32.xlu1 %v5632_v10, %s10800_s20  ;;  %5635 = vrot.lane.b32.xlu0 %v5631_v19, %s10800_s20 }
 0xb53   : > { %v5638_v17 = vpop.permute.xlu1 %5637  ;;  %v5636_v52 = vpop.permute.xlu0 %5635 }
 0xb54   : > { %5645 = vst.msk [vmem:[#allocation2 + $0x10] sm:$0xf] %vm3132_vm1, %v5638_v17  ;;  %v5639_v2 = vsel %vm517_vm0, %v5636_v52, %v5638_v17 }
 0xb55   : > { %5643 = vst.msk [vmem:[#allocation2] sm:$0xf] %vm3129_vm15, %v5636_v52  ;;  %5644 = vst [vmem:[#allocation2 + $0x8] sm:$0xf] %v5639_v2 }
 0xb5b   : > { %v5649_v62 = vld [vmem:[#allocation2 + $0x10] sm:$0xf] }
 0xb5c   : > { %v5647_v4 = vld [vmem:[#allocation2] sm:$0xf]  ;;  %5659 = vrot.lane.b32.xlu1 %v5649_v62, %s10801_s21  ;;  %v5648_v37 = vld [vmem:[#allocation2 + $0x8] sm:$0xf] }
 0xb5d   : > { %5655 = vrot.lane.b32.xlu0 %v5647_v4, %s10801_s21 }
 0xb60   : > { %5788 = vrot.lane.b32.xlu1 %v5648_v37, %s10798_s22 }
 0xb61   : > { %5657 = vrot.lane.b32.xlu0 %v5648_v37, %s10801_s21 }
 0xb64   : > { %5786 = vrot.lane.b32.xlu1 %v5647_v4, %s10798_s22 }
 0xb65   : > { %5790 = vrot.lane.b32.xlu0 %v5649_v62, %s10798_s22 }
 0xb68   : > { %5916 = vrot.lane.b32.xlu1 %v5649_v62, %s10799_s23 }
 0xb69   : > { %5914 = vrot.lane.b32.xlu0 %v5648_v37, %s10799_s23 }
 0xb6c   : > { %5760 = vperm.xlu1 %6692, %v5646_v0  }
 0xb6d   : > { %5912 = vrot.lane.b32.xlu0 %v5647_v4, %s10799_s23 }
 0xbce   : > { %v5660_v46 = vpop.permute.xlu1 %5659 }
 0xbcf   : > { %v5656_v54 = vpop.permute.xlu0 %5655 }
 0xbd2   : > { %v5789_v12 = vpop.permute.xlu1 %5788 }
 0xbd3   : > { %v5658_v34 = vpop.permute.xlu0 %5657 }
 0xbd4   : > { %v5661_v15 = vsel %vm652_vm4, %v5656_v54, %v5658_v34  ;;  %v5662_v29 = vsel %vm652_vm4, %v5658_v34, %v5660_v46 }
 0xbd5   : > { %6221 = vmatprep.subr.msk.mxu0 %vm3063_vm12, %v5662_v29  ;;  %6586 = vmatprep.subr.msk.mxu1 %vm3063_vm12, %v5662_v29 }
 0xbd6   : > { %6222 = vmatpush1.msk.msra.mxu0 %vm3063_vm12, %v5661_v15  ;;  %6587 = vmatpush1.msk.msra.mxu1 %vm3063_vm12, %v5661_v15  ;;  %v5787_v44 = vpop.permute.xlu1 %5786 }
 0xbd7   : > { %6223 = vmatmul.mubr.msk.f32.vlgmr.msra.gmra.mrb[86].mxu0 %vm3151_vm13, %v5650_v63  ;;  %v5791_v57 = vpop.permute.xlu0 %5790  ;;  %6224 = vmatmul.mubr.msk.f32.vlgmr.msra.gmra.mrb[74].mxu1 %vm3151_vm13, %v5651_v1  ;;  %v5792_v47 = vsel %vm742_vm11, %v5787_v44, %v5789_v12 }
 0xbd8   : > { %v5793_v55 = vsel %vm742_vm11, %v5789_v12, %v5791_v57  ;;  %5868 = vmatprep.mubr.f32.mxu1 %v10803_v23 }
 0xbd9   : > { %6227 = vmatprep.subr.msk.mxu1 %vm3063_vm12, %v5793_v55 }
 0xbda   : > { %6228 = vmatpush1.msk.msra.mxu1 %vm3063_vm12, %v5792_v47  ;;  %v5917_v3 = vpop.permute.xlu1 %5916 }
 0xbdb   : > { %v5915_v11 = vpop.permute.xlu0 %5914  ;;  %6229 = vmatmul.mubr.msk.f32.vlgmr.msra.gmra.mrb[76].mxu1 %vm3151_vm13, %v6225_v40 }
 0xbdc   : > { %v5919_v35 = vsel %vm825_vm3, %v5915_v11, %v5917_v3  ;;  %5874 = vmatprep.mubr.f32.mxu1 %v10803_v23 }
 0xbdd   : > { %6233 = vmatprep.subr.msk.mxu1 %vm3063_vm12, %v5919_v35 }
 0xbdf   : > { %v5913_v56 = vpop.permute.xlu0 %5912  ;;  %6230 = vmatmul.mubr.msk.f32.gmra.mrb[78].mxu1 %vm3151_vm13, %v6226_v60 }
 0xbe0   : > { %v5918_v22 = vsel %vm825_vm3, %v5913_v56, %v5915_v11  ;;  %5994 = vmatprep.mubr.f32.mxu1 %v10803_v23 }
 0xbe1   : > { %6234 = vmatpush1.msk.msra.mxu1 %vm3063_vm12, %v5918_v22 }
 0xbe3   : > { %6235 = vmatmul.mubr.msk.f32.vlgmr.msra.gmra.mrb[80].mxu1 %vm3151_vm13, %v6231_v42 }
 0xbe4   : > { %6000 = vmatprep.mubr.f32.mxu1 %v10803_v23 }
 0xbe7   : > { %6236 = vmatmul.mubr.msk.f32.gmra.mrb[82].mxu1 %vm3151_vm13, %v6232_v5 }
 0xbeb   : > { %v5761_v16 = vpop.permute.xlu1 %5760 }
 0xcaa   : > { %v5739_v61 = vpop.f32.mrb[86].mxu0  ;;  %v5745_v6 = vpop.f32.mrb[74].mxu1 }
 0xcab   : > { %v5741_v13 = vpop.f32.mrb[87].mxu0  ;;  %5750 = vrot.lane.b32.xlu0 %v5739_v61, %s10795_s18  ;;  %v5747_v8 = vpop.f32.mrb[75].mxu1  ;;  %v5767_v27 = vrot.slane %v5739_v61, 4 }
 0xcac   : > { %5752 = vrot.lane.b32.xlu1 %v5741_v13, %s10795_s18  ;;  %v5768_v48 = vrot.slane %v5741_v13, 4 }
 0xcae   : > { %v5870_v9 = vpop.f32.mrb[76].mxu1 }
 0xcaf   : > { %5773 = vrot.lane.b32.xlu0 %v5745_v6, %s10796_s16  ;;  %v5872_v18 = vpop.f32.mrb[77].mxu1  ;;  %v5893_v12 = vrot.slane %v5870_v9, 4 }
 0xcb0   : > { %5775 = vrot.lane.b32.xlu1 %v5747_v8, %s10796_s16  ;;  %v5894_v34 = vrot.slane %v5872_v18, 4 }
 0xcb2   : > { %v5876_v23 = vpop.f32.mrb[78].mxu1 }
 0xcb3   : > { %5881 = vrot.lane.b32.xlu0 %v5870_v9, %s10795_s18  ;;  %v5878_v26 = vpop.f32.mrb[79].mxu1 }
 0xcb4   : > { %5883 = vrot.lane.b32.xlu1 %v5872_v18, %s10795_s18 }
 0xcb6   : > { %v10689_v21 = vpop.f32.mrb[80].mxu1 }
 0xcb7   : > { %5899 = vrot.lane.b32.xlu0 %v5876_v23, %s10796_s16  ;;  %v10692_v24 = vpop.f32.mrb[81].mxu1  ;;  %v6019_v6 = vrot.slane %v10689_v21, 4 }
 0xcb8   : > { %5901 = vrot.lane.b32.xlu1 %v5878_v26, %s10796_s16  ;;  %v6020_v13 = vrot.slane %v10692_v24, 4 }
 0xcba   : > { %v6002_v45 = vpop.f32.mrb[82].mxu1 }
 0xcbb   : > { %6007 = vrot.lane.b32.xlu0 %v10689_v21, %s10795_s18  ;;  %v6004_v28 = vpop.f32.mrb[83].mxu1 }
 0xcbc   : > { %6009 = vrot.lane.b32.xlu1 %v10692_v24, %s10795_s18  ;;  %v10806_v24 = vld [vmem:[#allocation5_spill] sm:$0xff]  ;;  %s10807_s18 = sshll.u32 %s10809_s30, 3 }
 0xcbd   : > { %s487_s22 = scalar_lea.vmem %s10763_s14, %s10807_s18 }
 0xcbf   : > { %6025 = vrot.lane.b32.xlu0 %v6002_v45, %s10796_s16 }
 0xcc0   : > { %6027 = vrot.lane.b32.xlu1 %v6004_v28, %s10796_s16 }
 0xd1d   : > { %v5751_v25 = vpop.permute.xlu0 %5750 }
 0xd1e   : > { %v5753_v30 = vpop.permute.xlu1 %5752 }
 0xd1f   : > { %v5754_v36 = vsel %vm591_vm7, %v5751_v25, %v5753_v30  ;;  %v5755_v53 = vsel %vm591_vm7, %v5753_v30, %v5751_v25  ;;  %v7659_v25 = vld [vmem:[%s8733_s26] sm:$0xff] }
 0xd20   : > { %v5756_v41 = vmul.f32 %v7922_v50, %v5755_v53  ;;  %v5757_v49 = vmul.f32 %v7925_v51, %v5754_v36 }
 0xd21   : > { %v5774_v31 = vpop.permute.xlu0 %5773 }
 0xd22   : > { %v5763_v32 = vadd.f32 %v5761_v16, %v5756_v41  ;;  %v5764_v14 = vadd.f32 %v5761_v16, %v5757_v49  ;;  %v5776_v39 = vpop.permute.xlu1 %5775 }
 0xd23   : > { %v5777_v33 = vsel %vm616_vm10, %v5774_v31, %v5776_v39  ;;  %v5778_v7 = vsel %vm616_vm10, %v5776_v39, %v5774_v31 }
 0xd24   : > { %v5771_v20 = vadd.f32 %v5767_v27, %v5763_v32  ;;  %v5772_v43 = vadd.f32 %v5768_v48, %v5764_v14  ;;  %v5779_v10 = vmul.f32 %v7943_v58, %v5777_v33  ;;  %v5780_v19 = vmul.f32 %v7946_v59, %v5778_v7 }
 0xd25   : > { %v5882_v17 = vpop.permute.xlu0 %5881 }
 0xd26   : > { %v5884_v52 = vpop.permute.xlu1 %5883  ;;  %v5781_v4 = vadd.f32 %v5779_v10, %v5771_v20  ;;  %v5782_v37 = vadd.f32 %v5780_v19, %v5772_v43 }
 0xd27   : > { %v5885_v2 = vsel %vm591_vm7, %v5882_v17, %v5884_v52  ;;  %v5886_v62 = vsel %vm591_vm7, %v5884_v52, %v5882_v17 }
 0xd28   : > { %v5887_v0 = vmul.f32 %v7922_v50, %v5886_v62  ;;  %v5888_v46 = vmul.f32 %v7925_v51, %v5885_v2 }
 0xd29   : > { %v5900_v54 = vpop.permute.xlu0 %5899 }
 0xd2a   : > { %v5889_v15 = vadd.f32 %v5887_v0, %v5781_v4  ;;  %v5890_v29 = vadd.f32 %v5888_v46, %v5782_v37  ;;  %v5902_v63 = vpop.permute.xlu1 %5901 }
 0xd2b   : > { %v5903_v1 = vsel %vm616_vm10, %v5900_v54, %v5902_v63  ;;  %v5904_v44 = vsel %vm616_vm10, %v5902_v63, %v5900_v54 }
 0xd2c   : > { %v5897_v57 = vadd.f32 %v5893_v12, %v5889_v15  ;;  %v5898_v47 = vadd.f32 %v5894_v34, %v5890_v29  ;;  %v5905_v55 = vmul.f32 %v7943_v58, %v5903_v1  ;;  %v5906_v40 = vmul.f32 %v7946_v59, %v5904_v44 }
 0xd2d   : > { %v6008_v3 = vpop.permute.xlu0 %6007 }
 0xd2e   : > { %v6010_v11 = vpop.permute.xlu1 %6009  ;;  %v5907_v56 = vadd.f32 %v5905_v55, %v5897_v57  ;;  %v5908_v22 = vadd.f32 %v5906_v40, %v5898_v47 }
 0xd2f   : > { %v6011_v35 = vsel %vm591_vm7, %v6008_v3, %v6010_v11  ;;  %v6012_v60 = vsel %vm591_vm7, %v6010_v11, %v6008_v3 }
 0xd30   : > { %v6013_v42 = vmul.f32 %v7922_v50, %v6012_v60  ;;  %v6014_v5 = vmul.f32 %v7925_v51, %v6011_v35 }
 0xd31   : > { %v6026_v61 = vpop.permute.xlu0 %6025 }
 0xd32   : > { %v6015_v8 = vadd.f32 %v6013_v42, %v5907_v56  ;;  %v6016_v9 = vadd.f32 %v6014_v5, %v5908_v22  ;;  %v6028_v18 = vpop.permute.xlu1 %6027 }
 0xd33   : > { %v6029_v23 = vsel %vm616_vm10, %v6026_v61, %v6028_v18  ;;  %v6030_v26 = vsel %vm616_vm10, %v6028_v18, %v6026_v61 }
 0xd34   : > { %v6023_v45 = vadd.f32 %v6019_v6, %v6015_v8  ;;  %v6024_v50 = vadd.f32 %v6020_v13, %v6016_v9  ;;  %v6031_v28 = vmul.f32 %v7943_v58, %v6029_v23  ;;  %v6032_v51 = vmul.f32 %v7946_v59, %v6030_v26 }
 0xd36   : > { %v6033_v16 = vadd.f32 %v6031_v28, %v6023_v45  ;;  %v6034_v21 = vadd.f32 %v6032_v51, %v6024_v50 }
 0xd38   : > { %v6035_v30 = vadd.f32 %v7659_v25, %v6033_v16  ;;  %v6036_v36 = vadd.f32 %v6034_v21, %v10806_v24 }
 0xd3a   : > { %v6039_v53 = vcombine.low %v6035_v30, %v6036_v36 }
 0xd3c   : > { %6041 = vst [vmem:[%s487_s22] sm:$0xff] %v6039_v53 }
 0xd3d PF: > { %s24_s29 = sadd.s32 1, %s7666_s29  }
 0xd3e   : > { %p21_p4 = scmp.ge.s32.totalorder %s24_s29, 4  }
 0xd40   :  { %23 = sbr.rel (!%p21_p4) target bundleno = 3 (0x3), region = 121 }

</bundles_post_ra>
